<compile_context>
chip_gen: v5e
topology: v5e:2x2
jax: 0.10.0
libtpu: 0.0.40
codegen_flags: <defaults>
</compile_context>

<pallas_src>
import jax
import jax.numpy as jnp
from jax import lax
from jax.experimental import pallas as pl
from jax.experimental.pallas import tpu as pltpu


def _elementwise_dtype():
    """bf16 elementwise softmax path on v6e/v7x (bf16 VPU+EUP); f32 on v5e/older."""
    try:
        kind = jax.devices()[0].device_kind.lower()
    except Exception:
        kind = ""
    if any(t in kind for t in ("v6", "v7", "tpu6", "tpu7")):
        return jnp.bfloat16
    return jnp.float32


# ----------------------------------------------------------------------------
# One GATConv layer, fully in-VMEM (called inside the fused kernel).
# ----------------------------------------------------------------------------
def _gat_layer(x, adj_e, w_ref, attd_ref, atts_ref, cmask_ref, ones_ref, bias_ref,
               *, heads, f_out, concat, apply_elu, ew_dtype):
    N = x.shape[0]
    H, F = heads, f_out
    HF = H * F
    bf16 = jnp.bfloat16
    use_bf16_ew = ew_dtype == bf16

    # Linear transform for all heads at once; bf16 inputs, f32 accumulate (MXU).
    xw = jnp.dot(x.astype(bf16), w_ref[...],
                 preferred_element_type=jnp.float32)                 # (N, H*F)
    xw_bf = xw.astype(bf16)

    # Batched attention coefficients for ALL heads, two lane-dense MXU ops:
    #   a_dst[i, h] = <xw_h[i], att_dst_h>,  a_src[h, j] = <xw_h[j], att_src_h>
    a_dst = jnp.dot(xw_bf, attd_ref[...],
                    preferred_element_type=jnp.float32)               # (N, H)
    # dot(atts, xw^T): the MXU takes the transposed RHS directly, no (N,HF) relayout.
    a_src = lax.dot_general(atts_ref[...], xw_bf,
                            (((1,), (1,)), ((), ())),
                            preferred_element_type=jnp.float32)       # (H, N)

    # Scalar row-max trick: LeakyReLU is monotone increasing, so
    #   max_j LReLU(a_dst[i,h] + a_src[h,j]) == LReLU(a_dst[i,h] + max_j a_src[h,j]).
    # This removes the per-head (N,N) cross-lane max reduction entirely.
    ms = jnp.max(a_src, axis=-1, keepdims=True)                       # (H, 1)

    cm = cmask_ref[...]                                               # (H, H*F) 0/1 bf16
    cm_e = cm if use_bf16_ew else cm.astype(jnp.float32)

    p_blocks, xh_blocks = [], []
    for h in range(H):
        ad_h = a_dst[:, h:h + 1]                                      # (N, 1) f32
        m_h = ad_h + ms[h:h + 1, :]                                   # (N, 1)
        m_h = jnp.maximum(m_h, 0.2 * m_h).astype(ew_dtype)            # LReLU of the row max
        # logits[i, j] = LeakyReLU(a_dst[i] + a_src[j]), slope 0.2, in ew_dtype.
        lg = ad_h.astype(ew_dtype) + a_src[h:h + 1, :].astype(ew_dtype)   # (N, N)
        lg = jnp.maximum(lg, 0.2 * lg)
        # Un-normalized masked softmax numerator; masking after exp keeps the
        # ratios exact, and self-loops guarantee a nonzero row sum.  The
        # 1/rowsum normalization is deferred past the aggregation matmul.
        p = jnp.exp(lg - m_h) * adj_e                                 # (N, N)
        p_blocks.append(p.astype(bf16))
        if H > 1:
            # Head-h columns selected with a 0/1 column mask (no lane-offset slicing).
            if use_bf16_ew:
                xh_blocks.append(xw_bf * cm_e[h:h + 1, :])
            else:
                xh_blocks.append((xw * cm_e[h:h + 1, :]).astype(bf16))

    if H > 1:
        # Fuse the H aggregation matmuls into one K=H*N contraction.  Both
        # concatenations are on 128-aligned block boundaries (layout-free).
        p_all = jnp.concatenate(p_blocks, axis=-1)                    # (N, H*N)
        xh_all = jnp.concatenate(xh_blocks, axis=0)                   # (H*N, H*F)
    else:
        p_all, xh_all = p_blocks[0], xw_bf

    num = jnp.dot(p_all, xh_all, preferred_element_type=jnp.float32)      # (N, H*F)
    # Per-head softmax row-sums on the MXU (block-indicator RHS) -> no XLU sum.
    rowsum = jnp.dot(p_all, ones_ref[...], preferred_element_type=jnp.float32)  # (N, H)
    inv = pl.reciprocal(jnp.maximum(rowsum, 1e-30), approx=True)          # (N, H)

    if H > 1:
        # Broadcast each head's 1/rowsum over its F output columns via the MXU.
        scale = jnp.dot(inv.astype(bf16), cm, preferred_element_type=jnp.float32)  # (N, H*F)
        out = num * scale
    else:
        out = num * inv
    # concat=False is only used with heads == 1 in this model (mean == identity).

    out = out + bias_ref[...]
    if apply_elu:
        out = jnp.where(out > 0.0, out, jnp.exp(out) - 1.0)           # F.elu
    return out


# ----------------------------------------------------------------------------
# Fused forward kernel: all GATConv layers + dense + log_softmax.
# ----------------------------------------------------------------------------
def _make_gat_forward_kernel(layer_cfgs, ew_dtype):
    n_layers = len(layer_cfgs)
    P = 6  # refs per layer: W, att_dst, att_src, col_mask, ones_ind, bias

    def kernel(*refs):
        x_ref, adj_ref = refs[0], refs[1]
        wd_ref, bd_ref = refs[2 + P * n_layers], refs[3 + P * n_layers]
        o_ref = refs[4 + P * n_layers]

        # adj stays int8 in HBM/DMA; cast once here (f32 on v5e, bf16 on v6e/v7x).
        adj_e = adj_ref[...].astype(jnp.float32)
        if ew_dtype != jnp.float32:
            adj_e = adj_e.astype(ew_dtype)

        x = x_ref[...]
        for l, cfg in enumerate(layer_cfgs):
            b = 2 + P * l
            x = _gat_layer(x, adj_e, refs[b], refs[b + 1], refs[b + 2],
                           refs[b + 3], refs[b + 4], refs[b + 5],
                           ew_dtype=ew_dtype, **cfg)

        # Final dense + log_softmax(dim=1), kept in f32 for the tiny head.
        logits = jnp.dot(x, wd_ref[...],
                         preferred_element_type=jnp.float32) + bd_ref[...]
        m = jnp.max(logits, axis=-1, keepdims=True)
        s = logits - m
        o_ref[...] = s - jnp.log(jnp.sum(jnp.exp(s), axis=-1, keepdims=True))

    return kernel


def _pack_layer_inputs(p, n_nodes):
    """Pack per-head att vectors / masks into block matrices for lane-dense MXU ops."""
    H, F = p["heads"], p["f_out"]
    hf = H * F
    attd = jnp.zeros((hf, H), jnp.float32)     # xw @ attd   -> (N, H)  alpha_dst
    atts = jnp.zeros((H, hf), jnp.float32)     # atts . xw^T -> (H, N)  alpha_src
    cmask = jnp.zeros((H, hf), jnp.float32)    # 0/1 column mask per head
    for h in range(H):
        attd = attd.at[h * F:(h + 1) * F, h].set(p["att_dst"][h])
        atts = atts.at[h, h * F:(h + 1) * F].set(p["att_src"][h])
        cmask = cmask.at[h, h * F:(h + 1) * F].set(1.0)
    # Block indicator ones_ind[h*N + j, h] = 1: per-head softmax row-sums via MXU.
    ones_ind = jnp.repeat(jnp.eye(H, dtype=jnp.float32), n_nodes, axis=0)  # (H*N, H)
    return [p["W"].astype(jnp.bfloat16), attd.astype(jnp.bfloat16),
            atts.astype(jnp.bfloat16), cmask.astype(jnp.bfloat16),
            ones_ind.astype(jnp.bfloat16), p["bias"]]


def gat_forward(x, adj_mask, params, ew_dtype=None):
    if ew_dtype is None:
        ew_dtype = _elementwise_dtype()

    layer_params = [params["att0"]] + list(params["hidden"]) + [params["att_out"]]
    n_layers = len(layer_params)
    N = x.shape[0]

    flat_inputs = [x, adj_mask]
    layer_cfgs = []
    for idx, p in enumerate(layer_params):
        is_out = idx == n_layers - 1
        if is_out:
            assert p["heads"] == 1  # out_attention: heads=1, concat=False
        flat_inputs += _pack_layer_inputs(p, N)
        layer_cfgs.append(dict(heads=p["heads"], f_out=p["f_out"],
                               concat=not is_out, apply_elu=not is_out))
    flat_inputs += [params["dense_W"], params["dense_b"]]

    C = params["dense_W"].shape[1]

    def full_spec(a):
        nd = a.ndim
        return pl.BlockSpec(a.shape, lambda i, _nd=nd: (0,) * _nd)

    # Single fused pallas_call: adj + every intermediate activation stays in
    # VMEM; only the (N, C) log-probs leave the chip.
    # TODO(synk): for much larger N (esp. v7x: 64 MiB VMEM, 2 TCs), split into
    # per-layer pallas_calls tiled over a "parallel" dst-row grid axis and
    # raise vmem_limit_bytes; unnecessary at N=128.
    return pl.pallas_call(
        _make_gat_forward_kernel(layer_cfgs, ew_dtype),
        out_shape=jax.ShapeDtypeStruct((N, C), jnp.float32),
        grid=(1,),
        in_specs=[full_spec(a) for a in flat_inputs],
        out_specs=pl.BlockSpec((N, C), lambda i: (0, 0)),
        compiler_params=pltpu.CompilerParams(
            dimension_semantics=("arbitrary",)),
    )(*flat_inputs)


def init_gatconv_params(key, f_in, f_out, heads):
    k1, k2, k3 = jax.random.split(key, 3)
    return {
        "W": 0.1 * jax.random.normal(k1, (f_in, heads * f_out), jnp.float32),
        "att_src": 0.1 * jax.random.normal(k2, (heads, f_out), jnp.float32),
        "att_dst": 0.1 * jax.random.normal(k3, (heads, f_out), jnp.float32),
        "bias": jnp.zeros((1, heads * f_out), jnp.float32),
        "heads": heads,
        "f_out": f_out,
    }


if __name__ == "__main__":
    # Model config (small, consistent with the module):
    #   in_channels=16, hid_units=[16, 16], n_heads=[4, 4], num_classes=8
    N = 128
    in_channels = 16
    hid_units = [16, 16]
    n_heads = [4, 4]
    num_classes = 8

    root = jax.random.PRNGKey(0)
    k_x, k_e, k_p0, k_p1, k_pout, k_d = jax.random.split(root, 6)

    # node features
    x = jax.random.normal(k_x, (N, in_channels), jnp.float32)

    # deterministic random edge_index [2, E] and dense int8 adjacency mask
    # adj[dst, src] = 1 (src -> dst), with self-loops.
    E = 512
    edge_index = jax.random.randint(k_e, (2, E), 0, N)
    adj = jnp.zeros((N, N), jnp.int8)
    adj = adj.at[edge_index[1], edge_index[0]].set(1)         # src -> dst
    adj = adj.at[jnp.arange(N), jnp.arange(N)].set(1)         # self-loops

    # parameters
    params = {
        "att0": init_gatconv_params(k_p0, in_channels, hid_units[0], n_heads[0]),
        "hidden": [
            init_gatconv_params(k_p1, hid_units[0] * n_heads[0],
                                hid_units[1], n_heads[1]),
        ],
        "att_out": init_gatconv_params(k_pout, hid_units[-1] * n_heads[-1],
                                       hid_units[-1], 1),
        # dense: Linear(hid_units[-1], num_classes); weight stored as (F, C)
        "dense_W": 0.1 * jax.random.normal(k_d, (hid_units[-1], num_classes),
                                           jnp.float32),
        "dense_b": jnp.zeros((1, num_classes), jnp.float32),
    }
    # out_attention has concat=False -> its bias is (out_channels,)
    params["att_out"]["bias"] = jnp.zeros((1, hid_units[-1]), jnp.float32)

    # TODO(synk): dropout on inputs/attention is identity here (eval mode).
    out = gat_forward(x, adj, params)
    out = jax.block_until_ready(out)
    assert out.shape == (N, num_classes)
    assert bool(jnp.all(jnp.isfinite(out)))
    # rows of log_softmax must (exp-)sum to ~1
    assert bool(jnp.allclose(jnp.sum(jnp.exp(out), axis=1), 1.0, atol=1e-4))
    print("KERNEL_OK")
</pallas_src>

<mosaic_0001>
module attributes {stable_mosaic.version = 11 : i64} {
  func.func @kernel(%arg0: i32, %arg1: memref<128x16xf32, #tpu.memory_space<vmem>>, %arg2: memref<128x128xi8, #tpu.memory_space<vmem>>, %arg3: memref<16x64xbf16, #tpu.memory_space<vmem>>, %arg4: memref<64x4xbf16, #tpu.memory_space<vmem>>, %arg5: memref<4x64xbf16, #tpu.memory_space<vmem>>, %arg6: memref<4x64xbf16, #tpu.memory_space<vmem>>, %arg7: memref<512x4xbf16, #tpu.memory_space<vmem>>, %arg8: memref<1x64xf32, #tpu.memory_space<vmem>>, %arg9: memref<64x64xbf16, #tpu.memory_space<vmem>>, %arg10: memref<64x4xbf16, #tpu.memory_space<vmem>>, %arg11: memref<4x64xbf16, #tpu.memory_space<vmem>>, %arg12: memref<4x64xbf16, #tpu.memory_space<vmem>>, %arg13: memref<512x4xbf16, #tpu.memory_space<vmem>>, %arg14: memref<1x64xf32, #tpu.memory_space<vmem>>, %arg15: memref<64x16xbf16, #tpu.memory_space<vmem>>, %arg16: memref<16x1xbf16, #tpu.memory_space<vmem>>, %arg17: memref<1x16xbf16, #tpu.memory_space<vmem>>, %arg18: memref<1x16xbf16, #tpu.memory_space<vmem>>, %arg19: memref<128x1xbf16, #tpu.memory_space<vmem>>, %arg20: memref<1x16xf32, #tpu.memory_space<vmem>>, %arg21: memref<16x8xf32, #tpu.memory_space<vmem>>, %arg22: memref<1x8xf32, #tpu.memory_space<vmem>>, %arg23: memref<128x8xf32, #tpu.memory_space<vmem>>) attributes {dimension_semantics = [#tpu.dimension_semantics<arbitrary>], iteration_bounds = array<i64: 1>, scalar_prefetch = 0 : i64, scratch_operands = 0 : i64, tpu.core_type = #tpu.core_type<tc>, window_params = [{pipeline_mode = #tpu.pipeline_mode<synchronous>, transform_indices = @transform_0, window_bounds = array<i64: 128, 16>}, {pipeline_mode = #tpu.pipeline_mode<synchronous>, transform_indices = @transform_1, window_bounds = array<i64: 128, 128>}, {pipeline_mode = #tpu.pipeline_mode<synchronous>, transform_indices = @transform_2, window_bounds = array<i64: 16, 64>}, {pipeline_mode = #tpu.pipeline_mode<synchronous>, transform_indices = @transform_3, window_bounds = array<i64: 64, 4>}, {pipeline_mode = #tpu.pipeline_mode<synchronous>, transform_indices = @transform_4, window_bounds = array<i64: 4, 64>}, {pipeline_mode = #tpu.pipeline_mode<synchronous>, transform_indices = @transform_5, window_bounds = array<i64: 4, 64>}, {pipeline_mode = #tpu.pipeline_mode<synchronous>, transform_indices = @transform_6, window_bounds = array<i64: 512, 4>}, {pipeline_mode = #tpu.pipeline_mode<synchronous>, transform_indices = @transform_7, window_bounds = array<i64: 1, 64>}, {pipeline_mode = #tpu.pipeline_mode<synchronous>, transform_indices = @transform_8, window_bounds = array<i64: 64, 64>}, {pipeline_mode = #tpu.pipeline_mode<synchronous>, transform_indices = @transform_9, window_bounds = array<i64: 64, 4>}, {pipeline_mode = #tpu.pipeline_mode<synchronous>, transform_indices = @transform_10, window_bounds = array<i64: 4, 64>}, {pipeline_mode = #tpu.pipeline_mode<synchronous>, transform_indices = @transform_11, window_bounds = array<i64: 4, 64>}, {pipeline_mode = #tpu.pipeline_mode<synchronous>, transform_indices = @transform_12, window_bounds = array<i64: 512, 4>}, {pipeline_mode = #tpu.pipeline_mode<synchronous>, transform_indices = @transform_13, window_bounds = array<i64: 1, 64>}, {pipeline_mode = #tpu.pipeline_mode<synchronous>, transform_indices = @transform_14, window_bounds = array<i64: 64, 16>}, {pipeline_mode = #tpu.pipeline_mode<synchronous>, transform_indices = @transform_15, window_bounds = array<i64: 16, 1>}, {pipeline_mode = #tpu.pipeline_mode<synchronous>, transform_indices = @transform_16, window_bounds = array<i64: 1, 16>}, {pipeline_mode = #tpu.pipeline_mode<synchronous>, transform_indices = @transform_17, window_bounds = array<i64: 1, 16>}, {pipeline_mode = #tpu.pipeline_mode<synchronous>, transform_indices = @transform_18, window_bounds = array<i64: 128, 1>}, {pipeline_mode = #tpu.pipeline_mode<synchronous>, transform_indices = @transform_19, window_bounds = array<i64: 1, 16>}, {pipeline_mode = #tpu.pipeline_mode<synchronous>, transform_indices = @transform_20, window_bounds = array<i64: 16, 8>}, {pipeline_mode = #tpu.pipeline_mode<synchronous>, transform_indices = @transform_21, window_bounds = array<i64: 1, 8>}, {pipeline_mode = #tpu.pipeline_mode<synchronous>, transform_indices = @transform_22, window_bounds = array<i64: 128, 8>}]} {
    %c0 = arith.constant 0 : index
    %c0_0 = arith.constant 0 : index
    %0 = vector.load %arg2[%c0, %c0_0] : memref<128x128xi8, #tpu.memory_space<vmem>>, vector<128x128xi8>
    %1 = arith.sitofp %0 : vector<128x128xi8> to vector<128x128xf32>
    %c0_1 = arith.constant 0 : index
    %c0_2 = arith.constant 0 : index
    %2 = vector.load %arg1[%c0_1, %c0_2] : memref<128x16xf32, #tpu.memory_space<vmem>>, vector<128x16xf32>
    %3 = arith.truncf %2 : vector<128x16xf32> to vector<128x16xbf16>
    %c0_3 = arith.constant 0 : index
    %c0_4 = arith.constant 0 : index
    %4 = vector.load %arg3[%c0_3, %c0_4] : memref<16x64xbf16, #tpu.memory_space<vmem>>, vector<16x64xbf16>
    %cst = arith.constant dense<0.000000e+00> : vector<128x64xf32>
    %5 = tpu.matmul %3, %4, %cst {dimension_numbers = #tpu.dot_dimension_numbers<[1], [0], [0], [1], [0, 0, 1, 1], [], []>} : vector<128x16xbf16>, vector<16x64xbf16>, vector<128x64xf32> -> vector<128x64xf32>
    %6 = arith.truncf %5 : vector<128x64xf32> to vector<128x64xbf16>
    %c0_5 = arith.constant 0 : index
    %c0_6 = arith.constant 0 : index
    %7 = vector.load %arg4[%c0_5, %c0_6] : memref<64x4xbf16, #tpu.memory_space<vmem>>, vector<64x4xbf16>
    %cst_7 = arith.constant dense<0.000000e+00> : vector<128x4xf32>
    %8 = tpu.matmul %6, %7, %cst_7 {dimension_numbers = #tpu.dot_dimension_numbers<[1], [0], [0], [1], [0, 0, 1, 1], [], []>} : vector<128x64xbf16>, vector<64x4xbf16>, vector<128x4xf32> -> vector<128x4xf32>
    %c0_8 = arith.constant 0 : index
    %c0_9 = arith.constant 0 : index
    %9 = vector.load %arg5[%c0_8, %c0_9] : memref<4x64xbf16, #tpu.memory_space<vmem>>, vector<4x64xbf16>
    %cst_10 = arith.constant dense<0.000000e+00> : vector<4x128xf32>
    %10 = tpu.matmul %9, %6, %cst_10 {dimension_numbers = #tpu.dot_dimension_numbers<[1], [1], [0], [0], [0, 0, 1, 0], [], []>} : vector<4x64xbf16>, vector<128x64xbf16>, vector<4x128xf32> -> vector<4x128xf32>
    %cst_11 = arith.constant dense<0xFF800000> : vector<4xf32>
    %11 = vector.multi_reduction <maximumf>, %10, %cst_11 [1] : vector<4x128xf32> to vector<4xf32>
    %12 = vector.shape_cast %11 : vector<4xf32> to vector<4x1xf32>
    %c0_12 = arith.constant 0 : index
    %c0_13 = arith.constant 0 : index
    %13 = vector.load %arg6[%c0_12, %c0_13] : memref<4x64xbf16, #tpu.memory_space<vmem>>, vector<4x64xbf16>
    %14 = arith.extf %13 : vector<4x64xbf16> to vector<4x64xf32>
    %15 = vector.extract_strided_slice %8 {offsets = [0, 0], sizes = [128, 1], strides = [1, 1]} : vector<128x4xf32> to vector<128x1xf32>
    %16 = vector.extract_strided_slice %12 {offsets = [0, 0], sizes = [1, 1], strides = [1, 1]} : vector<4x1xf32> to vector<1x1xf32>
    %17 = vector.broadcast %16 : vector<1x1xf32> to vector<128x1xf32>
    %18 = arith.addf %15, %17 : vector<128x1xf32>
    %cst_14 = arith.constant 2.000000e-01 : f32
    %19 = vector.broadcast %cst_14 : f32 to vector<128x1xf32>
    %20 = arith.mulf %19, %18 : vector<128x1xf32>
    %21 = arith.maximumf %18, %20 : vector<128x1xf32>
    %22 = vector.extract_strided_slice %10 {offsets = [0, 0], sizes = [1, 128], strides = [1, 1]} : vector<4x128xf32> to vector<1x128xf32>
    %23 = vector.broadcast %15 : vector<128x1xf32> to vector<128x128xf32>
    %24 = vector.broadcast %22 : vector<1x128xf32> to vector<128x128xf32>
    %25 = arith.addf %23, %24 : vector<128x128xf32>
    %cst_15 = arith.constant 2.000000e-01 : f32
    %26 = vector.broadcast %cst_15 : f32 to vector<128x128xf32>
    %27 = arith.mulf %26, %25 : vector<128x128xf32>
    %28 = arith.maximumf %25, %27 : vector<128x128xf32>
    %29 = vector.broadcast %21 : vector<128x1xf32> to vector<128x128xf32>
    %30 = arith.subf %28, %29 : vector<128x128xf32>
    %31 = math.exp %30 : vector<128x128xf32>
    %32 = arith.mulf %31, %1 : vector<128x128xf32>
    %33 = arith.truncf %32 : vector<128x128xf32> to vector<128x128xbf16>
    %34 = vector.extract_strided_slice %14 {offsets = [0, 0], sizes = [1, 64], strides = [1, 1]} : vector<4x64xf32> to vector<1x64xf32>
    %35 = vector.broadcast %34 : vector<1x64xf32> to vector<128x64xf32>
    %36 = arith.mulf %5, %35 : vector<128x64xf32>
    %37 = arith.truncf %36 : vector<128x64xf32> to vector<128x64xbf16>
    %38 = vector.extract_strided_slice %8 {offsets = [0, 1], sizes = [128, 1], strides = [1, 1]} : vector<128x4xf32> to vector<128x1xf32>
    %39 = vector.extract_strided_slice %12 {offsets = [1, 0], sizes = [1, 1], strides = [1, 1]} : vector<4x1xf32> to vector<1x1xf32>
    %40 = vector.broadcast %39 : vector<1x1xf32> to vector<128x1xf32>
    %41 = arith.addf %38, %40 : vector<128x1xf32>
    %cst_16 = arith.constant 2.000000e-01 : f32
    %42 = vector.broadcast %cst_16 : f32 to vector<128x1xf32>
    %43 = arith.mulf %42, %41 : vector<128x1xf32>
    %44 = arith.maximumf %41, %43 : vector<128x1xf32>
    %45 = vector.extract_strided_slice %10 {offsets = [1, 0], sizes = [1, 128], strides = [1, 1]} : vector<4x128xf32> to vector<1x128xf32>
    %46 = vector.broadcast %38 : vector<128x1xf32> to vector<128x128xf32>
    %47 = vector.broadcast %45 : vector<1x128xf32> to vector<128x128xf32>
    %48 = arith.addf %46, %47 : vector<128x128xf32>
    %cst_17 = arith.constant 2.000000e-01 : f32
    %49 = vector.broadcast %cst_17 : f32 to vector<128x128xf32>
    %50 = arith.mulf %49, %48 : vector<128x128xf32>
    %51 = arith.maximumf %48, %50 : vector<128x128xf32>
    %52 = vector.broadcast %44 : vector<128x1xf32> to vector<128x128xf32>
    %53 = arith.subf %51, %52 : vector<128x128xf32>
    %54 = math.exp %53 : vector<128x128xf32>
    %55 = arith.mulf %54, %1 : vector<128x128xf32>
    %56 = arith.truncf %55 : vector<128x128xf32> to vector<128x128xbf16>
    %57 = vector.extract_strided_slice %14 {offsets = [1, 0], sizes = [1, 64], strides = [1, 1]} : vector<4x64xf32> to vector<1x64xf32>
    %58 = vector.broadcast %57 : vector<1x64xf32> to vector<128x64xf32>
    %59 = arith.mulf %5, %58 : vector<128x64xf32>
    %60 = arith.truncf %59 : vector<128x64xf32> to vector<128x64xbf16>
    %61 = vector.extract_strided_slice %8 {offsets = [0, 2], sizes = [128, 1], strides = [1, 1]} : vector<128x4xf32> to vector<128x1xf32>
    %62 = vector.extract_strided_slice %12 {offsets = [2, 0], sizes = [1, 1], strides = [1, 1]} : vector<4x1xf32> to vector<1x1xf32>
    %63 = vector.broadcast %62 : vector<1x1xf32> to vector<128x1xf32>
    %64 = arith.addf %61, %63 : vector<128x1xf32>
    %cst_18 = arith.constant 2.000000e-01 : f32
    %65 = vector.broadcast %cst_18 : f32 to vector<128x1xf32>
    %66 = arith.mulf %65, %64 : vector<128x1xf32>
    %67 = arith.maximumf %64, %66 : vector<128x1xf32>
    %68 = vector.extract_strided_slice %10 {offsets = [2, 0], sizes = [1, 128], strides = [1, 1]} : vector<4x128xf32> to vector<1x128xf32>
    %69 = vector.broadcast %61 : vector<128x1xf32> to vector<128x128xf32>
    %70 = vector.broadcast %68 : vector<1x128xf32> to vector<128x128xf32>
    %71 = arith.addf %69, %70 : vector<128x128xf32>
    %cst_19 = arith.constant 2.000000e-01 : f32
    %72 = vector.broadcast %cst_19 : f32 to vector<128x128xf32>
    %73 = arith.mulf %72, %71 : vector<128x128xf32>
    %74 = arith.maximumf %71, %73 : vector<128x128xf32>
    %75 = vector.broadcast %67 : vector<128x1xf32> to vector<128x128xf32>
    %76 = arith.subf %74, %75 : vector<128x128xf32>
    %77 = math.exp %76 : vector<128x128xf32>
    %78 = arith.mulf %77, %1 : vector<128x128xf32>
    %79 = arith.truncf %78 : vector<128x128xf32> to vector<128x128xbf16>
    %80 = vector.extract_strided_slice %14 {offsets = [2, 0], sizes = [1, 64], strides = [1, 1]} : vector<4x64xf32> to vector<1x64xf32>
    %81 = vector.broadcast %80 : vector<1x64xf32> to vector<128x64xf32>
    %82 = arith.mulf %5, %81 : vector<128x64xf32>
    %83 = arith.truncf %82 : vector<128x64xf32> to vector<128x64xbf16>
    %84 = vector.extract_strided_slice %8 {offsets = [0, 3], sizes = [128, 1], strides = [1, 1]} : vector<128x4xf32> to vector<128x1xf32>
    %85 = vector.extract_strided_slice %12 {offsets = [3, 0], sizes = [1, 1], strides = [1, 1]} : vector<4x1xf32> to vector<1x1xf32>
    %86 = vector.broadcast %85 : vector<1x1xf32> to vector<128x1xf32>
    %87 = arith.addf %84, %86 : vector<128x1xf32>
    %cst_20 = arith.constant 2.000000e-01 : f32
    %88 = vector.broadcast %cst_20 : f32 to vector<128x1xf32>
    %89 = arith.mulf %88, %87 : vector<128x1xf32>
    %90 = arith.maximumf %87, %89 : vector<128x1xf32>
    %91 = vector.extract_strided_slice %10 {offsets = [3, 0], sizes = [1, 128], strides = [1, 1]} : vector<4x128xf32> to vector<1x128xf32>
    %92 = vector.broadcast %84 : vector<128x1xf32> to vector<128x128xf32>
    %93 = vector.broadcast %91 : vector<1x128xf32> to vector<128x128xf32>
    %94 = arith.addf %92, %93 : vector<128x128xf32>
    %cst_21 = arith.constant 2.000000e-01 : f32
    %95 = vector.broadcast %cst_21 : f32 to vector<128x128xf32>
    %96 = arith.mulf %95, %94 : vector<128x128xf32>
    %97 = arith.maximumf %94, %96 : vector<128x128xf32>
    %98 = vector.broadcast %90 : vector<128x1xf32> to vector<128x128xf32>
    %99 = arith.subf %97, %98 : vector<128x128xf32>
    %100 = math.exp %99 : vector<128x128xf32>
    %101 = arith.mulf %100, %1 : vector<128x128xf32>
    %102 = arith.truncf %101 : vector<128x128xf32> to vector<128x128xbf16>
    %103 = vector.extract_strided_slice %14 {offsets = [3, 0], sizes = [1, 64], strides = [1, 1]} : vector<4x64xf32> to vector<1x64xf32>
    %104 = vector.broadcast %103 : vector<1x64xf32> to vector<128x64xf32>
    %105 = arith.mulf %5, %104 : vector<128x64xf32>
    %106 = arith.truncf %105 : vector<128x64xf32> to vector<128x64xbf16>
    %107 = tpu.concatenate %33, %56, %79, %102 in 1 : vector<128x128xbf16>, vector<128x128xbf16>, vector<128x128xbf16>, vector<128x128xbf16> -> vector<128x512xbf16>
    %108 = tpu.concatenate %37, %60, %83, %106 in 0 : vector<128x64xbf16>, vector<128x64xbf16>, vector<128x64xbf16>, vector<128x64xbf16> -> vector<512x64xbf16>
    %cst_22 = arith.constant dense<0.000000e+00> : vector<128x64xf32>
    %109 = tpu.matmul %107, %108, %cst_22 {dimension_numbers = #tpu.dot_dimension_numbers<[1], [0], [0], [1], [0, 0, 1, 1], [], []>} : vector<128x512xbf16>, vector<512x64xbf16>, vector<128x64xf32> -> vector<128x64xf32>
    %c0_23 = arith.constant 0 : index
    %c0_24 = arith.constant 0 : index
    %110 = vector.load %arg7[%c0_23, %c0_24] : memref<512x4xbf16, #tpu.memory_space<vmem>>, vector<512x4xbf16>
    %cst_25 = arith.constant dense<0.000000e+00> : vector<128x4xf32>
    %111 = tpu.matmul %107, %110, %cst_25 {dimension_numbers = #tpu.dot_dimension_numbers<[1], [0], [0], [1], [0, 0, 1, 1], [], []>} : vector<128x512xbf16>, vector<512x4xbf16>, vector<128x4xf32> -> vector<128x4xf32>
    %cst_26 = arith.constant 1.000000e-30 : f32
    %112 = vector.broadcast %cst_26 : f32 to vector<128x4xf32>
    %113 = arith.maximumf %111, %112 : vector<128x4xf32>
    %114 = tpu.reciprocal %113 {approx = true} : vector<128x4xf32> -> vector<128x4xf32>
    %115 = arith.truncf %114 : vector<128x4xf32> to vector<128x4xbf16>
    %cst_27 = arith.constant dense<0.000000e+00> : vector<128x64xf32>
    %116 = tpu.matmul %115, %13, %cst_27 {dimension_numbers = #tpu.dot_dimension_numbers<[1], [0], [0], [1], [0, 0, 1, 1], [], []>} : vector<128x4xbf16>, vector<4x64xbf16>, vector<128x64xf32> -> vector<128x64xf32>
    %117 = arith.mulf %109, %116 : vector<128x64xf32>
    %c0_28 = arith.constant 0 : index
    %c0_29 = arith.constant 0 : index
    %118 = vector.load %arg8[%c0_28, %c0_29] : memref<1x64xf32, #tpu.memory_space<vmem>>, vector<1x64xf32>
    %119 = vector.broadcast %118 : vector<1x64xf32> to vector<128x64xf32>
    %120 = arith.addf %117, %119 : vector<128x64xf32>
    %cst_30 = arith.constant 0.000000e+00 : f32
    %121 = vector.broadcast %cst_30 : f32 to vector<128x64xf32>
    %122 = arith.cmpf ogt, %120, %121 : vector<128x64xf32>
    %123 = math.exp %120 : vector<128x64xf32>
    %cst_31 = arith.constant 1.000000e+00 : f32
    %124 = vector.broadcast %cst_31 : f32 to vector<128x64xf32>
    %125 = arith.subf %123, %124 : vector<128x64xf32>
    %126 = arith.select %122, %120, %125 : vector<128x64xi1>, vector<128x64xf32>
    %127 = arith.truncf %126 : vector<128x64xf32> to vector<128x64xbf16>
    %c0_32 = arith.constant 0 : index
    %c0_33 = arith.constant 0 : index
    %128 = vector.load %arg9[%c0_32, %c0_33] : memref<64x64xbf16, #tpu.memory_space<vmem>>, vector<64x64xbf16>
    %cst_34 = arith.constant dense<0.000000e+00> : vector<128x64xf32>
    %129 = tpu.matmul %127, %128, %cst_34 {dimension_numbers = #tpu.dot_dimension_numbers<[1], [0], [0], [1], [0, 0, 1, 1], [], []>} : vector<128x64xbf16>, vector<64x64xbf16>, vector<128x64xf32> -> vector<128x64xf32>
    %130 = arith.truncf %129 : vector<128x64xf32> to vector<128x64xbf16>
    %c0_35 = arith.constant 0 : index
    %c0_36 = arith.constant 0 : index
    %131 = vector.load %arg10[%c0_35, %c0_36] : memref<64x4xbf16, #tpu.memory_space<vmem>>, vector<64x4xbf16>
    %cst_37 = arith.constant dense<0.000000e+00> : vector<128x4xf32>
    %132 = tpu.matmul %130, %131, %cst_37 {dimension_numbers = #tpu.dot_dimension_numbers<[1], [0], [0], [1], [0, 0, 1, 1], [], []>} : vector<128x64xbf16>, vector<64x4xbf16>, vector<128x4xf32> -> vector<128x4xf32>
    %c0_38 = arith.constant 0 : index
    %c0_39 = arith.constant 0 : index
    %133 = vector.load %arg11[%c0_38, %c0_39] : memref<4x64xbf16, #tpu.memory_space<vmem>>, vector<4x64xbf16>
    %cst_40 = arith.constant dense<0.000000e+00> : vector<4x128xf32>
    %134 = tpu.matmul %133, %130, %cst_40 {dimension_numbers = #tpu.dot_dimension_numbers<[1], [1], [0], [0], [0, 0, 1, 0], [], []>} : vector<4x64xbf16>, vector<128x64xbf16>, vector<4x128xf32> -> vector<4x128xf32>
    %cst_41 = arith.constant dense<0xFF800000> : vector<4xf32>
    %135 = vector.multi_reduction <maximumf>, %134, %cst_41 [1] : vector<4x128xf32> to vector<4xf32>
    %136 = vector.shape_cast %135 : vector<4xf32> to vector<4x1xf32>
    %c0_42 = arith.constant 0 : index
    %c0_43 = arith.constant 0 : index
    %137 = vector.load %arg12[%c0_42, %c0_43] : memref<4x64xbf16, #tpu.memory_space<vmem>>, vector<4x64xbf16>
    %138 = arith.extf %137 : vector<4x64xbf16> to vector<4x64xf32>
    %139 = vector.extract_strided_slice %132 {offsets = [0, 0], sizes = [128, 1], strides = [1, 1]} : vector<128x4xf32> to vector<128x1xf32>
    %140 = vector.extract_strided_slice %136 {offsets = [0, 0], sizes = [1, 1], strides = [1, 1]} : vector<4x1xf32> to vector<1x1xf32>
    %141 = vector.broadcast %140 : vector<1x1xf32> to vector<128x1xf32>
    %142 = arith.addf %139, %141 : vector<128x1xf32>
    %cst_44 = arith.constant 2.000000e-01 : f32
    %143 = vector.broadcast %cst_44 : f32 to vector<128x1xf32>
    %144 = arith.mulf %143, %142 : vector<128x1xf32>
    %145 = arith.maximumf %142, %144 : vector<128x1xf32>
    %146 = vector.extract_strided_slice %134 {offsets = [0, 0], sizes = [1, 128], strides = [1, 1]} : vector<4x128xf32> to vector<1x128xf32>
    %147 = vector.broadcast %139 : vector<128x1xf32> to vector<128x128xf32>
    %148 = vector.broadcast %146 : vector<1x128xf32> to vector<128x128xf32>
    %149 = arith.addf %147, %148 : vector<128x128xf32>
    %cst_45 = arith.constant 2.000000e-01 : f32
    %150 = vector.broadcast %cst_45 : f32 to vector<128x128xf32>
    %151 = arith.mulf %150, %149 : vector<128x128xf32>
    %152 = arith.maximumf %149, %151 : vector<128x128xf32>
    %153 = vector.broadcast %145 : vector<128x1xf32> to vector<128x128xf32>
    %154 = arith.subf %152, %153 : vector<128x128xf32>
    %155 = math.exp %154 : vector<128x128xf32>
    %156 = arith.mulf %155, %1 : vector<128x128xf32>
    %157 = arith.truncf %156 : vector<128x128xf32> to vector<128x128xbf16>
    %158 = vector.extract_strided_slice %138 {offsets = [0, 0], sizes = [1, 64], strides = [1, 1]} : vector<4x64xf32> to vector<1x64xf32>
    %159 = vector.broadcast %158 : vector<1x64xf32> to vector<128x64xf32>
    %160 = arith.mulf %129, %159 : vector<128x64xf32>
    %161 = arith.truncf %160 : vector<128x64xf32> to vector<128x64xbf16>
    %162 = vector.extract_strided_slice %132 {offsets = [0, 1], sizes = [128, 1], strides = [1, 1]} : vector<128x4xf32> to vector<128x1xf32>
    %163 = vector.extract_strided_slice %136 {offsets = [1, 0], sizes = [1, 1], strides = [1, 1]} : vector<4x1xf32> to vector<1x1xf32>
    %164 = vector.broadcast %163 : vector<1x1xf32> to vector<128x1xf32>
    %165 = arith.addf %162, %164 : vector<128x1xf32>
    %cst_46 = arith.constant 2.000000e-01 : f32
    %166 = vector.broadcast %cst_46 : f32 to vector<128x1xf32>
    %167 = arith.mulf %166, %165 : vector<128x1xf32>
    %168 = arith.maximumf %165, %167 : vector<128x1xf32>
    %169 = vector.extract_strided_slice %134 {offsets = [1, 0], sizes = [1, 128], strides = [1, 1]} : vector<4x128xf32> to vector<1x128xf32>
    %170 = vector.broadcast %162 : vector<128x1xf32> to vector<128x128xf32>
    %171 = vector.broadcast %169 : vector<1x128xf32> to vector<128x128xf32>
    %172 = arith.addf %170, %171 : vector<128x128xf32>
    %cst_47 = arith.constant 2.000000e-01 : f32
    %173 = vector.broadcast %cst_47 : f32 to vector<128x128xf32>
    %174 = arith.mulf %173, %172 : vector<128x128xf32>
    %175 = arith.maximumf %172, %174 : vector<128x128xf32>
    %176 = vector.broadcast %168 : vector<128x1xf32> to vector<128x128xf32>
    %177 = arith.subf %175, %176 : vector<128x128xf32>
    %178 = math.exp %177 : vector<128x128xf32>
    %179 = arith.mulf %178, %1 : vector<128x128xf32>
    %180 = arith.truncf %179 : vector<128x128xf32> to vector<128x128xbf16>
    %181 = vector.extract_strided_slice %138 {offsets = [1, 0], sizes = [1, 64], strides = [1, 1]} : vector<4x64xf32> to vector<1x64xf32>
    %182 = vector.broadcast %181 : vector<1x64xf32> to vector<128x64xf32>
    %183 = arith.mulf %129, %182 : vector<128x64xf32>
    %184 = arith.truncf %183 : vector<128x64xf32> to vector<128x64xbf16>
    %185 = vector.extract_strided_slice %132 {offsets = [0, 2], sizes = [128, 1], strides = [1, 1]} : vector<128x4xf32> to vector<128x1xf32>
    %186 = vector.extract_strided_slice %136 {offsets = [2, 0], sizes = [1, 1], strides = [1, 1]} : vector<4x1xf32> to vector<1x1xf32>
    %187 = vector.broadcast %186 : vector<1x1xf32> to vector<128x1xf32>
    %188 = arith.addf %185, %187 : vector<128x1xf32>
    %cst_48 = arith.constant 2.000000e-01 : f32
    %189 = vector.broadcast %cst_48 : f32 to vector<128x1xf32>
    %190 = arith.mulf %189, %188 : vector<128x1xf32>
    %191 = arith.maximumf %188, %190 : vector<128x1xf32>
    %192 = vector.extract_strided_slice %134 {offsets = [2, 0], sizes = [1, 128], strides = [1, 1]} : vector<4x128xf32> to vector<1x128xf32>
    %193 = vector.broadcast %185 : vector<128x1xf32> to vector<128x128xf32>
    %194 = vector.broadcast %192 : vector<1x128xf32> to vector<128x128xf32>
    %195 = arith.addf %193, %194 : vector<128x128xf32>
    %cst_49 = arith.constant 2.000000e-01 : f32
    %196 = vector.broadcast %cst_49 : f32 to vector<128x128xf32>
    %197 = arith.mulf %196, %195 : vector<128x128xf32>
    %198 = arith.maximumf %195, %197 : vector<128x128xf32>
    %199 = vector.broadcast %191 : vector<128x1xf32> to vector<128x128xf32>
    %200 = arith.subf %198, %199 : vector<128x128xf32>
    %201 = math.exp %200 : vector<128x128xf32>
    %202 = arith.mulf %201, %1 : vector<128x128xf32>
    %203 = arith.truncf %202 : vector<128x128xf32> to vector<128x128xbf16>
    %204 = vector.extract_strided_slice %138 {offsets = [2, 0], sizes = [1, 64], strides = [1, 1]} : vector<4x64xf32> to vector<1x64xf32>
    %205 = vector.broadcast %204 : vector<1x64xf32> to vector<128x64xf32>
    %206 = arith.mulf %129, %205 : vector<128x64xf32>
    %207 = arith.truncf %206 : vector<128x64xf32> to vector<128x64xbf16>
    %208 = vector.extract_strided_slice %132 {offsets = [0, 3], sizes = [128, 1], strides = [1, 1]} : vector<128x4xf32> to vector<128x1xf32>
    %209 = vector.extract_strided_slice %136 {offsets = [3, 0], sizes = [1, 1], strides = [1, 1]} : vector<4x1xf32> to vector<1x1xf32>
    %210 = vector.broadcast %209 : vector<1x1xf32> to vector<128x1xf32>
    %211 = arith.addf %208, %210 : vector<128x1xf32>
    %cst_50 = arith.constant 2.000000e-01 : f32
    %212 = vector.broadcast %cst_50 : f32 to vector<128x1xf32>
    %213 = arith.mulf %212, %211 : vector<128x1xf32>
    %214 = arith.maximumf %211, %213 : vector<128x1xf32>
    %215 = vector.extract_strided_slice %134 {offsets = [3, 0], sizes = [1, 128], strides = [1, 1]} : vector<4x128xf32> to vector<1x128xf32>
    %216 = vector.broadcast %208 : vector<128x1xf32> to vector<128x128xf32>
    %217 = vector.broadcast %215 : vector<1x128xf32> to vector<128x128xf32>
    %218 = arith.addf %216, %217 : vector<128x128xf32>
    %cst_51 = arith.constant 2.000000e-01 : f32
    %219 = vector.broadcast %cst_51 : f32 to vector<128x128xf32>
    %220 = arith.mulf %219, %218 : vector<128x128xf32>
    %221 = arith.maximumf %218, %220 : vector<128x128xf32>
    %222 = vector.broadcast %214 : vector<128x1xf32> to vector<128x128xf32>
    %223 = arith.subf %221, %222 : vector<128x128xf32>
    %224 = math.exp %223 : vector<128x128xf32>
    %225 = arith.mulf %224, %1 : vector<128x128xf32>
    %226 = arith.truncf %225 : vector<128x128xf32> to vector<128x128xbf16>
    %227 = vector.extract_strided_slice %138 {offsets = [3, 0], sizes = [1, 64], strides = [1, 1]} : vector<4x64xf32> to vector<1x64xf32>
    %228 = vector.broadcast %227 : vector<1x64xf32> to vector<128x64xf32>
    %229 = arith.mulf %129, %228 : vector<128x64xf32>
    %230 = arith.truncf %229 : vector<128x64xf32> to vector<128x64xbf16>
    %231 = tpu.concatenate %157, %180, %203, %226 in 1 : vector<128x128xbf16>, vector<128x128xbf16>, vector<128x128xbf16>, vector<128x128xbf16> -> vector<128x512xbf16>
    %232 = tpu.concatenate %161, %184, %207, %230 in 0 : vector<128x64xbf16>, vector<128x64xbf16>, vector<128x64xbf16>, vector<128x64xbf16> -> vector<512x64xbf16>
    %cst_52 = arith.constant dense<0.000000e+00> : vector<128x64xf32>
    %233 = tpu.matmul %231, %232, %cst_52 {dimension_numbers = #tpu.dot_dimension_numbers<[1], [0], [0], [1], [0, 0, 1, 1], [], []>} : vector<128x512xbf16>, vector<512x64xbf16>, vector<128x64xf32> -> vector<128x64xf32>
    %c0_53 = arith.constant 0 : index
    %c0_54 = arith.constant 0 : index
    %234 = vector.load %arg13[%c0_53, %c0_54] : memref<512x4xbf16, #tpu.memory_space<vmem>>, vector<512x4xbf16>
    %cst_55 = arith.constant dense<0.000000e+00> : vector<128x4xf32>
    %235 = tpu.matmul %231, %234, %cst_55 {dimension_numbers = #tpu.dot_dimension_numbers<[1], [0], [0], [1], [0, 0, 1, 1], [], []>} : vector<128x512xbf16>, vector<512x4xbf16>, vector<128x4xf32> -> vector<128x4xf32>
    %cst_56 = arith.constant 1.000000e-30 : f32
    %236 = vector.broadcast %cst_56 : f32 to vector<128x4xf32>
    %237 = arith.maximumf %235, %236 : vector<128x4xf32>
    %238 = tpu.reciprocal %237 {approx = true} : vector<128x4xf32> -> vector<128x4xf32>
    %239 = arith.truncf %238 : vector<128x4xf32> to vector<128x4xbf16>
    %cst_57 = arith.constant dense<0.000000e+00> : vector<128x64xf32>
    %240 = tpu.matmul %239, %137, %cst_57 {dimension_numbers = #tpu.dot_dimension_numbers<[1], [0], [0], [1], [0, 0, 1, 1], [], []>} : vector<128x4xbf16>, vector<4x64xbf16>, vector<128x64xf32> -> vector<128x64xf32>
    %241 = arith.mulf %233, %240 : vector<128x64xf32>
    %c0_58 = arith.constant 0 : index
    %c0_59 = arith.constant 0 : index
    %242 = vector.load %arg14[%c0_58, %c0_59] : memref<1x64xf32, #tpu.memory_space<vmem>>, vector<1x64xf32>
    %243 = vector.broadcast %242 : vector<1x64xf32> to vector<128x64xf32>
    %244 = arith.addf %241, %243 : vector<128x64xf32>
    %cst_60 = arith.constant 0.000000e+00 : f32
    %245 = vector.broadcast %cst_60 : f32 to vector<128x64xf32>
    %246 = arith.cmpf ogt, %244, %245 : vector<128x64xf32>
    %247 = math.exp %244 : vector<128x64xf32>
    %cst_61 = arith.constant 1.000000e+00 : f32
    %248 = vector.broadcast %cst_61 : f32 to vector<128x64xf32>
    %249 = arith.subf %247, %248 : vector<128x64xf32>
    %250 = arith.select %246, %244, %249 : vector<128x64xi1>, vector<128x64xf32>
    %251 = arith.truncf %250 : vector<128x64xf32> to vector<128x64xbf16>
    %c0_62 = arith.constant 0 : index
    %c0_63 = arith.constant 0 : index
    %252 = vector.load %arg15[%c0_62, %c0_63] : memref<64x16xbf16, #tpu.memory_space<vmem>>, vector<64x16xbf16>
    %cst_64 = arith.constant dense<0.000000e+00> : vector<128x16xf32>
    %253 = tpu.matmul %251, %252, %cst_64 {dimension_numbers = #tpu.dot_dimension_numbers<[1], [0], [0], [1], [0, 0, 1, 1], [], []>} : vector<128x64xbf16>, vector<64x16xbf16>, vector<128x16xf32> -> vector<128x16xf32>
    %254 = arith.truncf %253 : vector<128x16xf32> to vector<128x16xbf16>
    %c0_65 = arith.constant 0 : index
    %c0_66 = arith.constant 0 : index
    %255 = vector.load %arg16[%c0_65, %c0_66] : memref<16x1xbf16, #tpu.memory_space<vmem>>, vector<16x1xbf16>
    %cst_67 = arith.constant dense<0.000000e+00> : vector<128x1xf32>
    %256 = tpu.matmul %254, %255, %cst_67 {dimension_numbers = #tpu.dot_dimension_numbers<[1], [0], [0], [1], [0, 0, 1, 1], [], []>} : vector<128x16xbf16>, vector<16x1xbf16>, vector<128x1xf32> -> vector<128x1xf32>
    %c0_68 = arith.constant 0 : index
    %c0_69 = arith.constant 0 : index
    %257 = vector.load %arg17[%c0_68, %c0_69] : memref<1x16xbf16, #tpu.memory_space<vmem>>, vector<1x16xbf16>
    %cst_70 = arith.constant dense<0.000000e+00> : vector<1x128xf32>
    %258 = tpu.matmul %257, %254, %cst_70 {dimension_numbers = #tpu.dot_dimension_numbers<[1], [1], [0], [0], [0, 0, 1, 0], [], []>} : vector<1x16xbf16>, vector<128x16xbf16>, vector<1x128xf32> -> vector<1x128xf32>
    %cst_71 = arith.constant dense<0xFF800000> : vector<1xf32>
    %259 = vector.multi_reduction <maximumf>, %258, %cst_71 [1] : vector<1x128xf32> to vector<1xf32>
    %260 = vector.shape_cast %259 : vector<1xf32> to vector<1x1xf32>
    %261 = vector.broadcast %260 : vector<1x1xf32> to vector<128x1xf32>
    %262 = arith.addf %256, %261 : vector<128x1xf32>
    %cst_72 = arith.constant 2.000000e-01 : f32
    %263 = vector.broadcast %cst_72 : f32 to vector<128x1xf32>
    %264 = arith.mulf %263, %262 : vector<128x1xf32>
    %265 = arith.maximumf %262, %264 : vector<128x1xf32>
    %266 = vector.broadcast %256 : vector<128x1xf32> to vector<128x128xf32>
    %267 = vector.broadcast %258 : vector<1x128xf32> to vector<128x128xf32>
    %268 = arith.addf %266, %267 : vector<128x128xf32>
    %cst_73 = arith.constant 2.000000e-01 : f32
    %269 = vector.broadcast %cst_73 : f32 to vector<128x128xf32>
    %270 = arith.mulf %269, %268 : vector<128x128xf32>
    %271 = arith.maximumf %268, %270 : vector<128x128xf32>
    %272 = vector.broadcast %265 : vector<128x1xf32> to vector<128x128xf32>
    %273 = arith.subf %271, %272 : vector<128x128xf32>
    %274 = math.exp %273 : vector<128x128xf32>
    %275 = arith.mulf %274, %1 : vector<128x128xf32>
    %276 = arith.truncf %275 : vector<128x128xf32> to vector<128x128xbf16>
    %cst_74 = arith.constant dense<0.000000e+00> : vector<128x16xf32>
    %277 = tpu.matmul %276, %254, %cst_74 {dimension_numbers = #tpu.dot_dimension_numbers<[1], [0], [0], [1], [0, 0, 1, 1], [], []>} : vector<128x128xbf16>, vector<128x16xbf16>, vector<128x16xf32> -> vector<128x16xf32>
    %c0_75 = arith.constant 0 : index
    %c0_76 = arith.constant 0 : index
    %278 = vector.load %arg19[%c0_75, %c0_76] : memref<128x1xbf16, #tpu.memory_space<vmem>>, vector<128x1xbf16>
    %cst_77 = arith.constant dense<0.000000e+00> : vector<128x1xf32>
    %279 = tpu.matmul %276, %278, %cst_77 {dimension_numbers = #tpu.dot_dimension_numbers<[1], [0], [0], [1], [0, 0, 1, 1], [], []>} : vector<128x128xbf16>, vector<128x1xbf16>, vector<128x1xf32> -> vector<128x1xf32>
    %cst_78 = arith.constant 1.000000e-30 : f32
    %280 = vector.broadcast %cst_78 : f32 to vector<128x1xf32>
    %281 = arith.maximumf %279, %280 : vector<128x1xf32>
    %282 = tpu.reciprocal %281 {approx = true} : vector<128x1xf32> -> vector<128x1xf32>
    %283 = vector.broadcast %282 : vector<128x1xf32> to vector<128x16xf32>
    %284 = arith.mulf %277, %283 : vector<128x16xf32>
    %c0_79 = arith.constant 0 : index
    %c0_80 = arith.constant 0 : index
    %285 = vector.load %arg20[%c0_79, %c0_80] : memref<1x16xf32, #tpu.memory_space<vmem>>, vector<1x16xf32>
    %286 = vector.broadcast %285 : vector<1x16xf32> to vector<128x16xf32>
    %287 = arith.addf %284, %286 : vector<128x16xf32>
    %c0_81 = arith.constant 0 : index
    %c0_82 = arith.constant 0 : index
    %288 = vector.load %arg21[%c0_81, %c0_82] : memref<16x8xf32, #tpu.memory_space<vmem>>, vector<16x8xf32>
    %cst_83 = arith.constant dense<0.000000e+00> : vector<128x8xf32>
    %289 = tpu.matmul %287, %288, %cst_83 {dimension_numbers = #tpu.dot_dimension_numbers<[1], [0], [0], [1], [0, 0, 1, 1], [], []>} : vector<128x16xf32>, vector<16x8xf32>, vector<128x8xf32> -> vector<128x8xf32>
    %c0_84 = arith.constant 0 : index
    %c0_85 = arith.constant 0 : index
    %290 = vector.load %arg22[%c0_84, %c0_85] : memref<1x8xf32, #tpu.memory_space<vmem>>, vector<1x8xf32>
    %291 = vector.broadcast %290 : vector<1x8xf32> to vector<128x8xf32>
    %292 = arith.addf %289, %291 : vector<128x8xf32>
    %cst_86 = arith.constant dense<0xFF800000> : vector<128xf32>
    %293 = vector.multi_reduction <maximumf>, %292, %cst_86 [1] : vector<128x8xf32> to vector<128xf32>
    %294 = vector.shape_cast %293 : vector<128xf32> to vector<128x1xf32>
    %295 = vector.broadcast %294 : vector<128x1xf32> to vector<128x8xf32>
    %296 = arith.subf %292, %295 : vector<128x8xf32>
    %297 = math.exp %296 : vector<128x8xf32>
    %cst_87 = arith.constant dense<0.000000e+00> : vector<128xf32>
    %298 = vector.multi_reduction <add>, %297, %cst_87 [1] : vector<128x8xf32> to vector<128xf32>
    %299 = vector.shape_cast %298 : vector<128xf32> to vector<128x1xf32>
    %300 = math.log %299 : vector<128x1xf32>
    %301 = vector.broadcast %300 : vector<128x1xf32> to vector<128x8xf32>
    %302 = arith.subf %296, %301 : vector<128x8xf32>
    %c0_88 = arith.constant 0 : index
    %c0_89 = arith.constant 0 : index
    %303 = vector.load %arg23[%c0_88, %c0_89] : memref<128x8xf32, #tpu.memory_space<vmem>>, vector<128x8xf32>
    tpu.vector_store %arg23[%c0_88, %c0_89], %302 {strides = array<i32>} : memref<128x8xf32, #tpu.memory_space<vmem>>, vector<128x8xf32>,
    return
  }
  func.func @transform_0(%arg0: i32) -> (i32, i32) {
    %c0_i32 = arith.constant 0 : i32
    %c0_i32_0 = arith.constant 0 : i32
    %c0_i32_1 = arith.constant 0 : i32
    return %c0_i32, %c0_i32_0 : i32, i32
  }
  func.func @transform_1(%arg0: i32) -> (i32, i32) {
    %c0_i32 = arith.constant 0 : i32
    %c0_i32_0 = arith.constant 0 : i32
    %c0_i32_1 = arith.constant 0 : i32
    return %c0_i32, %c0_i32_0 : i32, i32
  }
  func.func @transform_2(%arg0: i32) -> (i32, i32) {
    %c0_i32 = arith.constant 0 : i32
    %c0_i32_0 = arith.constant 0 : i32
    %c0_i32_1 = arith.constant 0 : i32
    return %c0_i32, %c0_i32_0 : i32, i32
  }
  func.func @transform_3(%arg0: i32) -> (i32, i32) {
    %c0_i32 = arith.constant 0 : i32
    %c0_i32_0 = arith.constant 0 : i32
    %c0_i32_1 = arith.constant 0 : i32
    return %c0_i32, %c0_i32_0 : i32, i32
  }
  func.func @transform_4(%arg0: i32) -> (i32, i32) {
    %c0_i32 = arith.constant 0 : i32
    %c0_i32_0 = arith.constant 0 : i32
    %c0_i32_1 = arith.constant 0 : i32
    return %c0_i32, %c0_i32_0 : i32, i32
  }
  func.func @transform_5(%arg0: i32) -> (i32, i32) {
    %c0_i32 = arith.constant 0 : i32
    %c0_i32_0 = arith.constant 0 : i32
    %c0_i32_1 = arith.constant 0 : i32
    return %c0_i32, %c0_i32_0 : i32, i32
  }
  func.func @transform_6(%arg0: i32) -> (i32, i32) {
    %c0_i32 = arith.constant 0 : i32
    %c0_i32_0 = arith.constant 0 : i32
    %c0_i32_1 = arith.constant 0 : i32
    return %c0_i32, %c0_i32_0 : i32, i32
  }
  func.func @transform_7(%arg0: i32) -> (i32, i32) {
    %c0_i32 = arith.constant 0 : i32
    %c0_i32_0 = arith.constant 0 : i32
    %c0_i32_1 = arith.constant 0 : i32
    return %c0_i32, %c0_i32_0 : i32, i32
  }
  func.func @transform_8(%arg0: i32) -> (i32, i32) {
    %c0_i32 = arith.constant 0 : i32
    %c0_i32_0 = arith.constant 0 : i32
    %c0_i32_1 = arith.constant 0 : i32
    return %c0_i32, %c0_i32_0 : i32, i32
  }
  func.func @transform_9(%arg0: i32) -> (i32, i32) {
    %c0_i32 = arith.constant 0 : i32
    %c0_i32_0 = arith.constant 0 : i32
    %c0_i32_1 = arith.constant 0 : i32
    return %c0_i32, %c0_i32_0 : i32, i32
  }
  func.func @transform_10(%arg0: i32) -> (i32, i32) {
    %c0_i32 = arith.constant 0 : i32
    %c0_i32_0 = arith.constant 0 : i32
    %c0_i32_1 = arith.constant 0 : i32
    return %c0_i32, %c0_i32_0 : i32, i32
  }
  func.func @transform_11(%arg0: i32) -> (i32, i32) {
    %c0_i32 = arith.constant 0 : i32
    %c0_i32_0 = arith.constant 0 : i32
    %c0_i32_1 = arith.constant 0 : i32
    return %c0_i32, %c0_i32_0 : i32, i32
  }
  func.func @transform_12(%arg0: i32) -> (i32, i32) {
    %c0_i32 = arith.constant 0 : i32
    %c0_i32_0 = arith.constant 0 : i32
    %c0_i32_1 = arith.constant 0 : i32
    return %c0_i32, %c0_i32_0 : i32, i32
  }
  func.func @transform_13(%arg0: i32) -> (i32, i32) {
    %c0_i32 = arith.constant 0 : i32
    %c0_i32_0 = arith.constant 0 : i32
    %c0_i32_1 = arith.constant 0 : i32
    return %c0_i32, %c0_i32_0 : i32, i32
  }
  func.func @transform_14(%arg0: i32) -> (i32, i32) {
    %c0_i32 = arith.constant 0 : i32
    %c0_i32_0 = arith.constant 0 : i32
    %c0_i32_1 = arith.constant 0 : i32
    return %c0_i32, %c0_i32_0 : i32, i32
  }
  func.func @transform_15(%arg0: i32) -> (i32, i32) {
    %c0_i32 = arith.constant 0 : i32
    %c0_i32_0 = arith.constant 0 : i32
    %c0_i32_1 = arith.constant 0 : i32
    return %c0_i32, %c0_i32_0 : i32, i32
  }
  func.func @transform_16(%arg0: i32) -> (i32, i32) {
    %c0_i32 = arith.constant 0 : i32
    %c0_i32_0 = arith.constant 0 : i32
    %c0_i32_1 = arith.constant 0 : i32
    return %c0_i32, %c0_i32_0 : i32, i32
  }
  func.func @transform_17(%arg0: i32) -> (i32, i32) {
    %c0_i32 = arith.constant 0 : i32
    %c0_i32_0 = arith.constant 0 : i32
    %c0_i32_1 = arith.constant 0 : i32
    return %c0_i32, %c0_i32_0 : i32, i32
  }
  func.func @transform_18(%arg0: i32) -> (i32, i32) {
    %c0_i32 = arith.constant 0 : i32
    %c0_i32_0 = arith.constant 0 : i32
    %c0_i32_1 = arith.constant 0 : i32
    return %c0_i32, %c0_i32_0 : i32, i32
  }
  func.func @transform_19(%arg0: i32) -> (i32, i32) {
    %c0_i32 = arith.constant 0 : i32
    %c0_i32_0 = arith.constant 0 : i32
    %c0_i32_1 = arith.constant 0 : i32
    return %c0_i32, %c0_i32_0 : i32, i32
  }
  func.func @transform_20(%arg0: i32) -> (i32, i32) {
    %c0_i32 = arith.constant 0 : i32
    %c0_i32_0 = arith.constant 0 : i32
    %c0_i32_1 = arith.constant 0 : i32
    return %c0_i32, %c0_i32_0 : i32, i32
  }
  func.func @transform_21(%arg0: i32) -> (i32, i32) {
    %c0_i32 = arith.constant 0 : i32
    %c0_i32_0 = arith.constant 0 : i32
    %c0_i32_1 = arith.constant 0 : i32
    return %c0_i32, %c0_i32_0 : i32, i32
  }
  func.func @transform_22(%arg0: i32) -> (i32, i32) {
    %c0_i32 = arith.constant 0 : i32
    %c0_i32_0 = arith.constant 0 : i32
    %c0_i32_1 = arith.constant 0 : i32
    return %c0_i32, %c0_i32_0 : i32, i32
  }
}

</mosaic_0001>

<bundles_post_ra>
// kernel: tpu_custom_call.1
= control target key start
LH: loop header
LB: loop body
LE: loop exit
PB: predicated region body
PF: predicated region fallthrough
CT: control target
= control target key end

     0   :  { %vm140_vm0 = vcmask 130048   ;;  %vm254_vm1 = vcmask 523264   ;;  %v12099_v50 = vmov 2   ;;  %v12101_v51 = vmov 1   ;;  %s12072_s2 = inlined_call_operand.vmem [shape: bf16[16,64], index: 2, kind: input, shape index: {}]   ;;  %s12073_s17 = inlined_call_operand.vmem [shape: bf16[1,16], index: 17, kind: input, shape index: {}]   ;;  %s12074_s0 = inlined_call_operand.vmem [shape: f32[128,16], index: 0, kind: input, shape index: {}]   ;;  %s12075_s3 = inlined_call_operand.vmem [shape: bf16[64,4], index: 3, kind: input, shape index: {}]   ;;  %s12076_s5 = inlined_call_operand.vmem [shape: bf16[4,64], index: 5, kind: input, shape index: {}]   ;;  %s12077_s4 = inlined_call_operand.vmem [shape: bf16[4,64], index: 4, kind: input, shape index: {}]   ;;  %s12078_s1 = inlined_call_operand.vmem [shape: s8[128,128], index: 1, kind: input, shape index: {}]   ;;  %s12079_s6 = inlined_call_operand.vmem [shape: bf16[512,4], index: 6, kind: input, shape index: {}]   ;;  %s12080_s7 = inlined_call_operand.vmem [shape: f32[1,64], index: 7, kind: input, shape index: {}]   ;;  %s12081_s8 = inlined_call_operand.vmem [shape: bf16[64,64], index: 8, kind: input, shape index: {}]   ;;  %s12082_s9 = inlined_call_operand.vmem [shape: bf16[64,4], index: 9, kind: input, shape index: {}]   ;;  %s12083_s11 = inlined_call_operand.vmem [shape: bf16[4,64], index: 11, kind: input, shape index: {}]   ;;  %s12084_s10 = inlined_call_operand.vmem [shape: bf16[4,64], index: 10, kind: input, shape index: {}]   ;;  %s12085_s12 = inlined_call_operand.vmem [shape: bf16[512,4], index: 12, kind: input, shape index: {}]   ;;  %s12086_s13 = inlined_call_operand.vmem [shape: f32[1,64], index: 13, kind: input, shape index: {}]   ;;  %s12087_s14 = inlined_call_operand.vmem [shape: bf16[64,16], index: 14, kind: input, shape index: {}]   ;;  %s12088_s15 = inlined_call_operand.vmem [shape: bf16[16,1], index: 15, kind: input, shape index: {}]   ;;  %s12089_s16 = inlined_call_operand.vmem [shape: bf16[1,16], index: 16, kind: input, shape index: {}]   ;;  %s12090_s18 = inlined_call_operand.vmem [shape: bf16[128,1], index: 18, kind: input, shape index: {}]   ;;  %s12091_s19 = inlined_call_operand.vmem [shape: f32[1,16], index: 19, kind: input, shape index: {}]   ;;  %s12092_s20 = inlined_call_operand.vmem [shape: f32[16,8], index: 20, kind: input, shape index: {}]   ;;  %s12093_s21 = inlined_call_operand.vmem [shape: f32[1,8], index: 21, kind: input, shape index: {}]   ;;  %s12094_s22 = inlined_call_operand.vmem [shape: f32[128,8], index: 22, kind: output, shape index: {}]  }
   0x1   :  { %12181 = sst [smem:[#allocation59_spill]] %s12072_s2  ;;  %7772 = vset.pattern.permute.xlu2 %v12099_v50  ;;  %7771 = vset.pattern.permute.xlu1 %v12101_v51  ;;  %v12103_v53 = vmov 0   ;;  %vm345_vm2 = vcmask 1043456   ;;  %vm2884_vm3 = vcmask 1041408   ;;  %vm2859_vm4 = vcmask 31744  }
   0x2   :  { %12182 = sst [smem:[#allocation60_spill]] %s12074_s0  ;;  %7770 = vset.pattern.permute.xlu0 %v12103_v53 }
   0x3   :  { %12183 = sst [smem:[#allocation61_spill]] %s12075_s3 }
   0x4   :  { %12184 = sst [smem:[#allocation62_spill]] %s12076_s5 }
   0x5   :  { %12185 = sst [smem:[#allocation63_spill]] %s12077_s4 }
   0x6   :  { %12186 = sst [smem:[#allocation64_spill]] %s12078_s1 }
   0x7   :  { %12187 = sst [smem:[#allocation65_spill]] %s12089_s16 }
   0x8   :  { %s12188_s29 = sld [smem:[#allocation59_spill]] }
   0x9   :  { %s12189_s16 = sld [smem:[#allocation60_spill]] }
   0xa   :  { %s12190_s27 = sld [smem:[#allocation61_spill]] }
   0xb   :  { %s12203_s3 = sld [smem:[#allocation62_spill]] }
   0xc   :  { %s12227_s30 = sld [smem:[#allocation63_spill]] }
   0xd   :  { %s12279_s4 = sld [smem:[#allocation64_spill]] }
   0xe   :  { %v7671_v0 = vld [vmem:[%s12188_s29] sm:$0xff]  ;;  %s12470_s0 = sld [smem:[#allocation65_spill]] }
   0xf   :  { %v108_v1 = vld [vmem:[%s12189_s16] sm:$0xff]  ;;  %v109_v2 = vld [vmem:[%s12189_s16 + $0x8] sm:$0xff]  ;;  %172 = vmatpush.bf16.msra.mxu0 %v7671_v0  ;;  %v110_v4 = vld [vmem:[%s12189_s16 + $0x10] sm:$0xff] }
  0x10   :  { %v124_v3 = vpack.c.bf16 %v109_v2, %v108_v1  ;;  %v111_v5 = vld [vmem:[%s12189_s16 + $0x18] sm:$0xff]  ;;  %v112_v7 = vld [vmem:[%s12189_s16 + $0x20] sm:$0xff]  ;;  %v113_v8 = vld [vmem:[%s12189_s16 + $0x28] sm:$0xff] }
  0x11   :  { %v125_v6 = vpack.c.bf16 %v111_v5, %v110_v4  ;;  %v126_v9 = vpack.c.bf16 %v113_v8, %v112_v7  ;;  %v114_v10 = vld [vmem:[%s12189_s16 + $0x30] sm:$0xff]  ;;  %v115_v11 = vld [vmem:[%s12189_s16 + $0x38] sm:$0xff]  ;;  %v116_v13 = vld [vmem:[%s12189_s16 + $0x40] sm:$0xff] }
  0x12   :  { %7200 = vmatmul.msk.bf16.vlgmr.msra.gmra.mxu0 %vm140_vm0, %v124_v3  ;;  %v127_v12 = vpack.c.bf16 %v115_v11, %v114_v10  ;;  %v117_v14 = vld [vmem:[%s12189_s16 + $0x48] sm:$0xff]  ;;  %v118_v16 = vld [vmem:[%s12189_s16 + $0x50] sm:$0xff]  ;;  %v119_v17 = vld [vmem:[%s12189_s16 + $0x58] sm:$0xff] }
  0x13   :  { %v128_v15 = vpack.c.bf16 %v117_v14, %v116_v13  ;;  %v129_v18 = vpack.c.bf16 %v119_v17, %v118_v16  ;;  %v7675_v19 = vld [vmem:[%s12190_s27 + $0x18] sm:$0xff]  ;;  %v120_v20 = vld [vmem:[%s12189_s16 + $0x60] sm:$0xff]  ;;  %v121_v21 = vld [vmem:[%s12189_s16 + $0x68] sm:$0xff] }
  0x14   :  { %283 = vmatpush.bf16.msra.mxu1 %v7675_v19  ;;  %7761 = vmatpush.bf16.msra.mxu2 %v7675_v19  ;;  %v7674_v22 = vld [vmem:[%s12190_s27 + $0x10] sm:$0xff]  ;;  %v130_v23 = vpack.c.bf16 %v121_v21, %v120_v20  ;;  %v7673_v24 = vld [vmem:[%s12190_s27 + $0x8] sm:$0xff]  ;;  %v7672_v25 = vld [vmem:[%s12190_s27] sm:$0xff] }
  0x15   :  { %v122_v26 = vld [vmem:[%s12189_s16 + $0x70] sm:$0xff]  ;;  %v123_v27 = vld [vmem:[%s12189_s16 + $0x78] sm:$0xff]  ;;  %v349_v48 = vld [vmem:[%s12203_s3] sm:$0x3] }
  0x16   :  { %v131_v28 = vpack.c.bf16 %v123_v27, %v122_v26  ;;  %v8794_v49 = vunpack.c.l.bf16 %v349_v48 }
  0x18   :  { %284 = vmatpush.bf16.msra.mxu1 %v7674_v22  ;;  %7762 = vmatpush.bf16.msra.mxu2 %v7674_v22  ;;  %12204 = vst [vmem:[#allocation14_spill] sm:$0xff] %v8794_v49  ;;  %v689_v55 = vperm.slane %v8794_v49, 0  ;;  %v8809_v56 = vperm.slane %v8794_v49, 2  ;;  %v8812_v57 = vperm.slane %v8794_v49, 3 }
  0x1c   :  { %285 = vmatpush.bf16.msra.mxu1 %v7673_v24  ;;  %7763 = vmatpush.bf16.msra.mxu2 %v7673_v24 }
  0x20   :  { %286 = vmatpush.bf16.msra.mxu1 %v7672_v25  ;;  %7764 = vmatpush.bf16.msra.mxu2 %v7672_v25 }
  0x22   :  { %7201 = vmatmul.msk.bf16.gmra.mxu0 %vm140_vm0, %v125_v6 }
  0x32   :  { %7202 = vmatmul.msk.bf16.gmra.mxu0 %vm140_vm0, %v126_v9 }
  0x42   :  { %7203 = vmatmul.msk.bf16.gmra.mxu0 %vm140_vm0, %v127_v12 }
  0x52   :  { %7204 = vmatmul.msk.bf16.gmra.mxu0 %vm140_vm0, %v128_v15 }
  0x62   :  { %7205 = vmatmul.msk.bf16.gmra.mxu0 %vm140_vm0, %v129_v18 }
  0x72   :  { %7206 = vmatmul.msk.bf16.gmra.mxu0 %vm140_vm0, %v130_v23 }
  0x82   :  { %7207 = vmatmul.msk.bf16.gmra.mxu0 %vm140_vm0, %v131_v28 }
  0x8f   :  { %v8729_v29 = vpop.f32.mrf.mxu0 }
  0x90   :  { %12191 = vst [vmem:[#allocation2_spill] sm:$0xff] %v8729_v29  ;;  %v8815_v58 = vmul.f32 %v689_v55, %v8729_v29  ;;  %v8822_v60 = vmul.f32 %v8809_v56, %v8729_v29  ;;  %v8826_v61 = vmul.f32 %v8812_v57, %v8729_v29 }
  0x92   :  { %12206 = vst [vmem:[#allocation16_spill] sm:$0xff] %v8815_v58 }
  0x93   :  { %12207 = vst [vmem:[#allocation17_spill] sm:$0xff] %v8822_v60 }
  0x94   :  { %12208 = vst [vmem:[#allocation18_spill] sm:$0xff] %v8826_v61 }
  0x97   :  { %v8731_v30 = vpop.f32.mrf.mxu0 }
  0x98   :  { %12192 = vst [vmem:[#allocation3_spill] sm:$0xff] %v8731_v30  ;;  %v8735_v31 = vpack.c.bf16 %v8731_v30, %v8729_v29  ;;  %v8818_v59 = vmul.f32 %v689_v55, %v8731_v30  ;;  %v8839_v1 = vmul.f32 %v8809_v56, %v8731_v30  ;;  %v8843_v2 = vmul.f32 %v8812_v57, %v8731_v30 }
  0x9a   :  { %12193 = vst [vmem:[#allocation4_spill] sm:$0xff] %v8735_v31  ;;  %7224 = vmatmul.msk.bf16.vlgmr.msra.gmra.mxu1 %vm254_vm1, %v8735_v31 }
  0x9f   :  { %v8739_v32 = vpop.f32.mrf.mxu0 }
  0xa0   :  { %12194 = vst [vmem:[#allocation5_spill] sm:$0xff] %v8739_v32  ;;  %v8831_v63 = vmul.f32 %v689_v55, %v8739_v32  ;;  %v8835_v0 = vmul.f32 %v8809_v56, %v8739_v32  ;;  %v8854_v5 = vmul.f32 %v8812_v57, %v8739_v32 }
  0xa7   :  { %v8741_v33 = vpop.f32.mrf.mxu0 }
  0xa8   :  { %12195 = vst [vmem:[#allocation6_spill] sm:$0xff] %v8741_v33  ;;  %v8745_v34 = vpack.c.bf16 %v8741_v33, %v8739_v32  ;;  %v8846_v3 = vmul.f32 %v689_v55, %v8741_v33  ;;  %v8850_v4 = vmul.f32 %v8809_v56, %v8741_v33  ;;  %v8858_v6 = vmul.f32 %v8812_v57, %v8741_v33 }
  0xaa   :  { %12196 = vst [vmem:[#allocation7_spill] sm:$0xff] %v8745_v34  ;;  %7225 = vmatmul.msk.bf16.gmra.mxu1 %vm254_vm1, %v8745_v34 }
  0xaf   :  { %v8749_v35 = vpop.f32.mrf.mxu0 }
  0xb0   :  { %12197 = vst [vmem:[#allocation8_spill] sm:$0xff] %v8749_v35  ;;  %v8861_v7 = vmul.f32 %v689_v55, %v8749_v35  ;;  %v8868_v9 = vmul.f32 %v8809_v56, %v8749_v35  ;;  %v8872_v10 = vmul.f32 %v8812_v57, %v8749_v35 }
  0xb7   :  { %v8751_v36 = vpop.f32.mrf.mxu0 }
  0xb8   :  { %12198 = vst [vmem:[#allocation9_spill] sm:$0xff] %v8751_v36  ;;  %v8755_v37 = vpack.c.bf16 %v8751_v36, %v8749_v35  ;;  %v8864_v8 = vmul.f32 %v689_v55, %v8751_v36  ;;  %v8883_v13 = vmul.f32 %v8809_v56, %v8751_v36  ;;  %v8887_v14 = vmul.f32 %v8812_v57, %v8751_v36 }
  0xba   :  { %12199 = vst [vmem:[#allocation10_spill] sm:$0xff] %v8755_v37  ;;  %7226 = vmatmul.msk.bf16.vlgmr.msra.gmra.mxu2 %vm254_vm1, %v8755_v37 }
  0xbf   :  { %v8759_v38 = vpop.f32.mrf.mxu0 }
  0xc0   :  { %v8875_v11 = vmul.f32 %v689_v55, %v8759_v38  ;;  %v8879_v12 = vmul.f32 %v8809_v56, %v8759_v38 }
  0xc7   :  { %v8761_v39 = vpop.f32.mrf.mxu0 }
  0xc8   :  { %v8765_v40 = vpack.c.bf16 %v8761_v39, %v8759_v38  ;;  %v8895_v18 = vmul.f32 %v689_v55, %v8761_v39  ;;  %v8909_v22 = vmul.f32 %v8809_v56, %v8761_v39 }
  0xca   :  { %12200 = vst [vmem:[#allocation11_spill] sm:$0xff] %v8765_v40  ;;  %7227 = vmatmul.msk.bf16.gmra.mxu2 %vm254_vm1, %v8765_v40 }
  0xcf   :  { %v8769_v41 = vpop.f32.mrf.mxu0 }
  0xd0   :  { %v8898_v19 = vmul.f32 %v689_v55, %v8769_v41  ;;  %v8905_v21 = vmul.f32 %v8809_v56, %v8769_v41 }
  0xd7   :  { %v8771_v42 = vpop.f32.mrf.mxu0 }
  0xd8   :  { %v8775_v43 = vpack.c.bf16 %v8771_v42, %v8769_v41  ;;  %v8901_v20 = vmul.f32 %v689_v55, %v8771_v42 }
  0xda   :  { %7228 = vmatmul.msk.bf16.gmra.mxu2 %vm254_vm1, %v8775_v43 }
  0xdf   :  { %v8779_v44 = vpop.f32.mrf.mxu0 }
  0xe0   :  { %v8916_v26 = vmul.f32 %v689_v55, %v8779_v44 }
  0xe7   :  { %v8781_v45 = vpop.f32.mrf.mxu0 }
  0xe8   :  { %12201 = vst [vmem:[#allocation12_spill] sm:$0xff] %v8781_v45  ;;  %v8785_v46 = vpack.c.bf16 %v8781_v45, %v8779_v44  ;;  %v701_v28 = vmul.f32 %v689_v55, %v8781_v45  ;;  %v8923_v48 = vmul.f32 %v8809_v56, %v8781_v45  ;;  %v8927_v50 = vmul.f32 %v8812_v57, %v8781_v45 }
  0xea   :  { %7229 = vmatmul.msk.bf16.gmra.mxu2 %vm254_vm1, %v8785_v46 }
  0xef   :  { %v8789_v47 = vpop.f32.mrf.mxu0 }
  0xf0   :  { %12202 = vst [vmem:[#allocation13_spill] sm:$0xff] %v8789_v47  ;;  %v702_v23 = vmul.f32 %v689_v55, %v8789_v47  ;;  %v1412_v27 = vmul.f32 %v8809_v56, %v8789_v47 }
  0xf2   :  { %v718_v45 = vpack.c.bf16 %v702_v23, %v702_v23  ;;  %v1428_v40 = vpack.c.bf16 %v1412_v27, %v1412_v27 }
  0xf7   :  { %v8798_v52 = vpop.f32.mrf.mxu0 }
  0xf8   :  { %12205 = vst [vmem:[#allocation15_spill] sm:$0xff] %v8798_v52  ;;  %v8803_v54 = vpack.c.bf16 %v8798_v52, %v8789_v47  ;;  %v703_v24 = vmul.f32 %v689_v55, %v8798_v52  ;;  %v1413_v25 = vmul.f32 %v8809_v56, %v8798_v52  ;;  %v1768_v32 = vmul.f32 %v8812_v57, %v8798_v52 }
  0xfa   :  { %7230 = vmatmul.msk.bf16.gmra.mxu2 %vm254_vm1, %v8803_v54  ;;  %v719_v34 = vpack.c.bf16 %v703_v24, %v703_v24  ;;  %v1429_v49 = vpack.c.bf16 %v1413_v25, %v1413_v25  ;;  %v1784_v61 = vpack.c.bf16 %v1768_v32, %v1768_v32  ;;  %v1409_v32 = vmul.f32 %v8809_v56, %v8771_v42 }
  0xfc   :  { %v2008_v25 = vunpack.c.l.b16 %v719_v34  ;;  %v2007_v34 = vunpack.c.l.b16 %v718_v45 }
  0xfe   :  { %v2017_v45 = vpack.c.b16 %v2008_v25, %v2007_v34  ;;  %v1422_v34 = vpack.c.bf16 %v8879_v12, %v8879_v12  ;;  %v1776_v12 = vpack.c.bf16 %v8887_v14, %v8887_v14  ;;  %v1775_v14 = vpack.c.bf16 %v8872_v10, %v8872_v10 }
  0xff   :  { %v8828_v62 = vpop.f32.mrf.mxu0 }
 0x100   :  { %12209 = vst [vmem:[#allocation19_spill] sm:$0xff] %v8828_v62  ;;  %v704_v15 = vmul.f32 %v689_v55, %v8828_v62  ;;  %v1414_v16 = vmul.f32 %v8809_v56, %v8828_v62  ;;  %v1769_v17 = vmul.f32 %v8812_v57, %v8828_v62 }
 0x102   :  { %v720_v53 = vpack.c.bf16 %v704_v15, %v704_v15  ;;  %v1430_v29 = vpack.c.bf16 %v1414_v16, %v1414_v16  ;;  %v1785_v30 = vpack.c.bf16 %v1769_v17, %v1769_v17  ;;  %v1767_v15 = vmul.f32 %v8812_v57, %v8789_v47 }
 0x103   :  { %v1410_v47 = vmul.f32 %v8809_v56, %v8779_v44 }
 0x104   :  { %v2105_v37 = vunpack.c.l.b16 %v1430_v29  ;;  %v2153_v23 = vunpack.c.l.b16 %v1785_v30  ;;  %v1783_v58 = vpack.c.bf16 %v1767_v15, %v1767_v15  ;;  %v717_v29 = vpack.c.bf16 %v701_v28, %v701_v28 }
 0x105   :  { %v1764_v30 = vmul.f32 %v8812_v57, %v8771_v42  ;;  %v1425_v15 = vpack.c.bf16 %v1409_v32, %v1409_v32 }
 0x107   :  { %v8929_v51 = vpop.f32.mrf.mxu0 }
 0x108   :  { %12210 = vst [vmem:[#allocation20_spill] sm:$0xff] %v8929_v51  ;;  %v221_v33 = vpack.c.bf16 %v8929_v51, %v8828_v62  ;;  %v705_v35 = vmul.f32 %v689_v55, %v8929_v51  ;;  %v1415_v36 = vmul.f32 %v8809_v56, %v8929_v51  ;;  %v1770_v31 = vmul.f32 %v8812_v57, %v8929_v51 }
 0x109   :  { %v2009_v55 = vunpack.c.l.b16 %v720_v53  ;;  %v2152_v53 = vunpack.c.l.b16 %v1784_v61  ;;  %v1763_v56 = vmul.f32 %v8812_v57, %v8769_v41  ;;  %v274_v61 = vsel %vm254_vm1, %v8803_v54, 0 }
 0x10a   :  { %7231 = vmatmul.msk.bf16.gmra.mxu2 %vm254_vm1, %v221_v33  ;;  %v277_v16 = vsel %vm254_vm1, %v221_v33, 0  ;;  %v721_v17 = vpack.c.bf16 %v705_v35, %v705_v35  ;;  %v1431_v52 = vpack.c.bf16 %v1415_v36, %v1415_v36  ;;  %v1786_v62 = vpack.c.bf16 %v1770_v31, %v1770_v31 }
 0x10b   :  { %332 = vmatpush.bf16.xpose.msrb.mxu2 %v277_v16  ;;  %v1765_v33 = vmul.f32 %v8812_v57, %v8779_v44  ;;  %v2104_v16 = vunpack.c.l.b16 %v1429_v49  ;;  %v2151_v49 = vunpack.c.l.b16 %v1783_v58  ;;  %v1762_v58 = vmul.f32 %v8812_v57, %v8761_v39 }
 0x10c   :  { %v2010_v60 = vunpack.c.l.b16 %v721_v17  ;;  %v2106_v51 = vunpack.c.l.b16 %v1431_v52  ;;  %v2154_v24 = vunpack.c.l.b16 %v1786_v62  ;;  %v2103_v52 = vunpack.c.l.b16 %v1428_v40 }
 0x10d   :  { %v1427_v62 = vpack.c.bf16 %v8923_v48, %v8923_v48  ;;  %v1781_v27 = vpack.c.bf16 %v1765_v33, %v1765_v33  ;;  %v2161_v28 = vpack.c.b16 %v2152_v53, %v2151_v49  ;;  %v2006_v48 = vunpack.c.l.b16 %v717_v29 }
 0x10e   :  { %v2018_v35 = vpack.c.b16 %v2010_v60, %v2009_v55  ;;  %v2114_v36 = vpack.c.b16 %v2106_v51, %v2105_v37  ;;  %v2162_v31 = vpack.c.b16 %v2154_v24, %v2153_v23  ;;  %v1782_v37 = vpack.c.bf16 %v8927_v50, %v8927_v50 }
 0x10f   :  { %v716_v51 = vpack.c.bf16 %v8916_v26, %v8916_v26  ;;  %v1426_v60 = vpack.c.bf16 %v1410_v47, %v1410_v47  ;;  %v2113_v40 = vpack.c.b16 %v2104_v16, %v2103_v52  ;;  %v715_v50 = vpack.c.bf16 %v8901_v20, %v8901_v20 }
 0x110   :  { %2171 = vmatpush.bf16.msra.mxu3 %v2018_v35  ;;  %2269 = vmatpush.bf16.msrb.mxu0 %v2114_v36  ;;  %v2102_v47 = vunpack.c.l.b16 %v1427_v62  ;;  %v2150_v26 = vunpack.c.l.b16 %v1782_v37  ;;  %v1780_v17 = vpack.c.bf16 %v1764_v30, %v1764_v30  ;;  %v714_v55 = vpack.c.bf16 %v8898_v19, %v8898_v19 }
 0x111   :  { %2318 = vmatpush.bf16.msrb.mxu1 %v2162_v31  ;;  %v2005_v54 = vunpack.c.l.b16 %v716_v51  ;;  %v713_v23 = vpack.c.bf16 %v8895_v18, %v8895_v18  ;;  %v1761_v20 = vmul.f32 %v8812_v57, %v8759_v38  ;;  %v2101_v24 = vunpack.c.l.b16 %v1426_v60 }
 0x112   :  { %v2149_v25 = vunpack.c.l.b16 %v1781_v27  ;;  %v1424_v33 = vpack.c.bf16 %v8905_v21, %v8905_v21  ;;  %v1779_v35 = vpack.c.bf16 %v1763_v56, %v1763_v56  ;;  %v2004_v16 = vunpack.c.l.b16 %v715_v50 }
 0x113   :  { %333 = vmatpush.bf16.xpose.msrb.mxu2 %v274_v61  ;;  %v2016_v31 = vpack.c.b16 %v2006_v48, %v2005_v54  ;;  %v1423_v53 = vpack.c.bf16 %v8909_v22, %v8909_v22  ;;  %v1778_v19 = vpack.c.bf16 %v1762_v58, %v1762_v58  ;;  %v2112_v18 = vpack.c.b16 %v2102_v47, %v2101_v24 }
 0x114   :  { %2172 = vmatpush.bf16.msra.mxu3 %v2017_v45  ;;  %2270 = vmatpush.bf16.msrb.mxu0 %v2113_v40  ;;  %v2160_v57 = vpack.c.b16 %v2150_v26, %v2149_v25  ;;  %v2100_v29 = vunpack.c.l.b16 %v1425_v15  ;;  %v2148_v32 = vunpack.c.l.b16 %v1780_v17  ;;  %v2003_v21 = vunpack.c.l.b16 %v714_v55 }
 0x115   :  { %2319 = vmatpush.bf16.msrb.mxu1 %v2161_v28  ;;  %v712_v30 = vpack.c.bf16 %v8875_v11, %v8875_v11  ;;  %v711_v22 = vpack.c.bf16 %v8864_v8, %v8864_v8  ;;  %v271_v52 = vsel %vm254_vm1, %v8785_v46, 0  ;;  %v2099_v62 = vunpack.c.l.b16 %v1424_v33 }
 0x116   :  { %v2147_v37 = vunpack.c.l.b16 %v1779_v35  ;;  %v1777_v49 = vpack.c.bf16 %v1761_v20, %v1761_v20  ;;  %v2015_v51 = vpack.c.b16 %v2004_v16, %v2003_v21  ;;  %v2002_v60 = vunpack.c.l.b16 %v713_v23  ;;  %v12214_v21 = vld [vmem:[#allocation17_spill] sm:$0xff] }
 0x117   :  { %v8974_v36 = vpop.f32.mrf.mxu1  ;;  %v1421_v11 = vpack.c.bf16 %v8883_v13, %v8883_v13  ;;  %v2111_v56 = vpack.c.b16 %v2100_v29, %v2099_v62  ;;  %v2098_v8 = vunpack.c.l.b16 %v1423_v53  ;;  %v2146_v45 = vunpack.c.l.b16 %v1778_v19 }
 0x118   :  { %1127 = vperm.xlu2 %7772, %v8974_v36   ;;  %772 = vperm.xlu1 %7771, %v8974_v36   ;;  %v2159_v61 = vpack.c.b16 %v2148_v32, %v2147_v37  ;;  %v2001_v40 = vunpack.c.l.b16 %v712_v30  ;;  %v710_v46 = vpack.c.bf16 %v8861_v7, %v8861_v7  ;;  %v709_v27 = vpack.c.bf16 %v8846_v3, %v8846_v3  ;;  %v12215_v30 = vld [vmem:[#allocation18_spill] sm:$0xff] }
 0x119   :  { %402 = vperm.xlu0 %7770, %v8974_v36   ;;  %2173 = vmatpush.bf16.msra.mxu3 %v2016_v31  ;;  %v2097_v28 = vunpack.c.l.b16 %v1422_v34  ;;  %v2145_v48 = vunpack.c.l.b16 %v1777_v49  ;;  %v1420_v13 = vpack.c.bf16 %v8868_v9, %v8868_v9  ;;  %v2000_v47 = vunpack.c.l.b16 %v711_v22 }
 0x11a   :  { %2271 = vmatpush.bf16.msrb.mxu0 %v2112_v18  ;;  %2320 = vmatpush.bf16.msrb.mxu1 %v2160_v57  ;;  %v2014_v58 = vpack.c.b16 %v2002_v60, %v2001_v40  ;;  %v1419_v7 = vpack.c.bf16 %v8850_v4, %v8850_v4  ;;  %v1774_v3 = vpack.c.bf16 %v8858_v6, %v8858_v6  ;;  %v12121_v26 = vmov 3  }
 0x11b   :  { %334 = vmatpush.bf16.xpose.msrb.mxu2 %v271_v52  ;;  %v12211_v15 = vmov 0   ;;  %v2110_v17 = vpack.c.b16 %v2098_v8, %v2097_v28  ;;  %v2158_v9 = vpack.c.b16 %v2146_v45, %v2145_v48  ;;  %v2096_v54 = vunpack.c.l.b16 %v1421_v11  ;;  %v12218_v28 = vld [vmem:[#allocation10_spill] sm:$0xff] }
 0x11c   :  { %v2144_v55 = vunpack.c.l.b16 %v1776_v12  ;;  %v1999_v10 = vunpack.c.l.b16 %v710_v46  ;;  %v708_v23 = vpack.c.bf16 %v8831_v63, %v8831_v63  ;;  %v1418_v4 = vpack.c.bf16 %v8835_v0, %v8835_v0 }
 0x11d   :  { %2174 = vmatpush.bf16.msra.mxu3 %v2015_v51  ;;  %v707_v6 = vpack.c.bf16 %v8818_v59, %v8818_v59  ;;  %v268_v20 = vsel %vm254_vm1, %v8775_v43, 0  ;;  %v2095_v24 = vunpack.c.l.b16 %v1420_v13  ;;  %v2143_v25 = vunpack.c.l.b16 %v1775_v14  ;;  %v12219_v13 = vld [vmem:[#allocation14_spill] sm:$0xff] }
 0x11e   :  { %2272 = vmatpush.bf16.msrb.mxu0 %v2111_v56  ;;  %2321 = vmatpush.bf16.msrb.mxu1 %v2159_v61  ;;  %v1773_v33 = vpack.c.bf16 %v8854_v5, %v8854_v5  ;;  %v2013_v63 = vpack.c.b16 %v2000_v47, %v1999_v10  ;;  %v1998_v35 = vunpack.c.l.b16 %v709_v27  ;;  %v1417_v0 = vpack.c.bf16 %v8839_v1, %v8839_v1  ;;  %v12213_v5 = vld [vmem:[#allocation16_spill] sm:$0xff]  ;;  %v12217_v61 = vld [vmem:[#allocation11_spill] sm:$0xff] }
 0x11f   :  { %v9001_v50 = vpop.f32.mrf.mxu1  ;;  %v1772_v59 = vpack.c.bf16 %v8843_v2, %v8843_v2  ;;  %v2109_v31 = vpack.c.b16 %v2096_v54, %v2095_v24  ;;  %v2157_v16 = vpack.c.b16 %v2144_v55, %v2143_v25  ;;  %v2094_v53 = vunpack.c.l.b16 %v1419_v7  ;;  %v12221_v7 = vld [vmem:[#allocation19_spill] sm:$0xff] }
 0x120   :  { %7773 = vset.pattern.permute.xlu2 %v12121_v26  ;;  %7774 = vset.pattern.permute.xlu1 %v12211_v15  ;;  %v2142_v43 = vunpack.c.l.b16 %v1774_v3  ;;  %v12212_v19 = vmov 1   ;;  %v1997_v18 = vunpack.c.l.b16 %v708_v23  ;;  %v706_v57 = vpack.c.bf16 %v12213_v5, %v12213_v5  ;;  %v12223_v10 = vld [vmem:[#allocation15_spill] sm:$0xff] }
 0x121   :  { %2175 = vmatpush.bf16.msra.mxu3 %v2014_v58  ;;  %1482 = vperm.xlu2 %7773, %v8974_v36   ;;  %v2093_v29 = vunpack.c.l.b16 %v1418_v4  ;;  %v2141_v32 = vunpack.c.l.b16 %v1773_v33  ;;  %v1416_v1 = vpack.c.bf16 %v12214_v21, %v12214_v21  ;;  %v1771_v2 = vpack.c.bf16 %v12215_v30, %v12215_v30  ;;  %v12220_v58 = vld [vmem:[#allocation20_spill] sm:$0xff] }
 0x122   :  { %2273 = vmatpush.bf16.msrb.mxu0 %v2110_v17  ;;  %2322 = vmatpush.bf16.msrb.mxu1 %v2158_v9  ;;  %v2012_v34 = vpack.c.b16 %v1998_v35, %v1997_v18  ;;  %v1996_v22 = vunpack.c.l.b16 %v707_v6  ;;  %v2092_v37 = vunpack.c.l.b16 %v1417_v0  ;;  %v2140_v49 = vunpack.c.l.b16 %v1772_v59  ;;  %v12222_v17 = vld [vmem:[#allocation7_spill] sm:$0xff]  ;;  %v12224_v6 = vld [vmem:[#allocation13_spill] sm:$0xff]  ;;  %v12225_v33 = vld [vmem:[#allocation12_spill] sm:$0xff] }
 0x123   :  { %407 = vperm.xlu1 %7774, %v9001_v50   ;;  %335 = vmatpush.bf16.xpose.msrb.mxu2 %v268_v20  ;;  %v2108_v52 = vpack.c.b16 %v2094_v53, %v2093_v29  ;;  %v2156_v62 = vpack.c.b16 %v2142_v43, %v2141_v32  ;;  %v1995_v60 = vunpack.c.l.b16 %v706_v57  ;;  %v2091_v11 = vunpack.c.l.b16 %v1416_v1 }
 0x124   :  { %7790 = vset.pattern.permute.xlu0 %v12212_v19  ;;  %v2139_v12 = vunpack.c.l.b16 %v1771_v2  ;;  %v12216_v56 = vmov 2   ;;  %v265_v8 = vsel %vm254_vm1, %v12217_v61, 0  ;;  %v262_v48 = vsel %vm254_vm1, %v12218_v28, 0  ;;  %v12229_v61 = vld [vmem:[#allocation8_spill] sm:$0xff] }
 0x125   :  { %2176 = vmatpush.bf16.msra.mxu3 %v2013_v63  ;;  %v2011_v45 = vpack.c.b16 %v1996_v22, %v1995_v60  ;;  %v2107_v40 = vpack.c.b16 %v2092_v37, %v2091_v11  ;;  %v9049_v14 = vperm.slane %v12219_v13, 1  ;;  %v259_v9 = vsel %vm254_vm1, %v12222_v17, 0  ;;  %v12228_v60 = vld [vmem:[#allocation9_spill] sm:$0xff] }
 0x126   :  { %2274 = vmatpush.bf16.msrb.mxu0 %v2109_v31  ;;  %2323 = vmatpush.bf16.msrb.mxu1 %v2157_v16  ;;  %v2155_v46 = vpack.c.b16 %v2140_v49, %v2139_v12  ;;  %v12226_v31 = vld [vmem:[#allocation4_spill] sm:$0xff] }
 0x127   :  { %v9032_v51 = vpop.f32.mrf.mxu1  ;;  %v1060_v47 = vmul.f32 %v9049_v14, %v12220_v58  ;;  %v1059_v3 = vmul.f32 %v9049_v14, %v12221_v7  ;;  %v1058_v23 = vmul.f32 %v9049_v14, %v12223_v10  ;;  %v1057_v20 = vmul.f32 %v9049_v14, %v12224_v6  ;;  %v12231_v58 = vld [vmem:[#allocation5_spill] sm:$0xff]  ;;  %v12233_v6 = vld [vmem:[#allocation2_spill] sm:$0xff] }
 0x128   :  { %v1056_v63 = vmul.f32 %v9049_v14, %v12225_v33  ;;  %v1055_v59 = vmul.f32 %v9049_v14, %v8779_v44  ;;  %v256_v16 = vsel %vm254_vm1, %v12226_v31, 0  ;;  %v1054_v57 = vmul.f32 %v9049_v14, %v8771_v42  ;;  %v328_v42 = vld [vmem:[%s12227_s30] sm:$0x3] }
 0x129   :  { %2177 = vmatpush.bf16.msra.mxu3 %v2012_v34  ;;  %7775 = vset.pattern.permute.xlu2 %v12212_v19  ;;  %v1076_v55 = vpack.c.bf16 %v1060_v47, %v1060_v47  ;;  %v1075_v4 = vpack.c.bf16 %v1059_v3, %v1059_v3  ;;  %v1074_v25 = vpack.c.bf16 %v1058_v23, %v1058_v23 }
 0x12a   :  { %2275 = vmatpush.bf16.msrb.mxu0 %v2108_v52  ;;  %2324 = vmatpush.bf16.msrb.mxu1 %v2156_v62  ;;  %v1073_v0 = vpack.c.bf16 %v1057_v20, %v1057_v20  ;;  %v1072_v5 = vpack.c.bf16 %v1056_v63, %v1056_v63  ;;  %v1071_v29 = vpack.c.bf16 %v1055_v59, %v1055_v59 }
 0x12b   :  { %7776 = vset.pattern.permute.xlu1 %v12216_v56  ;;  %776 = vperm.xlu2 %7775, %v9001_v50   ;;  %v2058_v24 = vunpack.c.l.b16 %v1076_v55  ;;  %v2057_v35 = vunpack.c.l.b16 %v1075_v4  ;;  %v2056_v18 = vunpack.c.l.b16 %v1074_v25  ;;  %v1053_v32 = vmul.f32 %v9049_v14, %v8769_v41  ;;  %v12232_v55 = vld [vmem:[#allocation3_spill] sm:$0xff] }
 0x12c   :  { %1131 = vperm.xlu1 %7776, %v9001_v50   ;;  %336 = vmatpush.bf16.xpose.msrb.mxu2 %v265_v8  ;;  %v2055_v44 = vunpack.c.l.b16 %v1073_v0  ;;  %v2054_v1 = vunpack.c.l.b16 %v1072_v5  ;;  %v1070_v30 = vpack.c.bf16 %v1054_v57, %v1054_v57  ;;  %v1052_v2 = vmul.f32 %v9049_v14, %v8761_v39 }
 0x12d   :  { %2178 = vmatpush.bf16.msra.mxu3 %v2011_v45  ;;  %v2066_v53 = vpack.c.b16 %v2058_v24, %v2057_v35  ;;  %v2053_v34 = vunpack.c.l.b16 %v1071_v29  ;;  %v1069_v22 = vpack.c.bf16 %v1053_v32, %v1053_v32  ;;  %v1051_v41 = vmul.f32 %v9049_v14, %v8759_v38 }
 0x12e   :  { %2276 = vmatpush.bf16.msrb.mxu0 %v2107_v40  ;;  %2325 = vmatpush.bf16.msrb.mxu1 %v2155_v46  ;;  %v2065_v21 = vpack.c.b16 %v2056_v18, %v2055_v44  ;;  %v2052_v37 = vunpack.c.l.b16 %v1070_v30  ;;  %v1068_v49 = vpack.c.bf16 %v1052_v2, %v1052_v2  ;;  %v1050_v11 = vmul.f32 %v9049_v14, %v12228_v60  ;;  %v12230_v46 = vld [vmem:[#allocation6_spill] sm:$0xff] }
 0x12f   :  { %v9040_v27 = vpop.f32.mrf.mxu1  ;;  %v2064_v52 = vpack.c.b16 %v2054_v1, %v2053_v34  ;;  %v2051_v39 = vunpack.c.l.b16 %v1069_v22  ;;  %v1067_v12 = vpack.c.bf16 %v1051_v41, %v1051_v41  ;;  %v1049_v8 = vmul.f32 %v9049_v14, %v12229_v61 }
 0x130   :  { %v2050_v45 = vunpack.c.l.b16 %v1068_v49  ;;  %v1066_v40 = vpack.c.bf16 %v1050_v11, %v1050_v11  ;;  %v1048_v28 = vmul.f32 %v9049_v14, %v12230_v46  ;;  %v1047_v47 = vmul.f32 %v9049_v14, %v12231_v58 }
 0x131   :  { %v2063_v38 = vpack.c.b16 %v2052_v37, %v2051_v39  ;;  %v1065_v13 = vpack.c.bf16 %v1049_v8, %v1049_v8  ;;  %v1046_v10 = vmul.f32 %v9049_v14, %v12232_v55  ;;  %v1045_v20 = vmul.f32 %v9049_v14, %v12233_v6 }
 0x132   :  { %v2048_v17 = vunpack.c.l.b16 %v1066_v40  ;;  %v1063_v4 = vpack.c.bf16 %v1047_v47, %v1047_v47 }
 0x133   :  { %7782 = vset.pattern.permute.xlu2 %v12211_v15  ;;  %v2047_v23 = vunpack.c.l.b16 %v1065_v13  ;;  %v1062_v33 = vpack.c.bf16 %v1046_v10, %v1046_v10  ;;  %v1061_v35 = vpack.c.bf16 %v1045_v20, %v1045_v20 }
 0x134   :  { %7777 = vset.pattern.permute.xlu1 %v12121_v26  ;;  %417 = vperm.xlu2 %7782, %v9040_v27   ;;  %v2045_v63 = vunpack.c.l.b16 %v1063_v4 }
 0x135   :  { %1486 = vperm.xlu1 %7777, %v9001_v50   ;;  %337 = vmatpush.bf16.xpose.msrb.mxu2 %v262_v48  ;;  %v2049_v48 = vunpack.c.l.b16 %v1067_v12  ;;  %v2061_v24 = vpack.c.b16 %v2048_v17, %v2047_v23  ;;  %v2044_v14 = vunpack.c.l.b16 %v1062_v33  ;;  %v2043_v31 = vunpack.c.l.b16 %v1061_v35 }
 0x137   :  { %v2062_v7 = vpack.c.b16 %v2050_v45, %v2049_v48 }
 0x13c   :  { %7783 = vset.pattern.permute.xlu2 %v12212_v19 }
 0x13d   :  { %7778 = vset.pattern.permute.xlu1 %v12211_v15  ;;  %338 = vmatpush.bf16.xpose.msrb.mxu2 %v259_v9  ;;  %v9059_v54 = vpop.f32.mrf.mxu2  ;;  %v1064_v9 = vpack.c.bf16 %v1048_v28, %v1048_v28 }
 0x13e   :  { %412 = vperm.xlu1 %7778, %v9032_v51   ;;  %784 = vperm.xlu2 %7783, %v9040_v27  }
 0x13f   :  { %v2046_v25 = vunpack.c.l.b16 %v1064_v9 }
 0x141   :  { %v2060_v0 = vpack.c.b16 %v2046_v25, %v2045_v63 }
 0x145   :  { %339 = vmatpush.bf16.xpose.msrb.mxu2 %v256_v16  ;;  %v9073_v43 = vpop.f32.mrf.mxu2  ;;  %v2059_v16 = vpack.c.b16 %v2044_v14, %v2043_v31 }
 0x146   :  { %7779 = vset.pattern.permute.xlu1 %v12212_v19  ;;  %7784 = vset.pattern.permute.xlu2 %v12216_v56 }
 0x147   :  { %780 = vperm.xlu1 %7779, %v9032_v51   ;;  %1139 = vperm.xlu2 %7784, %v9040_v27  }
 0x148   :  { %792 = vperm.xlu0 %7790, %v9073_v43  }
 0x14c   :  { %7232 = vmatmul.msk.bf16.vlgmr.msrb.gmra.mxu2 %vm254_vm1, %v328_v42 }
 0x14d   :  { %2220 = vmatpush.bf16.msra.mxu2 %v2066_v53  ;;  %v9092_v62 = vpop.f32.mrf.mxu2 }
 0x14f   :  { %7780 = vset.pattern.permute.xlu1 %v12216_v56  ;;  %7785 = vset.pattern.permute.xlu2 %v12121_v26 }
 0x150   :  { %1135 = vperm.xlu1 %7780, %v9032_v51   ;;  %1494 = vperm.xlu2 %7785, %v9040_v27  }
 0x151   :  { %2221 = vmatpush.bf16.msra.mxu2 %v2065_v21  ;;  %7791 = vset.pattern.permute.xlu0 %v12216_v56 }
 0x152   :  { %1147 = vperm.xlu0 %7791, %v9073_v43  }
 0x155   :  { %2222 = vmatpush.bf16.msra.mxu2 %v2064_v52  ;;  %v9108_v3 = vpop.f32.mrf.mxu2 }
 0x158   :  { %7781 = vset.pattern.permute.xlu1 %v12121_v26  ;;  %7786 = vset.pattern.permute.xlu2 %v12211_v15 }
 0x159   :  { %2223 = vmatpush.bf16.msra.mxu2 %v2063_v38  ;;  %1490 = vperm.xlu1 %7781, %v9032_v51  }
 0x15a   :  { %422 = vperm.xlu2 %7786, %v9059_v54   ;;  %7793 = vset.pattern.permute.xlu0 %v12211_v15 }
 0x15b   :  { %432 = vperm.xlu0 %7793, %v9092_v62  }
 0x15d   :  { %2224 = vmatpush.bf16.msra.mxu2 %v2062_v7  ;;  %v9120_v59 = vpop.f32.mrf.mxu2 }
 0x161   :  { %2225 = vmatpush.bf16.msra.mxu2 %v2061_v24  ;;  %1498 = vperm.xlu1 %7781, %v9059_v54  }
 0x162   :  { %7787 = vset.pattern.permute.xlu2 %v12212_v19 }
 0x163   :  { %788 = vperm.xlu2 %7787, %v9059_v54   ;;  %7795 = vset.pattern.permute.xlu0 %v12216_v56 }
 0x164   :  { %1151 = vperm.xlu0 %7795, %v9092_v62  }
 0x165   :  { %2226 = vmatpush.bf16.msra.mxu2 %v2060_v0  ;;  %v9127_v53 = vpop.f32.mrf.mxu2 }
 0x169   :  { %2227 = vmatpush.bf16.msra.mxu2 %v2059_v16  ;;  %7789 = vset.pattern.permute.xlu1 %v12211_v15 }
 0x16a   :  { %427 = vperm.xlu1 %7789, %v9073_v43  }
 0x16b   :  { %7788 = vset.pattern.permute.xlu2 %v12216_v56 }
 0x16c   :  { %1143 = vperm.xlu2 %7788, %v9059_v54   ;;  %7801 = vset.pattern.permute.xlu0 %v12212_v19 }
 0x16d   :  { %804 = vperm.xlu0 %7801, %v9120_v59   ;;  %v9135_v18 = vpop.f32.mrf.mxu2 }
 0x172   :  { %437 = vperm.xlu1 %7789, %v9108_v3   ;;  %v9185_v32 = vpop.permute.xlu2 %1127 }
 0x174   :  { %7792 = vset.pattern.permute.xlu2 %v12121_v26 }
 0x175   :  { %1502 = vperm.xlu2 %7792, %v9073_v43   ;;  %7803 = vset.pattern.permute.xlu0 %v12121_v26  ;;  %v9141_v5 = vpop.f32.mrf.mxu2 }
 0x176   :  { %1514 = vperm.xlu0 %7803, %v9120_v59  }
 0x17a   :  { %7797 = vset.pattern.permute.xlu1 %v12212_v19 }
 0x17b   :  { %800 = vperm.xlu1 %7797, %v9108_v3   ;;  %v9192_v21 = vpop.permute.xlu2 %1482 }
 0x17d   :  { %7794 = vset.pattern.permute.xlu2 %v12212_v19  ;;  %v9147_v57 = vpop.f32.mrf.mxu2 }
 0x17e   :  { %796 = vperm.xlu2 %7794, %v9092_v62   ;;  %7812 = vset.pattern.permute.xlu0 %v12211_v15 }
 0x17f   :  { %457 = vperm.xlu0 %7812, %v9141_v5  }
 0x183   :  { %7798 = vset.pattern.permute.xlu1 %v12216_v56 }
 0x184   :  { %1155 = vperm.xlu1 %7798, %v9108_v3  }
 0x185   :  { %v9154_v44 = vpop.f32.mrf.mxu2  ;;  %v9200_v1 = vpop.permute.xlu2 %776 }
 0x186   :  { %7796 = vset.pattern.permute.xlu2 %v12121_v26 }
 0x187   :  { %1506 = vperm.xlu2 %7796, %v9092_v62   ;;  %7820 = vset.pattern.permute.xlu0 %v12212_v19 }
 0x188   :  { %824 = vperm.xlu0 %7820, %v9154_v44  }
 0x18a   :  { %v9196_v42 = vpop.permute.xlu1 %772 }
 0x18b   :  { %v9220_v37 = vpop.permute.xlu0 %402 }
 0x18c   :  { %7799 = vset.pattern.permute.xlu1 %v12121_v26 }
 0x18d   :  { %1510 = vperm.xlu1 %7799, %v9108_v3   ;;  %v9169_v29 = vpop.f32.mrf.mxu2 }
 0x18e   :  { %12234 = vst [vmem:[#allocation16_spill] sm:$0xff] %v9169_v29  ;;  %v9211_v34 = vpop.permute.xlu2 %417 }
 0x18f   :  { %7804 = vset.pattern.permute.xlu2 %v12211_v15 }
 0x190   :  { %447 = vperm.xlu2 %7804, %v9127_v53   ;;  %7821 = vset.pattern.permute.xlu0 %v12216_v56 }
 0x191   :  { %1179 = vperm.xlu0 %7821, %v9154_v44  }
 0x195   :  { %7800 = vset.pattern.permute.xlu1 %v12211_v15  ;;  %v9204_v30 = vpop.f32.mrf.mxu2  ;;  %v9206_v2 = vpop.permute.xlu1 %407 }
 0x196   :  { %442 = vperm.xlu1 %7800, %v9120_v59   ;;  %12235 = vst [vmem:[#allocation17_spill] sm:$0xff] %v9204_v30 }
 0x198   :  { %7806 = vset.pattern.permute.xlu2 %v12216_v56  ;;  %v9225_v60 = vpop.permute.xlu2 %784 }
 0x199   :  { %1163 = vperm.xlu2 %7806, %v9127_v53   ;;  %7823 = vset.pattern.permute.xlu0 %v12211_v15 }
 0x19a   :  { %472 = vperm.xlu0 %7823, %v9169_v29  }
 0x19e   :  { %7802 = vset.pattern.permute.xlu1 %v12216_v56  ;;  %v9218_v52 = vpop.permute.xlu1 %1131 }
 0x19f   :  { %1159 = vperm.xlu1 %7802, %v9120_v59  }
 0x1a1   :  { %7808 = vset.pattern.permute.xlu2 %v12211_v15  ;;  %v9235_v12 = vpop.permute.xlu2 %1139 }
 0x1a2   :  { %452 = vperm.xlu2 %7808, %v9135_v18   ;;  %7825 = vset.pattern.permute.xlu0 %v12216_v56 }
 0x1a3   :  { %1183 = vperm.xlu0 %7825, %v9169_v29  }
 0x1a7   :  { %7805 = vset.pattern.permute.xlu1 %v12212_v19  ;;  %v9229_v39 = vpop.permute.xlu1 %1486 }
 0x1a8   :  { %808 = vperm.xlu1 %7805, %v9127_v53  }
 0x1aa   :  { %7813 = vset.pattern.permute.xlu2 %v12212_v19  ;;  %v9244_v38 = vpop.permute.xlu2 %1494 }
 0x1ab   :  { %816 = vperm.xlu2 %7813, %v9141_v5  }
 0x1b0   :  { %7807 = vset.pattern.permute.xlu1 %v12121_v26  ;;  %v9240_v8 = vpop.permute.xlu1 %412 }
 0x1b1   :  { %1518 = vperm.xlu1 %7807, %v9127_v53  }
 0x1b3   :  { %7814 = vset.pattern.permute.xlu2 %v12216_v56 }
 0x1b4   :  { %1171 = vperm.xlu2 %7814, %v9141_v5   ;;  %v9255_v46 = vpop.permute.xlu2 %422 }
 0x1b9   :  { %7809 = vset.pattern.permute.xlu1 %v12212_v19  ;;  %v9250_v40 = vpop.permute.xlu1 %780 }
 0x1ba   :  { %812 = vperm.xlu1 %7809, %v9135_v18   ;;  %v9227_v11 = vpop.permute.xlu0 %792 }
 0x1bb   :  { %12236 = vst [vmem:[#allocation18_spill] sm:$0xff] %v9227_v11 }
 0x1bc   :  { %7815 = vset.pattern.permute.xlu2 %v12121_v26 }
 0x1bd   :  { %1526 = vperm.xlu2 %7815, %v9141_v5   ;;  %v9264_v13 = vpop.permute.xlu2 %788 }
 0x1c2   :  { %7810 = vset.pattern.permute.xlu1 %v12216_v56  ;;  %v9260_v48 = vpop.permute.xlu1 %1135 }
 0x1c3   :  { %1167 = vperm.xlu1 %7810, %v9135_v18  }
 0x1c4   :  { %v9237_v61 = vpop.permute.xlu0 %1147 }
 0x1c5   :  { %7816 = vset.pattern.permute.xlu2 %v12211_v15  ;;  %12237 = vst [vmem:[#allocation11_spill] sm:$0xff] %v9237_v61 }
 0x1c6   :  { %462 = vperm.xlu2 %7816, %v9147_v57   ;;  %v9270_v7 = vpop.permute.xlu2 %1143 }
 0x1c7   :  { %12241 = vst [vmem:[#allocation19_spill] sm:$0xff] %v9270_v7 }
 0x1cb   :  { %7811 = vset.pattern.permute.xlu1 %v12121_v26  ;;  %v9268_v47 = vpop.permute.xlu1 %1490 }
 0x1cc   :  { %1522 = vperm.xlu1 %7811, %v9135_v18  }
 0x1cd   :  { %v9248_v45 = vpop.permute.xlu0 %432 }
 0x1ce   :  { %7817 = vset.pattern.permute.xlu2 %v12212_v19  ;;  %12238 = vst [vmem:[#allocation10_spill] sm:$0xff] %v9248_v45 }
 0x1cf   :  { %820 = vperm.xlu2 %7817, %v9147_v57   ;;  %v9214_v22 = vpop.f32.mrf.mxu2  ;;  %v9276_v55 = vpop.permute.xlu2 %1502 }
 0x1d0   :  { %v346_v41 = vsel %vm345_vm2, %v9214_v22, -inf }
 0x1d1   :  { %347 = vmax.xlane.f32.xlu0 %v346_v41 }
 0x1d3   :  { %v9274_v9 = vpop.permute.xlu1 %1498 }
 0x1d4   :  { %1530 = vperm.xlu1 %7811, %v9147_v57  }
 0x1d6   :  { %v9258_v28 = vpop.permute.xlu0 %1151 }
 0x1d7   :  { %7818 = vset.pattern.permute.xlu2 %v12216_v56  ;;  %v343_v49 = vpop.f32.mrf.mxu2  ;;  %12239 = vst [vmem:[#allocation14_spill] sm:$0xff] %v9258_v28 }
 0x1d8   :  { %1175 = vperm.xlu2 %7818, %v9147_v57   ;;  %v9282_v4 = vpop.permute.xlu2 %796 }
 0x1d9   :  { %12244 = vst [vmem:[#allocation13_spill] sm:$0xff] %v9282_v4 }
 0x1dc   :  { %7819 = vset.pattern.permute.xlu1 %v12211_v15  ;;  %v9280_v23 = vpop.permute.xlu1 %427 }
 0x1dd   :  { %467 = vperm.xlu1 %7819, %v9154_v44  }
 0x1df   :  { %v9266_v58 = vpop.permute.xlu0 %804 }
 0x1e0   :  { %7822 = vset.pattern.permute.xlu2 %v12121_v26  ;;  %12240 = vst [vmem:[#allocation20_spill] sm:$0xff] %v9266_v58 }
 0x1e1   :  { %1534 = vperm.xlu2 %7822, %v9154_v44   ;;  %v9288_v24 = vpop.permute.xlu2 %1506 }
 0x1e2   :  { %12247 = vst [vmem:[#allocation9_spill] sm:$0xff] %v9288_v24 }
 0x1e4   :  { %v9286_v20 = vpop.permute.xlu1 %437 }
 0x1e5   :  { %477 = vperm.xlu1 %7819, %v9204_v30   ;;  %12246 = vst [vmem:[#allocation4_spill] sm:$0xff] %v9286_v20 }
 0x1e8   :  { %v9272_v17 = vpop.permute.xlu0 %1514 }
 0x1e9   :  { %7824 = vset.pattern.permute.xlu2 %v12212_v19  ;;  %12242 = vst [vmem:[#allocation7_spill] sm:$0xff] %v9272_v17 }
 0x1ea   :  { %828 = vperm.xlu2 %7824, %v9169_v29   ;;  %v9294_v63 = vpop.permute.xlu2 %447 }
 0x1eb   :  { %12250 = vst [vmem:[#allocation5_spill] sm:$0xff] %v9294_v63 }
 0x1ed   :  { %7827 = vset.pattern.permute.xlu1 %v12212_v19  ;;  %v9292_v33 = vpop.permute.xlu1 %800 }
 0x1ee   :  { %832 = vperm.xlu1 %7827, %v9204_v30   ;;  %12249 = vst [vmem:[#allocation6_spill] sm:$0xff] %v9292_v33 }
 0x1f1   :  { %v9278_v10 = vpop.permute.xlu0 %457 }
 0x1f2   :  { %7826 = vset.pattern.permute.xlu2 %v12121_v26  ;;  %12243 = vst [vmem:[#allocation15_spill] sm:$0xff] %v9278_v10 }
 0x1f3   :  { %1538 = vperm.xlu2 %7826, %v9169_v29   ;;  %v9300_v14 = vpop.permute.xlu2 %1163 }
 0x1f4   :  { %12253 = vst [vmem:[#allocation21_spill] sm:$0xff] %v9300_v14 }
 0x1f6   :  { %7828 = vset.pattern.permute.xlu1 %v12216_v56  ;;  %v9298_v0 = vpop.permute.xlu1 %1155 }
 0x1f7   :  { %1187 = vperm.xlu1 %7828, %v9204_v30   ;;  %12252 = vst [vmem:[#allocation2_spill] sm:$0xff] %v9298_v0 }
 0x1fa   :  { %v9284_v6 = vpop.permute.xlu0 %824 }
 0x1fb   :  { %7829 = vset.pattern.permute.xlu2 %v12211_v15  ;;  %12245 = vst [vmem:[#allocation12_spill] sm:$0xff] %v9284_v6 }
 0x1fc   :  { %v9310_v6 = vpop.permute.xlu2 %452 }
 0x1fd   :  { %12256 = vst [vmem:[#allocation24_spill] sm:$0xff] %v9310_v6 }
 0x1ff   :  { %7830 = vset.pattern.permute.xlu1 %v12211_v15  ;;  %v9304_v16 = vpop.permute.xlu1 %1510 }
 0x200   :  { %12255 = vst [vmem:[#allocation23_spill] sm:$0xff] %v9304_v16 }
 0x203   :  { %v9290_v25 = vpop.permute.xlu0 %1179 }
 0x204   :  { %12248 = vst [vmem:[#allocation8_spill] sm:$0xff] %v9290_v25 }
 0x205   :  { %v9330_v33 = vpop.permute.xlu2 %816 }
 0x206   :  { %12258 = vst [vmem:[#allocation26_spill] sm:$0xff] %v9330_v33 }
 0x208   :  { %v9322_v14 = vpop.permute.xlu1 %442 }
 0x209   :  { %12257 = vst [vmem:[#allocation25_spill] sm:$0xff] %v9322_v14 }
 0x20c   :  { %v9296_v35 = vpop.permute.xlu0 %472 }
 0x20d   :  { %12251 = vst [vmem:[#allocation3_spill] sm:$0xff] %v9296_v35 }
 0x215   :  { %v9302_v31 = vpop.permute.xlu0 %1183 }
 0x216   :  { %12254 = vst [vmem:[#allocation22_spill] sm:$0xff] %v9302_v31 }
 0x244   :  { %v348_v41 = vpop.xlane.xlu0 %347 }
 0x245   :  { %v9306_v49 = vperm.slane %v348_v41, 0  ;;  %v9308_v26 = vperm.slane %v348_v41, 2  ;;  %v9318_v17 = vperm.slane %v348_v41, 1  ;;  %v9320_v31 = vperm.slane %v348_v41, 3 }
 0x247   :  { %v1079_v25 = vadd.f32 %v9308_v26, %v9001_v50  ;;  %v353_v35 = vadd.f32 %v9306_v49, %v9001_v50  ;;  %v352_v10 = vadd.f32 %v9306_v49, %v8974_v36  ;;  %v1433_v45 = vadd.f32 %v9320_v31, %v8974_v36 }
 0x248   :  { %v724_v0 = vadd.f32 %v9318_v17, %v9001_v50  ;;  %v723_v41 = vadd.f32 %v9318_v17, %v8974_v36 }
 0x249   :  { %v1095_v58 = vmul.f32 0.2, %v1079_v25  ;;  %v369_v16 = vmul.f32 0.2, %v353_v35  ;;  %v368_v4 = vmul.f32 0.2, %v352_v10 }
 0x24a   :  { %v1449_v14 = vmul.f32 0.2, %v1433_v45  ;;  %v740_v29 = vmul.f32 0.2, %v724_v0  ;;  %v739_v7 = vmul.f32 0.2, %v723_v41 }
 0x24b   :  { %v1111_v63 = vmax.f32 %v1079_v25, %v1095_v58  ;;  %v385_v6 = vmax.f32 %v353_v35, %v369_v16  ;;  %v384_v24 = vmax.f32 %v352_v10, %v368_v4  ;;  %v9332_v58 = vpop.permute.xlu1 %1159  ;;  %v12260_v4 = vmov 3   ;;  %v9343_v35 = vpop.permute.xlu2 %1171 }
 0x24c   :  { %12259 = vst [vmem:[#allocation27_spill] sm:$0xff] %v9332_v58  ;;  %v1465_v10 = vmax.f32 %v1433_v45, %v1449_v14  ;;  %v755_v25 = vmax.f32 %v723_v41, %v739_v7  ;;  %v1078_v45 = vadd.f32 %v9308_v26, %v8974_v36  ;;  %v355_v36 = vadd.f32 %v9306_v49, %v9040_v27 }
 0x24d   :  { %1246 = vperm.xlu0 %7825, %v1111_v63   ;;  %536 = vperm.xlu1 %7830, %v385_v6   ;;  %v756_v6 = vmax.f32 %v724_v0, %v740_v29  ;;  %v1434_v63 = vadd.f32 %v9320_v31, %v9001_v50  ;;  %12261 = vst [vmem:[#allocation28_spill] sm:$0xff] %v9343_v35 }
 0x24e   :  { %531 = vperm.xlu2 %7829, %v384_v24   ;;  %v726_v24 = vadd.f32 %v9318_v17, %v9040_v27  ;;  %v1094_v29 = vmul.f32 0.2, %v1078_v45 }
 0x24f   :  { %v1450_v16 = vmul.f32 0.2, %v1434_v63 }
 0x250   :  { %v742_v14 = vmul.f32 0.2, %v726_v24  ;;  %v1110_v50 = vmax.f32 %v1078_v45, %v1094_v29 }
 0x251   :  { %v1466_v41 = vmax.f32 %v1434_v63, %v1450_v16  ;;  %v371_v63 = vmul.f32 0.2, %v355_v36 }
 0x252   :  { %v758_v0 = vmax.f32 %v726_v24, %v742_v14 }
 0x253   :  { %v9345_v7 = vpop.permute.xlu1 %808  ;;  %v9356_v24 = vpop.permute.xlu2 %1526  ;;  %v387_v29 = vmax.f32 %v355_v36, %v371_v63 }
 0x254   :  { %12262 = vst [vmem:[#allocation29_spill] sm:$0xff] %v9345_v7 }
 0x255   :  { %7834 = vset.pattern.permute.xlu0 %v12260_v4  ;;  %7832 = vset.pattern.permute.xlu1 %v12212_v19  ;;  %12263 = vst [vmem:[#allocation30_spill] sm:$0xff] %v9356_v24 }
 0x256   :  { %7831 = vset.pattern.permute.xlu2 %v12212_v19  ;;  %1596 = vperm.xlu0 %7834, %v1465_v10   ;;  %v1080_v10 = vadd.f32 %v9308_v26, %v9032_v51 }
 0x257   :  { %891 = vperm.xlu1 %7832, %v756_v6   ;;  %886 = vperm.xlu2 %7831, %v755_v25   ;;  %v354_v6 = vadd.f32 %v9306_v49, %v9032_v51 }
 0x258   :  { %v1096_v25 = vmul.f32 0.2, %v1080_v10 }
 0x259   :  { %v370_v14 = vmul.f32 0.2, %v354_v6 }
 0x25a   :  { %v1112_v45 = vmax.f32 %v1080_v10, %v1096_v25  ;;  %v725_v10 = vadd.f32 %v9318_v17, %v9032_v51 }
 0x25b   :  { %v9358_v16 = vpop.permute.xlu1 %1518  ;;  %v9369_v24 = vpop.permute.xlu2 %462 }
 0x25c   :  { %12264 = vst [vmem:[#allocation31_spill] sm:$0xff] %v9358_v16  ;;  %v741_v36 = vmul.f32 0.2, %v725_v10 }
 0x25d   :  { %12265 = vst [vmem:[#allocation32_spill] sm:$0xff] %v9369_v24  ;;  %v1436_v24 = vadd.f32 %v9320_v31, %v9040_v27 }
 0x25e   :  { %7839 = vset.pattern.permute.xlu0 %v12212_v19 }
 0x25f   :  { %7835 = vset.pattern.permute.xlu1 %v12260_v4  ;;  %7833 = vset.pattern.permute.xlu2 %v12216_v56 }
 0x260   :  { %901 = vperm.xlu0 %7839, %v758_v0   ;;  %1601 = vperm.xlu1 %7835, %v1466_v41   ;;  %v386_v0 = vmax.f32 %v354_v6, %v370_v14  ;;  %v727_v41 = vadd.f32 %v9318_v17, %v9059_v54 }
 0x261   :  { %1241 = vperm.xlu2 %7833, %v1110_v50   ;;  %v1081_v50 = vadd.f32 %v9308_v26, %v9040_v27  ;;  %v356_v27 = vadd.f32 %v9306_v49, %v9059_v54 }
 0x262   :  { %v743_v25 = vmul.f32 0.2, %v727_v41 }
 0x263   :  { %v1097_v35 = vmul.f32 0.2, %v1081_v50  ;;  %v9371_v6 = vpop.permute.xlu1 %812 }
 0x264   :  { %12266 = vst [vmem:[#allocation33_spill] sm:$0xff] %v9371_v6  ;;  %v759_v63 = vmax.f32 %v727_v41, %v743_v25 }
 0x265   :  { %v1113_v14 = vmax.f32 %v1081_v50, %v1097_v35  ;;  %v1452_v35 = vmul.f32 0.2, %v1436_v24  ;;  %v9382_v50 = vpop.permute.xlu2 %820 }
 0x266   :  { %12267 = vst [vmem:[#allocation34_spill] sm:$0xff] %v9382_v50 }
 0x268   :  { %7840 = vset.pattern.permute.xlu0 %v12216_v56  ;;  %7837 = vset.pattern.permute.xlu1 %v12211_v15 }
 0x269   :  { %7836 = vset.pattern.permute.xlu2 %v12211_v15  ;;  %1251 = vperm.xlu0 %7840, %v1112_v45   ;;  %v757_v45 = vmax.f32 %v725_v10, %v741_v36  ;;  %v1468_v36 = vmax.f32 %v1436_v24, %v1452_v35 }
 0x26a   :  { %546 = vperm.xlu1 %7837, %v387_v29   ;;  %541 = vperm.xlu2 %7836, %v386_v0   ;;  %v1438_v29 = vadd.f32 %v9320_v31, %v9073_v43  ;;  %v1435_v0 = vadd.f32 %v9320_v31, %v9032_v51  ;;  %v1085_v51 = vadd.f32 %v9308_v26, %v9108_v3 }
 0x26b   :  { %v9384_v16 = vpop.permute.xlu1 %1167 }
 0x26c   :  { %v1454_v6 = vmul.f32 0.2, %v1438_v29  ;;  %v1451_v41 = vmul.f32 0.2, %v1435_v0  ;;  %12268 = vst [vmem:[#allocation35_spill] sm:$0xff] %v9384_v16 }
 0x26e   :  { %v1470_v25 = vmax.f32 %v1438_v29, %v1454_v6  ;;  %v1467_v10 = vmax.f32 %v1435_v0, %v1451_v41  ;;  %v357_v6 = vadd.f32 %v9306_v49, %v9073_v43  ;;  %v9395_v29 = vpop.permute.xlu2 %1175 }
 0x26f   :  { %12269 = vst [vmem:[#allocation36_spill] sm:$0xff] %v9395_v29 }
 0x271   :  { %7846 = vset.pattern.permute.xlu0 %v12212_v19 }
 0x272   :  { %7841 = vset.pattern.permute.xlu1 %v12216_v56  ;;  %7838 = vset.pattern.permute.xlu2 %v12212_v19 }
 0x273   :  { %906 = vperm.xlu0 %7846, %v759_v63   ;;  %1256 = vperm.xlu1 %7841, %v1113_v14   ;;  %v1101_v63 = vmul.f32 0.2, %v1085_v51  ;;  %v372_v14 = vmul.f32 0.2, %v356_v27  ;;  %v9398_v41 = vpop.permute.xlu1 %1522 }
 0x274   :  { %896 = vperm.xlu2 %7838, %v757_v45   ;;  %v373_v45 = vmul.f32 0.2, %v357_v6  ;;  %12270 = vst [vmem:[#allocation37_spill] sm:$0xff] %v9398_v41 }
 0x275   :  { %v1117_v24 = vmax.f32 %v1085_v51, %v1101_v63  ;;  %v388_v0 = vmax.f32 %v356_v27, %v372_v14 }
 0x276   :  { %v389_v35 = vmax.f32 %v357_v6, %v373_v45  ;;  %v9408_v14 = vpop.permute.xlu2 %1534  ;;  %v362_v6 = vadd.f32 %v9306_v49, %v9135_v18 }
 0x277   :  { %12271 = vst [vmem:[#allocation38_spill] sm:$0xff] %v9408_v14 }
 0x27b   :  { %7851 = vset.pattern.permute.xlu0 %v12260_v4  ;;  %7842 = vset.pattern.permute.xlu1 %v12260_v4 }
 0x27c   :  { %7843 = vset.pattern.permute.xlu2 %v12260_v4  ;;  %1621 = vperm.xlu0 %7851, %v1470_v25   ;;  %v361_v25 = vadd.f32 %v9306_v49, %v9127_v53 }
 0x27d   :  { %1606 = vperm.xlu1 %7842, %v1467_v10   ;;  %1611 = vperm.xlu2 %7843, %v1468_v36   ;;  %v728_v10 = vadd.f32 %v9318_v17, %v9073_v43  ;;  %v1083_v36 = vadd.f32 %v9308_v26, %v9073_v43  ;;  %v1082_v43 = vadd.f32 %v9308_v26, %v9059_v54 }
 0x27e   :  { %v377_v51 = vmul.f32 0.2, %v361_v25  ;;  %v9421_v41 = vpop.permute.xlu2 %828 }
 0x27f   :  { %v744_v27 = vmul.f32 0.2, %v728_v10  ;;  %v1099_v63 = vmul.f32 0.2, %v1083_v36  ;;  %12273 = vst [vmem:[#allocation40_spill] sm:$0xff] %v9421_v41 }
 0x280   :  { %v393_v29 = vmax.f32 %v361_v25, %v377_v51  ;;  %v378_v25 = vmul.f32 0.2, %v362_v6  ;;  %v1098_v51 = vmul.f32 0.2, %v1082_v43 }
 0x281   :  { %v760_v45 = vmax.f32 %v728_v10, %v744_v27  ;;  %v734_v10 = vadd.f32 %v9318_v17, %v9141_v5  ;;  %v359_v27 = vadd.f32 %v9306_v49, %v9108_v3 }
 0x282   :  { %v394_v14 = vmax.f32 %v362_v6, %v378_v25 }
 0x283   :  { %v750_v6 = vmul.f32 0.2, %v734_v10 }
 0x284   :  { %7857 = vset.pattern.permute.xlu0 %v12216_v56 }
 0x285   :  { %7844 = vset.pattern.permute.xlu1 %v12211_v15  ;;  %7845 = vset.pattern.permute.xlu2 %v12211_v15 }
 0x286   :  { %1276 = vperm.xlu0 %7857, %v1117_v24   ;;  %551 = vperm.xlu1 %7844, %v388_v0   ;;  %v1115_v24 = vmax.f32 %v1083_v36, %v1099_v63  ;;  %v9414_v0 = vpop.permute.xlu1 %1530  ;;  %v1114_v36 = vmax.f32 %v1082_v43, %v1098_v51  ;;  %v9436_v43 = vpop.permute.xlu2 %1538  ;;  %v729_v51 = vadd.f32 %v9318_v17, %v9092_v62 }
 0x287   :  { %556 = vperm.xlu2 %7845, %v389_v35   ;;  %12272 = vst [vmem:[#allocation39_spill] sm:$0xff] %v9414_v0  ;;  %v1437_v35 = vadd.f32 %v9320_v31, %v9059_v54  ;;  %v358_v54 = vadd.f32 %v9306_v49, %v9092_v62 }
 0x288   :  { %12275 = vst [vmem:[#allocation42_spill] sm:$0xff] %v9436_v43 }
 0x289   :  { %v1453_v50 = vmul.f32 0.2, %v1437_v35 }
 0x28e   :  { %7861 = vset.pattern.permute.xlu0 %v12211_v15  ;;  %7847 = vset.pattern.permute.xlu1 %v12212_v19  ;;  %v9431_v63 = vpop.permute.xlu1 %467 }
 0x28f   :  { %7849 = vset.pattern.permute.xlu2 %v12216_v56  ;;  %576 = vperm.xlu0 %7861, %v393_v29   ;;  %v1469_v29 = vmax.f32 %v1437_v35, %v1453_v50  ;;  %12274 = vst [vmem:[#allocation41_spill] sm:$0xff] %v9431_v63  ;;  %v1088_v50 = vadd.f32 %v9308_v26, %v9135_v18 }
 0x290   :  { %911 = vperm.xlu1 %7847, %v760_v45   ;;  %1266 = vperm.xlu2 %7849, %v1115_v24   ;;  %v374_v45 = vmul.f32 0.2, %v358_v54  ;;  %v375_v24 = vmul.f32 0.2, %v359_v27 }
 0x292   :  { %v390_v35 = vmax.f32 %v358_v54, %v374_v45  ;;  %v391_v25 = vmax.f32 %v359_v27, %v375_v24  ;;  %v735_v27 = vadd.f32 %v9318_v17, %v9147_v57  ;;  %v9450_v45 = vperm.slane %v9214_v22, 0 }
 0x297   :  { %581 = vperm.xlu0 %7861, %v394_v14   ;;  %v766_v14 = vmax.f32 %v734_v10, %v750_v6  ;;  %v730_v10 = vadd.f32 %v9318_v17, %v9108_v3  ;;  %v745_v6 = vmul.f32 0.2, %v729_v51 }
 0x298   :  { %7848 = vset.pattern.permute.xlu1 %v12216_v56  ;;  %7850 = vset.pattern.permute.xlu2 %v12260_v4 }
 0x299   :  { %1261 = vperm.xlu1 %7848, %v1114_v36   ;;  %1616 = vperm.xlu2 %7850, %v1469_v29   ;;  %v9444_v36 = vpop.permute.xlu1 %477  ;;  %v1104_v29 = vmul.f32 0.2, %v1088_v50  ;;  %v746_v43 = vmul.f32 0.2, %v730_v10  ;;  %v761_v24 = vmax.f32 %v729_v51, %v745_v6 }
 0x29a   :  { %12276 = vst [vmem:[#allocation43_spill] sm:$0xff] %v9444_v36  ;;  %v9466_v36 = vperm.slane %v9214_v22, 1 }
 0x29b   :  { %v762_v41 = vmax.f32 %v730_v10, %v746_v43  ;;  %v9463_v43 = vperm.slane %v9214_v22, 2 }
 0x29f   :  { %7870 = vset.pattern.permute.xlu0 %v12212_v19 }
 0x2a0   :  { %941 = vperm.xlu0 %7870, %v766_v14   ;;  %v1120_v14 = vmax.f32 %v1088_v50, %v1104_v29  ;;  %v1084_v50 = vadd.f32 %v9308_v26, %v9092_v62 }
 0x2a1   :  { %7852 = vset.pattern.permute.xlu1 %v12211_v15  ;;  %7853 = vset.pattern.permute.xlu2 %v12211_v15  ;;  %v9458_v29 = vpop.permute.xlu1 %832 }
 0x2a2   :  { %561 = vperm.xlu1 %7852, %v390_v35   ;;  %566 = vperm.xlu2 %7853, %v391_v25   ;;  %v1440_v35 = vadd.f32 %v9320_v31, %v9108_v3  ;;  %v751_v25 = vmul.f32 0.2, %v735_v27  ;;  %12277 = vst [vmem:[#allocation44_spill] sm:$0xff] %v9458_v29  ;;  %v1100_v10 = vmul.f32 0.2, %v1084_v50 }
 0x2a4   :  { %v1456_v51 = vmul.f32 0.2, %v1440_v35  ;;  %v767_v6 = vmax.f32 %v735_v27, %v751_v25  ;;  %v1116_v0 = vmax.f32 %v1084_v50, %v1100_v10  ;;  %v731_v27 = vadd.f32 %v9318_v17, %v9120_v59 }
 0x2a5   :  { %v1439_v25 = vadd.f32 %v9320_v31, %v9092_v62  ;;  %v482_v10 = vadd.f32 %v9450_v45, %v9206_v2  ;;  %v9488_v62 = vperm.slane %v9214_v22, 3  ;;  %v1087_v2 = vadd.f32 %v9308_v26, %v9127_v53 }
 0x2a6   :  { %v1472_v29 = vmax.f32 %v1440_v35, %v1456_v51  ;;  %v836_v35 = vadd.f32 %v9466_v36, %v9196_v42  ;;  %v747_v33 = vmul.f32 0.2, %v731_v27  ;;  %v360_v22 = vadd.f32 %v9306_v49, %v9120_v59 }
 0x2a7   :  { %v1455_v58 = vmul.f32 0.2, %v1439_v25  ;;  %v1103_v20 = vmul.f32 0.2, %v1087_v2 }
 0x2a8   :  { %7871 = vset.pattern.permute.xlu0 %v12216_v56  ;;  %v532_v54 = vpop.permute.xlu2 %531 }
 0x2a9   :  { %1291 = vperm.xlu0 %7871, %v1120_v14   ;;  %v481_v14 = vadd.f32 %v9450_v45, %v9220_v37  ;;  %v1191_v37 = vadd.f32 %v9463_v43, %v9185_v32  ;;  %v1192_v32 = vadd.f32 %v9463_v43, %v9218_v52  ;;  %v1093_v52 = vadd.f32 %v9308_v26, %v9204_v30 }
 0x2aa   :  { %7854 = vset.pattern.permute.xlu1 %v12212_v19  ;;  %7855 = vset.pattern.permute.xlu2 %v12212_v19 }
 0x2ab   :  { %916 = vperm.xlu1 %7854, %v761_v24   ;;  %921 = vperm.xlu2 %7855, %v762_v41   ;;  %v497_v3 = vmul.f32 0.2, %v481_v14  ;;  %v1446_v41 = vadd.f32 %v9320_v31, %v9154_v44  ;;  %v1207_v51 = vmul.f32 0.2, %v1191_v37 }
 0x2ad   :  { %v513_v63 = vmax.f32 %v481_v14, %v497_v3  ;;  %v1462_v50 = vmul.f32 0.2, %v1446_v41  ;;  %v1208_v14 = vmul.f32 0.2, %v1192_v32  ;;  %v1223_v42 = vmax.f32 %v1191_v37, %v1207_v51 }
 0x2ae   :  { %v498_v3 = vmul.f32 0.2, %v482_v10  ;;  %v1109_v51 = vmul.f32 0.2, %v1093_v52 }
 0x2af   :  { %v609_v16 = vsub.f32 %v513_v63, %v532_v54  ;;  %v763_v63 = vmax.f32 %v731_v27, %v747_v33  ;;  %v1471_v54 = vmax.f32 %v1439_v25, %v1455_v58  ;;  %v1546_v33 = vadd.f32 %v9488_v62, %v9192_v21 }
 0x2b0   :  { %v837_v58 = vadd.f32 %v9466_v36, %v9200_v1  ;;  %v1224_v27 = vmax.f32 %v1192_v32, %v1208_v14  ;;  %v514_v25 = vmax.f32 %v482_v10, %v498_v3  ;;  %v9511_v21 = vadd.f32 %v9450_v45, %v9240_v8 }
 0x2b1   :  { %7877 = vset.pattern.permute.xlu0 %v12212_v19  ;;  %v887_v24 = vpop.permute.xlu2 %886  ;;  %v1125_v32 = vmax.f32 %v1093_v52, %v1109_v51  ;;  %v9515_v10 = vadd.f32 %v9466_v36, %v9250_v40  ;;  %v1562_v14 = vmul.f32 0.2, %v1546_v33  ;;  %v1441_v40 = vadd.f32 %v9320_v31, %v9120_v59 }
 0x2b2   :  { %946 = vperm.xlu0 %7877, %v767_v6   ;;  %v9485_v6 = vpop.permute.xlu1 %1187  ;;  %v853_v3 = vmul.f32 0.2, %v837_v58 }
 0x2b3   :  { %7859 = vset.pattern.permute.xlu1 %v12260_v4  ;;  %7856 = vset.pattern.permute.xlu2 %v12216_v56  ;;  %12278 = vst [vmem:[#allocation45_spill] sm:$0xff] %v9485_v6  ;;  %v625_v6 = vmul.f32 1.442695, %v609_v16  ;;  %v1578_v51 = vmax.f32 %v1546_v33, %v1562_v14 }
 0x2b4   :  { %1631 = vperm.xlu1 %7859, %v1472_v29   ;;  %1271 = vperm.xlu2 %7856, %v1116_v0   ;;  %v852_v0 = vmul.f32 0.2, %v836_v35  ;;  %v1478_v29 = vmax.f32 %v1446_v41, %v1462_v50  ;;  %v9500_v41 = vld [vmem:[%s12279_s4] sm:$0xff] }
 0x2b5   :  { %8025 = vpow2.f32 %v625_v6  ;;  %v1119_v6 = vmax.f32 %v1087_v2, %v1103_v20  ;;  %v732_v20 = vadd.f32 %v9318_v17, %v9127_v53 }
 0x2b6   :  { %v868_v50 = vmax.f32 %v836_v35, %v852_v0 }
 0x2b8   :  { %v964_v35 = vsub.f32 %v868_v50, %v887_v24  ;;  %v77_v24 = vunpack.c.1.s8 %v9500_v41 }
 0x2ba   :  { %7882 = vset.pattern.permute.xlu0 %v12260_v4  ;;  %v9531_v50 = vcvt.s32.f32 %v77_v24 }
 0x2bb   :  { %1661 = vperm.xlu0 %7882, %v1478_v29   ;;  %v1242_v7 = vpop.permute.xlu2 %1241  ;;  %v76_v29 = vunpack.c.0.s8 %v9500_v41  ;;  %v8026_v52 = vpop.eup %8025 }
 0x2bc   :  { %7862 = vset.pattern.permute.xlu1 %v12212_v19  ;;  %7858 = vset.pattern.permute.xlu2 %v12260_v4  ;;  %v1319_v37 = vsub.f32 %v1223_v42, %v1242_v7  ;;  %v376_v7 = vmul.f32 0.2, %v360_v22  ;;  %12281 = vst [vmem:[#allocation47_spill] sm:$0xff] %v9531_v50 }
 0x2bd   :  { %926 = vperm.xlu1 %7862, %v763_v63   ;;  %1626 = vperm.xlu2 %7858, %v1471_v54  }
 0x2be   :  { %v1335_v16 = vmul.f32 1.442695, %v1319_v37  ;;  %v392_v8 = vmax.f32 %v360_v22, %v376_v7  ;;  %v499_v37 = vmul.f32 0.2, %v9511_v21  ;;  %v854_v22 = vmul.f32 0.2, %v9515_v10 }
 0x2bf   :  { %v1247_v30 = vpop.permute.xlu0 %1246  ;;  %v537_v28 = vpop.permute.xlu1 %536  ;;  %v869_v7 = vmax.f32 %v837_v58, %v853_v3 }
 0x2c0   :  { %8027 = vpow2.f32 %v1335_v16  ;;  %v1320_v0 = vsub.f32 %v1224_v27, %v1247_v30  ;;  %v610_v42 = vsub.f32 %v514_v25, %v537_v28  ;;  %v9519_v30 = vcvt.s32.f32 %v76_v29 }
 0x2c1   :  { %v980_v28 = vmul.f32 1.442695, %v964_v35  ;;  %v839_v16 = vadd.f32 %v9466_v36, %v9225_v60  ;;  %v1547_v27 = vadd.f32 %v9488_v62, %v9229_v39 }
 0x2c2   :  { %v1337_v1 = vmul.f32 1.442695, %v1320_v0  ;;  %v627_v63 = vmul.f32 1.442695, %v610_v42  ;;  %12280 = vst [vmem:[#allocation46_spill] sm:$0xff] %v9519_v30  ;;  %v657_v35 = vmul.f32 %v8026_v52, %v9519_v30 }
 0x2c3   :  { %7889 = vset.pattern.permute.xlu0 %v12216_v56  ;;  %v1457_v42 = vmul.f32 0.2, %v1441_v40  ;;  %v855_v39 = vmul.f32 0.2, %v839_v16  ;;  %v1563_v14 = vmul.f32 0.2, %v1547_v27 }
 0x2c4   :  { %8029 = vpow2.f32 %v1337_v1  ;;  %1316 = vperm.xlu0 %7889, %v1125_v32   ;;  %v9521_v54 = vpop.permute.xlu2 %541  ;;  %v748_v1 = vmul.f32 0.2, %v732_v20  ;;  %v515_v32 = vmax.f32 %v9511_v21, %v499_v37  ;;  %v673_v3 = vpack.c.bf16 %v657_v35, %v657_v35 }
 0x2c5   :  { %8031 = vpow2.f32 %v627_v63  ;;  %7865 = vset.pattern.permute.xlu1 %v12216_v56  ;;  %7860 = vset.pattern.permute.xlu2 %v12211_v15  ;;  %v1473_v52 = vmax.f32 %v1441_v40, %v1457_v42  ;;  %v363_v21 = vadd.f32 %v9306_v49, %v9141_v5  ;;  %v871_v35 = vmax.f32 %v839_v16, %v855_v39 }
 0x2c6   :  { %v8028_v2 = vpop.eup %8027  ;;  %1286 = vperm.xlu1 %7865, %v1119_v6   ;;  %571 = vperm.xlu2 %7860, %v392_v8   ;;  %8033 = vpow2.f32 %v980_v28  ;;  %v870_v8 = vmax.f32 %v9515_v10, %v854_v22  ;;  %v764_v11 = vmax.f32 %v732_v20, %v748_v1  ;;  %v484_v1 = vadd.f32 %v9450_v45, %v9211_v34 }
 0x2c7   :  { %v1367_v25 = vmul.f32 %v8028_v2, %v9519_v30 }
 0x2c8   :  { %v1597_v29 = vpop.permute.xlu0 %1596 }
 0x2c9   :  { %v892_v0 = vpop.permute.xlu1 %891  ;;  %v1674_v6 = vsub.f32 %v1578_v51, %v1597_v29  ;;  %v1383_v28 = vpack.c.bf16 %v1367_v25, %v1367_v25  ;;  %v1086_v25 = vadd.f32 %v9308_v26, %v9120_v59  ;;  %v379_v59 = vmul.f32 0.2, %v363_v21 }
 0x2ca   :  { %v8030_v63 = vpop.eup %8029  ;;  %v965_v24 = vsub.f32 %v869_v7, %v892_v0  ;;  %v1193_v7 = vadd.f32 %v9463_v43, %v9260_v48  ;;  %v1803_v0 = vunpack.c.l.b16 %v673_v3  ;;  %v611_v48 = vsub.f32 %v515_v32, %v9521_v54 }
 0x2cb   :  { %v8032_v60 = vpop.eup %8031  ;;  %v1368_v2 = vmul.f32 %v8030_v63, %v9531_v50  ;;  %v1690_v51 = vmul.f32 1.442695, %v1674_v6  ;;  %v1899_v20 = vunpack.c.l.b16 %v1383_v28  ;;  %v1579_v6 = vmax.f32 %v1547_v27, %v1563_v14 }
 0x2cc   :  { %v982_v33 = vmul.f32 1.442695, %v965_v24  ;;  %v658_v58 = vmul.f32 %v8032_v60, %v9531_v50  ;;  %7902 = vset.pattern.permute.xlu0 %v12260_v4  ;;  %v8034_v37 = vpop.eup %8033  ;;  %v1209_v27 = vmul.f32 0.2, %v1193_v7  ;;  %v500_v28 = vmul.f32 0.2, %v484_v1 }
 0x2cd   :  { %v1384_v61 = vpack.c.bf16 %v1368_v2, %v1368_v2  ;;  %v1012_v63 = vmul.f32 %v8034_v37, %v9519_v30  ;;  %v1102_v2 = vmul.f32 0.2, %v1086_v25  ;;  %v395_v37 = vmax.f32 %v363_v21, %v379_v59 }
 0x2ce   :  { %8035 = vpow2.f32 %v982_v33  ;;  %7866 = vset.pattern.permute.xlu1 %v12260_v4  ;;  %7863 = vset.pattern.permute.xlu2 %v12212_v19  ;;  %v897_v10 = vpop.permute.xlu2 %896  ;;  %v674_v22 = vpack.c.bf16 %v658_v58, %v658_v58  ;;  %v1089_v33 = vadd.f32 %v9308_v26, %v9141_v5  ;;  %v1442_v32 = vadd.f32 %v9320_v31, %v9127_v53 }
 0x2cf   :  { %1636 = vperm.xlu1 %7866, %v1473_v52   ;;  %931 = vperm.xlu2 %7863, %v764_v11   ;;  %v966_v40 = vsub.f32 %v870_v8, %v897_v10  ;;  %v1900_v29 = vunpack.c.l.b16 %v1384_v61  ;;  %8037 = vpow2.f32 %v1690_v51  ;;  %v1028_v52 = vpack.c.bf16 %v1012_v63, %v1012_v63 }
 0x2d0   :  { %v1804_v42 = vunpack.c.l.b16 %v674_v22  ;;  %v1118_v54 = vmax.f32 %v1086_v25, %v1102_v2  ;;  %v629_v51 = vmul.f32 1.442695, %v611_v48  ;;  %v1225_v21 = vmax.f32 %v1193_v7, %v1209_v27 }
 0x2d1   :  { %v9555_v24 = vpack.c.b16 %v1900_v29, %v1899_v20  ;;  %v984_v11 = vmul.f32 1.442695, %v966_v40  ;;  %v79_v40 = vunpack.c.3.s8 %v9500_v41  ;;  %v1851_v25 = vunpack.c.l.b16 %v1028_v52 }
 0x2d2   :  { %v902_v60 = vpop.permute.xlu0 %901  ;;  %v1602_v8 = vpop.permute.xlu1 %1601  ;;  %v9557_v61 = vpack.c.b16 %v1804_v42, %v1803_v0  ;;  %v1105_v53 = vmul.f32 0.2, %v1089_v33  ;;  %v1458_v0 = vmul.f32 0.2, %v1442_v32  ;;  %v78_v42 = vunpack.c.2.s8 %v9500_v41 }
 0x2d3   :  { %v967_v16 = vsub.f32 %v871_v35, %v902_v60  ;;  %v1675_v39 = vsub.f32 %v1579_v6, %v1602_v8  ;;  %2277 = vmatmul.bf16.vlgmr.msrb.gmra.mxu0 %v9555_v24  ;;  %8039 = vpow2.f32 %v984_v11  ;;  %v516_v35 = vmax.f32 %v484_v1, %v500_v28 }
 0x2d4   :  { %v8036_v34 = vpop.eup %8035  ;;  %2179 = vmatmul.bf16.vlgmr.msra.gmra.mxu3 %v9557_v61  ;;  %v9576_v11 = vcvt.s32.f32 %v79_v40  ;;  %v1549_v8 = vadd.f32 %v9488_v62, %v9244_v38  ;;  %v1194_v1 = vadd.f32 %v9463_v43, %v9235_v12  ;;  %v1443_v27 = vadd.f32 %v9320_v31, %v9135_v18 }
 0x2d5   :  { %v1013_v14 = vmul.f32 %v8036_v34, %v9531_v50  ;;  %v986_v58 = vmul.f32 1.442695, %v967_v16  ;;  %v1692_v3 = vmul.f32 1.442695, %v1675_v39  ;;  %v8038_v20 = vpop.eup %8037  ;;  %v1121_v39 = vmax.f32 %v1089_v33, %v1105_v53 }
 0x2d6   :  { %v1722_v59 = vmul.f32 %v8038_v20, %v9519_v30  ;;  %12282 = vst [vmem:[#allocation48_spill] sm:$0xff] %v9576_v11  ;;  %v1474_v34 = vmax.f32 %v1442_v32, %v1458_v0  ;;  %v9585_v28 = vcvt.s32.f32 %v78_v42  ;;  %v1565_v12 = vmul.f32 0.2, %v1549_v8 }
 0x2d7   :  { %8041 = vpow2.f32 %v986_v58  ;;  %7868 = vset.pattern.permute.xlu1 %v12211_v15  ;;  %7864 = vset.pattern.permute.xlu2 %v12216_v56  ;;  %v9569_v10 = vpop.permute.xlu2 %1611  ;;  %v1029_v22 = vpack.c.bf16 %v1013_v14, %v1013_v14  ;;  %v1210_v52 = vmul.f32 0.2, %v1194_v1  ;;  %v733_v33 = vadd.f32 %v9318_v17, %v9135_v18 }
 0x2d8   :  { %8043 = vpow2.f32 %v1692_v3  ;;  %586 = vperm.xlu1 %7868, %v395_v37   ;;  %1281 = vperm.xlu2 %7864, %v1118_v54   ;;  %12283 = vst [vmem:[#allocation49_spill] sm:$0xff] %v9585_v28  ;;  %v1738_v58 = vpack.c.bf16 %v1722_v59, %v1722_v59 }
 0x2d9   :  { %v1852_v29 = vunpack.c.l.b16 %v1029_v22  ;;  %8045 = vpow2.f32 %v629_v51  ;;  %v8040_v60 = vpop.eup %8039  ;;  %v749_v53 = vmul.f32 0.2, %v733_v33 }
 0x2da   :  { %v1014_v22 = vmul.f32 %v8040_v60, %v9585_v28  ;;  %v1947_v40 = vunpack.c.l.b16 %v1738_v58  ;;  %v486_v60 = vadd.f32 %v9450_v45, %v9280_v23 }
 0x2db   :  { %v1252_v63 = vpop.permute.xlu0 %1251  ;;  %v9573_v6 = vpack.c.b16 %v1852_v29, %v1851_v25  ;;  %v1581_v29 = vmax.f32 %v1549_v8, %v1565_v12  ;;  %v9604_v8 = vadd.f32 %v9488_v62, %v9274_v9  ;;  %v364_v9 = vadd.f32 %v9306_v49, %v9147_v57 }
 0x2dc   :  { %v547_v7 = vpop.permute.xlu1 %546  ;;  %v1321_v48 = vsub.f32 %v1225_v21, %v1252_v63  ;;  %v1459_v21 = vmul.f32 0.2, %v1443_v27  ;;  %v1548_v63 = vadd.f32 %v9488_v62, %v9268_v47  ;;  %v1030_v59 = vpack.c.bf16 %v1014_v22, %v1014_v22 }
 0x2dd   :  { %v8042_v2 = vpop.eup %8041  ;;  %v612_v16 = vsub.f32 %v516_v35, %v547_v7  ;;  %2228 = vmatmul.bf16.vlgmr.msra.gmra.mxu2 %v9573_v6  ;;  %v1226_v35 = vmax.f32 %v1194_v1, %v1210_v52  ;;  %v1677_v7 = vsub.f32 %v1581_v29, %v9569_v10  ;;  %v765_v47 = vmax.f32 %v733_v33, %v749_v53 }
 0x2de   :  { %v8044_v41 = vpop.eup %8043  ;;  %v1015_v3 = vmul.f32 %v8042_v2, %v9576_v11  ;;  %v1339_v54 = vmul.f32 1.442695, %v1321_v48  ;;  %v1475_v1 = vmax.f32 %v1443_v27, %v1459_v21  ;;  %v1564_v23 = vmul.f32 0.2, %v1548_v63 }
 0x2df   :  { %v631_v14 = vmul.f32 1.442695, %v612_v16  ;;  %v1723_v38 = vmul.f32 %v8044_v41, %v9531_v50  ;;  %v8046_v37 = vpop.eup %8045  ;;  %v1853_v10 = vunpack.c.l.b16 %v1030_v59  ;;  %v1444_v27 = vadd.f32 %v9320_v31, %v9141_v5 }
 0x2e0   :  { %7872 = vset.pattern.permute.xlu1 %v12216_v56  ;;  %7867 = vset.pattern.permute.xlu2 %v12260_v4  ;;  %v1031_v25 = vpack.c.bf16 %v1015_v3, %v1015_v3  ;;  %v659_v0 = vmul.f32 %v8046_v37, %v9585_v28  ;;  %v1696_v58 = vmul.f32 1.442695, %v1677_v7  ;;  %v1551_v33 = vadd.f32 %v9488_v62, %v9276_v55 }
 0x2e1   :  { %8047 = vpow2.f32 %v631_v14  ;;  %1296 = vperm.xlu1 %7872, %v1121_v39   ;;  %1641 = vperm.xlu2 %7867, %v1474_v34   ;;  %v557_v32 = vpop.permute.xlu2 %556  ;;  %v1739_v51 = vpack.c.bf16 %v1723_v38, %v1723_v38  ;;  %v502_v38 = vmul.f32 0.2, %v486_v60  ;;  %v1566_v22 = vmul.f32 0.2, %v9604_v8 }
 0x2e2   :  { %8049 = vpow2.f32 %v1339_v54  ;;  %v1854_v16 = vunpack.c.l.b16 %v1031_v25  ;;  %v675_v14 = vpack.c.bf16 %v659_v0, %v659_v0  ;;  %v380_v5 = vmul.f32 0.2, %v364_v9 }
 0x2e3   :  { %v1948_v20 = vunpack.c.l.b16 %v1739_v51  ;;  %v518_v21 = vmax.f32 %v486_v60, %v502_v38  ;;  %v840_v55 = vadd.f32 %v9466_v36, %v9264_v13  ;;  %v485_v0 = vadd.f32 %v9450_v45, %v9255_v46 }
 0x2e4   :  { %v9620_v37 = vpack.c.b16 %v1854_v16, %v1853_v10  ;;  %v1805_v54 = vunpack.c.l.b16 %v675_v14  ;;  %v396_v7 = vmax.f32 %v364_v9, %v380_v5  ;;  %v1582_v60 = vmax.f32 %v9604_v8, %v1566_v22 }
 0x2e5   :  { %v1257_v18 = vpop.permute.xlu1 %1256  ;;  %v9595_v42 = vpack.c.b16 %v1948_v20, %v1947_v40  ;;  %v9607_v41 = vpop.permute.xlu0 %906  ;;  %v1580_v40 = vmax.f32 %v1548_v63, %v1564_v23  ;;  %v1460_v20 = vmul.f32 0.2, %v1444_v27 }
 0x2e6   :  { %v1322_v2 = vsub.f32 %v1226_v35, %v1257_v18  ;;  %v1567_v35 = vmul.f32 0.2, %v1551_v33  ;;  %v614_v18 = vsub.f32 %v518_v21, %v557_v32  ;;  %v365_v32 = vadd.f32 %v9306_v49, %v9154_v44 }
 0x2e7   :  { %v8048_v48 = vpop.eup %8047  ;;  %2326 = vmatmul.bf16.vlgmr.msrb.gmra.mxu1 %v9595_v42 }
 0x2e8   :  { %v1341_v39 = vmul.f32 1.442695, %v1322_v2  ;;  %v660_v34 = vmul.f32 %v8048_v48, %v9576_v11  ;;  %v8050_v52 = vpop.eup %8049  ;;  %v1476_v2 = vmax.f32 %v1444_v27, %v1460_v20  ;;  %v736_v48 = vadd.f32 %v9318_v17, %v9154_v44 }
 0x2e9   :  { %7873 = vset.pattern.permute.xlu1 %v12260_v4  ;;  %7869 = vset.pattern.permute.xlu2 %v12212_v19  ;;  %v1369_v29 = vmul.f32 %v8050_v52, %v9585_v28  ;;  %v635_v23 = vmul.f32 1.442695, %v614_v18  ;;  %v381_v52 = vmul.f32 0.2, %v365_v32 }
 0x2ea   :  { %1646 = vperm.xlu1 %7873, %v1475_v1   ;;  %936 = vperm.xlu2 %7869, %v765_v47   ;;  %v9616_v3 = vpop.permute.xlu2 %1266  ;;  %v676_v12 = vpack.c.bf16 %v660_v34, %v660_v34  ;;  %8051 = vpow2.f32 %v1341_v39  ;;  %v856_v39 = vmul.f32 0.2, %v840_v55  ;;  %v1583_v47 = vmax.f32 %v1551_v33, %v1567_v35  ;;  %v12285_v35 = vld [vmem:[#allocation18_spill] sm:$0xff] }
 0x2eb   :  { %8053 = vpow2.f32 %v1696_v58  ;;  %v1385_v13 = vpack.c.bf16 %v1369_v29, %v1369_v29  ;;  %v501_v34 = vmul.f32 0.2, %v485_v0 }
 0x2ec   :  { %v1806_v51 = vunpack.c.l.b16 %v676_v12  ;;  %v752_v12 = vmul.f32 0.2, %v736_v48  ;;  %v872_v33 = vmax.f32 %v840_v55, %v856_v39 }
 0x2ed   :  { %2233 = vmatmul.bf16.gmra.mxu2 %v9620_v37  ;;  %v1901_v38 = vunpack.c.l.b16 %v1385_v13 }
 0x2ee   :  { %v9624_v25 = vpack.c.b16 %v1806_v51, %v1805_v54  ;;  %v1622_v1 = vpop.permute.xlu0 %1621  ;;  %v9643_v54 = vld [vmem:[%s12279_s4 + $0x8] sm:$0xff]  ;;  %v968_v18 = vsub.f32 %v872_v33, %v9607_v41 }
 0x2ef   :  { %v1607_v53 = vpop.permute.xlu1 %1606  ;;  %v1679_v27 = vsub.f32 %v1583_v47, %v1622_v1  ;;  %v12284_v51 = vld [vmem:[#allocation11_spill] sm:$0xff]  ;;  %v81_v55 = vunpack.c.1.s8 %v9643_v54 }
 0x2f0   :  { %v1676_v63 = vsub.f32 %v1580_v40, %v1607_v53  ;;  %2184 = vmatmul.bf16.gmra.mxu3 %v9624_v25  ;;  %v8052_v59 = vpop.eup %8051  ;;  %v1196_v22 = vadd.f32 %v9463_v43, %v12284_v51  ;;  %v517_v40 = vmax.f32 %v485_v0, %v501_v34  ;;  %v841_v53 = vadd.f32 %v9466_v36, %v12285_v35  ;;  %v12289_v35 = vld [vmem:[#allocation19_spill] sm:$0xff] }
 0x2f1   :  { %v1370_v46 = vmul.f32 %v8052_v59, %v9576_v11  ;;  %v8054_v14 = vpop.eup %8053  ;;  %v768_v0 = vmax.f32 %v736_v48, %v752_v12  ;;  %v988_v39 = vmul.f32 1.442695, %v968_v18  ;;  %v1195_v18 = vadd.f32 %v9463_v43, %v12289_v35 }
 0x2f2   :  { %v1694_v16 = vmul.f32 1.442695, %v1676_v63  ;;  %7875 = vset.pattern.permute.xlu1 %v12211_v15  ;;  %7874 = vset.pattern.permute.xlu2 %v12260_v4  ;;  %v1725_v5 = vmul.f32 %v8054_v14, %v9576_v11  ;;  %v1700_v63 = vmul.f32 1.442695, %v1679_v27  ;;  %v1212_v13 = vmul.f32 0.2, %v1196_v22 }
 0x2f3   :  { %591 = vperm.xlu1 %7875, %v396_v7   ;;  %1651 = vperm.xlu2 %7874, %v1476_v2   ;;  %v1617_v8 = vpop.permute.xlu2 %1616  ;;  %v1386_v9 = vpack.c.bf16 %v1370_v46, %v1370_v46  ;;  %v397_v2 = vmax.f32 %v365_v32, %v381_v52  ;;  %v1091_v46 = vadd.f32 %v9308_v26, %v9154_v44  ;;  %v857_v32 = vmul.f32 0.2, %v841_v53  ;;  %v12287_v44 = vld [vmem:[#allocation4_spill] sm:$0xff] }
 0x2f4   :  { %8055 = vpow2.f32 %v1694_v16  ;;  %v1678_v10 = vsub.f32 %v1582_v60, %v1617_v8  ;;  %v1090_v60 = vadd.f32 %v9308_v26, %v9147_v57  ;;  %v1741_v41 = vpack.c.bf16 %v1725_v5, %v1725_v5 }
 0x2f5   :  { %v1902_v58 = vunpack.c.l.b16 %v1386_v9  ;;  %8057 = vpow2.f32 %v635_v23  ;;  %v9662_v8 = vcvt.s32.f32 %v81_v55  ;;  %v1107_v9 = vmul.f32 0.2, %v1091_v46 }
 0x2f6   :  { %v1698_v20 = vmul.f32 1.442695, %v1678_v10  ;;  %v1106_v14 = vmul.f32 0.2, %v1090_v60  ;;  %v1950_v10 = vunpack.c.l.b16 %v1741_v41  ;;  %v80_v27 = vunpack.c.0.s8 %v9643_v54 }
 0x2f7   :  { %v9648_v29 = vpack.c.b16 %v1902_v58, %v1901_v38  ;;  %12286 = vst [vmem:[#allocation11_spill] sm:$0xff] %v9662_v8  ;;  %v488_v38 = vadd.f32 %v9450_v45, %v12287_v44  ;;  %v1228_v58 = vmax.f32 %v1196_v22, %v1212_v13  ;;  %v873_v12 = vmax.f32 %v841_v53, %v857_v32 }
 0x2f8   :  { %v552_v21 = vpop.permute.xlu1 %551  ;;  %8059 = vpow2.f32 %v1698_v20  ;;  %v1122_v22 = vmax.f32 %v1090_v60, %v1106_v14  ;;  %v1123_v53 = vmax.f32 %v1091_v46, %v1107_v9  ;;  %v9678_v55 = vcvt.s32.f32 %v80_v27  ;;  %v12293_v9 = vld [vmem:[#allocation2_spill] sm:$0xff] }
 0x2f9   :  { %v613_v59 = vsub.f32 %v517_v40, %v552_v21  ;;  %2282 = vmatmul.bf16.gmra.mxu0 %v9648_v29  ;;  %8061 = vpow2.f32 %v1700_v63  ;;  %v12288_v40 = vld [vmem:[#allocation14_spill] sm:$0xff]  ;;  %v1324_v20 = vsub.f32 %v1228_v58, %v9616_v3  ;;  %v1198_v27 = vadd.f32 %v9463_v43, %v12293_v9  ;;  %v12296_v9 = vld [vmem:[#allocation9_spill] sm:$0xff] }
 0x2fa   :  { %v8056_v7 = vpop.eup %8055  ;;  %v9672_v5 = vadd.f32 %v9463_v43, %v12288_v40  ;;  %12290 = vst [vmem:[#allocation18_spill] sm:$0xff] %v9678_v55 }
 0x2fb   :  { %v633_v1 = vmul.f32 1.442695, %v613_v59  ;;  %7878 = vset.pattern.permute.xlu1 %v12212_v19  ;;  %7876 = vset.pattern.permute.xlu2 %v12211_v15  ;;  %v1724_v16 = vmul.f32 %v8056_v7, %v9585_v28  ;;  %v8058_v34 = vpop.eup %8057  ;;  %v1345_v32 = vmul.f32 1.442695, %v1324_v20 }
 0x2fc   :  { %951 = vperm.xlu1 %7878, %v768_v0   ;;  %596 = vperm.xlu2 %7876, %v397_v2   ;;  %v567_v48 = vpop.permute.xlu2 %566  ;;  %v662_v33 = vmul.f32 %v8058_v34, %v9662_v8  ;;  %v504_v0 = vmul.f32 0.2, %v488_v38  ;;  %v12291_v2 = vld [vmem:[#allocation16_spill] sm:$0xff]  ;;  %v1213_v34 = vmul.f32 0.2, %v9672_v5 }
 0x2fd   :  { %v1740_v47 = vpack.c.bf16 %v1724_v16, %v1724_v16  ;;  %8063 = vpow2.f32 %v633_v1  ;;  %v366_v3 = vadd.f32 %v9306_v49, %v12291_v2  ;;  %v1445_v1 = vadd.f32 %v9320_v31, %v9147_v57  ;;  %v12292_v57 = vld [vmem:[#allocation6_spill] sm:$0xff] }
 0x2fe   :  { %8065 = vpow2.f32 %v988_v39  ;;  %v8060_v51 = vpop.eup %8059  ;;  %v678_v46 = vpack.c.bf16 %v662_v33, %v662_v33  ;;  %v1211_v39 = vmul.f32 0.2, %v1195_v18  ;;  %v520_v44 = vmax.f32 %v488_v38, %v504_v0 }
 0x2ff   :  { %v1949_v23 = vunpack.c.l.b16 %v1740_v47  ;;  %v8062_v63 = vpop.eup %8061  ;;  %v1726_v13 = vmul.f32 %v8060_v51, %v9678_v55  ;;  %v382_v58 = vmul.f32 0.2, %v366_v3  ;;  %v1461_v51 = vmul.f32 0.2, %v1445_v1 }
 0x300   :  { %v1808_v33 = vunpack.c.l.b16 %v678_v46  ;;  %v616_v20 = vsub.f32 %v520_v44, %v567_v48  ;;  %v1214_v0 = vmul.f32 0.2, %v1198_v27  ;;  %v12297_v44 = vld [vmem:[#allocation5_spill] sm:$0xff] }
 0x301   :  { %v9667_v52 = vpack.c.b16 %v1950_v10, %v1949_v23  ;;  %v1727_v23 = vmul.f32 %v8062_v63, %v9662_v8  ;;  %v843_v10 = vadd.f32 %v9466_v36, %v12292_v57  ;;  %v1742_v40 = vpack.c.bf16 %v1726_v13, %v1726_v13 }
 0x302   :  { %v912_v21 = vpop.permute.xlu1 %911  ;;  %v1229_v63 = vmax.f32 %v9672_v5, %v1213_v34  ;;  %v398_v46 = vmax.f32 %v366_v3, %v382_v58  ;;  %v1477_v48 = vmax.f32 %v1445_v1, %v1461_v51  ;;  %v737_v13 = vadd.f32 %v9318_v17, %v12291_v2 }
 0x303   :  { %v969_v59 = vsub.f32 %v873_v12, %v912_v21  ;;  %2331 = vmatmul.bf16.gmra.mxu1 %v9667_v52  ;;  %v8064_v7 = vpop.eup %8063  ;;  %v1227_v21 = vmax.f32 %v1195_v18, %v1211_v39  ;;  %v859_v38 = vmul.f32 0.2, %v843_v10  ;;  %v1951_v18 = vunpack.c.l.b16 %v1742_v40  ;;  %v1277_v39 = vpop.permute.xlu0 %1276 }
 0x304   :  { %7879 = vset.pattern.permute.xlu1 %v12216_v56  ;;  %7880 = vset.pattern.permute.xlu2 %v12216_v56  ;;  %v661_v60 = vmul.f32 %v8064_v7, %v9678_v55  ;;  %v8066_v47 = vpop.eup %8065  ;;  %v9712_v1 = vadd.f32 %v9488_v62, %v12296_v9  ;;  %v490_v58 = vadd.f32 %v9450_v45, %v12297_v44  ;;  %v12298_v9 = vld [vmem:[#allocation13_spill] sm:$0xff] }
 0x305   :  { %v990_v16 = vmul.f32 1.442695, %v969_v59  ;;  %1301 = vperm.xlu1 %7879, %v1122_v22   ;;  %1306 = vperm.xlu2 %7880, %v1123_v53   ;;  %v9686_v41 = vpop.permute.xlu2 %921  ;;  %v1016_v35 = vmul.f32 %v8066_v47, %v9678_v55  ;;  %v12294_v53 = vld [vmem:[#allocation10_spill] sm:$0xff]  ;;  %v639_v47 = vmul.f32 1.442695, %v616_v20  ;;  %v1230_v51 = vmax.f32 %v1198_v27, %v1214_v0 }
 0x306   :  { %v677_v14 = vpack.c.bf16 %v661_v60, %v661_v60  ;;  %v487_v7 = vadd.f32 %v9450_v45, %v12294_v53  ;;  %v753_v53 = vmul.f32 0.2, %v737_v13  ;;  %v842_v44 = vadd.f32 %v9466_v36, %v12298_v9 }
 0x307   :  { %8067 = vpow2.f32 %v990_v16  ;;  %v1743_v16 = vpack.c.bf16 %v1727_v23, %v1727_v23  ;;  %v1032_v57 = vpack.c.bf16 %v1016_v35, %v1016_v35 }
 0x308   :  { %v1807_v12 = vunpack.c.l.b16 %v677_v14  ;;  %8069 = vpow2.f32 %v1345_v32  ;;  %v12295_v32 = vld [vmem:[#allocation17_spill] sm:$0xff] }
 0x309   :  { %v367_v5 = vadd.f32 %v9306_v49, %v12295_v32  ;;  %v1952_v49 = vunpack.c.l.b16 %v1743_v16  ;;  %v506_v16 = vmul.f32 0.2, %v490_v58 }
 0x30a   :  { %v9697_v22 = vpack.c.b16 %v1808_v33, %v1807_v12  ;;  %v503_v12 = vmul.f32 0.2, %v487_v7 }
 0x30b   :  { %v1262_v59 = vpop.permute.xlu1 %1261  ;;  %v383_v35 = vmul.f32 0.2, %v367_v5 }
 0x30c   :  { %v1323_v60 = vsub.f32 %v1227_v21, %v1262_v59  ;;  %2189 = vmatmul.bf16.gmra.mxu3 %v9697_v22  ;;  %v875_v21 = vmax.f32 %v843_v10, %v859_v38  ;;  %v9716_v59 = vpack.c.b16 %v1952_v49, %v1951_v18  ;;  %v1568_v18 = vmul.f32 0.2, %v9712_v1 }
 0x30d   :  { %v8068_v14 = vpop.eup %8067  ;;  %7883 = vset.pattern.permute.xlu1 %v12211_v15  ;;  %7881 = vset.pattern.permute.xlu2 %v12260_v4 }
 0x30e   :  { %v1343_v34 = vmul.f32 1.442695, %v1323_v60  ;;  %601 = vperm.xlu1 %7883, %v398_v46   ;;  %v1272_v3 = vpop.permute.xlu2 %1271  ;;  %v1017_v23 = vmul.f32 %v8068_v14, %v9662_v8  ;;  %1656 = vperm.xlu2 %7881, %v1477_v48   ;;  %v8070_v33 = vpop.eup %8069  ;;  %v1326_v60 = vsub.f32 %v1230_v51, %v1277_v39  ;;  %v1855_v46 = vunpack.c.l.b16 %v1032_v57 }
 0x30f   :  { %v1325_v40 = vsub.f32 %v1229_v63, %v1272_v3  ;;  %v519_v48 = vmax.f32 %v487_v7, %v503_v12  ;;  %v1372_v27 = vmul.f32 %v8070_v33, %v9662_v8  ;;  %v971_v63 = vsub.f32 %v875_v21, %v9686_v41 }
 0x310   :  { %8071 = vpow2.f32 %v1343_v34  ;;  %v1033_v20 = vpack.c.bf16 %v1017_v23, %v1017_v23  ;;  %v83_v34 = vunpack.c.3.s8 %v9643_v54  ;;  %v12299_v23 = vld [vmem:[#allocation25_spill] sm:$0xff]  ;;  %v1349_v57 = vmul.f32 1.442695, %v1326_v60 }
 0x311   :  { %8073 = vpow2.f32 %v639_v47  ;;  %v1347_v10 = vmul.f32 1.442695, %v1325_v40  ;;  %v769_v47 = vmax.f32 %v737_v13, %v753_v53  ;;  %v489_v7 = vadd.f32 %v9450_v45, %v12299_v23  ;;  %v577_v53 = vpop.permute.xlu0 %576 }
 0x312   :  { %v1856_v14 = vunpack.c.l.b16 %v1033_v20  ;;  %v399_v41 = vmax.f32 %v367_v5, %v383_v35  ;;  %v738_v12 = vadd.f32 %v9318_v17, %v12295_v32  ;;  %v1388_v51 = vpack.c.bf16 %v1372_v27, %v1372_v27 }
 0x313   :  { %2336 = vmatmul.bf16.gmra.mxu1 %v9716_v59  ;;  %v858_v20 = vmul.f32 0.2, %v842_v44  ;;  %v522_v21 = vmax.f32 %v490_v58, %v506_v16  ;;  %v994_v60 = vmul.f32 1.442695, %v971_v63  ;;  %8075 = vpow2.f32 %v1347_v10  ;;  %v12301_v10 = vld [vmem:[#allocation23_spill] sm:$0xff] }
 0x314   :  { %v562_v38 = vpop.permute.xlu1 %561  ;;  %v9723_v0 = vpack.c.b16 %v1856_v14, %v1855_v46  ;;  %v82_v35 = vunpack.c.2.s8 %v9643_v54  ;;  %v9736_v17 = vcvt.s32.f32 %v83_v34  ;;  %v505_v46 = vmul.f32 0.2, %v489_v7 }
 0x315   :  { %v615_v39 = vsub.f32 %v519_v48, %v562_v38  ;;  %v1584_v14 = vmax.f32 %v9712_v1, %v1568_v18  ;;  %v754_v9 = vmul.f32 0.2, %v738_v12  ;;  %v618_v48 = vsub.f32 %v522_v21, %v577_v53 }
 0x316   :  { %v8072_v3 = vpop.eup %8071  ;;  %7885 = vset.pattern.permute.xlu1 %v12212_v19  ;;  %2238 = vmatmul.bf16.gmra.mxu2 %v9723_v0  ;;  %12300 = vst [vmem:[#allocation4_spill] sm:$0xff] %v9736_v17  ;;  %v1904_v38 = vunpack.c.l.b16 %v1388_v51  ;;  %v874_v63 = vmax.f32 %v842_v44, %v858_v20  ;;  %v9748_v1 = vcvt.s32.f32 %v82_v35  ;;  %v1092_v44 = vadd.f32 %v9308_v26, %v12291_v2 }
 0x317   :  { %v637_v49 = vmul.f32 1.442695, %v615_v39  ;;  %7884 = vset.pattern.permute.xlu2 %v12211_v15  ;;  %956 = vperm.xlu1 %7885, %v769_v47   ;;  %v1627_v13 = vpop.permute.xlu2 %1626  ;;  %v1371_v33 = vmul.f32 %v8072_v3, %v9678_v55  ;;  %v8074_v40 = vpop.eup %8073  ;;  %v1553_v39 = vadd.f32 %v9488_v62, %v12301_v10  ;;  %v12302_v47 = vld [vmem:[#allocation29_spill] sm:$0xff] }
 0x318   :  { %606 = vperm.xlu2 %7884, %v399_v41   ;;  %v664_v58 = vmul.f32 %v8074_v40, %v9736_v17  ;;  %v1680_v16 = vsub.f32 %v1584_v14, %v1627_v13  ;;  %v9744_v54 = vadd.f32 %v9466_v36, %v12302_v47  ;;  %12303 = vst [vmem:[#allocation14_spill] sm:$0xff] %v9748_v1 }
 0x319   :  { %8077 = vpow2.f32 %v637_v49  ;;  %v1387_v5 = vpack.c.bf16 %v1371_v33, %v1371_v33  ;;  %v8076_v18 = vpop.eup %8075  ;;  %v643_v49 = vmul.f32 1.442695, %v618_v48  ;;  %v770_v13 = vmax.f32 %v738_v12, %v754_v9 }
 0x31a   :  { %8079 = vpow2.f32 %v1349_v57  ;;  %v1447_v57 = vadd.f32 %v9320_v31, %v12291_v2  ;;  %v521_v33 = vmax.f32 %v489_v7, %v505_v46  ;;  %v680_v51 = vpack.c.bf16 %v664_v58, %v664_v58  ;;  %v9764_v7 = vld [vmem:[%s12279_s4 + $0x10] sm:$0xff] }
 0x31b   :  { %v1903_v27 = vunpack.c.l.b16 %v1387_v5  ;;  %8081 = vpow2.f32 %v994_v60  ;;  %v1702_v20 = vmul.f32 1.442695, %v1680_v16  ;;  %v1569_v26 = vmul.f32 0.2, %v1553_v39 }
 0x31c   :  { %v861_v2 = vmul.f32 0.2, %v9744_v54  ;;  %v1373_v35 = vmul.f32 %v8076_v18, %v9748_v1  ;;  %v1463_v46 = vmul.f32 0.2, %v1447_v57  ;;  %v1108_v9 = vmul.f32 0.2, %v1092_v44 }
 0x31d   :  { %v917_v34 = vpop.permute.xlu1 %916  ;;  %v9746_v3 = vpack.c.b16 %v1904_v38, %v1903_v27  ;;  %v1810_v27 = vunpack.c.l.b16 %v680_v51  ;;  %v84_v16 = vunpack.c.0.s8 %v9764_v7  ;;  %v1585_v10 = vmax.f32 %v1553_v39, %v1569_v26  ;;  %v12304_v18 = vld [vmem:[#allocation20_spill] sm:$0xff] }
 0x31e   :  { %v970_v23 = vsub.f32 %v874_v63, %v917_v34  ;;  %v85_v63 = vunpack.c.1.s8 %v9764_v7  ;;  %v1389_v47 = vpack.c.bf16 %v1373_v35, %v1373_v35  ;;  %v1124_v39 = vmax.f32 %v1092_v44, %v1108_v9 }
 0x31f   :  { %v8078_v41 = vpop.eup %8077  ;;  %7886 = vset.pattern.permute.xlu1 %v12260_v4  ;;  %2287 = vmatmul.bf16.gmra.mxu0 %v9746_v3  ;;  %v9780_v26 = vcvt.s32.f32 %v84_v16 }
 0x320   :  { %v8080_v40 = vpop.eup %8079  ;;  %v992_v21 = vmul.f32 1.442695, %v970_v23  ;;  %7887 = vset.pattern.permute.xlu2 %v12212_v19  ;;  %1542 = vperm.xlu1 %7886, %v12295_v32   ;;  %v572_v53 = vpop.permute.xlu2 %571  ;;  %v663_v60 = vmul.f32 %v8078_v41, %v9748_v1  ;;  %v844_v23 = vadd.f32 %v9466_v36, %v12304_v18 }
 0x321   :  { %961 = vperm.xlu2 %7887, %v770_v13   ;;  %v617_v5 = vsub.f32 %v521_v33, %v572_v53  ;;  %v8082_v12 = vpop.eup %8081  ;;  %v1374_v38 = vmul.f32 %v8080_v40, %v9736_v17  ;;  %v12305_v33 = vld [vmem:[#allocation27_spill] sm:$0xff]  ;;  %12306 = vst [vmem:[#allocation19_spill] sm:$0xff] %v9780_v26 }
 0x322   :  { %8083 = vpow2.f32 %v992_v21  ;;  %v679_v14 = vpack.c.bf16 %v663_v60, %v663_v60  ;;  %v1019_v34 = vmul.f32 %v8082_v12, %v9736_v17  ;;  %v1199_v51 = vadd.f32 %v9463_v43, %v12305_v33 }
 0x323   :  { %8085 = vpow2.f32 %v643_v49  ;;  %v641_v48 = vmul.f32 1.442695, %v617_v5  ;;  %v1479_v49 = vmax.f32 %v1447_v57, %v1463_v46  ;;  %v1390_v21 = vpack.c.bf16 %v1374_v38, %v1374_v38 }
 0x324   :  { %8087 = vpow2.f32 %v1702_v20  ;;  %v1809_v58 = vunpack.c.l.b16 %v679_v14  ;;  %v877_v20 = vmax.f32 %v9744_v54, %v861_v2  ;;  %v1448_v60 = vadd.f32 %v9320_v31, %v12295_v32 }
 0x325   :  { %8089 = vpow2.f32 %v641_v48  ;;  %v9782_v57 = vcvt.s32.f32 %v85_v63  ;;  %v1905_v46 = vunpack.c.l.b16 %v1389_v47  ;;  %v1035_v2 = vpack.c.bf16 %v1019_v34, %v1019_v34  ;;  %v9790_v34 = vpop.permute.xlu0 %581 }
 0x326   :  { %v1632_v41 = vpop.permute.xlu1 %1631  ;;  %v9772_v13 = vpack.c.b16 %v1810_v27, %v1809_v58  ;;  %v860_v48 = vmul.f32 0.2, %v844_v23  ;;  %v1906_v31 = vunpack.c.l.b16 %v1390_v21  ;;  %v1215_v27 = vmul.f32 0.2, %v1199_v51 }
 0x327   :  { %v1681_v40 = vsub.f32 %v1585_v10, %v1632_v41  ;;  %12307 = vst [vmem:[#allocation16_spill] sm:$0xff] %v9782_v57  ;;  %v1858_v47 = vunpack.c.l.b16 %v1035_v2  ;;  %v1464_v18 = vmul.f32 0.2, %v1448_v60 }
 0x328   :  { %v8084_v53 = vpop.eup %8083  ;;  %1666 = vperm.xlu1 %7886, %v1479_v49   ;;  %2194 = vmatmul.bf16.gmra.mxu3 %v9772_v13  ;;  %v9788_v63 = vpack.c.b16 %v1906_v31, %v1905_v46  ;;  %v876_v41 = vmax.f32 %v844_v23, %v860_v48  ;;  %v12310_v23 = vld [vmem:[#allocation31_spill] sm:$0xff] }
 0x329   :  { %v8086_v5 = vpop.eup %8085  ;;  %v1704_v35 = vmul.f32 1.442695, %v1681_v40  ;;  %7888 = vset.pattern.permute.xlu2 %v12216_v56  ;;  %v932_v12 = vpop.permute.xlu2 %931  ;;  %v1018_v54 = vmul.f32 %v8084_v53, %v9748_v1  ;;  %v12308_v40 = vld [vmem:[#allocation21_spill] sm:$0xff]  ;;  %v1480_v2 = vmax.f32 %v1448_v60, %v1464_v18 }
 0x32a   :  { %v8088_v14 = vpop.eup %8087  ;;  %1311 = vperm.xlu2 %7888, %v1124_v39   ;;  %v973_v44 = vsub.f32 %v877_v20, %v932_v12  ;;  %v666_v16 = vmul.f32 %v8086_v5, %v9782_v57  ;;  %v1200_v20 = vadd.f32 %v9463_v43, %v12308_v40  ;;  %v12309_v12 = vld [vmem:[#allocation26_spill] sm:$0xff] }
 0x32b   :  { %v8090_v9 = vpop.eup %8089  ;;  %8091 = vpow2.f32 %v1704_v35  ;;  %v1034_v32 = vpack.c.bf16 %v1018_v54, %v1018_v54  ;;  %v1728_v33 = vmul.f32 %v8088_v14, %v9748_v1  ;;  %v847_v46 = vadd.f32 %v9466_v36, %v12309_v12 }
 0x32c   :  { %v998_v38 = vmul.f32 1.442695, %v973_v44  ;;  %v665_v58 = vmul.f32 %v8090_v9, %v9780_v26  ;;  %v682_v5 = vpack.c.bf16 %v666_v16, %v666_v16  ;;  %v1555_v54 = vadd.f32 %v9488_v62, %v12310_v23 }
 0x32d   :  { %v1857_v10 = vunpack.c.l.b16 %v1034_v32  ;;  %v1231_v14 = vmax.f32 %v1199_v51, %v1215_v27  ;;  %v1744_v32 = vpack.c.bf16 %v1728_v33, %v1728_v33  ;;  %v863_v60 = vmul.f32 0.2, %v847_v46  ;;  %v942_v23 = vpop.permute.xlu0 %941 }
 0x32e   :  { %8093 = vpow2.f32 %v998_v38  ;;  %v681_v49 = vpack.c.bf16 %v665_v58, %v665_v58  ;;  %v1216_v38 = vmul.f32 0.2, %v1200_v20  ;;  %v1571_v27 = vmul.f32 0.2, %v1555_v54 }
 0x32f   :  { %v927_v21 = vpop.permute.xlu1 %926  ;;  %2292 = vmatmul.bf16.gmra.mxu0 %v9788_v63  ;;  %v9796_v53 = vpack.c.b16 %v1858_v47, %v1857_v10  ;;  %v1812_v10 = vunpack.c.l.b16 %v682_v5 }
 0x330   :  { %v972_v39 = vsub.f32 %v876_v41, %v927_v21  ;;  %7891 = vset.pattern.permute.xlu1 %v12211_v15  ;;  %v1811_v9 = vunpack.c.l.b16 %v681_v49  ;;  %v12311_v41 = vld [vmem:[#allocation24_spill] sm:$0xff]  ;;  %v1953_v21 = vunpack.c.l.b16 %v1744_v32 }
 0x331   :  { %v8092_v35 = vpop.eup %8091  ;;  %2243 = vmatmul.bf16.gmra.mxu2 %v9796_v53  ;;  %v491_v40 = vadd.f32 %v9450_v45, %v12311_v41 }
 0x332   :  { %v996_v48 = vmul.f32 1.442695, %v972_v39  ;;  %7890 = vset.pattern.permute.xlu2 %v12260_v4  ;;  %v1282_v44 = vpop.permute.xlu2 %1281  ;;  %v1729_v31 = vmul.f32 %v8092_v35, %v9736_v17  ;;  %v9808_v18 = vpack.c.b16 %v1812_v10, %v1811_v9  ;;  %v1232_v39 = vmax.f32 %v1200_v20, %v1216_v38  ;;  %v12312_v35 = vld [vmem:[#allocation7_spill] sm:$0xff] }
 0x333   :  { %1671 = vperm.xlu2 %7890, %v1480_v2   ;;  %v1327_v58 = vsub.f32 %v1231_v14, %v1282_v44  ;;  %v1554_v12 = vadd.f32 %v9488_v62, %v12312_v35  ;;  %v507_v14 = vmul.f32 0.2, %v491_v40  ;;  %v1587_v20 = vmax.f32 %v1555_v54, %v1571_v27  ;;  %v12335_v4 = vld [vmem:[#allocation3_spill] sm:$0xff] }
 0x334   :  { %v8094_v16 = vpop.eup %8093  ;;  %8095 = vpow2.f32 %v996_v48  ;;  %v1745_v47 = vpack.c.bf16 %v1729_v31, %v1729_v31  ;;  %v879_v48 = vmax.f32 %v847_v46, %v863_v60  ;;  %v12313_v31 = vld [vmem:[#allocation33_spill] sm:$0xff]  ;;  %v495_v19 = vadd.f32 %v9450_v45, %v12335_v4 }
 0x335   :  { %v1351_v51 = vmul.f32 1.442695, %v1327_v58  ;;  %v1021_v33 = vmul.f32 %v8094_v16, %v9782_v57  ;;  %v846_v32 = vadd.f32 %v9466_v36, %v12313_v31  ;;  %v1570_v41 = vmul.f32 0.2, %v1554_v12 }
 0x336   :  { %v1954_v49 = vunpack.c.l.b16 %v1745_v47  ;;  %v975_v38 = vsub.f32 %v879_v48, %v942_v23  ;;  %v523_v46 = vmax.f32 %v491_v40, %v507_v14 }
 0x337   :  { %8097 = vpow2.f32 %v1351_v51  ;;  %v1037_v47 = vpack.c.bf16 %v1021_v33, %v1021_v33  ;;  %v1586_v33 = vmax.f32 %v1554_v12, %v1570_v41 }
 0x338   :  { %v1287_v5 = vpop.permute.xlu1 %1286  ;;  %2199 = vmatmul.bf16.gmra.mxu3 %v9808_v18  ;;  %v9814_v2 = vpack.c.b16 %v1954_v49, %v1953_v21  ;;  %v862_v49 = vmul.f32 0.2, %v846_v32  ;;  %v619_v54 = vsub.f32 %v523_v46, %v9790_v34  ;;  %v1002_v27 = vmul.f32 1.442695, %v975_v38 }
 0x339   :  { %v1328_v44 = vsub.f32 %v1232_v39, %v1287_v5  ;;  %v12314_v39 = vld [vmem:[#allocation35_spill] sm:$0xff]  ;;  %v1860_v48 = vunpack.c.l.b16 %v1037_v47 }
 0x33a   :  { %v8096_v9 = vpop.eup %8095  ;;  %2341 = vmatmul.bf16.gmra.mxu1 %v9814_v2  ;;  %v1201_v35 = vadd.f32 %v9463_v43, %v12314_v39  ;;  %v878_v34 = vmax.f32 %v846_v32, %v862_v49  ;;  %v12317_v49 = vld [vmem:[#allocation30_spill] sm:$0xff] }
 0x33b   :  { %v1353_v58 = vmul.f32 1.442695, %v1328_v44  ;;  %v1642_v16 = vpop.permute.xlu2 %1641  ;;  %v1020_v10 = vmul.f32 %v8096_v9, %v9780_v26  ;;  %7895 = vset.pattern.permute.xlu2 %v12211_v15  ;;  %v12315_v9 = vld [vmem:[#allocation15_spill] sm:$0xff] }
 0x33c   :  { %v1683_v51 = vsub.f32 %v1587_v20, %v1642_v16  ;;  %v492_v31 = vadd.f32 %v9450_v45, %v12315_v9  ;;  %v1217_v16 = vmul.f32 0.2, %v1201_v35  ;;  %v1557_v9 = vadd.f32 %v9488_v62, %v12317_v49  ;;  %v12320_v49 = vld [vmem:[#allocation41_spill] sm:$0xff] }
 0x33d   :  { %v8098_v21 = vpop.eup %8097  ;;  %8099 = vpow2.f32 %v1353_v58  ;;  %v1036_v60 = vpack.c.bf16 %v1020_v10, %v1020_v10  ;;  %v645_v10 = vmul.f32 1.442695, %v619_v54 }
 0x33e   :  { %v1708_v5 = vmul.f32 1.442695, %v1683_v51  ;;  %v1375_v44 = vmul.f32 %v8098_v21, %v9780_v26  ;;  %v87_v51 = vunpack.c.3.s8 %v9764_v7  ;;  %v508_v21 = vmul.f32 0.2, %v492_v31 }
 0x33f   :  { %v1859_v23 = vunpack.c.l.b16 %v1036_v60 }
 0x340   :  { %8101 = vpow2.f32 %v1708_v5  ;;  %v1391_v41 = vpack.c.bf16 %v1375_v44, %v1375_v44  ;;  %v1233_v5 = vmax.f32 %v1201_v35, %v1217_v16  ;;  %v524_v44 = vmax.f32 %v492_v31, %v508_v21 }
 0x341   :  { %v1637_v40 = vpop.permute.xlu1 %1636  ;;  %v9827_v14 = vpack.c.b16 %v1860_v48, %v1859_v23  ;;  %8103 = vpow2.f32 %v1002_v27  ;;  %v1292_v23 = vpop.permute.xlu0 %1291 }
 0x342   :  { %v1682_v20 = vsub.f32 %v1586_v33, %v1637_v40  ;;  %v1907_v54 = vunpack.c.l.b16 %v1391_v41  ;;  %v9832_v33 = vcvt.s32.f32 %v87_v51  ;;  %v1573_v41 = vmul.f32 0.2, %v1557_v9 }
 0x343   :  { %v8100_v58 = vpop.eup %8099  ;;  %2248 = vmatmul.bf16.gmra.mxu2 %v9827_v14 }
 0x344   :  { %v1706_v38 = vmul.f32 1.442695, %v1682_v20  ;;  %v937_v47 = vpop.permute.xlu2 %936  ;;  %v1376_v12 = vmul.f32 %v8100_v58, %v9782_v57  ;;  %12316 = vst [vmem:[#allocation6_spill] sm:$0xff] %v9832_v33  ;;  %v12318_v20 = vld [vmem:[#allocation28_spill] sm:$0xff] }
 0x345   :  { %v974_v46 = vsub.f32 %v878_v34, %v937_v47  ;;  %v1202_v58 = vadd.f32 %v9463_v43, %v12318_v20  ;;  %v1329_v34 = vsub.f32 %v1233_v5, %v1292_v23 }
 0x346   :  { %v8102_v60 = vpop.eup %8101  ;;  %8105 = vpow2.f32 %v1706_v38  ;;  %v1392_v39 = vpack.c.bf16 %v1376_v12, %v1376_v12 }
 0x347   :  { %v1000_v48 = vmul.f32 1.442695, %v974_v46  ;;  %8107 = vpow2.f32 %v645_v10  ;;  %v8104_v32 = vpop.eup %8103  ;;  %v1731_v40 = vmul.f32 %v8102_v60, %v9782_v57  ;;  %v86_v10 = vunpack.c.2.s8 %v9764_v7 }
 0x348   :  { %v1908_v27 = vunpack.c.l.b16 %v1392_v39  ;;  %v1023_v12 = vmul.f32 %v8104_v32, %v9832_v33  ;;  %v1218_v39 = vmul.f32 0.2, %v1202_v58  ;;  %v1355_v5 = vmul.f32 1.442695, %v1329_v34  ;;  %v12321_v34 = vld [vmem:[#allocation37_spill] sm:$0xff] }
 0x349   :  { %8109 = vpow2.f32 %v1000_v48  ;;  %v1747_v46 = vpack.c.bf16 %v1731_v40, %v1731_v40  ;;  %v9845_v23 = vcvt.s32.f32 %v86_v10  ;;  %v494_v32 = vadd.f32 %v9450_v45, %v12320_v49 }
 0x34a   :  { %v587_v35 = vpop.permute.xlu1 %586  ;;  %v9839_v16 = vpack.c.b16 %v1908_v27, %v1907_v54  ;;  %v1039_v27 = vpack.c.bf16 %v1023_v12, %v1023_v12  ;;  %v1556_v10 = vadd.f32 %v9488_v62, %v12321_v34 }
 0x34b   :  { %v620_v38 = vsub.f32 %v524_v44, %v587_v35  ;;  %12319 = vst [vmem:[#allocation2_spill] sm:$0xff] %v9845_v23  ;;  %v1589_v44 = vmax.f32 %v1557_v9, %v1573_v41  ;;  %v1956_v35 = vunpack.c.l.b16 %v1747_v46  ;;  %v510_v49 = vmul.f32 0.2, %v494_v32  ;;  %v9855_v9 = vpop.permute.xlu0 %946 }
 0x34c   :  { %v8106_v47 = vpop.eup %8105  ;;  %2297 = vmatmul.bf16.gmra.mxu0 %v9839_v16 }
 0x34d   :  { %v647_v51 = vmul.f32 1.442695, %v620_v38  ;;  %v1652_v31 = vpop.permute.xlu2 %1651  ;;  %v1730_v21 = vmul.f32 %v8106_v47, %v9780_v26  ;;  %v8108_v60 = vpop.eup %8107  ;;  %v1234_v38 = vmax.f32 %v1202_v58, %v1218_v39  ;;  %v1862_v26 = vunpack.c.l.b16 %v1039_v27 }
 0x34e   :  { %v667_v47 = vmul.f32 %v8108_v60, %v9845_v23  ;;  %v1685_v57 = vsub.f32 %v1589_v44, %v1652_v31  ;;  %v1572_v31 = vmul.f32 0.2, %v1556_v10 }
 0x34f   :  { %v8110_v48 = vpop.eup %8109  ;;  %8111 = vpow2.f32 %v647_v51  ;;  %v1746_v7 = vpack.c.bf16 %v1730_v21, %v1730_v21 }
 0x350   :  { %v1022_v54 = vmul.f32 %v8110_v48, %v9845_v23  ;;  %8113 = vpow2.f32 %v1355_v5  ;;  %v683_v39 = vpack.c.bf16 %v667_v47, %v667_v47  ;;  %v1712_v5 = vmul.f32 1.442695, %v1685_v57 }
 0x351   :  { %v1955_v20 = vunpack.c.l.b16 %v1746_v7  ;;  %v7683_v7 = vld [vmem:[%s12079_s6 + $0x38] sm:$0xff]  ;;  %v1588_v47 = vmax.f32 %v1556_v10, %v1572_v31 }
 0x352   :  { %v1038_v40 = vpack.c.bf16 %v1022_v54, %v1022_v54  ;;  %v7691_v54 = vld [vmem:[%s12079_s6 + $0x78] sm:$0xff]  ;;  %2623 = vmatpush.bf16.msrb.mxu3 %v7683_v7 }
 0x353   :  { %v1297_v51 = vpop.permute.xlu1 %1296  ;;  %v9853_v21 = vpack.c.b16 %v1956_v35, %v1955_v20  ;;  %2672 = vmatpush.bf16.msrb.mxu2 %v7691_v54  ;;  %v526_v35 = vmax.f32 %v494_v32, %v510_v49  ;;  %v1662_v32 = vpop.permute.xlu0 %1661 }
 0x354   :  { %v1330_v48 = vsub.f32 %v1234_v38, %v1297_v51  ;;  %v1861_v12 = vunpack.c.l.b16 %v1038_v40  ;;  %v1813_v38 = vunpack.c.l.b16 %v683_v39  ;;  %v12324_v51 = vld [vmem:[#allocation32_spill] sm:$0xff] }
 0x355   :  { %v8112_v17 = vpop.eup %8111  ;;  %2346 = vmatmul.bf16.gmra.mxu1 %v9853_v21 }
 0x356   :  { %v1357_v58 = vmul.f32 1.442695, %v1330_v48  ;;  %v597_v41 = vpop.permute.xlu2 %596  ;;  %v9858_v46 = vpack.c.b16 %v1862_v26, %v1861_v12  ;;  %v668_v60 = vmul.f32 %v8112_v17, %v9832_v33  ;;  %v8114_v27 = vpop.eup %8113  ;;  %v12322_v26 = vld [vmem:[#allocation38_spill] sm:$0xff]  ;;  %v493_v48 = vadd.f32 %v9450_v45, %v12324_v51 }
 0x357   :  { %v1559_v20 = vadd.f32 %v9488_v62, %v12322_v26  ;;  %v12323_v17 = vld [vmem:[#allocation34_spill] sm:$0xff]  ;;  %v1377_v34 = vmul.f32 %v8114_v27, %v9845_v23  ;;  %v622_v12 = vsub.f32 %v526_v35, %v597_v41  ;;  %v12325_v27 = vld [vmem:[#allocation39_spill] sm:$0xff] }
 0x358   :  { %8115 = vpow2.f32 %v1357_v58  ;;  %2253 = vmatmul.bf16.gmra.mxu2 %v9858_v46  ;;  %v684_v44 = vpack.c.bf16 %v668_v60, %v668_v60  ;;  %v848_v57 = vadd.f32 %v9466_v36, %v12323_v17  ;;  %v1558_v41 = vadd.f32 %v9488_v62, %v12325_v27  ;;  %v2180_v17 = vpop.f32.mrf.mxu3 }
 0x359   :  { %8117 = vpow2.f32 %v1712_v5  ;;  %v1575_v26 = vmul.f32 0.2, %v1559_v20  ;;  %v1393_v31 = vpack.c.bf16 %v1377_v34, %v1377_v34  ;;  %v509_v5 = vmul.f32 0.2, %v493_v48 }
 0x35a   :  { %v1814_v40 = vunpack.c.l.b16 %v684_v44  ;;  %v864_v1 = vmul.f32 0.2, %v848_v57  ;;  %v651_v44 = vmul.f32 1.442695, %v622_v12  ;;  %v2278_v12 = vpop.f32.mrf.mxu0  ;;  %v1574_v30 = vmul.f32 0.2, %v1558_v41 }
 0x35b   :  { %v1591_v51 = vmax.f32 %v1559_v20, %v1575_v26  ;;  %v1909_v11 = vunpack.c.l.b16 %v1393_v31  ;;  %v525_v50 = vmax.f32 %v493_v48, %v509_v5  ;;  %v12327_v26 = vld [vmem:[#allocation12_spill] sm:$0xff]  ;;  %v9902_v31 = vld [vmem:[%s12279_s4 + $0x18] sm:$0xff] }
 0x35c   :  { %v1647_v58 = vpop.permute.xlu1 %1646  ;;  %v9875_v60 = vpack.c.b16 %v1814_v40, %v1813_v38  ;;  %v7699_v38 = vld [vmem:[%s12079_s6 + $0xb8] sm:$0xff]  ;;  %v880_v27 = vmax.f32 %v848_v57, %v864_v1 }
 0x35d   :  { %v1684_v7 = vsub.f32 %v1588_v47, %v1647_v58  ;;  %v7707_v40 = vld [vmem:[%s12079_s6 + $0xf8] sm:$0xff]  ;;  %2721 = vmatpush.bf16.msra.mxu0 %v7699_v38  ;;  %v1687_v8 = vsub.f32 %v1591_v51, %v1662_v32 }
 0x35e   :  { %v8116_v54 = vpop.eup %8115  ;;  %2204 = vmatmul.bf16.gmra.mxu3 %v9875_v60  ;;  %2770 = vmatpush.bf16.msra.mxu1 %v7707_v40 }
 0x35f   :  { %v1710_v49 = vmul.f32 1.442695, %v1684_v7  ;;  %v9878_v39 = vpop.permute.xlu2 %1306  ;;  %v1378_v10 = vmul.f32 %v8116_v54, %v9832_v33  ;;  %v8118_v47 = vpop.eup %8117  ;;  %v12326_v7 = vld [vmem:[#allocation8_spill] sm:$0xff] }
 0x360   :  { %v2229_v35 = vpop.f32.mrf.mxu2  ;;  %v1204_v54 = vadd.f32 %v9463_v43, %v12326_v7  ;;  %v1733_v20 = vmul.f32 %v8118_v47, %v9832_v33  ;;  %v7682_v47 = vld [vmem:[%s12079_s6 + $0x30] sm:$0xff] }
 0x361   :  { %8119 = vpow2.f32 %v1710_v49  ;;  %v2230_v58 = vadd.f32 %v2229_v35, %v2180_v17  ;;  %v1394_v34 = vpack.c.bf16 %v1378_v10, %v1378_v10  ;;  %v849_v49 = vadd.f32 %v9466_v36, %v12327_v26  ;;  %2624 = vmatpush.bf16.msrb.mxu3 %v7682_v47 }
 0x362   :  { %8121 = vpow2.f32 %v651_v44  ;;  %v976_v10 = vsub.f32 %v880_v27, %v9855_v9  ;;  %v1220_v5 = vmul.f32 0.2, %v1204_v54  ;;  %v1716_v44 = vmul.f32 1.442695, %v1687_v8  ;;  %v7690_v8 = vld [vmem:[%s12079_s6 + $0x70] sm:$0xff] }
 0x363   :  { %v2279_v55 = vadd.f32 %v2278_v12, %v2230_v58  ;;  %v1910_v28 = vunpack.c.l.b16 %v1394_v34  ;;  %v89_v35 = vunpack.c.1.s8 %v9902_v31  ;;  %v1590_v9 = vmax.f32 %v1558_v41, %v1574_v30  ;;  %v9915_v41 = vpop.f32.mrf.mxu3  ;;  %2673 = vmatpush.bf16.msrb.mxu2 %v7690_v8 }
 0x364   :  { %v2327_v15 = vpop.f32.mrf.mxu1  ;;  %v88_v34 = vunpack.c.0.s8 %v9902_v31  ;;  %v1236_v27 = vmax.f32 %v1204_v54, %v1220_v5  ;;  %v7681_v54 = vld [vmem:[%s12079_s6 + $0x28] sm:$0xff]  ;;  %v7698_v5 = vld [vmem:[%s12079_s6 + $0xb0] sm:$0xff] }
 0x365   :  { %v592_v17 = vpop.permute.xlu1 %591  ;;  %v9895_v1 = vadd.f32 %v2327_v15, %v2279_v55  ;;  %v9897_v57 = vpack.c.b16 %v1910_v28, %v1909_v11  ;;  %v1749_v55 = vpack.c.bf16 %v1733_v20, %v1733_v20  ;;  %v865_v11 = vmul.f32 0.2, %v849_v49  ;;  %2625 = vmatpush.bf16.msrb.mxu3 %v7681_v54  ;;  %2722 = vmatpush.bf16.msra.mxu0 %v7698_v5 }
 0x366   :  { %v621_v32 = vsub.f32 %v525_v50, %v592_v17  ;;  %v1004_v28 = vmul.f32 1.442695, %v976_v10  ;;  %v9918_v7 = vcvt.s32.f32 %v89_v35  ;;  %v12329_v10 = vld [vmem:[#allocation43_spill] sm:$0xff] }
 0x367   :  { %v8120_v48 = vpop.eup %8119  ;;  %2302 = vmatmul.bf16.gmra.mxu0 %v9897_v57  ;;  %v1958_v26 = vunpack.c.l.b16 %v1749_v55  ;;  %v496_v17 = vadd.f32 %v9450_v45, %v12329_v10  ;;  %v9937_v55 = vpop.f32.mrf.mxu0 }
 0x368   :  { %v649_v38 = vmul.f32 1.442695, %v621_v32  ;;  %v1732_v15 = vmul.f32 %v8120_v48, %v9845_v23  ;;  %v1657_v50 = vpop.permute.xlu2 %1656  ;;  %v9907_v40 = vpop.f32.mrf.mxu2  ;;  %12328 = vst [vmem:[#allocation10_spill] sm:$0xff] %v9918_v7  ;;  %v881_v32 = vmax.f32 %v849_v49, %v865_v11  ;;  %v7706_v49 = vld [vmem:[%s12079_s6 + $0xf0] sm:$0xff] }
 0x369   :  { %v8122_v51 = vpop.eup %8121  ;;  %v1686_v58 = vsub.f32 %v1590_v9, %v1657_v50  ;;  %v1332_v9 = vsub.f32 %v1236_v27, %v9878_v39  ;;  %12331 = vst [vmem:[#allocation17_spill] sm:$0xff] %v9937_v55  ;;  %v9939_v39 = vcvt.s32.f32 %v88_v34  ;;  %v512_v47 = vmul.f32 0.2, %v496_v17  ;;  %2771 = vmatpush.bf16.msra.mxu1 %v7706_v49 }
 0x36a   :  { %8123 = vpow2.f32 %v649_v38  ;;  %v1748_v30 = vpack.c.bf16 %v1732_v15, %v1732_v15  ;;  %v670_v48 = vmul.f32 %v8122_v51, %v9918_v7 }
 0x36b   :  { %8125 = vpow2.f32 %v1716_v44  ;;  %v1714_v12 = vmul.f32 1.442695, %v1686_v58  ;;  %v12330_v44 = vld [vmem:[#allocation36_spill] sm:$0xff]  ;;  %12332 = vst [vmem:[#allocation9_spill] sm:$0xff] %v9939_v39 }
 0x36c   :  { %v1957_v20 = vunpack.c.l.b16 %v1748_v30  ;;  %8127 = vpow2.f32 %v1004_v28  ;;  %v1203_v38 = vadd.f32 %v9463_v43, %v12330_v44  ;;  %v686_v58 = vpack.c.bf16 %v670_v48, %v670_v48  ;;  %v7680_v30 = vld [vmem:[%s12079_s6 + $0x20] sm:$0xff] }
 0x36d   :  { %8129 = vpow2.f32 %v1714_v12  ;;  %v1361_v12 = vmul.f32 1.442695, %v1332_v9  ;;  %2626 = vmatpush.bf16.msrb.mxu3 %v7680_v30  ;;  %v9957_v30 = vpop.f32.mrf.mxu1 }
 0x36e   :  { %v952_v35 = vpop.permute.xlu1 %951  ;;  %v9926_v15 = vpack.c.b16 %v1958_v26, %v1957_v20  ;;  %v1219_v27 = vmul.f32 0.2, %v1203_v38  ;;  %v1816_v9 = vunpack.c.l.b16 %v686_v58 }
 0x36f   :  { %v977_v11 = vsub.f32 %v881_v32, %v952_v35  ;;  %v12333_v35 = vld [vmem:[#allocation44_spill] sm:$0xff] }
 0x370   :  { %v8124_v28 = vpop.eup %8123  ;;  %2351 = vmatmul.bf16.gmra.mxu1 %v9926_v15  ;;  %v2234_v26 = vpop.f32.mrf.mxu2  ;;  %v851_v54 = vadd.f32 %v9466_v36, %v12333_v35 }
 0x371   :  { %v8126_v50 = vpop.eup %8125  ;;  %v1006_v8 = vmul.f32 1.442695, %v977_v11  ;;  %v669_v51 = vmul.f32 %v8124_v28, %v9939_v39  ;;  %v12334_v11 = vld [vmem:[#allocation45_spill] sm:$0xff]  ;;  %v528_v28 = vmax.f32 %v496_v17, %v512_v47 }
 0x372   :  { %v607_v34 = vpop.permute.xlu2 %606  ;;  %v8128_v20 = vpop.eup %8127  ;;  %v1206_v48 = vadd.f32 %v9463_v43, %v12334_v11  ;;  %v1735_v49 = vmul.f32 %v8126_v50, %v9918_v7 }
 0x373   :  { %8131 = vpow2.f32 %v1006_v8  ;;  %v2185_v10 = vpop.f32.mrf.mxu3  ;;  %v685_v32 = vpack.c.bf16 %v669_v51, %v669_v51  ;;  %v8130_v44 = vpop.eup %8129  ;;  %v1235_v8 = vmax.f32 %v1203_v38, %v1219_v27  ;;  %v1024_v51 = vmul.f32 %v8128_v20, %v9939_v39  ;;  %v12336_v20 = vld [vmem:[#allocation22_spill] sm:$0xff] }
 0x374   :  { %v2235_v5 = vadd.f32 %v2234_v26, %v2185_v10  ;;  %v1734_v23 = vmul.f32 %v8130_v44, %v9939_v39  ;;  %8133 = vpow2.f32 %v1361_v12  ;;  %v624_v35 = vsub.f32 %v528_v28, %v607_v34 }
 0x375   :  { %v1815_v33 = vunpack.c.l.b16 %v685_v32  ;;  %v1222_v50 = vmul.f32 0.2, %v1206_v48  ;;  %v1751_v58 = vpack.c.bf16 %v1735_v49, %v1735_v49  ;;  %v867_v12 = vmul.f32 0.2, %v851_v54 }
 0x376   :  { %v2283_v55 = vpop.f32.mrf.mxu0  ;;  %v1750_v26 = vpack.c.bf16 %v1734_v23, %v1734_v23  ;;  %v1040_v45 = vpack.c.bf16 %v1024_v51, %v1024_v51  ;;  %v511_v34 = vmul.f32 0.2, %v495_v19  ;;  %v1317_v23 = vpop.permute.xlu0 %1316  ;;  %v655_v32 = vmul.f32 1.442695, %v624_v35 }
 0x377   :  { %v1302_v56 = vpop.permute.xlu1 %1301  ;;  %v9955_v11 = vpack.c.b16 %v1816_v9, %v1815_v33  ;;  %v2284_v47 = vadd.f32 %v2283_v55, %v2235_v5  ;;  %v1205_v33 = vadd.f32 %v9463_v43, %v12336_v20  ;;  %v1960_v55 = vunpack.c.l.b16 %v1751_v58  ;;  %v7697_v9 = vld [vmem:[%s12079_s6 + $0xa8] sm:$0xff]  ;;  %v7696_v58 = vld [vmem:[%s12079_s6 + $0xa0] sm:$0xff] }
 0x378   :  { %v1331_v17 = vsub.f32 %v1235_v8, %v1302_v56  ;;  %v1959_v27 = vunpack.c.l.b16 %v1750_v26  ;;  %v1238_v56 = vmax.f32 %v1206_v48, %v1222_v50  ;;  %v883_v49 = vmax.f32 %v851_v54, %v867_v12  ;;  %v7679_v8 = vld [vmem:[%s12079_s6 + $0x18] sm:$0xff]  ;;  %v7689_v43 = vld [vmem:[%s12079_s6 + $0x68] sm:$0xff]  ;;  %2723 = vmatpush.bf16.msra.mxu0 %v7697_v9  ;;  %v12337_v12 = vld [vmem:[#allocation40_spill] sm:$0xff] }
 0x379   :  { %v8132_v10 = vpop.eup %8131  ;;  %2209 = vmatmul.bf16.gmra.mxu3 %v9955_v11  ;;  %v1863_v48 = vunpack.c.l.b16 %v1040_v45  ;;  %v1221_v50 = vmul.f32 0.2, %v1205_v33  ;;  %v527_v54 = vmax.f32 %v495_v19, %v511_v34  ;;  %2674 = vmatpush.bf16.msrb.mxu2 %v7689_v43  ;;  %v7688_v34 = vld [vmem:[%s12079_s6 + $0x60] sm:$0xff]  ;;  %v7705_v20 = vld [vmem:[%s12079_s6 + $0xe8] sm:$0xff]  ;;  %v7695_v9 = vld [vmem:[%s12079_s6 + $0x98] sm:$0xff] }
 0x37a   :  { %v1359_v38 = vmul.f32 1.442695, %v1331_v17  ;;  %v1025_v4 = vmul.f32 %v8132_v10, %v9918_v7  ;;  %v8134_v28 = vpop.eup %8133  ;;  %v1334_v51 = vsub.f32 %v1238_v56, %v1317_v23  ;;  %v9972_v35 = vpack.c.b16 %v1960_v55, %v1959_v27  ;;  %2627 = vmatpush.bf16.msrb.mxu3 %v7679_v8  ;;  %v7678_v10 = vld [vmem:[%s12079_s6 + $0x10] sm:$0xff]  ;;  %2772 = vmatpush.bf16.msra.mxu1 %v7705_v20 }
 0x37b   :  { %v962_v44 = vpop.permute.xlu2 %961  ;;  %v1380_v17 = vmul.f32 %v8134_v28, %v9918_v7  ;;  %v91_v28 = vunpack.c.3.s8 %v9902_v31  ;;  %v1237_v55 = vmax.f32 %v1205_v33, %v1221_v50  ;;  %v7687_v33 = vld [vmem:[%s12079_s6 + $0x58] sm:$0xff]  ;;  %v7686_v20 = vld [vmem:[%s12079_s6 + $0x50] sm:$0xff] }
 0x37c   :  { %8135 = vpow2.f32 %v1359_v38  ;;  %v1041_v5 = vpack.c.bf16 %v1025_v4, %v1025_v4  ;;  %v850_v38 = vadd.f32 %v9466_v36, %v12337_v12  ;;  %v979_v27 = vsub.f32 %v883_v49, %v962_v44  ;;  %2724 = vmatpush.bf16.msra.mxu0 %v7696_v58 }
 0x37d   :  { %8137 = vpow2.f32 %v655_v32  ;;  %v1365_v44 = vmul.f32 1.442695, %v1334_v51  ;;  %v1396_v49 = vpack.c.bf16 %v1380_v17, %v1380_v17  ;;  %2675 = vmatpush.bf16.msrb.mxu2 %v7688_v34  ;;  %v10007_v17 = vcvt.s32.f32 %v91_v28  ;;  %v7694_v34 = vld [vmem:[%s12079_s6 + $0x90] sm:$0xff] }
 0x37e   :  { %v1864_v26 = vunpack.c.l.b16 %v1041_v5  ;;  %2628 = vmatpush.bf16.msrb.mxu3 %v7678_v10  ;;  %v866_v8 = vmul.f32 0.2, %v850_v38  ;;  %v1010_v43 = vmul.f32 1.442695, %v979_v27 }
 0x37f   :  { %12338 = vst [vmem:[#allocation5_spill] sm:$0xff] %v10007_v17  ;;  %v1912_v12 = vunpack.c.l.b16 %v1396_v49 }
 0x380   :  { %v602_v4 = vpop.permute.xlu1 %601  ;;  %2356 = vmatmul.bf16.gmra.mxu1 %v9972_v35  ;;  %v2332_v19 = vpop.f32.mrf.mxu1  ;;  %v9984_v45 = vpack.c.b16 %v1864_v26, %v1863_v48  ;;  %v90_v48 = vunpack.c.2.s8 %v9902_v31  ;;  %2725 = vmatpush.bf16.msra.mxu0 %v7695_v9  ;;  %v7676_v31 = vld [vmem:[%s12079_s6] sm:$0xff]  ;;  %v882_v27 = vmax.f32 %v850_v38, %v866_v8  ;;  %v7693_v9 = vld [vmem:[%s12079_s6 + $0x88] sm:$0xff] }
 0x381   :  { %v623_v23 = vsub.f32 %v527_v54, %v602_v4  ;;  %v9992_v32 = vadd.f32 %v2332_v19, %v2284_v47  ;;  %v7677_v47 = vld [vmem:[%s12079_s6 + $0x8] sm:$0xff]  ;;  %2676 = vmatpush.bf16.msrb.mxu2 %v7687_v33  ;;  %v7704_v38 = vld [vmem:[%s12079_s6 + $0xe0] sm:$0xff] }
 0x382   :  { %v8136_v36 = vpop.eup %8135  ;;  %2258 = vmatmul.bf16.gmra.mxu2 %v9984_v45  ;;  %2629 = vmatpush.bf16.msrb.mxu3 %v7677_v47  ;;  %v10012_v4 = vcvt.s32.f32 %v90_v48  ;;  %v7685_v47 = vld [vmem:[%s12079_s6 + $0x48] sm:$0xff] }
 0x383   :  { %v653_v56 = vmul.f32 1.442695, %v623_v23  ;;  %v1379_v5 = vmul.f32 %v8136_v36, %v9939_v39  ;;  %v8138_v26 = vpop.eup %8137  ;;  %2773 = vmatpush.bf16.msra.mxu1 %v7704_v38 }
 0x384   :  { %v1312_v51 = vpop.permute.xlu2 %1311  ;;  %12339 = vst [vmem:[#allocation13_spill] sm:$0xff] %v10012_v4  ;;  %v672_v19 = vmul.f32 %v8138_v26, %v10007_v17  ;;  %2726 = vmatpush.bf16.msra.mxu0 %v7694_v34  ;;  %v12340_v26 = vld [vmem:[#allocation42_spill] sm:$0xff] }
 0x385   :  { %8139 = vpow2.f32 %v653_v56  ;;  %v1333_v50 = vsub.f32 %v1237_v55, %v1312_v51  ;;  %v1395_v54 = vpack.c.bf16 %v1379_v5, %v1379_v5  ;;  %2677 = vmatpush.bf16.msrb.mxu2 %v7686_v20  ;;  %v7703_v51 = vld [vmem:[%s12079_s6 + $0xd8] sm:$0xff]  ;;  %v7684_v34 = vld [vmem:[%s12079_s6 + $0x40] sm:$0xff] }
 0x386   :  { %8141 = vpow2.f32 %v1365_v44  ;;  %2630 = vmatpush.bf16.msrb.mxu3 %v7676_v31  ;;  %v688_v49 = vpack.c.bf16 %v672_v19, %v672_v19  ;;  %v10044_v31 = vpop.f32.mrf.mxu2 }
 0x387   :  { %v1363_v58 = vmul.f32 1.442695, %v1333_v50  ;;  %v1911_v10 = vunpack.c.l.b16 %v1395_v54  ;;  %8143 = vpow2.f32 %v1010_v43  ;;  %v1560_v50 = vadd.f32 %v9488_v62, %v12340_v26  ;;  %2774 = vmatpush.bf16.msra.mxu1 %v7703_v51 }
 0x388   :  { %2727 = vmatpush.bf16.msra.mxu0 %v7693_v9 }
 0x389   :  { %8145 = vpow2.f32 %v1363_v58  ;;  %v957_v23 = vpop.permute.xlu1 %956  ;;  %v10021_v36 = vpack.c.b16 %v1912_v12, %v1911_v10  ;;  %v1818_v58 = vunpack.c.l.b16 %v688_v49  ;;  %2678 = vmatpush.bf16.msrb.mxu2 %v7685_v47  ;;  %v7692_v12 = vld [vmem:[%s12079_s6 + $0x80] sm:$0xff]  ;;  %v10058_v49 = vpop.f32.mrf.mxu0 }
 0x38a   :  { %v978_v44 = vsub.f32 %v882_v27, %v957_v23  ;;  %v10046_v27 = vpop.f32.mrf.mxu3 }
 0x38b   :  { %v8140_v28 = vpop.eup %8139  ;;  %2307 = vmatmul.bf16.gmra.mxu0 %v10021_v36 }
 0x38c   :  { %v8142_v56 = vpop.eup %8141  ;;  %v1008_v55 = vmul.f32 1.442695, %v978_v44  ;;  %v671_v5 = vmul.f32 %v8140_v28, %v10012_v4  ;;  %2728 = vmatpush.bf16.msra.mxu0 %v7692_v12  ;;  %v7701_v12 = vld [vmem:[%s12079_s6 + $0xc8] sm:$0xff] }
 0x38d   :  { %v8144_v8 = vpop.eup %8143  ;;  %v1382_v33 = vmul.f32 %v8142_v56, %v10007_v17  ;;  %v7702_v56 = vld [vmem:[%s12079_s6 + $0xd0] sm:$0xff]  ;;  %2679 = vmatpush.bf16.msrb.mxu2 %v7684_v34  ;;  %v10067_v34 = vpop.f32.mrf.mxu1 }
 0x38e   :  { %8147 = vpow2.f32 %v1008_v55  ;;  %v687_v43 = vpack.c.bf16 %v671_v5, %v671_v5  ;;  %v1027_v19 = vmul.f32 %v8144_v8, %v10007_v17  ;;  %v1576_v5 = vmul.f32 0.2, %v1560_v50  ;;  %2775 = vmatpush.bf16.msra.mxu1 %v7702_v56  ;;  %v7700_v56 = vld [vmem:[%s12079_s6 + $0xc0] sm:$0xff] }
 0x38f   :  { %v8146_v48 = vpop.eup %8145  ;;  %v1398_v38 = vpack.c.bf16 %v1382_v33, %v1382_v33  ;;  %v1672_v33 = vpop.permute.xlu2 %1671 }
 0x390   :  { %v1817_v54 = vunpack.c.l.b16 %v687_v43  ;;  %v1381_v10 = vmul.f32 %v8146_v48, %v10012_v4  ;;  %v1043_v43 = vpack.c.bf16 %v1027_v19, %v1027_v19  ;;  %v1592_v26 = vmax.f32 %v1560_v50, %v1576_v5 }
 0x391   :  { %v1914_v51 = vunpack.c.l.b16 %v1398_v38 }
 0x392   :  { %v1543_v20 = vpop.permute.xlu1 %1542  ;;  %v10052_v23 = vpack.c.b16 %v1818_v58, %v1817_v54  ;;  %v1397_v44 = vpack.c.bf16 %v1381_v10, %v1381_v10  ;;  %v2190_v54 = vpop.f32.mrf.mxu3  ;;  %v1866_v39 = vunpack.c.l.b16 %v1043_v43  ;;  %2776 = vmatpush.bf16.msra.mxu1 %v7701_v12 }
 0x393   :  { %v1561_v28 = vadd.f32 %v9488_v62, %v1543_v20 }
 0x394   :  { %v8148_v55 = vpop.eup %8147  ;;  %2214 = vmatmul.bf16.gmra.mxu3 %v10052_v23  ;;  %v1913_v47 = vunpack.c.l.b16 %v1397_v44 }
 0x395   :  { %v1577_v9 = vmul.f32 0.2, %v1561_v28  ;;  %v1026_v8 = vmul.f32 %v8148_v55, %v10012_v4 }
 0x396   :  { %v10062_v20 = vpack.c.b16 %v1914_v51, %v1913_v47  ;;  %2777 = vmatpush.bf16.msra.mxu1 %v7700_v56 }
 0x397   :  { %v1593_v62 = vmax.f32 %v1561_v28, %v1577_v9  ;;  %v1042_v48 = vpack.c.bf16 %v1026_v8, %v1026_v8  ;;  %v10080_v8 = vpop.f32.mrf.mxu1 }
 0x399   :  { %v1689_v58 = vsub.f32 %v1593_v62, %v1672_v33  ;;  %v2239_v10 = vpop.f32.mrf.mxu2  ;;  %v1865_v7 = vunpack.c.l.b16 %v1042_v48 }
 0x39a   :  { %v2240_v44 = vadd.f32 %v2239_v10, %v2190_v54  ;;  %v1667_v19 = vpop.permute.xlu1 %1666  ;;  %v10083_v48 = vpop.f32.mrf.mxu3 }
 0x39b   :  { %v1720_v28 = vmul.f32 1.442695, %v1689_v58  ;;  %v1688_v38 = vsub.f32 %v1592_v26, %v1667_v19  ;;  %2312 = vmatmul.bf16.gmra.mxu0 %v10062_v20  ;;  %v10070_v50 = vpack.c.b16 %v1866_v39, %v1865_v7 }
 0x39c   :  { %v2288_v55 = vpop.f32.mrf.mxu0 }
 0x39d   :  { %8149 = vpow2.f32 %v1720_v28  ;;  %v1718_v5 = vmul.f32 1.442695, %v1688_v38  ;;  %v10075_v9 = vadd.f32 %v2288_v55, %v2240_v44  ;;  %2263 = vmatmul.bf16.gmra.mxu2 %v10070_v50 }
 0x39f   :  { %8151 = vpow2.f32 %v1718_v5  ;;  %v10094_v10 = vpop.f32.mrf.mxu1 }
 0x3a1   :  { %v10086_v54 = vpop.f32.mrf.mxu2 }
 0x3a3   :  { %v8150_v47 = vpop.eup %8149 }
 0x3a4   :  { %2631 = vmatmul.bf16.vlgmr.msrb.gmra.mxu3 %v9557_v61  ;;  %v1737_v7 = vmul.f32 %v8150_v47, %v10007_v17  ;;  %v10088_v58 = vpop.f32.mrf.mxu0 }
 0x3a5   :  { %v8152_v39 = vpop.eup %8151 }
 0x3a6   :  { %v1736_v43 = vmul.f32 %v8152_v39, %v10012_v4  ;;  %v1753_v62 = vpack.c.bf16 %v1737_v7, %v1737_v7 }
 0x3a8   :  { %v1752_v51 = vpack.c.bf16 %v1736_v43, %v1736_v43  ;;  %v1962_v26 = vunpack.c.l.b16 %v1753_v62 }
 0x3aa   :  { %v1961_v33 = vunpack.c.l.b16 %v1752_v51 }
 0x3ab   :  { %2729 = vmatmul.bf16.vlgmr.msra.gmra.mxu0 %v9555_v24  ;;  %v2195_v12 = vpop.f32.mrf.mxu3 }
 0x3ac   :  { %v10090_v61 = vpack.c.b16 %v1962_v26, %v1961_v33  ;;  %v2293_v28 = vpop.f32.mrf.mxu0 }
 0x3ad   :  { %2680 = vmatmul.bf16.vlgmr.msrb.gmra.mxu2 %v9573_v6 }
 0x3ae   :  { %2361 = vmatmul.bf16.gmra.mxu1 %v10090_v61 }
 0x3b3   :  { %v10100_v55 = vpop.f32.mrf.mxu3 }
 0x3b4   :  { %v2244_v44 = vpop.f32.mrf.mxu2  ;;  %2636 = vmatmul.bf16.gmra.mxu3 %v9624_v25  ;;  %v10106_v5 = vpop.f32.mrf.mxu0 }
 0x3b5   :  { %v2245_v19 = vadd.f32 %v2244_v44, %v2195_v12 }
 0x3b7   :  { %v2294_v38 = vadd.f32 %v2293_v28, %v2245_v19  ;;  %v2342_v24 = vpop.f32.mrf.mxu1 }
 0x3b9   :  { %v10097_v56 = vadd.f32 %v2342_v24, %v2294_v38 }
 0x3bb   :  { %2734 = vmatmul.bf16.gmra.mxu0 %v9648_v29  ;;  %v2200_v25 = vpop.f32.mrf.mxu3 }
 0x3bc   :  { %v10103_v6 = vpop.f32.mrf.mxu2 }
 0x3bd   :  { %2685 = vmatmul.bf16.gmra.mxu2 %v9620_v37 }
 0x3be   :  { %2778 = vmatmul.bf16.vlgmr.msra.gmra.mxu1 %v9595_v42 }
 0x3bf   :  { %v10109_v43 = vpop.f32.mrf.mxu1 }
 0x3c3   :  { %v10117_v42 = vpop.f32.mrf.mxu3 }
 0x3c4   :  { %2641 = vmatmul.bf16.gmra.mxu3 %v9697_v22 }
 0x3c6   :  { %v2249_v47 = vpop.f32.mrf.mxu2 }
 0x3c7   :  { %v2250_v7 = vadd.f32 %v2249_v47, %v2200_v25 }
 0x3c9   :  { %v2298_v39 = vpop.f32.mrf.mxu0 }
 0x3ca   :  { %v2299_v62 = vadd.f32 %v2298_v39, %v2250_v7 }
 0x3cb   :  { %2739 = vmatmul.bf16.gmra.mxu0 %v9746_v3 }
 0x3cd   :  { %2690 = vmatmul.bf16.gmra.mxu2 %v9723_v0 }
 0x3ce   :  { %2783 = vmatmul.bf16.gmra.mxu1 %v9667_v52  ;;  %v10119_v22 = vpop.f32.mrf.mxu2 }
 0x3d1   :  { %v10122_v51 = vpop.f32.mrf.mxu0 }
 0x3d2   :  { %v2347_v37 = vpop.f32.mrf.mxu1 }
 0x3d3   :  { %v10114_v29 = vadd.f32 %v2347_v37, %v2299_v62 }
 0x3d4   :  { %2646 = vmatmul.bf16.gmra.mxu3 %v9772_v13 }
 0x3da   :  { %v10127_v26 = vpop.f32.mrf.mxu1 }
 0x3db   :  { %2744 = vmatmul.bf16.gmra.mxu0 %v9788_v63  ;;  %v2254_v0 = vpop.f32.mrf.mxu2 }
 0x3dd   :  { %2695 = vmatmul.bf16.gmra.mxu2 %v9796_v53 }
 0x3de   :  { %2788 = vmatmul.bf16.gmra.mxu1 %v9716_v59  ;;  %v8537_v59 = vld [vmem:[%s12203_s3] sm:$0x3] }
 0x3df   :  { %v2886_v53 = vsel %vm2884_vm3, %v8537_v59, 0 }
 0x3e0   :  { %2895 = vmatpush.bf16.msra.mxu3 %v2886_v53 }
 0x3e1   :  { %v2205_v3 = vpop.f32.mrf.mxu3 }
 0x3e2   :  { %v2255_v52 = vadd.f32 %v2254_v0, %v2205_v3 }
 0x3e4   :  { %v2303_v33 = vpop.f32.mrf.mxu0  ;;  %2651 = vmatmul.bf16.gmra.mxu3 %v9808_v18  ;;  %v10140_v18 = vpop.f32.mrf.mxu2 }
 0x3e5   :  { %v2304_v13 = vadd.f32 %v2303_v33, %v2255_v52 }
 0x3eb   :  { %2749 = vmatmul.bf16.gmra.mxu0 %v9839_v16  ;;  %v10142_v16 = vpop.f32.mrf.mxu3 }
 0x3ed   :  { %v2352_v12 = vpop.f32.mrf.mxu1  ;;  %2700 = vmatmul.bf16.gmra.mxu2 %v9827_v14 }
 0x3ee   :  { %v10131_v63 = vadd.f32 %v2352_v12, %v2304_v13  ;;  %2793 = vmatmul.bf16.gmra.mxu1 %v9814_v2  ;;  %v10146_v2 = vpop.f32.mrf.mxu0 }
 0x3f4   :  { %2656 = vmatmul.bf16.gmra.mxu3 %v9875_v60 }
 0x3f5   :  { %v10154_v60 = vpop.f32.mrf.mxu1 }
 0x3fb   :  { %2754 = vmatmul.bf16.gmra.mxu0 %v9897_v57 }
 0x3fc   :  { %v2210_v14 = vpop.f32.mrf.mxu3 }
 0x3fd   :  { %2705 = vmatmul.bf16.gmra.mxu2 %v9858_v46  ;;  %v10163_v25 = vpop.f32.mrf.mxu1 }
 0x3fe   :  { %2798 = vmatmul.bf16.gmra.mxu1 %v9853_v21 }
 0x404   :  { %2661 = vmatmul.bf16.gmra.mxu3 %v9955_v11  ;;  %v10156_v46 = vpop.f32.mrf.mxu3 }
 0x405   :  { %v2259_v44 = vpop.f32.mrf.mxu2  ;;  %v10172_v7 = vpop.f32.mrf.mxu1 }
 0x406   :  { %v2260_v19 = vadd.f32 %v2259_v44, %v2210_v14 }
 0x408   :  { %v2308_v28 = vpop.f32.mrf.mxu0 }
 0x409   :  { %v10149_v38 = vadd.f32 %v2308_v28, %v2260_v19 }
 0x40b   :  { %2759 = vmatmul.bf16.gmra.mxu0 %v10021_v36 }
 0x40d   :  { %2710 = vmatmul.bf16.gmra.mxu2 %v9984_v45  ;;  %v10161_v11 = vpop.f32.mrf.mxu2 }
 0x40e   :  { %2803 = vmatmul.bf16.gmra.mxu1 %v9926_v15 }
 0x410   :  { %v10158_v21 = vpop.f32.mrf.mxu0 }
 0x414   :  { %2666 = vmatmul.bf16.gmra.mxu3 %v10052_v23 }
 0x417   :  { %v2215_v57 = vpop.f32.mrf.mxu3 }
 0x418   :  { %v2313_v24 = vpop.f32.mrf.mxu0 }
 0x41b   :  { %2764 = vmatmul.bf16.gmra.mxu0 %v10062_v20 }
 0x41d   :  { %2715 = vmatmul.bf16.gmra.mxu2 %v10070_v50 }
 0x41e   :  { %2808 = vmatmul.bf16.gmra.mxu1 %v9972_v35 }
 0x41f   :  { %v10168_v15 = vpop.f32.mrf.mxu3 }
 0x420   :  { %v2264_v45 = vpop.f32.mrf.mxu2  ;;  %v10170_v36 = vpop.f32.mrf.mxu0 }
 0x421   :  { %12341 = vst [vmem:[#allocation25_spill] sm:$0xff] %v10170_v36  ;;  %v2265_v47 = vadd.f32 %v2264_v45, %v2215_v57 }
 0x423   :  { %v2314_v23 = vadd.f32 %v2313_v24, %v2265_v47 }
 0x427   :  { %v2632_v39 = vpop.f32.mrf.mxu3 }
 0x428   :  { %v10174_v62 = vpop.f32.mrf.mxu2  ;;  %v2730_v37 = vpop.f32.mrf.mxu0 }
 0x42b   :  { %v2362_v0 = vpop.f32.mrf.mxu1 }
 0x42c   :  { %v10176_v3 = vadd.f32 %v2362_v0, %v2314_v23 }
 0x42e   :  { %12342 = vst [vmem:[#allocation23_spill] sm:$0xff] %v10176_v3  ;;  %2813 = vmatmul.bf16.gmra.mxu1 %v10090_v61 }
 0x42f   :  { %v2634_v20 = vpop.f32.mrf.mxu3 }
 0x430   :  { %v2681_v35 = vpop.f32.mrf.mxu2  ;;  %v2732_v50 = vpop.f32.mrf.mxu0 }
 0x431   :  { %v2682_v59 = vadd.f32 %v2681_v35, %v2632_v39 }
 0x433   :  { %v10179_v52 = vpop.f32.mrf.mxu1  ;;  %v2731_v14 = vadd.f32 %v2730_v37, %v2682_v59 }
 0x434   :  { %12343 = vst [vmem:[#allocation29_spill] sm:$0xff] %v10179_v52 }
 0x437   :  { %v2637_v33 = vpop.f32.mrf.mxu3 }
 0x438   :  { %v2683_v13 = vpop.f32.mrf.mxu2  ;;  %v2735_v12 = vpop.f32.mrf.mxu0 }
 0x439   :  { %v2684_v44 = vadd.f32 %v2683_v13, %v2634_v20 }
 0x43b   :  { %v2779_v53 = vpop.f32.mrf.mxu1  ;;  %v2733_v45 = vadd.f32 %v2732_v50, %v2684_v44 }
 0x43c   :  { %v2780_v19 = vadd.f32 %v2779_v53, %v2731_v14 }
 0x43e   :  { %v2819_v47 = vmax.f32 %v2780_v19, 1e-30 }
 0x43f   :  { %v2639_v28 = vpop.f32.mrf.mxu3 }
 0x440   :  { %v2686_v57 = vpop.f32.mrf.mxu2  ;;  %v2737_v24 = vpop.f32.mrf.mxu0  ;;  %8153 = vrcp.f32 %v2819_v47 }
 0x441   :  { %v2687_v36 = vadd.f32 %v2686_v57, %v2637_v33 }
 0x443   :  { %v2781_v23 = vpop.f32.mrf.mxu1  ;;  %v2736_v35 = vadd.f32 %v2735_v12, %v2687_v36 }
 0x444   :  { %v2782_v61 = vadd.f32 %v2781_v23, %v2733_v45 }
 0x446   :  { %v2820_v0 = vmax.f32 %v2782_v61, 1e-30  ;;  %v8154_v39 = vpop.eup %8153 }
 0x447   :  { %v2642_v17 = vpop.f32.mrf.mxu3 }
 0x448   :  { %8155 = vrcp.f32 %v2820_v0  ;;  %v2688_v4 = vpop.f32.mrf.mxu2  ;;  %v2740_v52 = vpop.f32.mrf.mxu0 }
 0x449   :  { %v2689_v20 = vadd.f32 %v2688_v4, %v2639_v28 }
 0x44b   :  { %v2784_v3 = vpop.f32.mrf.mxu1  ;;  %v2738_v44 = vadd.f32 %v2737_v24, %v2689_v20 }
 0x44c   :  { %v2785_v59 = vadd.f32 %v2784_v3, %v2736_v35 }
 0x44e   :  { %v8156_v37 = vpop.eup %8155  ;;  %v2821_v19 = vmax.f32 %v2785_v59, 1e-30 }
 0x44f   :  { %v2851_v13 = vpack.c.bf16 %v8156_v37, %v8154_v39  ;;  %v2644_v53 = vpop.f32.mrf.mxu3 }
 0x450   :  { %v2691_v50 = vpop.f32.mrf.mxu2  ;;  %v2742_v14 = vpop.f32.mrf.mxu0  ;;  %8157 = vrcp.f32 %v2821_v19 }
 0x451   :  { %7361 = vmatmul.msk.bf16.vlgmr.msra.gmra.mxu3 %vm2859_vm4, %v2851_v13  ;;  %v2692_v12 = vadd.f32 %v2691_v50, %v2642_v17 }
 0x453   :  { %v2786_v45 = vpop.f32.mrf.mxu1  ;;  %v2741_v61 = vadd.f32 %v2740_v52, %v2692_v12 }
 0x454   :  { %v2787_v47 = vadd.f32 %v2786_v45, %v2738_v44 }
 0x456   :  { %v2822_v23 = vmax.f32 %v2787_v47, 1e-30  ;;  %v8158_v28 = vpop.eup %8157 }
 0x457   :  { %v2647_v33 = vpop.f32.mrf.mxu3 }
 0x458   :  { %8159 = vrcp.f32 %v2822_v23  ;;  %v2693_v57 = vpop.f32.mrf.mxu2  ;;  %v2745_v36 = vpop.f32.mrf.mxu0 }
 0x459   :  { %v2694_v0 = vadd.f32 %v2693_v57, %v2644_v53 }
 0x45b   :  { %v2789_v4 = vpop.f32.mrf.mxu1  ;;  %v2743_v20 = vadd.f32 %v2742_v14, %v2694_v0 }
 0x45c   :  { %v2790_v39 = vadd.f32 %v2789_v4, %v2741_v61 }
 0x45e   :  { %v8160_v3 = vpop.eup %8159  ;;  %v2823_v59 = vmax.f32 %v2790_v39, 1e-30 }
 0x45f   :  { %v2649_v35 = vpop.f32.mrf.mxu3  ;;  %v2852_v37 = vpack.c.bf16 %v8160_v3, %v8158_v28 }
 0x460   :  { %v2696_v13 = vpop.f32.mrf.mxu2  ;;  %v2747_v24 = vpop.f32.mrf.mxu0  ;;  %8161 = vrcp.f32 %v2823_v59 }
 0x461   :  { %7362 = vmatmul.msk.bf16.gmra.mxu3 %vm2859_vm4, %v2852_v37  ;;  %v2697_v50 = vadd.f32 %v2696_v13, %v2647_v33 }
 0x463   :  { %v2791_v44 = vpop.f32.mrf.mxu1  ;;  %v2746_v57 = vadd.f32 %v2745_v36, %v2697_v50 }
 0x464   :  { %v2792_v19 = vadd.f32 %v2791_v44, %v2743_v20 }
 0x466   :  { %v2824_v45 = vmax.f32 %v2792_v19, 1e-30  ;;  %v8162_v53 = vpop.eup %8161 }
 0x467   :  { %v2652_v47 = vpop.f32.mrf.mxu3 }
 0x468   :  { %8163 = vrcp.f32 %v2824_v45  ;;  %v2698_v17 = vpop.f32.mrf.mxu2  ;;  %v2750_v52 = vpop.f32.mrf.mxu0 }
 0x469   :  { %v2699_v4 = vadd.f32 %v2698_v17, %v2649_v35 }
 0x46b   :  { %v2794_v23 = vpop.f32.mrf.mxu1  ;;  %v2748_v14 = vadd.f32 %v2747_v24, %v2699_v4 }
 0x46c   :  { %v2795_v28 = vadd.f32 %v2794_v23, %v2746_v57 }
 0x46e   :  { %v8164_v12 = vpop.eup %8163  ;;  %v2825_v0 = vmax.f32 %v2795_v28, 1e-30 }
 0x46f   :  { %v2853_v61 = vpack.c.bf16 %v8164_v12, %v8162_v53  ;;  %v2654_v37 = vpop.f32.mrf.mxu3 }
 0x470   :  { %v2701_v3 = vpop.f32.mrf.mxu2  ;;  %v2752_v59 = vpop.f32.mrf.mxu0  ;;  %8165 = vrcp.f32 %v2825_v0 }
 0x471   :  { %7363 = vmatmul.msk.bf16.gmra.mxu3 %vm2859_vm4, %v2853_v61  ;;  %v2702_v13 = vadd.f32 %v2701_v3, %v2652_v47 }
 0x473   :  { %v2796_v39 = vpop.f32.mrf.mxu1  ;;  %v2751_v35 = vadd.f32 %v2750_v52, %v2702_v13 }
 0x474   :  { %v2797_v20 = vadd.f32 %v2796_v39, %v2748_v14 }
 0x476   :  { %v2826_v44 = vmax.f32 %v2797_v20, 1e-30  ;;  %v8166_v45 = vpop.eup %8165 }
 0x477   :  { %v2657_v19 = vpop.f32.mrf.mxu3 }
 0x478   :  { %8167 = vrcp.f32 %v2826_v44  ;;  %v2703_v33 = vpop.f32.mrf.mxu2  ;;  %v2755_v23 = vpop.f32.mrf.mxu0 }
 0x479   :  { %v2704_v50 = vadd.f32 %v2703_v33, %v2654_v37 }
 0x47b   :  { %v2799_v36 = vpop.f32.mrf.mxu1  ;;  %v2753_v24 = vadd.f32 %v2752_v59, %v2704_v50  ;;  %v7711_v59 = vld [vmem:[%s12081_s8 + $0x18] sm:$0xff] }
 0x47c   :  { %v2800_v53 = vadd.f32 %v2799_v36, %v2751_v35  ;;  %3121 = vmatpush.bf16.msra.mxu2 %v7711_v59 }
 0x47e   :  { %v8168_v17 = vpop.eup %8167  ;;  %v2827_v4 = vmax.f32 %v2800_v53, 1e-30 }
 0x47f   :  { %v2854_v57 = vpack.c.bf16 %v8168_v17, %v8166_v45  ;;  %v2659_v14 = vpop.f32.mrf.mxu3 }
 0x480   :  { %v2706_v12 = vpop.f32.mrf.mxu2  ;;  %8169 = vrcp.f32 %v2827_v4  ;;  %v2757_v39 = vpop.f32.mrf.mxu0 }
 0x481   :  { %7364 = vmatmul.msk.bf16.gmra.mxu3 %vm2859_vm4, %v2854_v57  ;;  %v2707_v3 = vadd.f32 %v2706_v12, %v2657_v19 }
 0x483   :  { %v2801_v28 = vpop.f32.mrf.mxu1  ;;  %v2756_v37 = vadd.f32 %v2755_v23, %v2707_v3 }
 0x484   :  { %v2802_v61 = vadd.f32 %v2801_v28, %v2753_v24 }
 0x486   :  { %v2828_v0 = vmax.f32 %v2802_v61, 1e-30  ;;  %v8170_v20 = vpop.eup %8169 }
 0x487   :  { %v2662_v13 = vpop.f32.mrf.mxu3 }
 0x488   :  { %8171 = vrcp.f32 %v2828_v0  ;;  %v2708_v47 = vpop.f32.mrf.mxu2  ;;  %v2760_v50 = vpop.f32.mrf.mxu0 }
 0x489   :  { %v2709_v33 = vadd.f32 %v2708_v47, %v2659_v14 }
 0x48b   :  { %v2804_v52 = vpop.f32.mrf.mxu1  ;;  %v2758_v17 = vadd.f32 %v2757_v39, %v2709_v33 }
 0x48c   :  { %v2805_v36 = vadd.f32 %v2804_v52, %v2756_v37  ;;  %v7710_v37 = vld [vmem:[%s12081_s8 + $0x10] sm:$0xff] }
 0x48d   :  { %3122 = vmatpush.bf16.msra.mxu2 %v7710_v37 }
 0x48e   :  { %v8172_v44 = vpop.eup %8171  ;;  %v2829_v19 = vmax.f32 %v2805_v36, 1e-30 }
 0x48f   :  { %v2855_v45 = vpack.c.bf16 %v8172_v44, %v8170_v20  ;;  %v2664_v24 = vpop.f32.mrf.mxu3 }
 0x490   :  { %v2711_v35 = vpop.f32.mrf.mxu2  ;;  %8173 = vrcp.f32 %v2829_v19  ;;  %v2762_v14 = vpop.f32.mrf.mxu0 }
 0x491   :  { %7365 = vmatmul.msk.bf16.gmra.mxu3 %vm2859_vm4, %v2855_v45  ;;  %v2712_v4 = vadd.f32 %v2711_v35, %v2662_v13 }
 0x493   :  { %v2806_v53 = vpop.f32.mrf.mxu1  ;;  %v2761_v0 = vadd.f32 %v2760_v50, %v2712_v4 }
 0x494   :  { %v2807_v57 = vadd.f32 %v2806_v53, %v2758_v17 }
 0x496   :  { %v2830_v12 = vmax.f32 %v2807_v57, 1e-30  ;;  %v8174_v61 = vpop.eup %8173 }
 0x497   :  { %v2667_v33 = vpop.f32.mrf.mxu3 }
 0x498   :  { %8175 = vrcp.f32 %v2830_v12  ;;  %v2713_v23 = vpop.f32.mrf.mxu2  ;;  %v2765_v59 = vpop.f32.mrf.mxu0 }
 0x499   :  { %v2714_v3 = vadd.f32 %v2713_v23, %v2664_v24 }
 0x49b   :  { %v2809_v28 = vpop.f32.mrf.mxu1  ;;  %v2763_v44 = vadd.f32 %v2762_v14, %v2714_v3 }
 0x49c   :  { %v2810_v52 = vadd.f32 %v2809_v28, %v2761_v0 }
 0x49e   :  { %v8176_v47 = vpop.eup %8175  ;;  %v2831_v36 = vmax.f32 %v2810_v52, 1e-30 }
 0x49f   :  { %v2856_v20 = vpack.c.bf16 %v8176_v47, %v8174_v61  ;;  %v2669_v57 = vpop.f32.mrf.mxu3 }
 0x4a0   :  { %v2716_v39 = vpop.f32.mrf.mxu2  ;;  %8177 = vrcp.f32 %v2831_v36  ;;  %v2767_v61 = vpop.f32.mrf.mxu0 }
 0x4a1   :  { %7366 = vmatmul.msk.bf16.gmra.mxu3 %vm2859_vm4, %v2856_v20  ;;  %v2717_v17 = vadd.f32 %v2716_v39, %v2667_v33  ;;  %v10200_v33 = vld [vmem:[%s12080_s7] ss:$0 sm:$0xff] }
 0x4a3   :  { %v2811_v45 = vpop.f32.mrf.mxu1  ;;  %v2766_v12 = vadd.f32 %v2765_v59, %v2717_v17 }
 0x4a4   :  { %v2812_v13 = vadd.f32 %v2811_v45, %v2763_v44  ;;  %v2232_v44 = vadd.f32 %v9907_v40, %v9915_v41  ;;  %v7709_v45 = vld [vmem:[%s12081_s8 + $0x8] sm:$0xff] }
 0x4a5   :  { %3123 = vmatpush.bf16.msra.mxu2 %v7709_v45 }
 0x4a6   :  { %v2832_v35 = vmax.f32 %v2812_v13, 1e-30  ;;  %v8178_v53 = vpop.eup %8177 }
 0x4a8   :  { %8179 = vrcp.f32 %v2832_v35  ;;  %v2718_v50 = vpop.f32.mrf.mxu2  ;;  %v12344_v35 = vld [vmem:[#allocation17_spill] sm:$0xff] }
 0x4a9   :  { %v2719_v24 = vadd.f32 %v2718_v50, %v2669_v57  ;;  %v2281_v59 = vadd.f32 %v12344_v35, %v2232_v44 }
 0x4ab   :  { %v2814_v19 = vpop.f32.mrf.mxu1  ;;  %v2768_v14 = vadd.f32 %v2767_v61, %v2719_v24  ;;  %v2330_v50 = vadd.f32 %v9957_v30, %v2281_v59  ;;  %v2237_v24 = vadd.f32 %v10044_v31, %v10046_v27  ;;  %v2242_v27 = vadd.f32 %v10086_v54, %v10083_v48 }
 0x4ac   :  { %v2815_v4 = vadd.f32 %v2814_v19, %v2766_v12  ;;  %v7708_v19 = vld [vmem:[%s12081_s8] sm:$0xff] }
 0x4ad   :  { %3124 = vmatpush.bf16.msra.mxu2 %v7708_v19 }
 0x4ae   :  { %v8180_v23 = vpop.eup %8179  ;;  %v2833_v0 = vmax.f32 %v2815_v4, 1e-30 }
 0x4af   :  { %v2857_v28 = vpack.c.bf16 %v8180_v23, %v8178_v53 }
 0x4b0   :  { %8181 = vrcp.f32 %v2833_v0 }
 0x4b1   :  { %7367 = vmatmul.msk.bf16.gmra.mxu3 %vm2859_vm4, %v2857_v28 }
 0x4b3   :  { %v2816_v47 = vpop.f32.mrf.mxu1 }
 0x4b4   :  { %v2817_v3 = vadd.f32 %v2816_v47, %v2768_v14  ;;  %v2286_v14 = vadd.f32 %v10058_v49, %v2237_v24  ;;  %v2338_v49 = vadd.f32 %v10080_v8, %v10075_v9 }
 0x4b6   :  { %v2834_v52 = vmax.f32 %v2817_v3, 1e-30  ;;  %v8182_v20 = vpop.eup %8181  ;;  %v2335_v47 = vadd.f32 %v10067_v34, %v2286_v14 }
 0x4b8   :  { %8183 = vrcp.f32 %v2834_v52 }
 0x4be   :  { %v8184_v39 = vpop.eup %8183 }
 0x4bf   :  { %v2858_v37 = vpack.c.bf16 %v8184_v39, %v8182_v20 }
 0x4c1   :  { %7368 = vmatmul.msk.bf16.gmra.mxu3 %vm2859_vm4, %v2858_v37 }
 0x4d4   :  { %v2897_v36 = vpop.f32.mrf.mxu3 }
 0x4d5   :  { %v2937_v13 = vmul.f32 %v2897_v36, %v9895_v1 }
 0x4d7   :  { %v2957_v17 = vadd.f32 %v10200_v33, %v2937_v13  ;;  %v2291_v13 = vadd.f32 %v10088_v58, %v2242_v27 }
 0x4d9   :  { %v2989_v40 = vmul.f32 1.442695, %v2957_v17  ;;  %vm2973_vm5 = vcmp.gt.f32.partialorder %v2957_v17, 0.0 }
 0x4db   :  { %8185 = vpow2.f32 %v2989_v40 }
 0x4dc   :  { %v2899_v41 = vpop.f32.mrf.mxu3 }
 0x4dd   :  { %v2938_v53 = vmul.f32 %v2899_v41, %v2330_v50  ;;  %v2340_v41 = vadd.f32 %v10094_v10, %v2291_v13 }
 0x4df   :  { %v2958_v57 = vadd.f32 %v10200_v33, %v2938_v53 }
 0x4e1   :  { %v2991_v12 = vmul.f32 1.442695, %v2958_v57  ;;  %v8186_v23 = vpop.eup %8185  ;;  %vm2974_vm6 = vcmp.gt.f32.partialorder %v2958_v57, 0.0 }
 0x4e2   :  { %v7369_v28 = vadd.f32 -1.0, %v8186_v23 }
 0x4e3   :  { %8187 = vpow2.f32 %v2991_v12 }
 0x4e4   :  { %v2902_v1 = vpop.f32.mrf.mxu3  ;;  %v3037_v52 = vsel %vm2973_vm5, %v2957_v17, %v7369_v28 }
 0x4e5   :  { %v2939_v30 = vmul.f32 %v2902_v1, %v9992_v32 }
 0x4e7   :  { %v2959_v4 = vadd.f32 %v10200_v33, %v2939_v30 }
 0x4e9   :  { %v8188_v61 = vpop.eup %8187  ;;  %v2993_v3 = vmul.f32 1.442695, %v2959_v4  ;;  %vm2975_vm7 = vcmp.gt.f32.partialorder %v2959_v4, 0.0 }
 0x4ea   :  { %v7370_v0 = vadd.f32 -1.0, %v8188_v61 }
 0x4eb   :  { %8189 = vpow2.f32 %v2993_v3 }
 0x4ec   :  { %v3038_v20 = vsel %vm2974_vm6, %v2958_v57, %v7370_v0  ;;  %v2904_v39 = vpop.f32.mrf.mxu3  ;;  %v2247_v57 = vadd.f32 %v10103_v6, %v10100_v55 }
 0x4ed   :  { %v3053_v37 = vpack.c.bf16 %v3038_v20, %v3037_v52  ;;  %v2940_v44 = vmul.f32 %v2904_v39, %v2335_v47 }
 0x4ee   :  { %v2296_v10 = vadd.f32 %v10106_v5, %v2247_v57 }
 0x4ef   :  { %v2960_v32 = vadd.f32 %v10200_v33, %v2940_v44  ;;  %7401 = vmatmul.msk.bf16.vlgmr.msra.gmra.mxu2 %vm254_vm1, %v3053_v37 }
 0x4f0   :  { %v2345_v61 = vadd.f32 %v10109_v43, %v2296_v10  ;;  %v2252_v43 = vadd.f32 %v10119_v22, %v10117_v42 }
 0x4f1   :  { %v2995_v31 = vmul.f32 1.442695, %v2960_v32  ;;  %v8190_v36 = vpop.eup %8189  ;;  %vm2976_vm8 = vcmp.gt.f32.partialorder %v2960_v32, 0.0 }
 0x4f2   :  { %v7371_v59 = vadd.f32 -1.0, %v8190_v36 }
 0x4f3   :  { %8191 = vpow2.f32 %v2995_v31  ;;  %v2301_v31 = vadd.f32 %v10122_v51, %v2252_v43 }
 0x4f4   :  { %v2907_v34 = vpop.f32.mrf.mxu3  ;;  %v3039_v48 = vsel %vm2975_vm7, %v2959_v4, %v7371_v59 }
 0x4f5   :  { %v2941_v45 = vmul.f32 %v2907_v34, %v2338_v49  ;;  %v2350_v49 = vadd.f32 %v10127_v26, %v2301_v31  ;;  %v2257_v26 = vadd.f32 %v10140_v18, %v10142_v16  ;;  %v7715_v18 = vld [vmem:[%s12082_s9 + $0x18] sm:$0xff] }
 0x4f6   :  { %3234 = vmatpush.bf16.msrb.mxu0 %v7715_v18  ;;  %v12347_v31 = vld [vmem:[#allocation29_spill] sm:$0xff] }
 0x4f7   :  { %v2961_v35 = vadd.f32 %v10200_v33, %v2941_v45 }
 0x4f9   :  { %v8192_v17 = vpop.eup %8191  ;;  %v2997_v40 = vmul.f32 1.442695, %v2961_v35  ;;  %vm2977_vm9 = vcmp.gt.f32.partialorder %v2961_v35, 0.0 }
 0x4fa   :  { %v7372_v50 = vadd.f32 -1.0, %v8192_v17 }
 0x4fb   :  { %8193 = vpow2.f32 %v2997_v40 }
 0x4fc   :  { %v3040_v54 = vsel %vm2976_vm8, %v2960_v32, %v7372_v50  ;;  %v2909_v19 = vpop.f32.mrf.mxu3 }
 0x4fd   :  { %v2942_v53 = vmul.f32 %v2909_v19, %v2340_v41  ;;  %v3054_v9 = vpack.c.bf16 %v3040_v54, %v3039_v48  ;;  %v2306_v48 = vadd.f32 %v10146_v2, %v2257_v26  ;;  %v7712_v26 = vld [vmem:[%s12082_s9] sm:$0xff] }
 0x4ff   :  { %v2962_v8 = vadd.f32 %v10200_v33, %v2942_v53  ;;  %7402 = vmatmul.msk.bf16.gmra.mxu2 %vm254_vm1, %v3054_v9  ;;  %v2355_v19 = vadd.f32 %v10154_v60, %v2306_v48  ;;  %v2262_v60 = vadd.f32 %v10161_v11, %v10156_v46 }
 0x501   :  { %v2999_v58 = vmul.f32 1.442695, %v2962_v8  ;;  %v8194_v1 = vpop.eup %8193  ;;  %vm2978_vm10 = vcmp.gt.f32.partialorder %v2962_v8, 0.0 }
 0x502   :  { %v7373_v30 = vadd.f32 -1.0, %v8194_v1 }
 0x503   :  { %8195 = vpow2.f32 %v2999_v58 }
 0x504   :  { %v2912_v12 = vpop.f32.mrf.mxu3  ;;  %v3041_v0 = vsel %vm2977_vm9, %v2961_v35, %v7373_v30 }
 0x505   :  { %v2943_v23 = vmul.f32 %v2912_v12, %v10097_v56  ;;  %v2358_v12 = vadd.f32 %v10163_v25, %v10149_v38  ;;  %v7714_v38 = vld [vmem:[%s12082_s9 + $0x10] sm:$0xff] }
 0x506   :  { %3235 = vmatpush.bf16.msrb.mxu0 %v7714_v38 }
 0x507   :  { %v2963_v24 = vadd.f32 %v10200_v33, %v2943_v23 }
 0x509   :  { %v8196_v4 = vpop.eup %8195  ;;  %v3001_v14 = vmul.f32 1.442695, %v2963_v24  ;;  %vm2979_vm11 = vcmp.gt.f32.partialorder %v2963_v24, 0.0 }
 0x50a   :  { %v7374_v28 = vadd.f32 -1.0, %v8196_v4 }
 0x50b   :  { %8197 = vpow2.f32 %v3001_v14 }
 0x50c   :  { %v3042_v47 = vsel %vm2978_vm10, %v2962_v8, %v7374_v28  ;;  %v2914_v55 = vpop.f32.mrf.mxu3 }
 0x50d   :  { %v2944_v6 = vmul.f32 %v2914_v55, %v2345_v61  ;;  %v3055_v3 = vpack.c.bf16 %v3042_v47, %v3041_v0 }
 0x50f   :  { %v2964_v56 = vadd.f32 %v10200_v33, %v2944_v6  ;;  %7403 = vmatmul.msk.bf16.gmra.mxu2 %vm254_vm1, %v3055_v3 }
 0x511   :  { %v3003_v5 = vmul.f32 1.442695, %v2964_v56  ;;  %v8198_v20 = vpop.eup %8197  ;;  %vm2980_vm12 = vcmp.gt.f32.partialorder %v2964_v56, 0.0 }
 0x512   :  { %v7375_v44 = vadd.f32 -1.0, %v8198_v20 }
 0x513   :  { %8199 = vpow2.f32 %v3003_v5  ;;  %v12345_v5 = vld [vmem:[#allocation23_spill] sm:$0xff] }
 0x514   :  { %v2917_v52 = vpop.f32.mrf.mxu3  ;;  %v3043_v36 = vsel %vm2979_vm11, %v2963_v24, %v7375_v44  ;;  %v2311_v24 = vadd.f32 %v10158_v21, %v2262_v60 }
 0x515   :  { %v2945_v39 = vmul.f32 %v2917_v52, %v10114_v29 }
 0x516   :  { %v2360_v0 = vadd.f32 %v10172_v7, %v2311_v24  ;;  %v2267_v7 = vadd.f32 %v10174_v62, %v10168_v15  ;;  %v3299_v24 = vld [vmem:[%s12083_s11] sm:$0x3] }
 0x517   :  { %v2965_v37 = vadd.f32 %v10200_v33, %v2945_v39 }
 0x519   :  { %v8200_v32 = vpop.eup %8199  ;;  %v3005_v34 = vmul.f32 1.442695, %v2965_v37  ;;  %vm2981_vm13 = vcmp.gt.f32.partialorder %v2965_v37, 0.0 }
 0x51a   :  { %v7376_v27 = vadd.f32 -1.0, %v8200_v32 }
 0x51b   :  { %8201 = vpow2.f32 %v3005_v34 }
 0x51c   :  { %v3044_v45 = vsel %vm2980_vm12, %v2964_v56, %v7376_v27  ;;  %v2919_v13 = vpop.f32.mrf.mxu3 }
 0x51d   :  { %v2946_v35 = vmul.f32 %v2919_v13, %v2350_v49  ;;  %v3056_v59 = vpack.c.bf16 %v3044_v45, %v3043_v36 }
 0x51f   :  { %v2966_v29 = vadd.f32 %v10200_v33, %v2946_v35  ;;  %7404 = vmatmul.msk.bf16.gmra.mxu2 %vm254_vm1, %v3056_v59  ;;  %v7713_v59 = vld [vmem:[%s12082_s9 + $0x8] sm:$0xff] }
 0x520   :  { %3236 = vmatpush.bf16.msrb.mxu0 %v7713_v59 }
 0x521   :  { %v3007_v42 = vmul.f32 1.442695, %v2966_v29  ;;  %v8202_v51 = vpop.eup %8201  ;;  %vm2982_vm14 = vcmp.gt.f32.partialorder %v2966_v29, 0.0 }
 0x522   :  { %v7377_v40 = vadd.f32 -1.0, %v8202_v51 }
 0x523   :  { %8203 = vpow2.f32 %v3007_v42 }
 0x524   :  { %v2922_v22 = vpop.f32.mrf.mxu3  ;;  %v3045_v9 = vsel %vm2981_vm13, %v2965_v37, %v7377_v40  ;;  %v12346_v37 = vld [vmem:[#allocation25_spill] sm:$0xff]  ;;  %3237 = vmatpush.bf16.msrb.mxu0 %v7712_v26 }
 0x525   :  { %v2947_v17 = vmul.f32 %v2922_v22, %v10131_v63  ;;  %v2316_v44 = vadd.f32 %v12346_v37, %v2267_v7 }
 0x527   :  { %v2967_v50 = vadd.f32 %v10200_v33, %v2947_v17  ;;  %v2365_v27 = vadd.f32 %v12347_v31, %v2316_v44 }
 0x529   :  { %v8204_v41 = vpop.eup %8203  ;;  %v3009_v53 = vmul.f32 1.442695, %v2967_v50  ;;  %vm2983_vm15 = vcmp.gt.f32.partialorder %v2967_v50, 0.0 }
 0x52a   :  { %v7378_v54 = vadd.f32 -1.0, %v8204_v41 }
 0x52b   :  { %8205 = vpow2.f32 %v3009_v53 }
 0x52c   :  { %v3046_v8 = vsel %vm2982_vm14, %v2966_v29, %v7378_v54  ;;  %v2924_v58 = vpop.f32.mrf.mxu3 }
 0x52d   :  { %v2948_v63 = vmul.f32 %v2924_v58, %v2355_v19  ;;  %v3057_v16 = vpack.c.bf16 %v3046_v8, %v3045_v9 }
 0x52f   :  { %v2968_v57 = vadd.f32 %v10200_v33, %v2948_v63  ;;  %7405 = vmatmul.msk.bf16.gmra.mxu2 %vm254_vm1, %v3057_v16 }
 0x531   :  { %v3011_v2 = vmul.f32 1.442695, %v2968_v57  ;;  %v8206_v23 = vpop.eup %8205  ;;  %vm2984_vm5 = vcmp.gt.f32.partialorder %v2968_v57, 0.0 }
 0x532   :  { %v7379_v4 = vadd.f32 -1.0, %v8206_v23 }
 0x533   :  { %8207 = vpow2.f32 %v3011_v2 }
 0x534   :  { %v2927_v1 = vpop.f32.mrf.mxu3  ;;  %v3047_v46 = vsel %vm2983_vm15, %v2967_v50, %v7379_v4 }
 0x535   :  { %v2949_v10 = vmul.f32 %v2927_v1, %v2358_v12 }
 0x537   :  { %v2969_v30 = vadd.f32 %v10200_v33, %v2949_v10 }
 0x539   :  { %v8208_v28 = vpop.eup %8207  ;;  %v3013_v14 = vmul.f32 1.442695, %v2969_v30  ;;  %vm2985_vm6 = vcmp.gt.f32.partialorder %v2969_v30, 0.0 }
 0x53a   :  { %v7380_v61 = vadd.f32 -1.0, %v8208_v28 }
 0x53b   :  { %8209 = vpow2.f32 %v3013_v14 }
 0x53c   :  { %v3048_v11 = vsel %vm2984_vm5, %v2968_v57, %v7380_v61  ;;  %v2929_v47 = vpop.f32.mrf.mxu3 }
 0x53d   :  { %v2950_v25 = vmul.f32 %v2929_v47, %v2360_v0  ;;  %v3058_v55 = vpack.c.bf16 %v3048_v11, %v3047_v46 }
 0x53f   :  { %v2970_v21 = vadd.f32 %v10200_v33, %v2950_v25  ;;  %7406 = vmatmul.msk.bf16.gmra.mxu2 %vm254_vm1, %v3058_v55 }
 0x541   :  { %v3015_v6 = vmul.f32 1.442695, %v2970_v21  ;;  %v8210_v56 = vpop.eup %8209  ;;  %vm2986_vm7 = vcmp.gt.f32.partialorder %v2970_v21, 0.0 }
 0x542   :  { %v7381_v43 = vadd.f32 -1.0, %v8210_v56 }
 0x543   :  { %8211 = vpow2.f32 %v3015_v6 }
 0x544   :  { %v2932_v3 = vpop.f32.mrf.mxu3  ;;  %v3049_v34 = vsel %vm2985_vm6, %v2969_v30, %v7381_v43  ;;  %v10349_v30 = vunpack.c.l.bf16 %v3299_v24 }
 0x545   :  { %v2951_v52 = vmul.f32 %v2932_v3, %v12345_v5 }
 0x546   :  { %v10357_v61 = vperm.slane %v10349_v30, 0  ;;  %v10360_v14 = vperm.slane %v10349_v30, 2  ;;  %v10363_v0 = vperm.slane %v10349_v30, 3 }
 0x547   :  { %v2971_v20 = vadd.f32 %v10200_v33, %v2951_v52 }
 0x549   :  { %v8212_v39 = vpop.eup %8211  ;;  %v3017_v49 = vmul.f32 1.442695, %v2971_v20  ;;  %vm2987_vm8 = vcmp.gt.f32.partialorder %v2971_v20, 0.0 }
 0x54a   :  { %v7382_v32 = vadd.f32 -1.0, %v8212_v39 }
 0x54b   :  { %8213 = vpow2.f32 %v3017_v49 }
 0x54c   :  { %v3050_v36 = vsel %vm2986_vm7, %v2970_v21, %v7382_v32  ;;  %v2934_v45 = vpop.f32.mrf.mxu3 }
 0x54d   :  { %v2952_v13 = vmul.f32 %v2934_v45, %v2365_v27  ;;  %v3059_v35 = vpack.c.bf16 %v3050_v36, %v3049_v34 }
 0x54f   :  { %v2972_v15 = vadd.f32 %v10200_v33, %v2952_v13  ;;  %7407 = vmatmul.msk.bf16.gmra.mxu2 %vm254_vm1, %v3059_v35 }
 0x551   :  { %v3019_v62 = vmul.f32 1.442695, %v2972_v15  ;;  %v8214_v29 = vpop.eup %8213  ;;  %vm2988_vm9 = vcmp.gt.f32.partialorder %v2972_v15, 0.0 }
 0x552   :  { %v7383_v42 = vadd.f32 -1.0, %v8214_v29 }
 0x553   :  { %8215 = vpow2.f32 %v3019_v62 }
 0x554   :  { %v3051_v33 = vsel %vm2987_vm8, %v2971_v20, %v7383_v42 }
 0x559   :  { %v8216_v22 = vpop.eup %8215 }
 0x55a   :  { %v7384_v51 = vadd.f32 -1.0, %v8216_v22 }
 0x55c   :  { %v3052_v17 = vsel %vm2988_vm9, %v2972_v15, %v7384_v51 }
 0x55d   :  { %v3060_v50 = vpack.c.bf16 %v3052_v17, %v3051_v33 }
 0x55f   :  { %7408 = vmatmul.msk.bf16.gmra.mxu2 %vm254_vm1, %v3060_v50 }
 0x572   :  { %v10284_v40 = vpop.f32.mrf.mxu2 }
 0x573   :  { %12348 = vst [vmem:[#allocation20_spill] sm:$0xff] %v10284_v40  ;;  %v10385_v56 = vmul.f32 %v10357_v61, %v10284_v40  ;;  %v10389_v7 = vmul.f32 %v10360_v14, %v10284_v40  ;;  %v10393_v43 = vmul.f32 %v10363_v0, %v10284_v40 }
 0x57a   :  { %v10286_v41 = vpop.f32.mrf.mxu2 }
 0x57b   :  { %12349 = vst [vmem:[#allocation27_spill] sm:$0xff] %v10286_v41  ;;  %v10290_v48 = vpack.c.bf16 %v10286_v41, %v10284_v40  ;;  %v10401_v32 = vmul.f32 %v10357_v61, %v10286_v41  ;;  %v10405_v34 = vmul.f32 %v10360_v14, %v10286_v41  ;;  %v10423_v29 = vmul.f32 %v10363_v0, %v10286_v41 }
 0x57d   :  { %12350 = vst [vmem:[#allocation21_spill] sm:$0xff] %v10290_v48  ;;  %7425 = vmatmul.msk.bf16.vlgmr.msrb.gmra.mxu0 %vm254_vm1, %v10290_v48 }
 0x582   :  { %v10294_v54 = vpop.f32.mrf.mxu2 }
 0x58a   :  { %v10296_v19 = vpop.f32.mrf.mxu2 }
 0x58b   :  { %v10300_v53 = vpack.c.bf16 %v10296_v19, %v10294_v54 }
 0x58d   :  { %7426 = vmatmul.msk.bf16.gmra.mxu0 %vm254_vm1, %v10300_v53 }
 0x592   :  { %v10304_v9 = vpop.f32.mrf.mxu2 }
 0x59a   :  { %v10306_v8 = vpop.f32.mrf.mxu2 }
 0x59b   :  { %v10310_v58 = vpack.c.bf16 %v10306_v8, %v10304_v9 }
 0x59d   :  { %7427 = vmatmul.msk.bf16.gmra.mxu0 %vm254_vm1, %v10310_v58 }
 0x5a2   :  { %v10314_v18 = vpop.f32.mrf.mxu2 }
 0x5aa   :  { %v10316_v63 = vpop.f32.mrf.mxu2 }
 0x5ab   :  { %v10320_v16 = vpack.c.bf16 %v10316_v63, %v10314_v18 }
 0x5ad   :  { %7428 = vmatmul.msk.bf16.gmra.mxu0 %vm254_vm1, %v10320_v16 }
 0x5b2   :  { %v10324_v57 = vpop.f32.mrf.mxu2 }
 0x5ba   :  { %v10326_v2 = vpop.f32.mrf.mxu2 }
 0x5bb   :  { %v10330_v60 = vpack.c.bf16 %v10326_v2, %v10324_v57 }
 0x5bd   :  { %7429 = vmatmul.msk.bf16.gmra.mxu0 %vm254_vm1, %v10330_v60 }
 0x5c2   :  { %v10334_v12 = vpop.f32.mrf.mxu2 }
 0x5c3   :  { %12351 = vst [vmem:[#allocation26_spill] sm:$0xff] %v10334_v12  ;;  %v3650_v21 = vmul.f32 %v10357_v61, %v10334_v12  ;;  %v10397_v44 = vmul.f32 %v10360_v14, %v10334_v12  ;;  %v4715_v24 = vmul.f32 %v10363_v0, %v10334_v12 }
 0x5c5   :  { %v3666_v27 = vpack.c.bf16 %v3650_v21, %v3650_v21  ;;  %v4376_v26 = vpack.c.bf16 %v10397_v44, %v10397_v44 }
 0x5c7   :  { %v10434_v17 = vunpack.c.l.b16 %v3666_v27 }
 0x5ca   :  { %v10336_v1 = vpop.f32.mrf.mxu2 }
 0x5cb   :  { %v10340_v23 = vpack.c.bf16 %v10336_v1, %v10334_v12  ;;  %v3651_v6 = vmul.f32 %v10357_v61, %v10336_v1  ;;  %v4361_v35 = vmul.f32 %v10360_v14, %v10336_v1 }
 0x5cd   :  { %7430 = vmatmul.msk.bf16.gmra.mxu0 %vm254_vm1, %v10340_v23  ;;  %v3667_v49 = vpack.c.bf16 %v3651_v6, %v3651_v6 }
 0x5cf   :  { %v10436_v50 = vunpack.c.l.b16 %v3667_v49 }
 0x5d2   :  { %v10344_v10 = vpop.f32.mrf.mxu2 }
 0x5d3   :  { %v3652_v46 = vmul.f32 %v10357_v61, %v10344_v10  ;;  %v4362_v11 = vmul.f32 %v10360_v14, %v10344_v10  ;;  %v4717_v47 = vmul.f32 %v10363_v0, %v10344_v10 }
 0x5d5   :  { %v3668_v5 = vpack.c.bf16 %v3652_v46, %v3652_v46  ;;  %v4378_v52 = vpack.c.bf16 %v4362_v11, %v4362_v11  ;;  %v4733_v20 = vpack.c.bf16 %v4717_v47, %v4717_v47 }
 0x5d7   :  { %v10415_v15 = vunpack.c.l.b16 %v3668_v5  ;;  %v10417_v62 = vunpack.c.l.b16 %v4378_v52  ;;  %v10419_v59 = vunpack.c.l.b16 %v4733_v20  ;;  %v4716_v52 = vmul.f32 %v10363_v0, %v10336_v1 }
 0x5d8   :  { %v3649_v20 = vmul.f32 %v10357_v61, %v10326_v2 }
 0x5d9   :  { %v4732_v41 = vpack.c.bf16 %v4716_v52, %v4716_v52 }
 0x5da   :  { %v10351_v4 = vpop.f32.mrf.mxu2  ;;  %v3665_v48 = vpack.c.bf16 %v3649_v20, %v3649_v20  ;;  %v5051_v20 = vunpack.c.l.b16 %v4376_v26 }
 0x5db   :  { %v3172_v28 = vpack.c.bf16 %v10351_v4, %v10344_v10  ;;  %v3653_v38 = vmul.f32 %v10357_v61, %v10351_v4  ;;  %v4363_v25 = vmul.f32 %v10360_v14, %v10351_v4  ;;  %v4718_v55 = vmul.f32 %v10363_v0, %v10351_v4 }
 0x5dd   :  { %7431 = vmatmul.msk.bf16.gmra.mxu0 %vm254_vm1, %v3172_v28  ;;  %v3669_v39 = vpack.c.bf16 %v3653_v38, %v3653_v38  ;;  %v4379_v37 = vpack.c.bf16 %v4363_v25, %v4363_v25  ;;  %v4734_v31 = vpack.c.bf16 %v4718_v55, %v4718_v55  ;;  %v3225_v42 = vsel %vm254_vm1, %v3172_v28, 0 }
 0x5de   :  { %v4377_v38 = vpack.c.bf16 %v4361_v35, %v4361_v35 }
 0x5df   :  { %v10426_v22 = vunpack.c.l.b16 %v3669_v39  ;;  %v10428_v51 = vunpack.c.l.b16 %v4379_v37  ;;  %v10432_v33 = vunpack.c.l.b16 %v4734_v31  ;;  %v4359_v39 = vmul.f32 %v10360_v14, %v10326_v2 }
 0x5e1   :  { %v4967_v5 = vpack.c.b16 %v10426_v22, %v10415_v15  ;;  %v5063_v52 = vpack.c.b16 %v10428_v51, %v10417_v62 }
 0x5e2   :  { %v10381_v3 = vpop.f32.mrf.mxu2 }
 0x5e3   :  { %v3654_v36 = vmul.f32 %v10357_v61, %v10381_v3  ;;  %v4364_v45 = vmul.f32 %v10360_v14, %v10381_v3  ;;  %v4719_v13 = vmul.f32 %v10363_v0, %v10381_v3 }
 0x5e5   :  { %v3670_v46 = vpack.c.bf16 %v3654_v36, %v3654_v36  ;;  %v4380_v11 = vpack.c.bf16 %v4364_v45, %v4364_v45  ;;  %v4735_v47 = vpack.c.bf16 %v4719_v13, %v4719_v13  ;;  %v3648_v45 = vmul.f32 %v10357_v61, %v10324_v57 }
 0x5e6   :  { %v4358_v13 = vmul.f32 %v10360_v14, %v10324_v57 }
 0x5e7   :  { %v4959_v49 = vunpack.c.l.b16 %v3670_v46  ;;  %v5055_v36 = vunpack.c.l.b16 %v4380_v11  ;;  %v5103_v22 = vunpack.c.l.b16 %v4735_v47  ;;  %v3664_v12 = vpack.c.bf16 %v3648_v45, %v3648_v45 }
 0x5e8   :  { %v3646_v47 = vmul.f32 %v10357_v61, %v10314_v18 }
 0x5e9   :  { %v4953_v51 = vunpack.c.l.b16 %v3664_v12 }
 0x5ea   :  { %v10440_v28 = vpop.f32.mrf.mxu2 }
 0x5eb   :  { %v3173_v25 = vpack.c.bf16 %v10440_v28, %v10381_v3  ;;  %v3655_v55 = vmul.f32 %v10357_v61, %v10440_v28  ;;  %v4365_v21 = vmul.f32 %v10360_v14, %v10440_v28  ;;  %v4720_v6 = vmul.f32 %v10363_v0, %v10440_v28 }
 0x5ed   :  { %7432 = vmatmul.msk.bf16.gmra.mxu0 %vm254_vm1, %v3173_v25  ;;  %v3228_v37 = vsel %vm254_vm1, %v3173_v25, 0  ;;  %v3671_v44 = vpack.c.bf16 %v3655_v55, %v3655_v55  ;;  %v4381_v31 = vpack.c.bf16 %v4365_v21, %v4365_v21  ;;  %v4736_v27 = vpack.c.bf16 %v4720_v6, %v4720_v6 }
 0x5ee   :  { %3283 = vmatpush.bf16.xpose.msrb.mxu1 %v3228_v37  ;;  %v4714_v25 = vmul.f32 %v10363_v0, %v10326_v2  ;;  %v3647_v55 = vmul.f32 %v10357_v61, %v10316_v63  ;;  %v4375_v6 = vpack.c.bf16 %v4359_v39, %v4359_v39  ;;  %v4731_v37 = vpack.c.bf16 %v4715_v24, %v4715_v24 }
 0x5ef   :  { %v4960_v35 = vunpack.c.l.b16 %v3671_v44  ;;  %v5056_v15 = vunpack.c.l.b16 %v4381_v31  ;;  %v5104_v40 = vunpack.c.l.b16 %v4736_v27  ;;  %v4713_v44 = vmul.f32 %v10363_v0, %v10324_v57 }
 0x5f0   :  { %v5052_v31 = vunpack.c.l.b16 %v4377_v38  ;;  %v4374_v27 = vpack.c.bf16 %v4358_v13, %v4358_v13  ;;  %v4730_v39 = vpack.c.bf16 %v4714_v25, %v4714_v25  ;;  %v3663_v24 = vpack.c.bf16 %v3647_v55, %v3647_v55 }
 0x5f1   :  { %v4968_v46 = vpack.c.b16 %v4960_v35, %v4959_v49  ;;  %v5064_v11 = vpack.c.b16 %v5056_v15, %v5055_v36  ;;  %v5112_v21 = vpack.c.b16 %v5104_v40, %v5103_v22  ;;  %v5100_v49 = vunpack.c.l.b16 %v4732_v41 }
 0x5f2   :  { %v4954_v40 = vunpack.c.l.b16 %v3665_v48  ;;  %v5111_v36 = vpack.c.b16 %v10432_v33, %v10419_v59  ;;  %v5050_v45 = vunpack.c.l.b16 %v4375_v6  ;;  %v4356_v35 = vmul.f32 %v10360_v14, %v10314_v18 }
 0x5f3   :  { %5121 = vmatpush.bf16.msrb.mxu3 %v4968_v46  ;;  %5219 = vmatpush.bf16.msrb.mxu2 %v5064_v11  ;;  %v4357_v15 = vmul.f32 %v10360_v14, %v10316_v63  ;;  %v5099_v62 = vunpack.c.l.b16 %v4731_v37  ;;  %v4729_v26 = vpack.c.bf16 %v4713_v44, %v4713_v44  ;;  %v3662_v38 = vpack.c.bf16 %v3646_v47, %v3646_v47 }
 0x5f4   :  { %5268 = vmatpush.bf16.msra.mxu0 %v5112_v21  ;;  %v4966_v41 = vpack.c.b16 %v10436_v50, %v10434_v17  ;;  %v5062_v48 = vpack.c.b16 %v5052_v31, %v5051_v20  ;;  %v5049_v13 = vunpack.c.l.b16 %v4374_v27  ;;  %v4712_v59 = vmul.f32 %v10363_v0, %v10316_v63 }
 0x5f5   :  { %v5110_v33 = vpack.c.b16 %v5100_v49, %v5099_v62  ;;  %v4965_v22 = vpack.c.b16 %v4954_v40, %v4953_v51  ;;  %v5098_v25 = vunpack.c.l.b16 %v4730_v39  ;;  %v4952_v55 = vunpack.c.l.b16 %v3663_v24 }
 0x5f6   :  { %3284 = vmatpush.bf16.xpose.msrb.mxu1 %v3225_v42  ;;  %v5061_v42 = vpack.c.b16 %v5050_v45, %v5049_v13  ;;  %v4372_v46 = vpack.c.bf16 %v4356_v35, %v4356_v35  ;;  %v4373_v12 = vpack.c.bf16 %v4357_v15, %v4357_v15  ;;  %v5097_v21 = vunpack.c.l.b16 %v4729_v26 }
 0x5f7   :  { %5122 = vmatpush.bf16.msrb.mxu3 %v4967_v5  ;;  %5220 = vmatpush.bf16.msrb.mxu2 %v5063_v52  ;;  %v4711_v5 = vmul.f32 %v10363_v0, %v10314_v18  ;;  %v4951_v17 = vunpack.c.l.b16 %v3662_v38  ;;  %v3645_v50 = vmul.f32 %v10357_v61, %v10306_v8  ;;  %v4355_v6 = vmul.f32 %v10360_v14, %v10306_v8 }
 0x5f8   :  { %5269 = vmatpush.bf16.msra.mxu0 %v5111_v36  ;;  %v4728_v37 = vpack.c.bf16 %v4712_v59, %v4712_v59  ;;  %v3644_v44 = vmul.f32 %v10357_v61, %v10304_v9  ;;  %v4710_v47 = vmul.f32 %v10363_v0, %v10306_v8  ;;  %v3222_v52 = vsel %vm254_vm1, %v10340_v23, 0 }
 0x5f9   :  { %v5109_v20 = vpack.c.b16 %v5098_v25, %v5097_v21  ;;  %v4964_v31 = vpack.c.b16 %v4952_v55, %v4951_v17  ;;  %v4354_v27 = vmul.f32 %v10360_v14, %v10304_v9  ;;  %v5047_v49 = vunpack.c.l.b16 %v4372_v46 }
 0x5fa   :  { %v10486_v11 = vpop.f32.mrf.mxu0  ;;  %v5048_v40 = vunpack.c.l.b16 %v4373_v12  ;;  %v4727_v39 = vpack.c.bf16 %v4711_v5, %v4711_v5  ;;  %v4709_v24 = vmul.f32 %v10363_v0, %v10304_v9  ;;  %v3661_v36 = vpack.c.bf16 %v3645_v50, %v3645_v50 }
 0x5fb   :  { %3352 = vperm.xlu1 %7891, %v10486_v11   ;;  %5123 = vmatpush.bf16.msrb.mxu3 %v4966_v41  ;;  %v4371_v45 = vpack.c.bf16 %v4355_v6, %v4355_v6  ;;  %v3643_v35 = vmul.f32 %v10357_v61, %v10296_v19  ;;  %v4353_v23 = vmul.f32 %v10360_v14, %v10296_v19  ;;  %v5096_v15 = vunpack.c.l.b16 %v4728_v37 }
 0x5fc   :  { %5221 = vmatpush.bf16.msrb.mxu2 %v5062_v48  ;;  %5270 = vmatpush.bf16.msra.mxu0 %v5110_v33  ;;  %v3660_v62 = vpack.c.bf16 %v3644_v44, %v3644_v44  ;;  %v4726_v51 = vpack.c.bf16 %v4710_v47, %v4710_v47  ;;  %v4708_v26 = vmul.f32 %v10363_v0, %v10296_v19  ;;  %v5095_v59 = vunpack.c.l.b16 %v4727_v39 }
 0x5fd   :  { %v4370_v38 = vpack.c.bf16 %v4354_v27, %v4354_v27  ;;  %v3642_v41 = vmul.f32 %v10357_v61, %v10294_v54  ;;  %v4352_v48 = vmul.f32 %v10360_v14, %v10294_v54  ;;  %v5060_v13 = vpack.c.b16 %v5048_v40, %v5047_v49 }
 0x5fe   :  { %3285 = vmatpush.bf16.xpose.msrb.mxu1 %v3222_v52  ;;  %v4725_v33 = vpack.c.bf16 %v4709_v24, %v4709_v24  ;;  %v4950_v55 = vunpack.c.l.b16 %v3661_v36  ;;  %v5046_v46 = vunpack.c.l.b16 %v4371_v45  ;;  %v3659_v12 = vpack.c.bf16 %v3643_v35, %v3643_v35 }
 0x5ff   :  { %5124 = vmatpush.bf16.msrb.mxu3 %v4965_v22  ;;  %v4707_v22 = vmul.f32 %v10363_v0, %v10294_v54  ;;  %v12352_v5 = vmov 2   ;;  %v5108_v61 = vpack.c.b16 %v5096_v15, %v5095_v59  ;;  %v5094_v21 = vunpack.c.l.b16 %v4726_v51 }
 0x600   :  { %5222 = vmatpush.bf16.msrb.mxu2 %v5061_v42  ;;  %5271 = vmatpush.bf16.msra.mxu0 %v5109_v20  ;;  %v4369_v42 = vpack.c.bf16 %v4353_v23, %v4353_v23  ;;  %v4724_v17 = vpack.c.bf16 %v4708_v26, %v4708_v26  ;;  %v3657_v14 = vpack.c.bf16 %v10401_v32, %v10401_v32  ;;  %v4949_v50 = vunpack.c.l.b16 %v3660_v62 }
 0x601   :  { %v5045_v0 = vunpack.c.l.b16 %v4370_v38  ;;  %v3658_v6 = vpack.c.bf16 %v3642_v41, %v3642_v41  ;;  %v4368_v37 = vpack.c.bf16 %v4352_v48, %v4352_v48  ;;  %v3219_v44 = vsel %vm254_vm1, %v10330_v60, 0 }
 0x602   :  { %v10515_v25 = vpop.f32.mrf.mxu0  ;;  %v5093_v47 = vunpack.c.l.b16 %v4725_v33  ;;  %v4723_v52 = vpack.c.bf16 %v4707_v22, %v4707_v22  ;;  %v4367_v20 = vpack.c.bf16 %v10405_v34, %v10405_v34  ;;  %v4963_v27 = vpack.c.b16 %v4950_v55, %v4949_v50 }
 0x603   :  { %7892 = vset.pattern.permute.xlu1 %v12352_v5  ;;  %3357 = vperm.xlu2 %7895, %v10515_v25   ;;  %v5059_v32 = vpack.c.b16 %v5046_v46, %v5045_v0  ;;  %v5044_v49 = vunpack.c.l.b16 %v4369_v42  ;;  %v5092_v39 = vunpack.c.l.b16 %v4724_v17  ;;  %v4722_v24 = vpack.c.bf16 %v10423_v29, %v10423_v29 }
 0x604   :  { %5125 = vmatpush.bf16.msrb.mxu3 %v4964_v31  ;;  %5223 = vmatpush.bf16.msrb.mxu2 %v5060_v13  ;;  %v4948_v31 = vunpack.c.l.b16 %v3659_v12  ;;  %v5107_v40 = vpack.c.b16 %v5094_v21, %v5093_v47  ;;  %v4947_v36 = vunpack.c.l.b16 %v3658_v6  ;;  %v5043_v45 = vunpack.c.l.b16 %v4368_v37  ;;  %v12356_v47 = vld [vmem:[#allocation26_spill] sm:$0xff] }
 0x605   :  { %5272 = vmatpush.bf16.msra.mxu0 %v5108_v61  ;;  %4077 = vperm.xlu1 %7892, %v10486_v11   ;;  %v3656_v60 = vpack.c.bf16 %v10385_v56, %v10385_v56  ;;  %v4366_v34 = vpack.c.bf16 %v10389_v7, %v10389_v7  ;;  %v5091_v35 = vunpack.c.l.b16 %v4723_v52  ;;  %v4721_v23 = vpack.c.bf16 %v10393_v43, %v10393_v43  ;;  %v12357_v52 = vld [vmem:[#allocation21_spill] sm:$0xff] }
 0x606   :  { %3286 = vmatpush.bf16.xpose.msrb.mxu1 %v3219_v44  ;;  %v4962_v62 = vpack.c.b16 %v4948_v31, %v4947_v36  ;;  %v5058_v51 = vpack.c.b16 %v5044_v49, %v5043_v45  ;;  %v4946_v29 = vunpack.c.l.b16 %v3657_v14  ;;  %v5042_v26 = vunpack.c.l.b16 %v4367_v20 }
 0x607   :  { %v5106_v38 = vpack.c.b16 %v5092_v39, %v5091_v35  ;;  %v5090_v56 = vunpack.c.l.b16 %v4722_v24  ;;  %v4945_v7 = vunpack.c.l.b16 %v3656_v60  ;;  %v5041_v41 = vunpack.c.l.b16 %v4366_v34 }
 0x608   :  { %5126 = vmatpush.bf16.msrb.mxu3 %v4963_v27  ;;  %5224 = vmatpush.bf16.msrb.mxu2 %v5059_v32  ;;  %v12353_v48 = vmov 1   ;;  %v5089_v43 = vunpack.c.l.b16 %v4721_v23  ;;  %v3216_v13 = vsel %vm254_vm1, %v10320_v16, 0  ;;  %v12354_v46 = vmov 3  }
 0x609   :  { %5273 = vmatpush.bf16.msra.mxu0 %v5107_v40  ;;  %v4961_v59 = vpack.c.b16 %v4946_v29, %v4945_v7  ;;  %v5057_v33 = vpack.c.b16 %v5042_v26, %v5041_v41  ;;  %v3213_v16 = vsel %vm254_vm1, %v10310_v58, 0  ;;  %v10554_v12 = vperm.slane %v10349_v30, 1 }
 0x60a   :  { %v10534_v15 = vpop.f32.mrf.mxu0  ;;  %v5105_v22 = vpack.c.b16 %v5090_v56, %v5089_v43  ;;  %v12355_v61 = vmov 0   ;;  %v3210_v58 = vsel %vm254_vm1, %v10300_v53, 0  ;;  %v3207_v20 = vsel %vm254_vm1, %v12357_v52, 0 }
 0x60b   :  { %7896 = vset.pattern.permute.xlu2 %v12352_v5  ;;  %4440 = vperm.xlu0 %7902, %v10534_v15   ;;  %v4010_v21 = vmul.f32 %v10554_v12, %v10440_v28  ;;  %v4009_v17 = vmul.f32 %v10554_v12, %v10381_v3  ;;  %v4008_v14 = vmul.f32 %v10554_v12, %v10351_v4 }
 0x60c   :  { %5127 = vmatpush.bf16.msrb.mxu3 %v4962_v62  ;;  %5225 = vmatpush.bf16.msrb.mxu2 %v5058_v51  ;;  %v4007_v3 = vmul.f32 %v10554_v12, %v10344_v10  ;;  %v4006_v53 = vmul.f32 %v10554_v12, %v10336_v1  ;;  %v4005_v4 = vmul.f32 %v10554_v12, %v12356_v47 }
 0x60d   :  { %5274 = vmatpush.bf16.msra.mxu0 %v5106_v38  ;;  %7893 = vset.pattern.permute.xlu1 %v12353_v48  ;;  %v4026_v30 = vpack.c.bf16 %v4010_v21, %v4010_v21  ;;  %v4025_v28 = vpack.c.bf16 %v4009_v17, %v4009_v17  ;;  %v4024_v6 = vpack.c.bf16 %v4008_v14, %v4008_v14 }
 0x60e   :  { %4081 = vperm.xlu2 %7896, %v10515_v25   ;;  %3722 = vperm.xlu1 %7893, %v10486_v11   ;;  %v4023_v44 = vpack.c.bf16 %v4007_v3, %v4007_v3  ;;  %v4022_v32 = vpack.c.bf16 %v4006_v53, %v4006_v53  ;;  %v4004_v31 = vmul.f32 %v10554_v12, %v10326_v2  ;;  %v3279_v2 = vld [vmem:[%s12084_s10] sm:$0x3] }
 0x60f   :  { %3287 = vmatpush.bf16.xpose.msrb.mxu1 %v3216_v13  ;;  %v5008_v0 = vunpack.c.l.b16 %v4026_v30  ;;  %v5007_v37 = vunpack.c.l.b16 %v4025_v28  ;;  %v5006_v10 = vunpack.c.l.b16 %v4024_v6  ;;  %v4021_v40 = vpack.c.bf16 %v4005_v4, %v4005_v4  ;;  %v12359_v30 = vld [vmem:[#allocation20_spill] sm:$0xff] }
 0x610   :  { %5128 = vmatpush.bf16.msrb.mxu3 %v4961_v59  ;;  %5226 = vmatpush.bf16.msrb.mxu2 %v5057_v33  ;;  %v5005_v49 = vunpack.c.l.b16 %v4023_v44  ;;  %v4003_v39 = vmul.f32 %v10554_v12, %v10324_v57  ;;  %v5004_v36 = vunpack.c.l.b16 %v4022_v32  ;;  %v4020_v45 = vpack.c.bf16 %v4004_v31, %v4004_v31 }
 0x611   :  { %5275 = vmatpush.bf16.msra.mxu0 %v5105_v22  ;;  %v5016_v27 = vpack.c.b16 %v5008_v0, %v5007_v37  ;;  %v4002_v60 = vmul.f32 %v10554_v12, %v10316_v63  ;;  %v5003_v34 = vunpack.c.l.b16 %v4021_v40  ;;  %v4001_v57 = vmul.f32 %v10554_v12, %v10314_v18 }
 0x612   :  { %v10543_v55 = vpop.f32.mrf.mxu0  ;;  %v5015_v24 = vpack.c.b16 %v5006_v10, %v5005_v49  ;;  %v4019_v35 = vpack.c.bf16 %v4003_v39, %v4003_v39  ;;  %v5002_v62 = vunpack.c.l.b16 %v4020_v45  ;;  %v4000_v29 = vmul.f32 %v10554_v12, %v10306_v8 }
 0x613   :  { %7905 = vset.pattern.permute.xlu0 %v12353_v48  ;;  %v5014_v23 = vpack.c.b16 %v5004_v36, %v5003_v34  ;;  %v4018_v51 = vpack.c.bf16 %v4002_v60, %v4002_v60  ;;  %v4017_v38 = vpack.c.bf16 %v4001_v57, %v4001_v57  ;;  %v3999_v18 = vmul.f32 %v10554_v12, %v10304_v9 }
 0x614   :  { %3734 = vperm.xlu0 %7905, %v10543_v55   ;;  %v5001_v26 = vunpack.c.l.b16 %v4019_v35  ;;  %v4016_v7 = vpack.c.bf16 %v4000_v29, %v4000_v29  ;;  %v3998_v41 = vmul.f32 %v10554_v12, %v10296_v19  ;;  %v3997_v9 = vmul.f32 %v10554_v12, %v10294_v54 }
 0x615   :  { %v5000_v8 = vunpack.c.l.b16 %v4018_v51  ;;  %v4999_v43 = vunpack.c.l.b16 %v4017_v38  ;;  %v4015_v13 = vpack.c.bf16 %v3999_v18, %v3999_v18  ;;  %v3995_v14 = vmul.f32 %v10554_v12, %v12359_v30 }
 0x616   :  { %7897 = vset.pattern.permute.xlu2 %v12353_v48  ;;  %7894 = vset.pattern.permute.xlu1 %v12354_v46  ;;  %v5013_v56 = vpack.c.b16 %v5002_v62, %v5001_v26  ;;  %v4998_v33 = vunpack.c.l.b16 %v4016_v7  ;;  %v4014_v22 = vpack.c.bf16 %v3998_v41, %v3998_v41 }
 0x617   :  { %3726 = vperm.xlu2 %7897, %v10515_v25   ;;  %4432 = vperm.xlu1 %7894, %v10486_v11   ;;  %v5012_v59 = vpack.c.b16 %v5000_v8, %v4999_v43  ;;  %v4997_v19 = vunpack.c.l.b16 %v4015_v13  ;;  %v4011_v6 = vpack.c.bf16 %v3995_v14, %v3995_v14 }
 0x618   :  { %3288 = vmatpush.bf16.xpose.msrb.mxu1 %v3213_v16  ;;  %v12358_v16 = vld [vmem:[#allocation27_spill] sm:$0xff]  ;;  %v4996_v28 = vunpack.c.l.b16 %v4014_v22 }
 0x619   :  { %v3996_v21 = vmul.f32 %v10554_v12, %v12358_v16  ;;  %v5011_v54 = vpack.c.b16 %v4998_v33, %v4997_v19  ;;  %v4993_v44 = vunpack.c.l.b16 %v4011_v6 }
 0x61a   :  { %v10556_v42 = vpop.f32.mrf.mxu0 }
 0x61b   :  { %v4012_v3 = vpack.c.bf16 %v3996_v21, %v3996_v21 }
 0x61c   :  { %7911 = vset.pattern.permute.xlu0 %v12355_v61 }
 0x61d   :  { %v4994_v37 = vunpack.c.l.b16 %v4012_v3 }
 0x61f   :  { %7898 = vset.pattern.permute.xlu2 %v12354_v46  ;;  %7903 = vset.pattern.permute.xlu1 %v12355_v61  ;;  %v5009_v47 = vpack.c.b16 %v4994_v37, %v4993_v44 }
 0x620   :  { %4436 = vperm.xlu2 %7898, %v10515_v25   ;;  %3289 = vmatpush.bf16.xpose.msrb.mxu1 %v3210_v58  ;;  %v4013_v58 = vpack.c.bf16 %v3997_v9, %v3997_v9 }
 0x621   :  { %3367 = vperm.xlu1 %7903, %v10543_v55  }
 0x622   :  { %v10571_v50 = vpop.f32.mrf.mxu0  ;;  %v4995_v0 = vunpack.c.l.b16 %v4013_v58 }
 0x623   :  { %3377 = vperm.xlu0 %7911, %v10571_v50  }
 0x624   :  { %v5010_v53 = vpack.c.b16 %v4996_v28, %v4995_v0 }
 0x628   :  { %7899 = vset.pattern.permute.xlu2 %v12355_v61  ;;  %3290 = vmatpush.bf16.xpose.msrb.mxu1 %v3207_v20 }
 0x629   :  { %3362 = vperm.xlu2 %7899, %v10534_v15   ;;  %7904 = vset.pattern.permute.xlu1 %v12352_v5 }
 0x62a   :  { %4089 = vperm.xlu1 %7904, %v10543_v55   ;;  %v10588_v1 = vpop.f32.mrf.mxu0 }
 0x62b   :  { %7913 = vset.pattern.permute.xlu0 %v12353_v48 }
 0x62c   :  { %3742 = vperm.xlu0 %7913, %v10571_v50  }
 0x62f   :  { %7433 = vmatmul.msk.bf16.vlgmr.msrb.gmra.mxu1 %vm254_vm1, %v3279_v2 }
 0x630   :  { %5170 = vmatpush.bf16.msra.mxu1 %v5016_v27 }
 0x631   :  { %7900 = vset.pattern.permute.xlu2 %v12352_v5 }
 0x632   :  { %4085 = vperm.xlu2 %7900, %v10534_v15   ;;  %v10606_v63 = vpop.f32.mrf.mxu0  ;;  %7906 = vset.pattern.permute.xlu1 %v12354_v46 }
 0x633   :  { %4444 = vperm.xlu1 %7906, %v10543_v55  }
 0x634   :  { %5171 = vmatpush.bf16.msra.mxu1 %v5015_v24  ;;  %7919 = vset.pattern.permute.xlu0 %v12355_v61 }
 0x635   :  { %3387 = vperm.xlu0 %7919, %v10606_v63  }
 0x638   :  { %5172 = vmatpush.bf16.msra.mxu1 %v5014_v23 }
 0x63a   :  { %7901 = vset.pattern.permute.xlu2 %v12353_v48  ;;  %v10621_v17 = vpop.f32.mrf.mxu0 }
 0x63b   :  { %3730 = vperm.xlu2 %7901, %v10534_v15   ;;  %7908 = vset.pattern.permute.xlu1 %v12352_v5 }
 0x63c   :  { %5173 = vmatpush.bf16.msra.mxu1 %v5013_v56  ;;  %4093 = vperm.xlu1 %7908, %v10556_v42  }
 0x63d   :  { %7921 = vset.pattern.permute.xlu0 %v12353_v48 }
 0x63e   :  { %3750 = vperm.xlu0 %7921, %v10606_v63  }
 0x640   :  { %5174 = vmatpush.bf16.msra.mxu1 %v5012_v59 }
 0x642   :  { %v10630_v12 = vpop.f32.mrf.mxu0 }
 0x643   :  { %7907 = vset.pattern.permute.xlu2 %v12355_v61 }
 0x644   :  { %5175 = vmatpush.bf16.msra.mxu1 %v5011_v54  ;;  %3372 = vperm.xlu2 %7907, %v10556_v42  }
 0x645   :  { %7910 = vset.pattern.permute.xlu1 %v12354_v46 }
 0x646   :  { %4448 = vperm.xlu1 %7910, %v10556_v42   ;;  %7927 = vset.pattern.permute.xlu0 %v12355_v61 }
 0x647   :  { %3397 = vperm.xlu0 %7927, %v10630_v12  }
 0x648   :  { %5176 = vmatpush.bf16.msra.mxu1 %v5010_v53 }
 0x64a   :  { %v10638_v4 = vpop.f32.mrf.mxu0 }
 0x64c   :  { %5177 = vmatpush.bf16.msra.mxu1 %v5009_v47  ;;  %7909 = vset.pattern.permute.xlu2 %v12353_v48 }
 0x64d   :  { %3738 = vperm.xlu2 %7909, %v10556_v42  }
 0x64e   :  { %7916 = vset.pattern.permute.xlu1 %v12352_v5 }
 0x64f   :  { %4101 = vperm.xlu1 %7916, %v10588_v1   ;;  %7929 = vset.pattern.permute.xlu0 %v12353_v48 }
 0x650   :  { %3758 = vperm.xlu0 %7929, %v10630_v12  }
 0x652   :  { %v10646_v52 = vpop.f32.mrf.mxu0 }
 0x655   :  { %7912 = vset.pattern.permute.xlu2 %v12352_v5 }
 0x656   :  { %4097 = vperm.xlu2 %7912, %v10571_v50  }
 0x657   :  { %7918 = vset.pattern.permute.xlu1 %v12354_v46 }
 0x658   :  { %4456 = vperm.xlu1 %7918, %v10588_v1   ;;  %7935 = vset.pattern.permute.xlu0 %v12355_v61 }
 0x659   :  { %3407 = vperm.xlu0 %7935, %v10646_v52  }
 0x65a   :  { %v10655_v20 = vpop.f32.mrf.mxu0 }
 0x65b   :  { %12360 = vst [vmem:[#allocation31_spill] sm:$0xff] %v10655_v20 }
 0x65d   :  { %v10657_v27 = vpop.permute.xlu2 %3357 }
 0x65e   :  { %7914 = vset.pattern.permute.xlu2 %v12354_v46 }
 0x65f   :  { %4452 = vperm.xlu2 %7914, %v10571_v50  }
 0x660   :  { %7924 = vset.pattern.permute.xlu1 %v12352_v5 }
 0x661   :  { %4109 = vperm.xlu1 %7924, %v10621_v17   ;;  %7937 = vset.pattern.permute.xlu0 %v12353_v48 }
 0x662   :  { %3766 = vperm.xlu0 %7937, %v10646_v52   ;;  %v10666_v10 = vpop.f32.mrf.mxu0 }
 0x667   :  { %7915 = vset.pattern.permute.xlu2 %v12355_v61 }
 0x668   :  { %3382 = vperm.xlu2 %7915, %v10588_v1   ;;  %v10668_v32 = vpop.permute.xlu2 %4081 }
 0x669   :  { %7926 = vset.pattern.permute.xlu1 %v12354_v46 }
 0x66a   :  { %4464 = vperm.xlu1 %7926, %v10621_v17   ;;  %7943 = vset.pattern.permute.xlu0 %v12355_v61  ;;  %v10677_v31 = vpop.f32.mrf.mxu0 }
 0x66b   :  { %3417 = vperm.xlu0 %7943, %v10666_v10  }
 0x66d   :  { %v10767_v9 = vpop.permute.xlu1 %3352 }
 0x670   :  { %7917 = vset.pattern.permute.xlu2 %v12353_v48 }
 0x671   :  { %3746 = vperm.xlu2 %7917, %v10588_v1   ;;  %v10679_v49 = vpop.permute.xlu2 %3726 }
 0x672   :  { %7932 = vset.pattern.permute.xlu1 %v12352_v5  ;;  %v10688_v40 = vpop.f32.mrf.mxu0 }
 0x673   :  { %4117 = vperm.xlu1 %7932, %v10638_v4   ;;  %7945 = vset.pattern.permute.xlu0 %v12353_v48 }
 0x674   :  { %3774 = vperm.xlu0 %7945, %v10666_v10  }
 0x677   :  { %v10775_v22 = vpop.permute.xlu1 %4077 }
 0x679   :  { %7920 = vset.pattern.permute.xlu2 %v12352_v5 }
 0x67a   :  { %4105 = vperm.xlu2 %7920, %v10606_v63   ;;  %v10690_v39 = vpop.permute.xlu2 %4436 }
 0x67b   :  { %7934 = vset.pattern.permute.xlu1 %v12354_v46 }
 0x67c   :  { %4472 = vperm.xlu1 %7934, %v10638_v4   ;;  %7951 = vset.pattern.permute.xlu0 %v12355_v61 }
 0x67d   :  { %3427 = vperm.xlu0 %7951, %v10688_v40   ;;  %v10714_v45 = vpop.permute.xlu0 %4440 }
 0x680   :  { %v10784_v19 = vpop.permute.xlu1 %3722 }
 0x682   :  { %7922 = vset.pattern.permute.xlu2 %v12354_v46 }
 0x683   :  { %4460 = vperm.xlu2 %7922, %v10606_v63   ;;  %v10699_v24 = vpop.permute.xlu2 %3362 }
 0x684   :  { %7940 = vset.pattern.permute.xlu1 %v12352_v5 }
 0x685   :  { %4125 = vperm.xlu1 %7940, %v10655_v20   ;;  %7953 = vset.pattern.permute.xlu0 %v12353_v48 }
 0x686   :  { %3782 = vperm.xlu0 %7953, %v10688_v40   ;;  %v10722_v34 = vpop.permute.xlu0 %3734 }
 0x689   :  { %v10793_v14 = vpop.permute.xlu1 %4432 }
 0x68b   :  { %7923 = vset.pattern.permute.xlu2 %v12355_v61 }
 0x68c   :  { %3392 = vperm.xlu2 %7923, %v10621_v17   ;;  %v10706_v2 = vpop.permute.xlu2 %4085 }
 0x68d   :  { %7942 = vset.pattern.permute.xlu1 %v12354_v46 }
 0x68e   :  { %4480 = vperm.xlu1 %7942, %v10655_v20  }
 0x693   :  { %v10801_v3 = vpop.permute.xlu1 %3367 }
 0x694   :  { %7925 = vset.pattern.permute.xlu2 %v12353_v48 }
 0x695   :  { %3754 = vperm.xlu2 %7925, %v10621_v17   ;;  %v10712_v36 = vpop.permute.xlu2 %3730  ;;  %v10729_v57 = vpop.permute.xlu0 %3377 }
 0x696   :  { %7948 = vset.pattern.permute.xlu1 %v12352_v5 }
 0x697   :  { %4133 = vperm.xlu1 %7948, %v10677_v31  }
 0x69c   :  { %v10809_v53 = vpop.permute.xlu1 %4089 }
 0x69d   :  { %7928 = vset.pattern.permute.xlu2 %v12352_v5 }
 0x69e   :  { %4113 = vperm.xlu2 %7928, %v10630_v12   ;;  %v10720_v60 = vpop.permute.xlu2 %3372  ;;  %v10737_v29 = vpop.permute.xlu0 %3742 }
 0x69f   :  { %7950 = vset.pattern.permute.xlu1 %v12354_v46 }
 0x6a0   :  { %4488 = vperm.xlu1 %7950, %v10677_v31  }
 0x6a5   :  { %v10816_v47 = vpop.permute.xlu1 %4444 }
 0x6a6   :  { %7930 = vset.pattern.permute.xlu2 %v12354_v46 }
 0x6a7   :  { %4468 = vperm.xlu2 %7930, %v10630_v12   ;;  %v10733_v62 = vpop.permute.xlu2 %3738  ;;  %v10744_v38 = vpop.permute.xlu0 %3387 }
 0x6a8   :  { %7955 = vset.pattern.permute.xlu1 %v12355_v61  ;;  %12361 = vst [vmem:[#allocation24_spill] sm:$0xff] %v10744_v38 }
 0x6ac   :  { %v10727_v35 = vpop.f32.mrf.mxu1 }
 0x6ad   :  { %v3296_v23 = vsel %vm345_vm2, %v10727_v35, -inf }
 0x6af   :  { %7931 = vset.pattern.permute.xlu2 %v12355_v61 }
 0x6b0   :  { %3402 = vperm.xlu2 %7931, %v10638_v4   ;;  %3297 = vmax.xlane.f32.xlu0 %v3296_v23  ;;  %v10740_v26 = vpop.permute.xlu2 %4097  ;;  %v10751_v56 = vpop.permute.xlu0 %3750 }
 0x6b1   :  { %12362 = vst [vmem:[#allocation7_spill] sm:$0xff] %v10751_v56 }
 0x6b4   :  { %v3294_v51 = vpop.f32.mrf.mxu1 }
 0x6b8   :  { %7933 = vset.pattern.permute.xlu2 %v12353_v48 }
 0x6b9   :  { %3762 = vperm.xlu2 %7933, %v10638_v4   ;;  %v10747_v18 = vpop.permute.xlu2 %4452  ;;  %v10757_v7 = vpop.permute.xlu0 %3397 }
 0x6ba   :  { %12364 = vst [vmem:[#allocation35_spill] sm:$0xff] %v10757_v7 }
 0x6c1   :  { %7936 = vset.pattern.permute.xlu2 %v12352_v5 }
 0x6c2   :  { %4121 = vperm.xlu2 %7936, %v10646_v52   ;;  %v10753_v8 = vpop.permute.xlu2 %3382  ;;  %v10763_v43 = vpop.permute.xlu0 %3758 }
 0x6c3   :  { %12363 = vst [vmem:[#allocation33_spill] sm:$0xff] %v10753_v8 }
 0x6c4   :  { %12366 = vst [vmem:[#allocation30_spill] sm:$0xff] %v10763_v43 }
 0x6ca   :  { %7938 = vset.pattern.permute.xlu2 %v12354_v46 }
 0x6cb   :  { %4476 = vperm.xlu2 %7938, %v10646_v52   ;;  %v10759_v41 = vpop.permute.xlu2 %3746  ;;  %v10771_v59 = vpop.permute.xlu0 %3407 }
 0x6cc   :  { %12365 = vst [vmem:[#allocation15_spill] sm:$0xff] %v10759_v41 }
 0x6cd   :  { %12368 = vst [vmem:[#allocation41_spill] sm:$0xff] %v10771_v59 }
 0x6d3   :  { %7939 = vset.pattern.permute.xlu2 %v12355_v61 }
 0x6d4   :  { %3412 = vperm.xlu2 %7939, %v10655_v20   ;;  %v10765_v13 = vpop.permute.xlu2 %4105  ;;  %v10779_v16 = vpop.permute.xlu0 %3766 }
 0x6d5   :  { %12367 = vst [vmem:[#allocation28_spill] sm:$0xff] %v10765_v13 }
 0x6d6   :  { %12370 = vst [vmem:[#allocation38_spill] sm:$0xff] %v10779_v16 }
 0x6dc   :  { %7941 = vset.pattern.permute.xlu2 %v12353_v48 }
 0x6dd   :  { %3770 = vperm.xlu2 %7941, %v10655_v20   ;;  %v10773_v33 = vpop.permute.xlu2 %4460  ;;  %v10787_v58 = vpop.permute.xlu0 %3417 }
 0x6de   :  { %12369 = vst [vmem:[#allocation37_spill] sm:$0xff] %v10773_v33 }
 0x6df   :  { %12372 = vst [vmem:[#allocation32_spill] sm:$0xff] %v10787_v58 }
 0x6e5   :  { %7944 = vset.pattern.permute.xlu2 %v12352_v5 }
 0x6e6   :  { %4129 = vperm.xlu2 %7944, %v10666_v10   ;;  %v10781_v21 = vpop.permute.xlu2 %3392  ;;  %v10795_v54 = vpop.permute.xlu0 %3774 }
 0x6e7   :  { %12371 = vst [vmem:[#allocation34_spill] sm:$0xff] %v10781_v21 }
 0x6e8   :  { %12374 = vst [vmem:[#allocation8_spill] sm:$0xff] %v10795_v54 }
 0x6ee   :  { %7946 = vset.pattern.permute.xlu2 %v12354_v46 }
 0x6ef   :  { %4484 = vperm.xlu2 %7946, %v10666_v10   ;;  %v10789_v30 = vpop.permute.xlu2 %3754  ;;  %v10803_v0 = vpop.permute.xlu0 %3427 }
 0x6f0   :  { %12373 = vst [vmem:[#allocation39_spill] sm:$0xff] %v10789_v30  ;;  %v10832_v30 = vpop.permute.xlu1 %4093 }
 0x6f1   :  { %12376 = vst [vmem:[#allocation43_spill] sm:$0xff] %v10803_v0 }
 0x6f7   :  { %7947 = vset.pattern.permute.xlu2 %v12355_v61 }
 0x6f8   :  { %3422 = vperm.xlu2 %7947, %v10677_v31   ;;  %v10797_v28 = vpop.permute.xlu2 %4113  ;;  %v10812_v37 = vpop.permute.xlu0 %3782 }
 0x6f9   :  { %12375 = vst [vmem:[#allocation12_spill] sm:$0xff] %v10797_v28 }
 0x6fa   :  { %12378 = vst [vmem:[#allocation44_spill] sm:$0xff] %v10812_v37 }
 0x700   :  { %7949 = vset.pattern.permute.xlu2 %v12353_v48 }
 0x701   :  { %3778 = vperm.xlu2 %7949, %v10677_v31   ;;  %v10806_v6 = vpop.permute.xlu2 %4468 }
 0x702   :  { %12377 = vst [vmem:[#allocation36_spill] sm:$0xff] %v10806_v6 }
 0x709   :  { %7952 = vset.pattern.permute.xlu2 %v12352_v5 }
 0x70a   :  { %4137 = vperm.xlu2 %7952, %v10688_v40   ;;  %v10814_v44 = vpop.permute.xlu2 %3402 }
 0x70b   :  { %12379 = vst [vmem:[#allocation45_spill] sm:$0xff] %v10814_v44 }
 0x712   :  { %7954 = vset.pattern.permute.xlu2 %v12354_v46 }
 0x713   :  { %4492 = vperm.xlu2 %7954, %v10688_v40   ;;  %v10822_v54 = vpop.permute.xlu2 %3762 }
 0x714   :  { %12380 = vst [vmem:[#allocation3_spill] sm:$0xff] %v10822_v54 }
 0x71b   :  { %7956 = vset.pattern.permute.xlu2 %v12355_v61 }
 0x71c   :  { %v10840_v38 = vpop.permute.xlu2 %4121 }
 0x71d   :  { %12381 = vst [vmem:[#allocation22_spill] sm:$0xff] %v10840_v38 }
 0x723   :  { %v3298_v23 = vpop.xlane.xlu0 %3297 }
 0x724   :  { %v10818_v51 = vperm.slane %v3298_v23, 0  ;;  %v10820_v0 = vperm.slane %v3298_v23, 1  ;;  %v10830_v59 = vperm.slane %v3298_v23, 2 }
 0x726   :  { %v3673_v58 = vadd.f32 %v10820_v0, %v10486_v11  ;;  %v3303_v16 = vadd.f32 %v10818_v51, %v10515_v25  ;;  %v3302_v37 = vadd.f32 %v10818_v51, %v10486_v11  ;;  %v3306_v54 = vadd.f32 %v10818_v51, %v10556_v42 }
 0x727   :  { %v4029_v56 = vadd.f32 %v10830_v59, %v10515_v25  ;;  %v4028_v33 = vadd.f32 %v10830_v59, %v10486_v11 }
 0x728   :  { %v3689_v44 = vmul.f32 0.2, %v3673_v58  ;;  %v3319_v43 = vmul.f32 0.2, %v3303_v16  ;;  %v3318_v6 = vmul.f32 0.2, %v3302_v37 }
 0x729   :  { %v3322_v41 = vmul.f32 0.2, %v3306_v54  ;;  %v4045_v13 = vmul.f32 0.2, %v4029_v56  ;;  %v4044_v8 = vmul.f32 0.2, %v4028_v33 }
 0x72a   :  { %v3705_v7 = vmax.f32 %v3673_v58, %v3689_v44  ;;  %v3335_v28 = vmax.f32 %v3303_v16, %v3319_v43  ;;  %v3334_v21 = vmax.f32 %v3302_v37, %v3318_v6  ;;  %v10842_v58 = vperm.slane %v3298_v23, 3  ;;  %v10844_v43 = vpop.permute.xlu1 %4448  ;;  %v10855_v44 = vpop.permute.xlu2 %4476 }
 0x72b   :  { %v3338_v16 = vmax.f32 %v3306_v54, %v3322_v41  ;;  %v3674_v41 = vadd.f32 %v10820_v0, %v10515_v25  ;;  %12382 = vst [vmem:[#allocation40_spill] sm:$0xff] %v10855_v44  ;;  %v3308_v23 = vadd.f32 %v10818_v51, %v10588_v1 }
 0x72c   :  { %3836 = vperm.xlu0 %7953, %v3705_v7   ;;  %3486 = vperm.xlu2 %7956, %v3335_v28   ;;  %v4061_v7 = vmax.f32 %v4029_v56, %v4045_v13  ;;  %v4060_v28 = vmax.f32 %v4028_v33, %v4044_v8  ;;  %v4383_v6 = vadd.f32 %v10842_v58, %v10486_v11 }
 0x72d   :  { %3481 = vperm.xlu1 %7955, %v3334_v21   ;;  %v3677_v21 = vadd.f32 %v10820_v0, %v10556_v42  ;;  %v3690_v56 = vmul.f32 0.2, %v3674_v41 }
 0x72e   :  { %v4399_v37 = vmul.f32 0.2, %v4383_v6 }
 0x72f   :  { %v3693_v54 = vmul.f32 0.2, %v3677_v21  ;;  %v3706_v11 = vmax.f32 %v3674_v41, %v3690_v56 }
 0x730   :  { %v4415_v33 = vmax.f32 %v4383_v6, %v4399_v37 }
 0x731   :  { %v3709_v13 = vmax.f32 %v3677_v21, %v3693_v54 }
 0x732   :  { %v10857_v8 = vpop.permute.xlu1 %4101  ;;  %v10868_v54 = vpop.permute.xlu2 %3412 }
 0x733   :  { %12383 = vst [vmem:[#allocation42_spill] sm:$0xff] %v10857_v8  ;;  %v12401_v8 = vld [vmem:[#allocation47_spill] sm:$0xff] }
 0x734   :  { %7970 = vset.pattern.permute.xlu0 %v12355_v61  ;;  %7958 = vset.pattern.permute.xlu2 %v12352_v5  ;;  %12384 = vst [vmem:[#allocation17_spill] sm:$0xff] %v10868_v54 }
 0x735   :  { %7957 = vset.pattern.permute.xlu1 %v12352_v5  ;;  %3501 = vperm.xlu0 %7970, %v3338_v16   ;;  %v3304_v16 = vadd.f32 %v10818_v51, %v10534_v15 }
 0x736   :  { %4196 = vperm.xlu2 %7958, %v4061_v7   ;;  %4191 = vperm.xlu1 %7957, %v4060_v28   ;;  %v4384_v7 = vadd.f32 %v10842_v58, %v10515_v25  ;;  %v3324_v28 = vmul.f32 0.2, %v3308_v23  ;;  %v3679_v25 = vadd.f32 %v10820_v0, %v10588_v1 }
 0x737   :  { %v3320_v21 = vmul.f32 0.2, %v3304_v16 }
 0x738   :  { %v4400_v6 = vmul.f32 0.2, %v4384_v7  ;;  %v3340_v37 = vmax.f32 %v3308_v23, %v3324_v28 }
 0x739   :  { %v3336_v41 = vmax.f32 %v3304_v16, %v3320_v21 }
 0x73a   :  { %v10870_v44 = vpop.permute.xlu1 %4456  ;;  %v4416_v56 = vmax.f32 %v4384_v7, %v4400_v6  ;;  %v10881_v54 = vpop.permute.xlu2 %3770 }
 0x73b   :  { %12385 = vst [vmem:[#allocation23_spill] sm:$0xff] %v10870_v44 }
 0x73c   :  { %12386 = vst [vmem:[#allocation25_spill] sm:$0xff] %v10881_v54 }
 0x73d   :  { %7974 = vset.pattern.permute.xlu0 %v12353_v48 }
 0x73e   :  { %7960 = vset.pattern.permute.xlu2 %v12354_v46  ;;  %7959 = vset.pattern.permute.xlu1 %v12353_v48 }
 0x73f   :  { %3856 = vperm.xlu0 %7974, %v3709_v13   ;;  %4546 = vperm.xlu2 %7960, %v4415_v33   ;;  %v4031_v13 = vadd.f32 %v10830_v59, %v10543_v55  ;;  %v3305_v33 = vadd.f32 %v10818_v51, %v10543_v55 }
 0x740   :  { %3841 = vperm.xlu1 %7959, %v3706_v11   ;;  %v3695_v11 = vmul.f32 0.2, %v3679_v25 }
 0x741   :  { %v4047_v23 = vmul.f32 0.2, %v4031_v13  ;;  %v3321_v28 = vmul.f32 0.2, %v3305_v33 }
 0x742   :  { %v3711_v16 = vmax.f32 %v3679_v25, %v3695_v11  ;;  %v10884_v21 = vpop.permute.xlu1 %4109 }
 0x743   :  { %v4063_v7 = vmax.f32 %v4031_v13, %v4047_v23  ;;  %12387 = vst [vmem:[#allocation29_spill] sm:$0xff] %v10884_v21  ;;  %v3337_v6 = vmax.f32 %v3305_v33, %v3321_v28  ;;  %v10894_v23 = vpop.permute.xlu2 %4129 }
 0x744   :  { %12388 = vst [vmem:[#allocation26_spill] sm:$0xff] %v10894_v23 }
 0x747   :  { %7978 = vset.pattern.permute.xlu0 %v12355_v61  ;;  %7962 = vset.pattern.permute.xlu2 %v12355_v61 }
 0x748   :  { %7961 = vset.pattern.permute.xlu1 %v12354_v46  ;;  %3511 = vperm.xlu0 %7978, %v3340_v37   ;;  %v3310_v37 = vadd.f32 %v10818_v51, %v10621_v17 }
 0x749   :  { %3491 = vperm.xlu2 %7962, %v3336_v41   ;;  %4551 = vperm.xlu1 %7961, %v4416_v56   ;;  %v3675_v41 = vadd.f32 %v10820_v0, %v10534_v15  ;;  %v4030_v56 = vadd.f32 %v10830_v59, %v10534_v15 }
 0x74a   :  { %v3326_v25 = vmul.f32 0.2, %v3310_v37 }
 0x74b   :  { %v3691_v13 = vmul.f32 0.2, %v3675_v41  ;;  %v4046_v11 = vmul.f32 0.2, %v4030_v56 }
 0x74c   :  { %v3342_v54 = vmax.f32 %v3310_v37, %v3326_v25  ;;  %v3676_v37 = vadd.f32 %v10820_v0, %v10543_v55 }
 0x74d   :  { %v3707_v33 = vmax.f32 %v3675_v41, %v3691_v13  ;;  %v4062_v28 = vmax.f32 %v4030_v56, %v4046_v11  ;;  %v10907_v56 = vpop.permute.xlu2 %4484 }
 0x74e   :  { %v3692_v41 = vmul.f32 0.2, %v3676_v37  ;;  %12390 = vst [vmem:[#allocation27_spill] sm:$0xff] %v10907_v56  ;;  %v4385_v56 = vadd.f32 %v10842_v58, %v10534_v15  ;;  %v4388_v15 = vadd.f32 %v10842_v58, %v10571_v50 }
 0x750   :  { %7982 = vset.pattern.permute.xlu0 %v12353_v48  ;;  %v3708_v11 = vmax.f32 %v3676_v37, %v3692_v41 }
 0x751   :  { %7965 = vset.pattern.permute.xlu2 %v12352_v5  ;;  %7963 = vset.pattern.permute.xlu1 %v12355_v61 }
 0x752   :  { %3866 = vperm.xlu0 %7982, %v3711_v16   ;;  %4206 = vperm.xlu2 %7965, %v4063_v7   ;;  %v10898_v16 = vpop.permute.xlu1 %4464  ;;  %v3681_v7 = vadd.f32 %v10820_v0, %v10621_v17 }
 0x753   :  { %3496 = vperm.xlu1 %7963, %v3337_v6   ;;  %12389 = vst [vmem:[#allocation21_spill] sm:$0xff] %v10898_v16  ;;  %v4386_v6 = vadd.f32 %v10842_v58, %v10543_v55  ;;  %v4033_v55 = vadd.f32 %v10830_v59, %v10571_v50 }
 0x754   :  { %v3697_v25 = vmul.f32 0.2, %v3681_v7 }
 0x755   :  { %v4402_v23 = vmul.f32 0.2, %v4386_v6 }
 0x756   :  { %v3713_v13 = vmax.f32 %v3681_v7, %v3697_v25  ;;  %v4049_v7 = vmul.f32 0.2, %v4033_v55  ;;  %v10920_v25 = vpop.permute.xlu2 %3422 }
 0x757   :  { %12392 = vst [vmem:[#allocation50_spill] sm:$0xff] %v10920_v25  ;;  %v4404_v25 = vmul.f32 0.2, %v4388_v15 }
 0x758   :  { %v4065_v41 = vmax.f32 %v4033_v55, %v4049_v7 }
 0x75a   :  { %7986 = vset.pattern.permute.xlu0 %v12355_v61  ;;  %7966 = vset.pattern.permute.xlu2 %v12353_v48 }
 0x75b   :  { %7964 = vset.pattern.permute.xlu1 %v12352_v5  ;;  %3521 = vperm.xlu0 %7986, %v3342_v54   ;;  %v4418_v54 = vmax.f32 %v4386_v6, %v4402_v23  ;;  %v4401_v6 = vmul.f32 0.2, %v4385_v56 }
 0x75c   :  { %3846 = vperm.xlu2 %7966, %v3707_v33   ;;  %4201 = vperm.xlu1 %7964, %v4062_v28   ;;  %v3312_v33 = vadd.f32 %v10818_v51, %v10638_v4  ;;  %v10914_v28 = vpop.permute.xlu1 %4117 }
 0x75d   :  { %12391 = vst [vmem:[#allocation20_spill] sm:$0xff] %v10914_v28 }
 0x75e   :  { %v3328_v23 = vmul.f32 0.2, %v3312_v33 }
 0x760   :  { %v3344_v37 = vmax.f32 %v3312_v33, %v3328_v23  ;;  %v3307_v33 = vadd.f32 %v10818_v51, %v10571_v50 }
 0x762   :  { %v3323_v55 = vmul.f32 0.2, %v3307_v33 }
 0x763   :  { %7990 = vset.pattern.permute.xlu0 %v12353_v48 }
 0x764   :  { %7969 = vset.pattern.permute.xlu2 %v12354_v46  ;;  %7967 = vset.pattern.permute.xlu1 %v12353_v48 }
 0x765   :  { %3876 = vperm.xlu0 %7990, %v3713_v13   ;;  %4561 = vperm.xlu2 %7969, %v4418_v54   ;;  %v4417_v13 = vmax.f32 %v4385_v56, %v4401_v6  ;;  %v3683_v54 = vadd.f32 %v10820_v0, %v10638_v4  ;;  %v10933_v56 = vpop.permute.xlu2 %3778  ;;  %v4420_v6 = vmax.f32 %v4388_v15, %v4404_v25 }
 0x766   :  { %3851 = vperm.xlu1 %7967, %v3708_v11   ;;  %v10929_v11 = vpop.permute.xlu1 %4472  ;;  %12394 = vst [vmem:[#allocation52_spill] sm:$0xff] %v10933_v56  ;;  %v4032_v56 = vadd.f32 %v10830_v59, %v10556_v42 }
 0x767   :  { %12393 = vst [vmem:[#allocation51_spill] sm:$0xff] %v10929_v11  ;;  %v3699_v23 = vmul.f32 0.2, %v3683_v54 }
 0x768   :  { %v4048_v15 = vmul.f32 0.2, %v4032_v56 }
 0x769   :  { %v3715_v7 = vmax.f32 %v3683_v54, %v3699_v23 }
 0x76d   :  { %7994 = vset.pattern.permute.xlu0 %v12355_v61  ;;  %7973 = vset.pattern.permute.xlu2 %v12352_v5  ;;  %v10946_v28 = vpop.permute.xlu2 %4137 }
 0x76e   :  { %7968 = vset.pattern.permute.xlu1 %v12354_v46  ;;  %3531 = vperm.xlu0 %7994, %v3344_v37   ;;  %v3339_v37 = vmax.f32 %v3307_v33, %v3323_v55  ;;  %v10944_v11 = vpop.permute.xlu1 %4125  ;;  %12396 = vst [vmem:[#allocation54_spill] sm:$0xff] %v10946_v28  ;;  %v4064_v55 = vmax.f32 %v4032_v56, %v4048_v15  ;;  %v10960_v56 = vperm.slane %v10727_v35, 0 }
 0x76f   :  { %4216 = vperm.xlu2 %7973, %v4065_v41   ;;  %4556 = vperm.xlu1 %7968, %v4417_v13   ;;  %v3314_v41 = vadd.f32 %v10818_v51, %v10655_v20  ;;  %v4035_v13 = vadd.f32 %v10830_v59, %v10606_v63  ;;  %12395 = vst [vmem:[#allocation53_spill] sm:$0xff] %v10944_v11 }
 0x771   :  { %v3330_v25 = vmul.f32 0.2, %v3314_v41  ;;  %v4051_v54 = vmul.f32 0.2, %v4035_v13 }
 0x773   :  { %v3346_v23 = vmax.f32 %v3314_v41, %v3330_v25  ;;  %v4067_v33 = vmax.f32 %v4035_v13, %v4051_v54 }
 0x776   :  { %7998 = vset.pattern.permute.xlu0 %v12353_v48  ;;  %v10957_v41 = vpop.permute.xlu1 %4480 }
 0x777   :  { %7977 = vset.pattern.permute.xlu2 %v12354_v46  ;;  %7971 = vset.pattern.permute.xlu1 %v12355_v61  ;;  %12397 = vst [vmem:[#allocation55_spill] sm:$0xff] %v10957_v41  ;;  %v4037_v41 = vadd.f32 %v10830_v59, %v10630_v12 }
 0x778   :  { %3886 = vperm.xlu0 %7998, %v3715_v7   ;;  %4571 = vperm.xlu2 %7977, %v4420_v6   ;;  %v3685_v7 = vadd.f32 %v10820_v0, %v10655_v20  ;;  %v4390_v6 = vadd.f32 %v10842_v58, %v10606_v63 }
 0x779   :  { %3506 = vperm.xlu1 %7971, %v3339_v37   ;;  %v3678_v37 = vadd.f32 %v10820_v0, %v10571_v50  ;;  %v3316_v50 = vadd.f32 %v10818_v51, %v10677_v31 }
 0x77a   :  { %v3701_v25 = vmul.f32 0.2, %v3685_v7  ;;  %v4406_v28 = vmul.f32 0.2, %v4390_v6 }
 0x77b   :  { %v3694_v13 = vmul.f32 0.2, %v3678_v37 }
 0x77c   :  { %v3717_v54 = vmax.f32 %v3685_v7, %v3701_v25  ;;  %v4422_v15 = vmax.f32 %v4390_v6, %v4406_v28  ;;  %v4387_v28 = vadd.f32 %v10842_v58, %v10556_v42  ;;  %v3332_v6 = vmul.f32 0.2, %v3316_v50 }
 0x77d   :  { %v3687_v42 = vadd.f32 %v10820_v0, %v10677_v31 }
 0x77e   :  { %v10975_v7 = vpop.permute.xlu1 %4133 }
 0x77f   :  { %12399 = vst [vmem:[#allocation57_spill] sm:$0xff] %v10975_v7 }
 0x780   :  { %8002 = vset.pattern.permute.xlu0 %v12355_v61  ;;  %7981 = vset.pattern.permute.xlu2 %v12352_v5 }
 0x781   :  { %7972 = vset.pattern.permute.xlu1 %v12352_v5  ;;  %3541 = vperm.xlu0 %8002, %v3346_v23   ;;  %v10963_v23 = vpop.permute.xlu2 %4492 }
 0x782   :  { %4226 = vperm.xlu2 %7981, %v4067_v33   ;;  %4211 = vperm.xlu1 %7972, %v4064_v55   ;;  %12398 = vst [vmem:[#allocation56_spill] sm:$0xff] %v10963_v23  ;;  %v3710_v33 = vmax.f32 %v3678_v37, %v3694_v13  ;;  %v3432_v55 = vadd.f32 %v10960_v56, %v10657_v27  ;;  %v4053_v37 = vmul.f32 0.2, %v4037_v41  ;;  %v4403_v13 = vmul.f32 0.2, %v4387_v28 }
 0x783   :  { %v10978_v23 = vperm.slane %v10727_v35, 2 }
 0x784   :  { %v3448_v25 = vmul.f32 0.2, %v3432_v55  ;;  %v4069_v27 = vmax.f32 %v4037_v41, %v4053_v37  ;;  %v4419_v38 = vmax.f32 %v4387_v28, %v4403_v13  ;;  %v3431_v41 = vadd.f32 %v10960_v56, %v10767_v9 }
 0x786   :  { %v3464_v11 = vmax.f32 %v3432_v55, %v3448_v25  ;;  %v3309_v55 = vadd.f32 %v10818_v51, %v10606_v63  ;;  %v10993_v28 = vpop.permute.xlu1 %4488  ;;  %v3703_v25 = vmul.f32 0.2, %v3687_v42 }
 0x787   :  { %12400 = vst [vmem:[#allocation58_spill] sm:$0xff] %v10993_v28 }
 0x789   :  { %8006 = vset.pattern.permute.xlu0 %v12353_v48 }
 0x78a   :  { %7985 = vset.pattern.permute.xlu2 %v12354_v46  ;;  %7975 = vset.pattern.permute.xlu1 %v12353_v48 }
 0x78b   :  { %3896 = vperm.xlu0 %8006, %v3717_v54   ;;  %4581 = vperm.xlu2 %7985, %v4422_v15   ;;  %v3487_v54 = vpop.permute.xlu2 %3486  ;;  %v3348_v15 = vmax.f32 %v3316_v50, %v3332_v6  ;;  %v4142_v50 = vadd.f32 %v10978_v23, %v10668_v32  ;;  %v10996_v6 = vperm.slane %v10727_v35, 1  ;;  %v3719_v32 = vmax.f32 %v3687_v42, %v3703_v25 }
 0x78c   :  { %3861 = vperm.xlu1 %7975, %v3710_v33   ;;  %v4392_v33 = vadd.f32 %v10842_v58, %v10630_v12  ;;  %v3560_v7 = vsub.f32 %v3464_v11, %v3487_v54  ;;  %v3325_v54 = vmul.f32 0.2, %v3309_v55  ;;  %v4039_v42 = vadd.f32 %v10830_v59, %v10646_v52 }
 0x78d   :  { %v4158_v11 = vmul.f32 0.2, %v4142_v50  ;;  %v3786_v16 = vadd.f32 %v10996_v6, %v10784_v19  ;;  %v4141_v25 = vadd.f32 %v10978_v23, %v10775_v22 }
 0x78e   :  { %v4408_v37 = vmul.f32 0.2, %v4392_v33  ;;  %v3577_v13 = vmul.f32 1.442695, %v3560_v7  ;;  %v3341_v28 = vmax.f32 %v3309_v55, %v3325_v54  ;;  %v4398_v7 = vadd.f32 %v10842_v58, %v10688_v40 }
 0x78f   :  { %v4174_v9 = vmax.f32 %v4142_v50, %v4158_v11  ;;  %v11012_v55 = vperm.slane %v10727_v35, 3  ;;  %v4157_v44 = vmul.f32 0.2, %v4141_v25 }
 0x790   :  { %8217 = vpow2.f32 %v3577_v13  ;;  %v3802_v13 = vmul.f32 0.2, %v3786_v16  ;;  %v4414_v11 = vmul.f32 0.2, %v4398_v7 }
 0x793   :  { %8010 = vset.pattern.permute.xlu0 %v12355_v61  ;;  %7989 = vset.pattern.permute.xlu2 %v12352_v5 }
 0x794   :  { %7976 = vset.pattern.permute.xlu1 %v12354_v46  ;;  %3551 = vperm.xlu0 %8010, %v3348_v15   ;;  %v3447_v15 = vmul.f32 0.2, %v3431_v41 }
 0x795   :  { %4236 = vperm.xlu2 %7989, %v4069_v27   ;;  %4566 = vperm.xlu1 %7976, %v4419_v38   ;;  %v4197_v27 = vpop.permute.xlu2 %4196  ;;  %v4424_v38 = vmax.f32 %v4392_v33, %v4408_v37  ;;  %v4034_v33 = vadd.f32 %v10830_v59, %v10588_v1 }
 0x796   :  { %v3463_v21 = vmax.f32 %v3431_v41, %v3447_v15  ;;  %v4270_v19 = vsub.f32 %v4174_v9, %v4197_v27  ;;  %v4055_v41 = vmul.f32 0.2, %v4039_v42  ;;  %v3818_v27 = vmax.f32 %v3786_v16, %v3802_v13 }
 0x797   :  { %v4050_v15 = vmul.f32 0.2, %v4034_v33  ;;  %v4430_v9 = vmax.f32 %v4398_v7, %v4414_v11 }
 0x798   :  { %v4071_v35 = vmax.f32 %v4039_v42, %v4055_v41  ;;  %v3787_v42 = vadd.f32 %v10996_v6, %v10679_v49  ;;  %v12402_v41 = vld [vmem:[#allocation46_spill] sm:$0xff] }
 0x79c   :  { %8014 = vset.pattern.permute.xlu0 %v12353_v48 }
 0x79d   :  { %7993 = vset.pattern.permute.xlu2 %v12354_v46  ;;  %7979 = vset.pattern.permute.xlu1 %v12355_v61 }
 0x79e   :  { %3906 = vperm.xlu0 %8014, %v3719_v32   ;;  %4591 = vperm.xlu2 %7993, %v4424_v38   ;;  %v8218_v32 = vpop.eup %8217  ;;  %v4287_v38 = vmul.f32 1.442695, %v4270_v19  ;;  %v4173_v19 = vmax.f32 %v4141_v25, %v4157_v44 }
 0x79f   :  { %3516 = vperm.xlu1 %7979, %v3341_v28   ;;  %v3482_v50 = vpop.permute.xlu1 %3481  ;;  %v4496_v28 = vadd.f32 %v11012_v55, %v10793_v14  ;;  %v3608_v22 = vmul.f32 %v8218_v32, %v12401_v8  ;;  %v3680_v14 = vadd.f32 %v10820_v0, %v10606_v63 }
 0x7a0   :  { %v3559_v37 = vsub.f32 %v3463_v21, %v3482_v50  ;;  %v3837_v21 = vpop.permute.xlu0 %3836  ;;  %v4066_v50 = vmax.f32 %v4034_v33, %v4050_v15 }
 0x7a1   :  { %v3914_v7 = vsub.f32 %v3818_v27, %v3837_v21  ;;  %v3624_v11 = vpack.c.bf16 %v3608_v22, %v3608_v22  ;;  %v3696_v32 = vmul.f32 0.2, %v3680_v14  ;;  %v4041_v22 = vadd.f32 %v10830_v59, %v10666_v10 }
 0x7a2   :  { %v3575_v54 = vmul.f32 1.442695, %v3559_v37  ;;  %v4394_v37 = vadd.f32 %v10842_v58, %v10646_v52 }
 0x7a3   :  { %v3930_v20 = vmul.f32 1.442695, %v3914_v7  ;;  %v4754_v27 = vunpack.c.l.b16 %v3624_v11  ;;  %v4389_v7 = vadd.f32 %v10842_v58, %v10588_v1  ;;  %v4497_v11 = vadd.f32 %v11012_v55, %v10690_v39 }
 0x7a4   :  { %8219 = vpow2.f32 %v3575_v54  ;;  %v4512_v54 = vmul.f32 0.2, %v4496_v28  ;;  %v4410_v25 = vmul.f32 0.2, %v4394_v37 }
 0x7a5   :  { %8221 = vpow2.f32 %v4287_v38 }
 0x7a6   :  { %8017 = vset.pattern.permute.xlu0 %v12354_v46  ;;  %7997 = vset.pattern.permute.xlu2 %v12352_v5 }
 0x7a7   :  { %7980 = vset.pattern.permute.xlu1 %v12352_v5  ;;  %4621 = vperm.xlu0 %8017, %v4430_v9   ;;  %v4547_v9 = vpop.permute.xlu2 %4546 }
 0x7a8   :  { %4246 = vperm.xlu2 %7997, %v4071_v35   ;;  %4221 = vperm.xlu1 %7980, %v4066_v50   ;;  %v4192_v16 = vpop.permute.xlu1 %4191  ;;  %v3803_v35 = vmul.f32 0.2, %v3787_v42  ;;  %v4528_v50 = vmax.f32 %v4496_v28, %v4512_v54  ;;  %v3433_v28 = vadd.f32 %v10960_v56, %v10699_v24 }
 0x7a9   :  { %v4269_v13 = vsub.f32 %v4173_v19, %v4192_v16  ;;  %v4426_v19 = vmax.f32 %v4394_v37, %v4410_v25  ;;  %v3712_v16 = vmax.f32 %v3680_v14, %v3696_v32  ;;  %v4405_v25 = vmul.f32 0.2, %v4389_v7 }
 0x7aa   :  { %v8220_v33 = vpop.eup %8219  ;;  %v3819_v37 = vmax.f32 %v3787_v42, %v3803_v35  ;;  %v3449_v24 = vmul.f32 0.2, %v3433_v28 }
 0x7ab   :  { %v3607_v15 = vmul.f32 %v8220_v33, %v12402_v41  ;;  %v4285_v44 = vmul.f32 1.442695, %v4269_v13  ;;  %v8222_v38 = vpop.eup %8221  ;;  %v4624_v13 = vsub.f32 %v4528_v50, %v4547_v9 }
 0x7ac   :  { %v4318_v49 = vmul.f32 %v8222_v38, %v12401_v8 }
 0x7ad   :  { %v3623_v63 = vpack.c.bf16 %v3607_v15, %v3607_v15  ;;  %8223 = vpow2.f32 %v4285_v44  ;;  %v4640_v38 = vmul.f32 1.442695, %v4624_v13 }
 0x7ae   :  { %8225 = vpow2.f32 %v3930_v20  ;;  %v4334_v44 = vpack.c.bf16 %v4318_v49, %v4318_v49  ;;  %v4057_v20 = vmul.f32 0.2, %v4041_v22  ;;  %v3311_v49 = vadd.f32 %v10818_v51, %v10630_v12 }
 0x7af   :  { %v4753_v21 = vunpack.c.l.b16 %v3623_v63  ;;  %8019 = vset.pattern.permute.xlu0 %v12355_v61  ;;  %v4513_v63 = vmul.f32 0.2, %v4497_v11  ;;  %v3492_v9 = vpop.permute.xlu2 %3491 }
 0x7b0   :  { %8001 = vset.pattern.permute.xlu2 %v12354_v46  ;;  %7983 = vset.pattern.permute.xlu1 %v12353_v48  ;;  %v4850_v50 = vunpack.c.l.b16 %v4334_v44  ;;  %v4073_v39 = vmax.f32 %v4041_v22, %v4057_v20  ;;  %v4144_v22 = vadd.f32 %v10978_v23, %v10809_v53  ;;  %v3327_v20 = vmul.f32 0.2, %v3311_v49 }
 0x7b1   :  { %4601 = vperm.xlu2 %8001, %v4426_v19   ;;  %3871 = vperm.xlu1 %7983, %v3712_v16   ;;  %v11037_v14 = vpack.c.b16 %v4754_v27, %v4753_v21  ;;  %v4421_v21 = vmax.f32 %v4389_v7, %v4405_v25  ;;  %v3465_v19 = vmax.f32 %v3433_v28, %v3449_v24 }
 0x7b2   :  { %v3842_v33 = vpop.permute.xlu1 %3841  ;;  %v4396_v16 = vadd.f32 %v10842_v58, %v10666_v10  ;;  %v4529_v13 = vmax.f32 %v4497_v11, %v4513_v63 }
 0x7b3   :  { %v8224_v54 = vpop.eup %8223  ;;  %v3915_v15 = vsub.f32 %v3819_v37, %v3842_v33  ;;  %5129 = vmatmul.bf16.vlgmr.msrb.gmra.mxu3 %v11037_v14  ;;  %v3561_v28 = vsub.f32 %v3465_v19, %v3492_v9 }
 0x7b4   :  { %v4317_v1 = vmul.f32 %v8224_v54, %v12402_v41  ;;  %v8226_v35 = vpop.eup %8225 }
 0x7b5   :  { %v3932_v32 = vmul.f32 1.442695, %v3915_v15  ;;  %v3962_v37 = vmul.f32 %v8226_v35, %v12402_v41  ;;  %v3434_v15 = vadd.f32 %v10960_v56, %v10801_v3  ;;  %v4043_v3 = vadd.f32 %v10830_v59, %v10688_v40 }
 0x7b6   :  { %v4333_v42 = vpack.c.bf16 %v4317_v1, %v4317_v1  ;;  %v4412_v1 = vmul.f32 0.2, %v4396_v16 }
 0x7b7   :  { %8227 = vpow2.f32 %v3932_v32  ;;  %v3978_v25 = vpack.c.bf16 %v3962_v37, %v3962_v37  ;;  %v4160_v32 = vmul.f32 0.2, %v4144_v22  ;;  %v3450_v53 = vmul.f32 0.2, %v3434_v15  ;;  %v4207_v35 = vpop.permute.xlu2 %4206 }
 0x7b8   :  { %v4849_v27 = vunpack.c.l.b16 %v4333_v42  ;;  %8229 = vpow2.f32 %v4640_v38  ;;  %v3579_v42 = vmul.f32 1.442695, %v3561_v28  ;;  %v4428_v9 = vmax.f32 %v4396_v16, %v4412_v1 }
 0x7b9   :  { %8005 = vset.pattern.permute.xlu2 %v12352_v5  ;;  %7984 = vset.pattern.permute.xlu1 %v12354_v46  ;;  %v4176_v37 = vmax.f32 %v4144_v22, %v4160_v32  ;;  %v3788_v16 = vadd.f32 %v10996_v6, %v10712_v36 }
 0x7ba   :  { %4256 = vperm.xlu2 %8005, %v4073_v39   ;;  %4576 = vperm.xlu1 %7984, %v4421_v21   ;;  %v11050_v33 = vpack.c.b16 %v4850_v50, %v4849_v27  ;;  %v3343_v50 = vmax.f32 %v3311_v49, %v3327_v20  ;;  %v4801_v27 = vunpack.c.l.b16 %v3978_v25  ;;  %v4036_v21 = vadd.f32 %v10830_v59, %v10621_v17 }
 0x7bb   :  { %v4552_v7 = vpop.permute.xlu1 %4551  ;;  %v3466_v49 = vmax.f32 %v3434_v15, %v3450_v53  ;;  %v4059_v20 = vmul.f32 0.2, %v4043_v3 }
 0x7bc   :  { %v4625_v54 = vsub.f32 %v4529_v13, %v4552_v7  ;;  %5227 = vmatmul.bf16.vlgmr.msrb.gmra.mxu2 %v11050_v33  ;;  %v4272_v7 = vsub.f32 %v4176_v37, %v4207_v35  ;;  %v4052_v22 = vmul.f32 0.2, %v4036_v21 }
 0x7bd   :  { %v8228_v44 = vpop.eup %8227 }
 0x7be   :  { %v3963_v24 = vmul.f32 %v8228_v44, %v12401_v8  ;;  %v4642_v11 = vmul.f32 1.442695, %v4625_v54  ;;  %v8230_v38 = vpop.eup %8229  ;;  %v4143_v54 = vadd.f32 %v10978_v23, %v10706_v2  ;;  %v4291_v36 = vmul.f32 1.442695, %v4272_v7 }
 0x7bf   :  { %v4672_v19 = vmul.f32 %v8230_v38, %v12402_v41  ;;  %v4068_v53 = vmax.f32 %v4036_v21, %v4052_v22  ;;  %v4397_v2 = vadd.f32 %v10842_v58, %v10677_v31  ;;  %v12403_v21 = vld [vmem:[#allocation49_spill] sm:$0xff] }
 0x7c0   :  { %v3979_v63 = vpack.c.bf16 %v3963_v24, %v3963_v24  ;;  %8231 = vpow2.f32 %v4642_v11  ;;  %v3804_v11 = vmul.f32 0.2, %v3788_v16  ;;  %v4159_v38 = vmul.f32 0.2, %v4143_v54 }
 0x7c1   :  { %8233 = vpow2.f32 %v3579_v42  ;;  %v4688_v25 = vpack.c.bf16 %v4672_v19, %v4672_v19 }
 0x7c2   :  { %v4802_v39 = vunpack.c.l.b16 %v3979_v63  ;;  %8009 = vset.pattern.permute.xlu2 %v12354_v46  ;;  %7987 = vset.pattern.permute.xlu1 %v12355_v61  ;;  %v4075_v63 = vmax.f32 %v4043_v3, %v4059_v20  ;;  %v4175_v19 = vmax.f32 %v4143_v54, %v4159_v38  ;;  %v12404_v54 = vld [vmem:[#allocation48_spill] sm:$0xff] }
 0x7c3   :  { %4611 = vperm.xlu2 %8009, %v4428_v9   ;;  %3526 = vperm.xlu1 %7987, %v3343_v50   ;;  %v4897_v35 = vunpack.c.l.b16 %v4688_v25  ;;  %v3847_v9 = vpop.permute.xlu2 %3846 }
 0x7c4   :  { %v11067_v13 = vpack.c.b16 %v4802_v39, %v4801_v27  ;;  %v3682_v27 = vadd.f32 %v10820_v0, %v10630_v12  ;;  %v3820_v39 = vmax.f32 %v3788_v16, %v3804_v11 }
 0x7c5   :  { %v3497_v28 = vpop.permute.xlu1 %3496 }
 0x7c6   :  { %v8232_v44 = vpop.eup %8231  ;;  %v3562_v1 = vsub.f32 %v3466_v49, %v3497_v28  ;;  %5178 = vmatmul.bf16.vlgmr.msra.gmra.mxu1 %v11067_v13  ;;  %v4499_v49 = vadd.f32 %v11012_v55, %v10816_v47  ;;  %v4413_v28 = vmul.f32 0.2, %v4397_v2  ;;  %v3698_v12 = vmul.f32 0.2, %v3682_v27 }
 0x7c7   :  { %v4673_v24 = vmul.f32 %v8232_v44, %v12401_v8  ;;  %v8234_v42 = vpop.eup %8233  ;;  %v3789_v44 = vadd.f32 %v10996_v6, %v10722_v34  ;;  %v4391_v34 = vadd.f32 %v10842_v58, %v10621_v17  ;;  %v4498_v17 = vadd.f32 %v11012_v55, %v10714_v45 }
 0x7c8   :  { %v3581_v32 = vmul.f32 1.442695, %v3562_v1  ;;  %v3609_v37 = vmul.f32 %v8234_v42, %v12403_v21  ;;  %v3916_v1 = vsub.f32 %v3820_v39, %v3847_v9  ;;  %v4515_v11 = vmul.f32 0.2, %v4499_v49 }
 0x7c9   :  { %v4689_v15 = vpack.c.bf16 %v4673_v24, %v4673_v24  ;;  %v3714_v38 = vmax.f32 %v3682_v27, %v3698_v12  ;;  %v3313_v45 = vadd.f32 %v10818_v51, %v10646_v52 }
 0x7ca   :  { %8235 = vpow2.f32 %v3581_v32  ;;  %v3625_v24 = vpack.c.bf16 %v3609_v37, %v3609_v37  ;;  %v4429_v32 = vmax.f32 %v4397_v2, %v4413_v28  ;;  %v3934_v47 = vmul.f32 1.442695, %v3916_v1 }
 0x7cb   :  { %v4898_v50 = vunpack.c.l.b16 %v4689_v15  ;;  %8013 = vset.pattern.permute.xlu2 %v12352_v5  ;;  %7988 = vset.pattern.permute.xlu1 %v12352_v5  ;;  %8237 = vpow2.f32 %v4291_v36  ;;  %v3805_v36 = vmul.f32 0.2, %v3789_v44  ;;  %v4531_v9 = vmax.f32 %v4499_v49, %v4515_v11 }
 0x7cc   :  { %4266 = vperm.xlu2 %8013, %v4075_v63   ;;  %4231 = vperm.xlu1 %7988, %v4068_v53   ;;  %v4562_v63 = vpop.permute.xlu2 %4561  ;;  %v4755_v53 = vunpack.c.l.b16 %v3625_v24 }
 0x7cd   :  { %v11079_v3 = vpack.c.b16 %v4898_v50, %v4897_v35  ;;  %v3435_v50 = vadd.f32 %v10960_v56, %v10720_v60  ;;  %v3821_v27 = vmax.f32 %v3789_v44, %v3805_v36  ;;  %v4514_v44 = vmul.f32 0.2, %v4498_v17 }
 0x7ce   :  { %v4202_v7 = vpop.permute.xlu1 %4201 }
 0x7cf   :  { %v4271_v20 = vsub.f32 %v4175_v19, %v4202_v7  ;;  %5276 = vmatmul.bf16.vlgmr.msra.gmra.mxu0 %v11079_v3  ;;  %v4627_v19 = vsub.f32 %v4531_v9, %v4562_v63  ;;  %v4407_v7 = vmul.f32 0.2, %v4391_v34  ;;  %v3451_v12 = vmul.f32 0.2, %v3435_v50 }
 0x7d0   :  { %v8236_v16 = vpop.eup %8235 }
 0x7d1   :  { %v4289_v22 = vmul.f32 1.442695, %v4271_v20  ;;  %v3610_v25 = vmul.f32 %v8236_v16, %v12404_v54  ;;  %v8238_v15 = vpop.eup %8237  ;;  %v4646_v60 = vmul.f32 1.442695, %v4627_v19  ;;  %v3467_v36 = vmax.f32 %v3435_v50, %v3451_v12 }
 0x7d2   :  { %v4320_v2 = vmul.f32 %v8238_v15, %v12404_v54  ;;  %v3502_v15 = vpop.permute.xlu0 %3501 }
 0x7d3   :  { %8239 = vpow2.f32 %v4289_v22  ;;  %v3626_v42 = vpack.c.bf16 %v3610_v25, %v3610_v25  ;;  %v4423_v22 = vmax.f32 %v4391_v34, %v4407_v7  ;;  %v4146_v34 = vadd.f32 %v10978_v23, %v10740_v26 }
 0x7d4   :  { %8016 = vset.pattern.permute.xlu2 %v12354_v46  ;;  %7991 = vset.pattern.permute.xlu1 %v12353_v48  ;;  %8241 = vpow2.f32 %v3934_v47  ;;  %v4336_v20 = vpack.c.bf16 %v4320_v2, %v4320_v2  ;;  %v4530_v47 = vmax.f32 %v4498_v17, %v4514_v44  ;;  %v3563_v9 = vsub.f32 %v3467_v36, %v3502_v15 }
 0x7d5   :  { %4616 = vperm.xlu2 %8016, %v4429_v32   ;;  %3881 = vperm.xlu1 %7991, %v3714_v38   ;;  %v4756_v35 = vunpack.c.l.b16 %v3626_v42  ;;  %v4162_v7 = vmul.f32 0.2, %v4146_v34 }
 0x7d6   :  { %v4852_v32 = vunpack.c.l.b16 %v4336_v20  ;;  %v4217_v20 = vpop.permute.xlu2 %4216 }
 0x7d7   :  { %v11095_v39 = vpack.c.b16 %v4756_v35, %v4755_v53  ;;  %v3329_v53 = vmul.f32 0.2, %v3313_v45  ;;  %v3436_v35 = vadd.f32 %v10960_v56, %v10729_v57  ;;  %v4038_v57 = vadd.f32 %v10830_v59, %v10638_v4 }
 0x7d8   :  { %v3852_v37 = vpop.permute.xlu1 %3851  ;;  %v4178_v44 = vmax.f32 %v4146_v34, %v4162_v7 }
 0x7d9   :  { %v8240_v28 = vpop.eup %8239  ;;  %v3917_v1 = vsub.f32 %v3821_v27, %v3852_v37  ;;  %5134 = vmatmul.bf16.gmra.mxu3 %v11095_v39  ;;  %v3345_v17 = vmax.f32 %v3313_v45, %v3329_v53 }
 0x7da   :  { %v4319_v49 = vmul.f32 %v8240_v28, %v12403_v21  ;;  %v8242_v24 = vpop.eup %8241  ;;  %v3452_v28 = vmul.f32 0.2, %v3436_v35  ;;  %v3857_v7 = vpop.permute.xlu0 %3856 }
 0x7db   :  { %v3936_v16 = vmul.f32 1.442695, %v3917_v1  ;;  %v3964_v42 = vmul.f32 %v8242_v24, %v12403_v21 }
 0x7dc   :  { %v4335_v25 = vpack.c.bf16 %v4319_v49, %v4319_v49  ;;  %v3583_v49 = vmul.f32 1.442695, %v3563_v9  ;;  %v3468_v24 = vmax.f32 %v3436_v35, %v3452_v28 }
 0x7dd   :  { %8243 = vpow2.f32 %v3936_v16  ;;  %7992 = vset.pattern.permute.xlu1 %v12354_v46  ;;  %8018 = vset.pattern.permute.xlu2 %v12355_v61  ;;  %v3980_v37 = vpack.c.bf16 %v3964_v42, %v3964_v42 }
 0x7de   :  { %4586 = vperm.xlu1 %7992, %v4423_v22   ;;  %v4851_v11 = vunpack.c.l.b16 %v4335_v25  ;;  %8245 = vpow2.f32 %v4646_v60  ;;  %v4145_v60 = vadd.f32 %v10978_v23, %v10832_v30  ;;  %v3790_v22 = vadd.f32 %v10996_v6, %v10733_v62 }
 0x7df   :  { %v4803_v12 = vunpack.c.l.b16 %v3980_v37 }
 0x7e0   :  { %v11105_v38 = vpack.c.b16 %v4852_v32, %v4851_v11  ;;  %v4054_v11 = vmul.f32 0.2, %v4038_v57  ;;  %v4274_v32 = vsub.f32 %v4178_v44, %v4217_v20  ;;  %v3806_v53 = vmul.f32 0.2, %v3790_v22 }
 0x7e1   :  { %v4557_v63 = vpop.permute.xlu1 %4556 }
 0x7e2   :  { %v4626_v2 = vsub.f32 %v4530_v47, %v4557_v63  ;;  %5232 = vmatmul.bf16.gmra.mxu2 %v11105_v38  ;;  %v4161_v63 = vmul.f32 0.2, %v4145_v60  ;;  %v4070_v34 = vmax.f32 %v4038_v57, %v4054_v11  ;;  %v4295_v9 = vmul.f32 1.442695, %v4274_v32 }
 0x7e3   :  { %v8244_v50 = vpop.eup %8243  ;;  %v3822_v37 = vmax.f32 %v3790_v22, %v3806_v53  ;;  %v4501_v57 = vadd.f32 %v11012_v55, %v10747_v18  ;;  %v4393_v18 = vadd.f32 %v10842_v58, %v10638_v4  ;;  %v4500_v4 = vadd.f32 %v11012_v55, %v10844_v43 }
 0x7e4   :  { %v4644_v27 = vmul.f32 1.442695, %v4626_v2  ;;  %v3965_v19 = vmul.f32 %v8244_v50, %v12404_v54  ;;  %v8246_v1 = vpop.eup %8245  ;;  %v3684_v2 = vadd.f32 %v10820_v0, %v10646_v52 }
 0x7e5   :  { %v4675_v25 = vmul.f32 %v8246_v1, %v12404_v54  ;;  %v4517_v32 = vmul.f32 0.2, %v4501_v57 }
 0x7e6   :  { %8247 = vpow2.f32 %v4644_v27  ;;  %7995 = vset.pattern.permute.xlu1 %v12355_v61  ;;  %v3981_v26 = vpack.c.bf16 %v3965_v19, %v3965_v19  ;;  %v3700_v1 = vmul.f32 0.2, %v3684_v2 }
 0x7e7   :  { %3536 = vperm.xlu1 %7995, %v3345_v17   ;;  %8249 = vpow2.f32 %v3583_v49  ;;  %v4691_v30 = vpack.c.bf16 %v4675_v25, %v4675_v25  ;;  %v4177_v17 = vmax.f32 %v4145_v60, %v4161_v63  ;;  %v12405_v49 = vld [vmem:[#allocation18_spill] sm:$0xff]  ;;  %v12406_v25 = vld [vmem:[#allocation11_spill] sm:$0xff]  ;;  %v4533_v53 = vmax.f32 %v4501_v57, %v4517_v32 }
 0x7e8   :  { %v4804_v16 = vunpack.c.l.b16 %v3981_v26  ;;  %v3716_v60 = vmax.f32 %v3684_v2, %v3700_v1 }
 0x7e9   :  { %v4900_v19 = vunpack.c.l.b16 %v4691_v30  ;;  %v4572_v30 = vpop.permute.xlu2 %4571 }
 0x7ea   :  { %v11122_v45 = vpack.c.b16 %v4804_v16, %v4803_v12  ;;  %v3918_v12 = vsub.f32 %v3822_v37, %v3857_v7  ;;  %v3791_v16 = vadd.f32 %v10996_v6, %v10737_v29 }
 0x7eb   :  { %v3507_v36 = vpop.permute.xlu1 %3506 }
 0x7ec   :  { %v8248_v15 = vpop.eup %8247  ;;  %v3564_v47 = vsub.f32 %v3468_v24, %v3507_v36  ;;  %5183 = vmatmul.bf16.gmra.mxu1 %v11122_v45 }
 0x7ed   :  { %v4674_v42 = vmul.f32 %v8248_v15, %v12403_v21  ;;  %v8250_v50 = vpop.eup %8249  ;;  %v3938_v15 = vmul.f32 1.442695, %v3918_v12  ;;  %v3315_v12 = vadd.f32 %v10818_v51, %v10666_v10 }
 0x7ee   :  { %v3585_v62 = vmul.f32 1.442695, %v3564_v47  ;;  %v3611_v26 = vmul.f32 %v8250_v50, %v12405_v49  ;;  %v3807_v47 = vmul.f32 0.2, %v3791_v16 }
 0x7ef   :  { %7996 = vset.pattern.permute.xlu1 %v12352_v5  ;;  %v4690_v35 = vpack.c.bf16 %v4674_v42, %v4674_v42  ;;  %v3331_v32 = vmul.f32 0.2, %v3315_v12 }
 0x7f0   :  { %8251 = vpow2.f32 %v3585_v62  ;;  %4241 = vperm.xlu1 %7996, %v4070_v34   ;;  %v3627_v11 = vpack.c.bf16 %v3611_v26, %v3611_v26  ;;  %v4409_v62 = vmul.f32 0.2, %v4393_v18  ;;  %v3823_v2 = vmax.f32 %v3791_v16, %v3807_v47  ;;  %v12408_v47 = vld [vmem:[#allocation28_spill] sm:$0xff] }
 0x7f1   :  { %v4899_v27 = vunpack.c.l.b16 %v4690_v35  ;;  %8253 = vpow2.f32 %v4295_v9  ;;  %v12407_v9 = vld [vmem:[#allocation33_spill] sm:$0xff] }
 0x7f2   :  { %v4757_v29 = vunpack.c.l.b16 %v3627_v11  ;;  %v3437_v35 = vadd.f32 %v10960_v56, %v12407_v9  ;;  %v3512_v11 = vpop.permute.xlu0 %3511  ;;  %v3347_v9 = vmax.f32 %v3315_v12, %v3331_v32 }
 0x7f3   :  { %v11129_v28 = vpack.c.b16 %v4900_v19, %v4899_v27  ;;  %v4629_v27 = vsub.f32 %v4533_v53, %v4572_v30  ;;  %v12409_v53 = vld [vmem:[#allocation24_spill] sm:$0xff] }
 0x7f4   :  { %v4212_v20 = vpop.permute.xlu1 %4211  ;;  %v3453_v57 = vmul.f32 0.2, %v3437_v35 }
 0x7f5   :  { %v4273_v52 = vsub.f32 %v4177_v17, %v4212_v20  ;;  %5281 = vmatmul.bf16.gmra.mxu0 %v11129_v28  ;;  %v4425_v17 = vmax.f32 %v4393_v18, %v4409_v62  ;;  %v4650_v16 = vmul.f32 1.442695, %v4629_v27  ;;  %v3438_v62 = vadd.f32 %v10960_v56, %v12409_v53  ;;  %v12410_v27 = vld [vmem:[#allocation31_spill] sm:$0xff] }
 0x7f6   :  { %v8252_v22 = vpop.eup %8251  ;;  %v3686_v53 = vadd.f32 %v10820_v0, %v10666_v10  ;;  %v12414_v10 = vld [vmem:[#allocation14_spill] sm:$0xff] }
 0x7f7   :  { %v4293_v44 = vmul.f32 1.442695, %v4273_v52  ;;  %v3612_v24 = vmul.f32 %v8252_v22, %v12406_v25  ;;  %v8254_v36 = vpop.eup %8253  ;;  %v4516_v52 = vmul.f32 0.2, %v4500_v4 }
 0x7f8   :  { %7999 = vset.pattern.permute.xlu1 %v12353_v48  ;;  %v4322_v34 = vmul.f32 %v8254_v36, %v12406_v25 }
 0x7f9   :  { %8255 = vpow2.f32 %v4293_v44  ;;  %3891 = vperm.xlu1 %7999, %v3716_v60   ;;  %v3628_v42 = vpack.c.bf16 %v3612_v24, %v3612_v24  ;;  %v3469_v24 = vmax.f32 %v3437_v35, %v3453_v57  ;;  %v4532_v18 = vmax.f32 %v4500_v4, %v4516_v52  ;;  %v4227_v57 = vpop.permute.xlu2 %4226 }
 0x7fa   :  { %8257 = vpow2.f32 %v3938_v15  ;;  %v4338_v26 = vpack.c.bf16 %v4322_v34, %v4322_v34 }
 0x7fb   :  { %v4758_v63 = vunpack.c.l.b16 %v3628_v42  ;;  %v4148_v42 = vadd.f32 %v10978_v23, %v12408_v47 }
 0x7fc   :  { %v4854_v60 = vunpack.c.l.b16 %v4338_v26 }
 0x7fd   :  { %v11144_v50 = vpack.c.b16 %v4758_v63, %v4757_v29  ;;  %v3565_v29 = vsub.f32 %v3469_v24, %v3512_v11  ;;  %v12412_v11 = vld [vmem:[#allocation42_spill] sm:$0xff] }
 0x7fe   :  { %v3862_v19 = vpop.permute.xlu1 %3861  ;;  %v4147_v32 = vadd.f32 %v10978_v23, %v12412_v11 }
 0x7ff   :  { %v8256_v37 = vpop.eup %8255  ;;  %v3919_v7 = vsub.f32 %v3823_v2, %v3862_v19  ;;  %5139 = vmatmul.bf16.gmra.mxu3 %v11144_v50  ;;  %v4040_v19 = vadd.f32 %v10830_v59, %v12410_v27 }
 0x800   :  { %v4321_v1 = vmul.f32 %v8256_v37, %v12405_v49  ;;  %v8258_v22 = vpop.eup %8257  ;;  %v4164_v37 = vmul.f32 0.2, %v4148_v42 }
 0x801   :  { %v3940_v20 = vmul.f32 1.442695, %v3919_v7  ;;  %8000 = vset.pattern.permute.xlu1 %v12354_v46  ;;  %v3966_v15 = vmul.f32 %v8258_v22, %v12405_v49  ;;  %v4056_v12 = vmul.f32 0.2, %v4040_v19  ;;  %v12411_v22 = vld [vmem:[#allocation15_spill] sm:$0xff] }
 0x802   :  { %4596 = vperm.xlu1 %8000, %v4425_v17   ;;  %v4337_v43 = vpack.c.bf16 %v4321_v1, %v4321_v1  ;;  %v3587_v17 = vmul.f32 1.442695, %v3565_v29  ;;  %v3454_v1 = vmul.f32 0.2, %v3438_v62 }
 0x803   :  { %8259 = vpow2.f32 %v3940_v20  ;;  %v3982_v4 = vpack.c.bf16 %v3966_v15, %v3966_v15  ;;  %v4072_v29 = vmax.f32 %v4040_v19, %v4056_v12  ;;  %v3702_v19 = vmul.f32 0.2, %v3686_v53 }
 0x804   :  { %v4853_v44 = vunpack.c.l.b16 %v4337_v43  ;;  %8261 = vpow2.f32 %v4650_v16  ;;  %v4180_v16 = vmax.f32 %v4148_v42, %v4164_v37  ;;  %v3867_v37 = vpop.permute.xlu0 %3866 }
 0x805   :  { %v4805_v20 = vunpack.c.l.b16 %v3982_v4 }
 0x806   :  { %v11153_v36 = vpack.c.b16 %v4854_v60, %v4853_v44  ;;  %v3792_v44 = vadd.f32 %v10996_v6, %v12411_v22  ;;  %v3470_v60 = vmax.f32 %v3438_v62, %v3454_v1  ;;  %v12413_v1 = vld [vmem:[#allocation37_spill] sm:$0xff] }
 0x807   :  { %v4567_v30 = vpop.permute.xlu1 %4566 }
 0x808   :  { %v4628_v63 = vsub.f32 %v4532_v18, %v4567_v30  ;;  %5237 = vmatmul.bf16.gmra.mxu2 %v11153_v36  ;;  %v4276_v18 = vsub.f32 %v4180_v16, %v4227_v57  ;;  %v3808_v62 = vmul.f32 0.2, %v3792_v44  ;;  %v12415_v16 = vld [vmem:[#allocation7_spill] sm:$0xff] }
 0x809   :  { %v8260_v34 = vpop.eup %8259 }
 0x80a   :  { %v4648_v35 = vmul.f32 1.442695, %v4628_v63  ;;  %8003 = vset.pattern.permute.xlu1 %v12355_v61  ;;  %v3967_v2 = vmul.f32 %v8260_v34, %v12406_v25  ;;  %v8262_v7 = vpop.eup %8261  ;;  %v3824_v57 = vmax.f32 %v3792_v44, %v3808_v62  ;;  %v4395_v44 = vadd.f32 %v10842_v58, %v12410_v27 }
 0x80b   :  { %3546 = vperm.xlu1 %8003, %v3347_v9   ;;  %v4677_v43 = vmul.f32 %v8262_v7, %v12406_v25  ;;  %v4163_v9 = vmul.f32 0.2, %v4147_v32 }
 0x80c   :  { %8263 = vpow2.f32 %v4648_v35  ;;  %v3983_v26 = vpack.c.bf16 %v3967_v2, %v3967_v2  ;;  %v4299_v35 = vmul.f32 1.442695, %v4276_v18  ;;  %v3920_v22 = vsub.f32 %v3824_v57, %v3867_v37 }
 0x80d   :  { %8265 = vpow2.f32 %v3587_v17  ;;  %v4693_v63 = vpack.c.bf16 %v4677_v43, %v4677_v43  ;;  %v3793_v43 = vadd.f32 %v10996_v6, %v12415_v16  ;;  %v3718_v18 = vmax.f32 %v3686_v53, %v3702_v19  ;;  %v12418_v19 = vld [vmem:[#allocation23_spill] sm:$0xff] }
 0x80e   :  { %v4806_v52 = vunpack.c.l.b16 %v3983_v26  ;;  %v4503_v26 = vadd.f32 %v11012_v55, %v12413_v1  ;;  %v3942_v62 = vmul.f32 1.442695, %v3920_v22  ;;  %v4502_v1 = vadd.f32 %v11012_v55, %v12418_v19 }
 0x80f   :  { %v4902_v17 = vunpack.c.l.b16 %v4693_v63  ;;  %v3809_v63 = vmul.f32 0.2, %v3793_v43 }
 0x810   :  { %v11168_v24 = vpack.c.b16 %v4806_v52, %v4805_v20  ;;  %v4179_v20 = vmax.f32 %v4147_v32, %v4163_v9  ;;  %v4519_v32 = vmul.f32 0.2, %v4503_v26 }
 0x811   :  { %v3517_v15 = vpop.permute.xlu1 %3516  ;;  %v3825_v58 = vmax.f32 %v3793_v43, %v3809_v63 }
 0x812   :  { %v8264_v47 = vpop.eup %8263  ;;  %v3566_v30 = vsub.f32 %v3470_v60, %v3517_v15  ;;  %5188 = vmatmul.bf16.gmra.mxu1 %v11168_v24  ;;  %v4535_v53 = vmax.f32 %v4503_v26, %v4519_v32  ;;  %v3317_v26 = vadd.f32 %v10818_v51, %v10688_v40  ;;  %v4518_v32 = vmul.f32 0.2, %v4502_v1 }
 0x813   :  { %8004 = vset.pattern.permute.xlu1 %v12352_v5  ;;  %v4676_v42 = vmul.f32 %v8264_v47, %v12405_v49  ;;  %v8266_v4 = vpop.eup %8265  ;;  %v12452_v49 = vld [vmem:[#allocation50_spill] sm:$0xff] }
 0x814   :  { %v3589_v34 = vmul.f32 1.442695, %v3566_v30  ;;  %4251 = vperm.xlu1 %8004, %v4072_v29   ;;  %v3613_v12 = vmul.f32 %v8266_v4, %v12414_v10  ;;  %v12416_v30 = vld [vmem:[#allocation4_spill] sm:$0xff]  ;;  %v3333_v63 = vmul.f32 0.2, %v3317_v26  ;;  %v4534_v51 = vmax.f32 %v4502_v1, %v4518_v32 }
 0x815   :  { %v4692_v2 = vpack.c.bf16 %v4676_v42, %v4676_v42 }
 0x816   :  { %8267 = vpow2.f32 %v3589_v34  ;;  %v3629_v42 = vpack.c.bf16 %v3613_v12, %v3613_v12  ;;  %v3349_v19 = vmax.f32 %v3317_v26, %v3333_v63  ;;  %v12422_v63 = vld [vmem:[#allocation29_spill] sm:$0xff] }
 0x817   :  { %v4901_v7 = vunpack.c.l.b16 %v4692_v2  ;;  %8269 = vpow2.f32 %v4299_v35  ;;  %v4582_v35 = vpop.permute.xlu2 %4581  ;;  %v4411_v2 = vmul.f32 0.2, %v4395_v44 }
 0x818   :  { %v4759_v4 = vunpack.c.l.b16 %v3629_v42  ;;  %v4631_v57 = vsub.f32 %v4535_v53, %v4582_v35  ;;  %v12420_v53 = vld [vmem:[#allocation35_spill] sm:$0xff] }
 0x819   :  { %v11179_v52 = vpack.c.b16 %v4902_v17, %v4901_v7  ;;  %v12417_v7 = vld [vmem:[#allocation34_spill] sm:$0xff]  ;;  %v4427_v22 = vmax.f32 %v4395_v44, %v4411_v2  ;;  %v3522_v44 = vpop.permute.xlu0 %3521 }
 0x81a   :  { %v4222_v60 = vpop.permute.xlu1 %4221  ;;  %v3439_v17 = vadd.f32 %v10960_v56, %v12417_v7 }
 0x81b   :  { %v4275_v11 = vsub.f32 %v4179_v20, %v4222_v60  ;;  %5286 = vmatmul.bf16.gmra.mxu0 %v11179_v52 }
 0x81c   :  { %v8268_v15 = vpop.eup %8267  ;;  %8007 = vset.pattern.permute.xlu1 %v12353_v48  ;;  %v3455_v43 = vmul.f32 0.2, %v3439_v17 }
 0x81d   :  { %v4297_v47 = vmul.f32 1.442695, %v4275_v11  ;;  %3901 = vperm.xlu1 %8007, %v3718_v18   ;;  %v3614_v29 = vmul.f32 %v8268_v15, %v12416_v30  ;;  %v8270_v34 = vpop.eup %8269 }
 0x81e   :  { %v4324_v27 = vmul.f32 %v8270_v34, %v12416_v30 }
 0x81f   :  { %8271 = vpow2.f32 %v4297_v47  ;;  %v3630_v9 = vpack.c.bf16 %v3614_v29, %v3614_v29  ;;  %v4654_v47 = vmul.f32 1.442695, %v4631_v57  ;;  %v4237_v26 = vpop.permute.xlu2 %4236 }
 0x820   :  { %8273 = vpow2.f32 %v3942_v62  ;;  %v4340_v15 = vpack.c.bf16 %v4324_v27, %v4324_v27  ;;  %v3471_v62 = vmax.f32 %v3439_v17, %v3455_v43  ;;  %v4042_v17 = vadd.f32 %v10830_v59, %v10677_v31 }
 0x821   :  { %v4760_v37 = vunpack.c.l.b16 %v3630_v9  ;;  %v12419_v9 = vld [vmem:[#allocation12_spill] sm:$0xff] }
 0x822   :  { %v4856_v34 = vunpack.c.l.b16 %v4340_v15  ;;  %v4150_v35 = vadd.f32 %v10978_v23, %v12419_v9  ;;  %v4058_v15 = vmul.f32 0.2, %v4042_v17 }
 0x823   :  { %v3872_v20 = vpop.permute.xlu1 %3871  ;;  %v11194_v12 = vpack.c.b16 %v4760_v37, %v4759_v4  ;;  %v3440_v4 = vadd.f32 %v10960_v56, %v12420_v53  ;;  %v3567_v37 = vsub.f32 %v3471_v62, %v3522_v44  ;;  %v4149_v62 = vadd.f32 %v10978_v23, %v12422_v63 }
 0x824   :  { %v3921_v16 = vsub.f32 %v3825_v58, %v3872_v20  ;;  %v4166_v1 = vmul.f32 0.2, %v4150_v35 }
 0x825   :  { %v8272_v60 = vpop.eup %8271  ;;  %8008 = vset.pattern.permute.xlu1 %v12354_v46  ;;  %5144 = vmatmul.bf16.gmra.mxu3 %v11194_v12  ;;  %v3591_v43 = vmul.f32 1.442695, %v3567_v37 }
 0x826   :  { %v3944_v11 = vmul.f32 1.442695, %v3921_v16  ;;  %4606 = vperm.xlu1 %8008, %v4427_v22   ;;  %v4323_v18 = vmul.f32 %v8272_v60, %v12414_v10  ;;  %v8274_v29 = vpop.eup %8273  ;;  %v3456_v60 = vmul.f32 0.2, %v3440_v4  ;;  %v4182_v32 = vmax.f32 %v4150_v35, %v4166_v1 }
 0x827   :  { %v3968_v2 = vmul.f32 %v8274_v29, %v12414_v10  ;;  %v3688_v35 = vadd.f32 %v10820_v0, %v10688_v40  ;;  %v12424_v0 = vld [vmem:[#allocation19_spill] sm:$0xff] }
 0x828   :  { %8275 = vpow2.f32 %v3944_v11  ;;  %v4339_v42 = vpack.c.bf16 %v4323_v18, %v4323_v18  ;;  %v3472_v31 = vmax.f32 %v3440_v4, %v3456_v60 }
 0x829   :  { %8277 = vpow2.f32 %v4654_v47  ;;  %v3984_v22 = vpack.c.bf16 %v3968_v2, %v3968_v2  ;;  %v4074_v2 = vmax.f32 %v4042_v17, %v4058_v15  ;;  %v3877_v17 = vpop.permute.xlu0 %3876 }
 0x82a   :  { %v4855_v46 = vunpack.c.l.b16 %v4339_v42  ;;  %v12421_v42 = vld [vmem:[#allocation39_spill] sm:$0xff] }
 0x82b   :  { %v4807_v47 = vunpack.c.l.b16 %v3984_v22  ;;  %v3794_v44 = vadd.f32 %v10996_v6, %v12421_v42 }
 0x82c   :  { %v4577_v7 = vpop.permute.xlu1 %4576  ;;  %v11206_v58 = vpack.c.b16 %v4856_v34, %v4855_v46  ;;  %v4278_v46 = vsub.f32 %v4182_v32, %v4237_v26  ;;  %v12425_v26 = vld [vmem:[#allocation30_spill] sm:$0xff] }
 0x82d   :  { %v4630_v27 = vsub.f32 %v4534_v51, %v4577_v7  ;;  %v3810_v4 = vmul.f32 0.2, %v3794_v44  ;;  %v3795_v15 = vadd.f32 %v10996_v6, %v12425_v26 }
 0x82e   :  { %v8276_v57 = vpop.eup %8275  ;;  %8011 = vset.pattern.permute.xlu1 %v12355_v61  ;;  %5242 = vmatmul.bf16.gmra.mxu2 %v11206_v58 }
 0x82f   :  { %v4652_v20 = vmul.f32 1.442695, %v4630_v27  ;;  %3556 = vperm.xlu1 %8011, %v3349_v19   ;;  %v3969_v16 = vmul.f32 %v8276_v57, %v12416_v30  ;;  %v8278_v11 = vpop.eup %8277  ;;  %v4165_v19 = vmul.f32 0.2, %v4149_v62  ;;  %v4303_v57 = vmul.f32 1.442695, %v4278_v46 }
 0x830   :  { %v4679_v59 = vmul.f32 %v8278_v11, %v12416_v30  ;;  %v3826_v22 = vmax.f32 %v3794_v44, %v3810_v4 }
 0x831   :  { %8279 = vpow2.f32 %v4652_v20  ;;  %v3985_v18 = vpack.c.bf16 %v3969_v16, %v3969_v16  ;;  %v3704_v16 = vmul.f32 0.2, %v3688_v35  ;;  %v4181_v40 = vmax.f32 %v4149_v62, %v4165_v19  ;;  %v12426_v62 = vld [vmem:[#allocation16_spill] sm:$0xff]  ;;  %v12427_v19 = vld [vmem:[#allocation45_spill] sm:$0xff] }
 0x832   :  { %8281 = vpow2.f32 %v3591_v43  ;;  %v4695_v27 = vpack.c.bf16 %v4679_v59, %v4679_v59  ;;  %v12423_v43 = vld [vmem:[#allocation36_spill] sm:$0xff]  ;;  %v3922_v32 = vsub.f32 %v3826_v22, %v3877_v17 }
 0x833   :  { %v4808_v29 = vunpack.c.l.b16 %v3985_v18  ;;  %v4505_v11 = vadd.f32 %v11012_v55, %v12423_v43 }
 0x834   :  { %v4904_v60 = vunpack.c.l.b16 %v4695_v27  ;;  %v4592_v27 = vpop.permute.xlu2 %4591 }
 0x835   :  { %v3527_v34 = vpop.permute.xlu1 %3526  ;;  %v11218_v9 = vpack.c.b16 %v4808_v29, %v4807_v47  ;;  %v4521_v44 = vmul.f32 0.2, %v4505_v11 }
 0x836   :  { %v3568_v51 = vsub.f32 %v3472_v31, %v3527_v34  ;;  %v3720_v31 = vmax.f32 %v3688_v35, %v3704_v16  ;;  %v5130_v4 = vpop.f32.mrf.mxu3 }
 0x837   :  { %v8280_v53 = vpop.eup %8279  ;;  %8012 = vset.pattern.permute.xlu1 %v12352_v5  ;;  %5193 = vmatmul.bf16.gmra.mxu1 %v11218_v9 }
 0x838   :  { %v3593_v37 = vmul.f32 1.442695, %v3568_v51  ;;  %4261 = vperm.xlu1 %8012, %v4074_v2   ;;  %v4678_v7 = vmul.f32 %v8280_v53, %v12414_v10  ;;  %v8282_v1 = vpop.eup %8281  ;;  %v3811_v51 = vmul.f32 0.2, %v3795_v15  ;;  %v3946_v2 = vmul.f32 1.442695, %v3922_v32 }
 0x839   :  { %v3615_v18 = vmul.f32 %v8282_v1, %v12424_v0 }
 0x83a   :  { %8283 = vpow2.f32 %v3593_v37  ;;  %v4694_v20 = vpack.c.bf16 %v4678_v7, %v4678_v7  ;;  %v3827_v16 = vmax.f32 %v3795_v15, %v3811_v51  ;;  %v3532_v51 = vpop.permute.xlu0 %3531 }
 0x83b   :  { %8285 = vpow2.f32 %v4303_v57  ;;  %v3631_v34 = vpack.c.bf16 %v3615_v18, %v3615_v18  ;;  %v4537_v57 = vmax.f32 %v4505_v11, %v4521_v44 }
 0x83c   :  { %v4903_v5 = vunpack.c.l.b16 %v4694_v20 }
 0x83d   :  { %v4761_v20 = vunpack.c.l.b16 %v3631_v34 }
 0x83e   :  { %v4232_v47 = vpop.permute.xlu1 %4231  ;;  %v11230_v29 = vpack.c.b16 %v4904_v60, %v4903_v5  ;;  %v12428_v60 = vld [vmem:[#allocation21_spill] sm:$0xff] }
 0x83f   :  { %v4277_v42 = vsub.f32 %v4181_v40, %v4232_v47  ;;  %v5228_v1 = vpop.f32.mrf.mxu2  ;;  %v4504_v43 = vadd.f32 %v11012_v55, %v12428_v60  ;;  %v4633_v40 = vsub.f32 %v4537_v57, %v4592_v27 }
 0x840   :  { %v8284_v59 = vpop.eup %8283  ;;  %8015 = vset.pattern.permute.xlu1 %v12353_v48  ;;  %5291 = vmatmul.bf16.gmra.mxu0 %v11230_v29  ;;  %v3441_v48 = vadd.f32 %v10960_v56, %v12427_v19  ;;  %v12430_v19 = vld [vmem:[#allocation41_spill] sm:$0xff] }
 0x841   :  { %v4301_v63 = vmul.f32 1.442695, %v4277_v42  ;;  %3911 = vperm.xlu1 %8015, %v3720_v31   ;;  %v3616_v46 = vmul.f32 %v8284_v59, %v12426_v62  ;;  %v8286_v53 = vpop.eup %8285  ;;  %v4520_v59 = vmul.f32 0.2, %v4504_v43  ;;  %v4658_v44 = vmul.f32 1.442695, %v4633_v40 }
 0x842   :  { %v4326_v5 = vmul.f32 %v8286_v53, %v12426_v62  ;;  %v3457_v11 = vmul.f32 0.2, %v3441_v48  ;;  %v3442_v57 = vadd.f32 %v10960_v56, %v12430_v19 }
 0x843   :  { %8287 = vpow2.f32 %v4301_v63  ;;  %v5179_v37 = vpop.f32.mrf.mxu1  ;;  %v3632_v7 = vpack.c.bf16 %v3616_v46, %v3616_v46  ;;  %v4536_v27 = vmax.f32 %v4504_v43, %v4520_v59  ;;  %v12431_v59 = vld [vmem:[#allocation3_spill] sm:$0xff] }
 0x844   :  { %v5180_v35 = vadd.f32 %v5179_v37, %v5130_v4  ;;  %8289 = vpow2.f32 %v3946_v2  ;;  %v4342_v31 = vpack.c.bf16 %v4326_v5, %v4326_v5  ;;  %v3473_v53 = vmax.f32 %v3441_v48, %v3457_v11  ;;  %v4247_v11 = vpop.permute.xlu2 %4246 }
 0x845   :  { %v4762_v17 = vunpack.c.l.b16 %v3632_v7  ;;  %v12429_v7 = vld [vmem:[#allocation22_spill] sm:$0xff] }
 0x846   :  { %v5229_v22 = vadd.f32 %v5228_v1, %v5180_v35  ;;  %v4858_v37 = vunpack.c.l.b16 %v4342_v31  ;;  %v3569_v1 = vsub.f32 %v3473_v53, %v3532_v51 }
 0x847   :  { %v3882_v18 = vpop.permute.xlu1 %3881  ;;  %v11240_v26 = vpack.c.b16 %v4762_v17, %v4761_v20 }
 0x848   :  { %v3923_v32 = vsub.f32 %v3827_v16, %v3882_v18  ;;  %v3458_v18 = vmul.f32 0.2, %v3442_v57  ;;  %v3595_v43 = vmul.f32 1.442695, %v3569_v1 }
 0x849   :  { %v8288_v47 = vpop.eup %8287  ;;  %5149 = vmatmul.bf16.gmra.mxu3 %v11240_v26  ;;  %8020 = vset.pattern.permute.xlu1 %v12355_v61  ;;  %v4152_v61 = vadd.f32 %v10978_v23, %v12429_v7 }
 0x84a   :  { %v3948_v42 = vmul.f32 1.442695, %v3923_v32  ;;  %v4325_v15 = vmul.f32 %v8288_v47, %v12424_v0  ;;  %v8290_v63 = vpop.eup %8289 }
 0x84b   :  { %v3970_v35 = vmul.f32 %v8290_v63, %v12424_v0  ;;  %v4168_v48 = vmul.f32 0.2, %v4152_v61  ;;  %v3474_v63 = vmax.f32 %v3442_v57, %v3458_v18  ;;  %v12433_v18 = vld [vmem:[#allocation40_spill] sm:$0xff] }
 0x84c   :  { %8291 = vpow2.f32 %v3948_v42  ;;  %v5277_v46 = vpop.f32.mrf.mxu0  ;;  %v4341_v34 = vpack.c.bf16 %v4325_v15, %v4325_v15 }
 0x84d   :  { %v11245_v2 = vadd.f32 %v5277_v46, %v5229_v22  ;;  %8293 = vpow2.f32 %v4658_v44  ;;  %v3986_v40 = vpack.c.bf16 %v3970_v35, %v3970_v35  ;;  %v4184_v42 = vmax.f32 %v4152_v61, %v4168_v48  ;;  %v3887_v48 = vpop.permute.xlu0 %3886 }
 0x84e   :  { %v4857_v4 = vunpack.c.l.b16 %v4341_v34  ;;  %v3796_v44 = vadd.f32 %v10996_v6, %v12431_v59  ;;  %v12432_v34 = vld [vmem:[#allocation20_spill] sm:$0xff] }
 0x84f   :  { %v4809_v15 = vunpack.c.l.b16 %v3986_v40  ;;  %v4151_v51 = vadd.f32 %v10978_v23, %v12432_v34  ;;  %v4280_v53 = vsub.f32 %v4184_v42, %v4247_v11  ;;  %v12434_v42 = vld [vmem:[#allocation2_spill] sm:$0xff] }
 0x850   :  { %v4587_v20 = vpop.permute.xlu1 %4586  ;;  %v11252_v17 = vpack.c.b16 %v4858_v37, %v4857_v4  ;;  %v3812_v61 = vmul.f32 0.2, %v3796_v44 }
 0x851   :  { %v4632_v16 = vsub.f32 %v4536_v27, %v4587_v20  ;;  %v4167_v20 = vmul.f32 0.2, %v4151_v51  ;;  %v4307_v57 = vmul.f32 1.442695, %v4280_v53 }
 0x852   :  { %v8292_v22 = vpop.eup %8291  ;;  %5247 = vmatmul.bf16.gmra.mxu2 %v11252_v17 }
 0x853   :  { %v4656_v5 = vmul.f32 1.442695, %v4632_v16  ;;  %v3971_v60 = vmul.f32 %v8292_v22, %v12426_v62  ;;  %v8294_v32 = vpop.eup %8293  ;;  %v4183_v11 = vmax.f32 %v4151_v51, %v4167_v20 }
 0x854   :  { %v4681_v46 = vmul.f32 %v8294_v32, %v12426_v62  ;;  %v11267_v32 = vpop.f32.mrf.mxu3 }
 0x855   :  { %8295 = vpow2.f32 %v4656_v5  ;;  %v3987_v47 = vpack.c.bf16 %v3971_v60, %v3971_v60  ;;  %v3828_v5 = vmax.f32 %v3796_v44, %v3812_v61  ;;  %v11276_v44 = vpop.f32.mrf.mxu2  ;;  %v12436_v61 = vld [vmem:[#allocation6_spill] sm:$0xff] }
 0x856   :  { %8297 = vpow2.f32 %v3595_v43  ;;  %v4697_v1 = vpack.c.bf16 %v4681_v46, %v4681_v46  ;;  %v4507_v43 = vadd.f32 %v11012_v55, %v12433_v18 }
 0x857   :  { %v4810_v31 = vunpack.c.l.b16 %v3987_v47  ;;  %v11269_v47 = vpop.f32.mrf.mxu1 }
 0x858   :  { %v4906_v40 = vunpack.c.l.b16 %v4697_v1 }
 0x859   :  { %v3537_v4 = vpop.permute.xlu1 %3536  ;;  %v11261_v37 = vpack.c.b16 %v4810_v31, %v4809_v15  ;;  %v12435_v31 = vld [vmem:[#allocation38_spill] sm:$0xff] }
 0x85a   :  { %v3570_v7 = vsub.f32 %v3474_v63, %v3537_v4  ;;  %v3797_v59 = vadd.f32 %v10996_v6, %v12435_v31  ;;  %v3924_v63 = vsub.f32 %v3828_v5, %v3887_v48  ;;  %v11282_v31 = vpop.f32.mrf.mxu0 }
 0x85b   :  { %v8296_v27 = vpop.eup %8295  ;;  %5198 = vmatmul.bf16.gmra.mxu1 %v11261_v37  ;;  %12438 = vst [vmem:[#allocation33_spill] sm:$0xff] %v11282_v31 }
 0x85c   :  { %v3597_v35 = vmul.f32 1.442695, %v3570_v7  ;;  %v4680_v19 = vmul.f32 %v8296_v27, %v12424_v0  ;;  %v8298_v16 = vpop.eup %8297  ;;  %v4523_v7 = vmul.f32 0.2, %v4507_v43  ;;  %v3950_v1 = vmul.f32 1.442695, %v3924_v63 }
 0x85d   :  { %v3617_v15 = vmul.f32 %v8298_v16, %v12434_v42  ;;  %v4602_v16 = vpop.permute.xlu2 %4601  ;;  %v12439_v63 = vld [vmem:[#allocation51_spill] sm:$0xff] }
 0x85e   :  { %8299 = vpow2.f32 %v3597_v35  ;;  %v4696_v22 = vpack.c.bf16 %v4680_v19, %v4680_v19  ;;  %v3813_v19 = vmul.f32 0.2, %v3797_v59  ;;  %v4539_v5 = vmax.f32 %v4507_v43, %v4523_v7 }
 0x85f   :  { %8301 = vpow2.f32 %v4307_v57  ;;  %v3633_v51 = vpack.c.bf16 %v3617_v15, %v3617_v15 }
 0x860   :  { %v4905_v60 = vunpack.c.l.b16 %v4696_v22  ;;  %v12437_v22 = vld [vmem:[#allocation17_spill] sm:$0xff] }
 0x861   :  { %v3443_v48 = vadd.f32 %v10960_v56, %v12437_v22  ;;  %v4763_v18 = vunpack.c.l.b16 %v3633_v51 }
 0x862   :  { %v4242_v46 = vpop.permute.xlu1 %4241  ;;  %v11274_v34 = vpack.c.b16 %v4906_v40, %v4905_v60  ;;  %v5135_v60 = vpop.f32.mrf.mxu3 }
 0x863   :  { %v4279_v53 = vsub.f32 %v4183_v11, %v4242_v46  ;;  %v3829_v46 = vmax.f32 %v3797_v59, %v3813_v19  ;;  %v3459_v51 = vmul.f32 0.2, %v3443_v48 }
 0x864   :  { %v8300_v4 = vpop.eup %8299  ;;  %5296 = vmatmul.bf16.gmra.mxu0 %v11274_v34 }
 0x865   :  { %v4305_v27 = vmul.f32 1.442695, %v4279_v53  ;;  %v3618_v35 = vmul.f32 %v8300_v4, %v12436_v61  ;;  %v8302_v20 = vpop.eup %8301  ;;  %v4506_v4 = vadd.f32 %v11012_v55, %v12439_v63 }
 0x866   :  { %v4328_v15 = vmul.f32 %v8302_v20, %v12436_v61 }
 0x867   :  { %8303 = vpow2.f32 %v4305_v27  ;;  %v3634_v57 = vpack.c.bf16 %v3618_v35, %v3618_v35  ;;  %v4635_v27 = vsub.f32 %v4539_v5, %v4602_v16  ;;  %v5233_v35 = vpop.f32.mrf.mxu2  ;;  %v3542_v16 = vpop.permute.xlu0 %3541  ;;  %v12440_v5 = vld [vmem:[#allocation26_spill] sm:$0xff] }
 0x868   :  { %8305 = vpow2.f32 %v3950_v1  ;;  %v4344_v19 = vpack.c.bf16 %v4328_v15, %v4328_v15  ;;  %v12442_v15 = vld [vmem:[#allocation32_spill] sm:$0xff] }
 0x869   :  { %v5184_v40 = vpop.f32.mrf.mxu1  ;;  %v4764_v11 = vunpack.c.l.b16 %v3634_v57  ;;  %v4522_v57 = vmul.f32 0.2, %v4506_v4  ;;  %v4662_v20 = vmul.f32 1.442695, %v4635_v27  ;;  %v3444_v27 = vadd.f32 %v10960_v56, %v12442_v15 }
 0x86a   :  { %v5185_v53 = vadd.f32 %v5184_v40, %v5135_v60 }
 0x86b   :  { %v3892_v0 = vpop.permute.xlu1 %3891  ;;  %v11287_v62 = vpack.c.b16 %v4764_v11, %v4763_v18  ;;  %v4154_v18 = vadd.f32 %v10978_v23, %v12440_v5  ;;  %v3475_v11 = vmax.f32 %v3443_v48, %v3459_v51  ;;  %v4538_v63 = vmax.f32 %v4506_v4, %v4522_v57  ;;  %v7723_v48 = vld [vmem:[%s12085_s12 + $0x38] sm:$0xff] }
 0x86c   :  { %v3925_v43 = vsub.f32 %v3829_v46, %v3892_v0  ;;  %v5234_v7 = vadd.f32 %v5233_v35, %v5185_v53  ;;  %v4860_v53 = vunpack.c.l.b16 %v4344_v19  ;;  %v7739_v51 = vld [vmem:[%s12085_s12 + $0xb8] sm:$0xff]  ;;  %5573 = vmatpush.bf16.msra.mxu3 %v7723_v48 }
 0x86d   :  { %v8304_v22 = vpop.eup %8303  ;;  %5154 = vmatmul.bf16.gmra.mxu3 %v11287_v62  ;;  %v7731_v4 = vld [vmem:[%s12085_s12 + $0x78] sm:$0xff]  ;;  %v4170_v57 = vmul.f32 0.2, %v4154_v18  ;;  %5671 = vmatpush.bf16.msra.mxu2 %v7739_v51 }
 0x86e   :  { %v3952_v1 = vmul.f32 1.442695, %v3925_v43  ;;  %v4327_v59 = vmul.f32 %v8304_v22, %v12434_v42  ;;  %v8306_v60 = vpop.eup %8305  ;;  %v3571_v22 = vsub.f32 %v3475_v11, %v3542_v16  ;;  %5622 = vmatpush.bf16.msrb.mxu1 %v7731_v4  ;;  %v3460_v16 = vmul.f32 0.2, %v3444_v27 }
 0x86f   :  { %v3972_v43 = vmul.f32 %v8306_v60, %v12434_v42 }
 0x870   :  { %8307 = vpow2.f32 %v3952_v1  ;;  %v4343_v40 = vpack.c.bf16 %v4327_v59, %v4327_v59  ;;  %v3599_v5 = vmul.f32 1.442695, %v3571_v22  ;;  %v3476_v48 = vmax.f32 %v3444_v27, %v3460_v16 }
 0x871   :  { %8309 = vpow2.f32 %v4662_v20 }
 0x872   :  { %v5282_v0 = vpop.f32.mrf.mxu0  ;;  %v4859_v46 = vunpack.c.l.b16 %v4343_v40  ;;  %v3988_v40 = vpack.c.bf16 %v3972_v43, %v3972_v43 }
 0x873   :  { %v11293_v35 = vadd.f32 %v5282_v0, %v5234_v7 }
 0x874   :  { %v4597_v1 = vpop.permute.xlu1 %4596  ;;  %v11298_v59 = vpack.c.b16 %v4860_v53, %v4859_v46  ;;  %v4257_v46 = vpop.permute.xlu2 %4256  ;;  %v4186_v53 = vmax.f32 %v4154_v18, %v4170_v57  ;;  %v4811_v15 = vunpack.c.l.b16 %v3988_v40  ;;  %v7747_v18 = vld [vmem:[%s12085_s12 + $0xf8] sm:$0xff] }
 0x875   :  { %12441 = vst [vmem:[#allocation28_spill] sm:$0xff] %v11293_v35  ;;  %v4634_v7 = vsub.f32 %v4538_v63, %v4597_v1  ;;  %v12443_v1 = vld [vmem:[#allocation25_spill] sm:$0xff]  ;;  %v3897_v57 = vpop.permute.xlu0 %3896  ;;  %5720 = vmatpush.bf16.msrb.mxu0 %v7747_v18 }
 0x876   :  { %v8308_v19 = vpop.eup %8307  ;;  %5252 = vmatmul.bf16.gmra.mxu2 %v11298_v59  ;;  %v3798_v30 = vadd.f32 %v10996_v6, %v12443_v1  ;;  %v4282_v51 = vsub.f32 %v4186_v53, %v4257_v46  ;;  %v12446_v18 = vld [vmem:[#allocation9_spill] sm:$0xff] }
 0x877   :  { %v4660_v20 = vmul.f32 1.442695, %v4634_v7  ;;  %v3973_v60 = vmul.f32 %v8308_v19, %v12436_v61  ;;  %v8310_v11 = vpop.eup %8309  ;;  %v12444_v19 = vld [vmem:[#allocation53_spill] sm:$0xff] }
 0x878   :  { %v4683_v7 = vmul.f32 %v8310_v11, %v12436_v61  ;;  %v4153_v43 = vadd.f32 %v10978_v23, %v12444_v19  ;;  %v3814_v27 = vmul.f32 0.2, %v3798_v30  ;;  %v12445_v19 = vld [vmem:[#allocation27_spill] sm:$0xff] }
 0x879   :  { %8311 = vpow2.f32 %v4660_v20  ;;  %v3989_v0 = vpack.c.bf16 %v3973_v60, %v3973_v60 }
 0x87a   :  { %8313 = vpow2.f32 %v3599_v5  ;;  %v4699_v5 = vpack.c.bf16 %v4683_v7, %v4683_v7  ;;  %v4169_v11 = vmul.f32 0.2, %v4153_v43 }
 0x87b   :  { %v4812_v63 = vunpack.c.l.b16 %v3989_v0  ;;  %v4311_v0 = vmul.f32 1.442695, %v4282_v51 }
 0x87c   :  { %v4908_v1 = vunpack.c.l.b16 %v4699_v5  ;;  %v4185_v61 = vmax.f32 %v4153_v43, %v4169_v11  ;;  %v11338_v43 = vpop.f32.mrf.mxu1 }
 0x87d   :  { %v3547_v4 = vpop.permute.xlu1 %3546  ;;  %v11316_v22 = vpack.c.b16 %v4812_v63, %v4811_v15  ;;  %v3830_v15 = vmax.f32 %v3798_v30, %v3814_v27  ;;  %v7722_v30 = vld [vmem:[%s12085_s12 + $0x30] sm:$0xff]  ;;  %12449 = vst [vmem:[#allocation31_spill] sm:$0xff] %v11338_v43  ;;  %v11340_v11 = vpop.permute.xlu0 %3551 }
 0x87e   :  { %v3572_v20 = vsub.f32 %v3476_v48, %v3547_v4  ;;  %v4509_v48 = vadd.f32 %v11012_v55, %v12445_v19  ;;  %v4612_v4 = vpop.permute.xlu2 %4611  ;;  %v7738_v27 = vld [vmem:[%s12085_s12 + $0xb0] sm:$0xff]  ;;  %5574 = vmatpush.bf16.msra.mxu3 %v7722_v30  ;;  %v3445_v30 = vadd.f32 %v10960_v56, %v12452_v49 }
 0x87f   :  { %v8312_v60 = vpop.eup %8311  ;;  %5203 = vmatmul.bf16.gmra.mxu1 %v11316_v22  ;;  %v3926_v7 = vsub.f32 %v3830_v15, %v3897_v57  ;;  %v7730_v57 = vld [vmem:[%s12085_s12 + $0x70] sm:$0xff]  ;;  %v12451_v15 = vld [vmem:[#allocation10_spill] sm:$0xff]  ;;  %5672 = vmatpush.bf16.msra.mxu2 %v7738_v27 }
 0x880   :  { %v3601_v40 = vmul.f32 1.442695, %v3572_v20  ;;  %v4682_v16 = vmul.f32 %v8312_v60, %v12434_v42  ;;  %v8314_v46 = vpop.eup %8313  ;;  %v12447_v20 = vld [vmem:[#allocation8_spill] sm:$0xff]  ;;  %v11328_v42 = vpop.f32.mrf.mxu3  ;;  %5623 = vmatpush.bf16.msrb.mxu1 %v7730_v57 }
 0x881   :  { %v3619_v10 = vmul.f32 %v8314_v46, %v12446_v18  ;;  %v3799_v60 = vadd.f32 %v10996_v6, %v12447_v20  ;;  %12448 = vst [vmem:[#allocation24_spill] sm:$0xff] %v11328_v42  ;;  %v11346_v46 = vpop.f32.mrf.mxu2  ;;  %v7746_v49 = vld [vmem:[%s12085_s12 + $0xf0] sm:$0xff] }
 0x882   :  { %8315 = vpow2.f32 %v3601_v40  ;;  %v4698_v53 = vpack.c.bf16 %v4682_v16, %v4682_v16  ;;  %12450 = vst [vmem:[#allocation15_spill] sm:$0xff] %v11346_v46  ;;  %5721 = vmatpush.bf16.msrb.mxu0 %v7746_v49 }
 0x883   :  { %8317 = vpow2.f32 %v4311_v0  ;;  %v4525_v0 = vmul.f32 0.2, %v4509_v48  ;;  %v3815_v19 = vmul.f32 0.2, %v3799_v60 }
 0x884   :  { %v4907_v63 = vunpack.c.l.b16 %v4698_v53 }
 0x885   :  { %v4541_v25 = vmax.f32 %v4509_v48, %v4525_v0  ;;  %v3831_v8 = vmax.f32 %v3799_v60, %v3815_v19  ;;  %v7721_v48 = vld [vmem:[%s12085_s12 + $0x28] sm:$0xff]  ;;  %v11364_v60 = vpop.f32.mrf.mxu0 }
 0x886   :  { %v4252_v51 = vpop.permute.xlu1 %4251  ;;  %v11330_v40 = vpack.c.b16 %v4908_v1, %v4907_v63  ;;  %v3635_v1 = vpack.c.bf16 %v3619_v10, %v3619_v10  ;;  %v11362_v0 = vpop.permute.xlu2 %4266  ;;  %12454 = vst [vmem:[#allocation42_spill] sm:$0xff] %v11364_v60  ;;  %5575 = vmatpush.bf16.msra.mxu3 %v7721_v48  ;;  %v12456_v60 = vld [vmem:[#allocation56_spill] sm:$0xff] }
 0x887   :  { %v4281_v16 = vsub.f32 %v4185_v61, %v4252_v51  ;;  %v3954_v61 = vmul.f32 1.442695, %v3926_v7  ;;  %v4637_v27 = vsub.f32 %v4541_v25, %v4612_v4  ;;  %v3461_v25 = vmul.f32 0.2, %v3445_v30 }
 0x888   :  { %v8316_v5 = vpop.eup %8315  ;;  %5301 = vmatmul.bf16.gmra.mxu0 %v11330_v40  ;;  %v4765_v54 = vunpack.c.l.b16 %v3635_v1  ;;  %v5140_v41 = vpop.f32.mrf.mxu3 }
 0x889   :  { %v4309_v53 = vmul.f32 1.442695, %v4281_v16  ;;  %v3620_v63 = vmul.f32 %v8316_v5, %v12451_v15  ;;  %v8318_v20 = vpop.eup %8317  ;;  %v12453_v5 = vld [vmem:[#allocation55_spill] sm:$0xff] }
 0x88a   :  { %v4330_v16 = vmul.f32 %v8318_v20, %v12451_v15  ;;  %v4508_v10 = vadd.f32 %v11012_v55, %v12453_v5 }
 0x88b   :  { %8319 = vpow2.f32 %v4309_v53  ;;  %v3636_v51 = vpack.c.bf16 %v3620_v63, %v3620_v63  ;;  %v5238_v4 = vpop.f32.mrf.mxu2 }
 0x88c   :  { %8321 = vpow2.f32 %v3954_v61  ;;  %v4346_v20 = vpack.c.bf16 %v4330_v16, %v4330_v16  ;;  %v3477_v16 = vmax.f32 %v3445_v30, %v3461_v25  ;;  %v7737_v30 = vld [vmem:[%s12085_s12 + $0xa8] sm:$0xff] }
 0x88d   :  { %v4766_v21 = vunpack.c.l.b16 %v3636_v51  ;;  %v7720_v51 = vld [vmem:[%s12085_s12 + $0x20] sm:$0xff]  ;;  %5673 = vmatpush.bf16.msra.mxu2 %v7737_v30 }
 0x88e   :  { %5576 = vmatpush.bf16.msra.mxu3 %v7720_v51 }
 0x88f   :  { %v3902_v7 = vpop.permute.xlu1 %3901  ;;  %v5189_v57 = vpop.f32.mrf.mxu1  ;;  %v11354_v46 = vpack.c.b16 %v4766_v21, %v4765_v54 }
 0x890   :  { %v3927_v53 = vsub.f32 %v3831_v8, %v3902_v7  ;;  %v5190_v63 = vadd.f32 %v5189_v57, %v5140_v41  ;;  %v11367_v21 = vpop.permute.xlu0 %3906  ;;  %v4524_v8 = vmul.f32 0.2, %v4508_v10  ;;  %v12455_v41 = vld [vmem:[#allocation58_spill] sm:$0xff]  ;;  %v4666_v7 = vmul.f32 1.442695, %v4637_v27 }
 0x891   :  { %v8320_v1 = vpop.eup %8319  ;;  %5159 = vmatmul.bf16.gmra.mxu3 %v11354_v46  ;;  %v4510_v5 = vadd.f32 %v11012_v55, %v12455_v41  ;;  %v12458_v41 = vld [vmem:[#allocation43_spill] sm:$0xff] }
 0x892   :  { %v3956_v54 = vmul.f32 1.442695, %v3927_v53  ;;  %v5239_v19 = vadd.f32 %v5238_v4, %v5190_v63  ;;  %v4329_v61 = vmul.f32 %v8320_v1, %v12446_v18  ;;  %v8322_v57 = vpop.eup %8321  ;;  %v4511_v53 = vadd.f32 %v11012_v55, %v12456_v60  ;;  %v12457_v63 = vld [vmem:[#allocation54_spill] sm:$0xff]  ;;  %v7745_v60 = vld [vmem:[%s12085_s12 + $0xe8] sm:$0xff] }
 0x893   :  { %v4156_v1 = vadd.f32 %v10978_v23, %v12457_v63  ;;  %v4862_v4 = vunpack.c.l.b16 %v4346_v20  ;;  %v4526_v35 = vmul.f32 0.2, %v4510_v5  ;;  %v4540_v43 = vmax.f32 %v4508_v10, %v4524_v8  ;;  %v7719_v10 = vld [vmem:[%s12085_s12 + $0x18] sm:$0xff]  ;;  %5722 = vmatpush.bf16.msrb.mxu0 %v7745_v60 }
 0x894   :  { %8323 = vpow2.f32 %v3956_v54  ;;  %v4345_v49 = vpack.c.bf16 %v4329_v61, %v4329_v61  ;;  %v3974_v42 = vmul.f32 %v8322_v57, %v12446_v18  ;;  %v3446_v27 = vadd.f32 %v10960_v56, %v12458_v41  ;;  %v7744_v57 = vld [vmem:[%s12085_s12 + $0xe0] sm:$0xff]  ;;  %5577 = vmatpush.bf16.msra.mxu3 %v7719_v10 }
 0x895   :  { %8325 = vpow2.f32 %v4666_v7  ;;  %v3573_v54 = vsub.f32 %v3477_v16, %v11340_v11  ;;  %v4527_v25 = vmul.f32 0.2, %v4511_v53  ;;  %v7729_v11 = vld [vmem:[%s12085_s12 + $0x68] sm:$0xff]  ;;  %v4172_v8 = vmul.f32 0.2, %v4156_v1  ;;  %v4617_v7 = vpop.permute.xlu2 %4616  ;;  %v7736_v16 = vld [vmem:[%s12085_s12 + $0xa0] sm:$0xff] }
 0x896   :  { %v4861_v48 = vunpack.c.l.b16 %v4345_v49  ;;  %v4542_v49 = vmax.f32 %v4510_v5, %v4526_v35  ;;  %5624 = vmatpush.bf16.msrb.mxu1 %v7729_v11  ;;  %5674 = vmatpush.bf16.msra.mxu2 %v7736_v16  ;;  %v12459_v11 = vld [vmem:[#allocation52_spill] sm:$0xff] }
 0x897   :  { %v4543_v35 = vmax.f32 %v4511_v53, %v4527_v25  ;;  %5723 = vmatpush.bf16.msrb.mxu0 %v7744_v57  ;;  %v4188_v10 = vmax.f32 %v4156_v1, %v4172_v8  ;;  %v3800_v53 = vadd.f32 %v10996_v6, %v12459_v11  ;;  %v7735_v57 = vld [vmem:[%s12085_s12 + $0x98] sm:$0xff]  ;;  %v7728_v1 = vld [vmem:[%s12085_s12 + $0x60] sm:$0xff]  ;;  %v7742_v16 = vld [vmem:[%s12085_s12 + $0xd0] sm:$0xff] }
 0x898   :  { %v4607_v61 = vpop.permute.xlu1 %4606  ;;  %v5287_v31 = vpop.f32.mrf.mxu0  ;;  %v11383_v55 = vpack.c.b16 %v4862_v4, %v4861_v48  ;;  %v3462_v48 = vmul.f32 0.2, %v3446_v27  ;;  %v3603_v4 = vmul.f32 1.442695, %v3573_v54  ;;  %v4638_v5 = vsub.f32 %v4542_v49, %v4617_v7  ;;  %v7717_v54 = vld [vmem:[%s12085_s12 + $0x8] sm:$0xff]  ;;  %v12460_v8 = vld [vmem:[#allocation57_spill] sm:$0xff] }
 0x899   :  { %v4636_v56 = vsub.f32 %v4540_v43, %v4607_v61  ;;  %v11394_v20 = vadd.f32 %v5287_v31, %v5239_v19  ;;  %v3990_v31 = vpack.c.bf16 %v3974_v42, %v3974_v42  ;;  %v7718_v19 = vld [vmem:[%s12085_s12 + $0x10] sm:$0xff]  ;;  %v4622_v41 = vpop.permute.xlu0 %4621  ;;  %v7743_v42 = vld [vmem:[%s12085_s12 + $0xd8] sm:$0xff]  ;;  %v4155_v49 = vadd.f32 %v10978_v23, %v12460_v8  ;;  %v7716_v23 = vld [vmem:[%s12085_s12] sm:$0xff] }
 0x89a   :  { %v8324_v51 = vpop.eup %8323  ;;  %5257 = vmatmul.bf16.gmra.mxu2 %v11383_v55  ;;  %v4639_v30 = vsub.f32 %v4543_v35, %v4622_v41  ;;  %5578 = vmatpush.bf16.msra.mxu3 %v7718_v19  ;;  %v3478_v25 = vmax.f32 %v3446_v27, %v3462_v48 }
 0x89b   :  { %v4664_v63 = vmul.f32 1.442695, %v4636_v56  ;;  %v3975_v43 = vmul.f32 %v8324_v51, %v12451_v15  ;;  %v8326_v61 = vpop.eup %8325  ;;  %v4813_v56 = vunpack.c.l.b16 %v3990_v31  ;;  %5724 = vmatpush.bf16.msrb.mxu0 %v7743_v42  ;;  %5625 = vmatpush.bf16.msrb.mxu1 %v7728_v1  ;;  %v12461_v1 = vld [vmem:[#allocation13_spill] sm:$0xff] }
 0x89c   :  { %v4685_v7 = vmul.f32 %v8326_v61, %v12451_v15  ;;  %5675 = vmatpush.bf16.msra.mxu2 %v7735_v57 }
 0x89d   :  { %8327 = vpow2.f32 %v4664_v63  ;;  %v3991_v60 = vpack.c.bf16 %v3975_v43, %v3975_v43  ;;  %v4284_v63 = vsub.f32 %v4188_v10, %v11362_v0  ;;  %v4668_v43 = vmul.f32 1.442695, %v4638_v5  ;;  %v7734_v5 = vld [vmem:[%s12085_s12 + $0x90] sm:$0xff] }
 0x89e   :  { %8329 = vpow2.f32 %v3603_v4  ;;  %v4670_v4 = vmul.f32 1.442695, %v4639_v30  ;;  %5579 = vmatpush.bf16.msra.mxu3 %v7717_v54  ;;  %v3816_v0 = vmul.f32 0.2, %v3800_v53  ;;  %v4701_v35 = vpack.c.bf16 %v4685_v7, %v4685_v7  ;;  %v7733_v7 = vld [vmem:[%s12085_s12 + $0x88] sm:$0xff] }
 0x89f   :  { %v4814_v51 = vunpack.c.l.b16 %v3991_v60  ;;  %v4171_v60 = vmul.f32 0.2, %v4155_v49  ;;  %v4315_v42 = vmul.f32 1.442695, %v4284_v63  ;;  %8331 = vpow2.f32 %v4668_v43  ;;  %5725 = vmatpush.bf16.msrb.mxu0 %v7742_v16  ;;  %v12462_v63 = vld [vmem:[#allocation44_spill] sm:$0xff] }
 0x8a0   :  { %v3832_v54 = vmax.f32 %v3800_v53, %v3816_v0  ;;  %5676 = vmatpush.bf16.msra.mxu2 %v7734_v5  ;;  %v3801_v43 = vadd.f32 %v10996_v6, %v12462_v63  ;;  %v7740_v53 = vld [vmem:[%s12085_s12 + $0xc0] sm:$0xff]  ;;  %v11461_v0 = vpop.f32.mrf.mxu1 }
 0x8a1   :  { %v3557_v31 = vpop.permute.xlu1 %3556  ;;  %v11428_v19 = vpack.c.b16 %v4814_v51, %v4813_v56  ;;  %v7741_v56 = vld [vmem:[%s12085_s12 + $0xc8] sm:$0xff]  ;;  %v7727_v51 = vld [vmem:[%s12085_s12 + $0x58] sm:$0xff]  ;;  %v4187_v57 = vmax.f32 %v4155_v49, %v4171_v60  ;;  %v11459_v49 = vpop.f32.mrf.mxu3  ;;  %v7732_v6 = vld [vmem:[%s12085_s12 + $0x80] sm:$0xff] }
 0x8a2   :  { %v3574_v27 = vsub.f32 %v3478_v25, %v3557_v31  ;;  %5580 = vmatpush.bf16.msra.mxu3 %v7716_v23  ;;  %v4910_v25 = vunpack.c.l.b16 %v4701_v35  ;;  %5626 = vmatpush.bf16.msrb.mxu1 %v7727_v51  ;;  %v3928_v31 = vsub.f32 %v3832_v54, %v11367_v21  ;;  %v7726_v21 = vld [vmem:[%s12085_s12 + $0x50] sm:$0xff]  ;;  %v12463_v35 = vld [vmem:[#allocation5_spill] sm:$0xff]  ;;  %v7725_v51 = vld [vmem:[%s12085_s12 + $0x48] sm:$0xff] }
 0x8a3   :  { %v8328_v48 = vpop.eup %8327  ;;  %5208 = vmatmul.bf16.gmra.mxu1 %v11428_v19  ;;  %5726 = vmatpush.bf16.msrb.mxu0 %v7741_v56 }
 0x8a4   :  { %v3605_v41 = vmul.f32 1.442695, %v3574_v27  ;;  %v4684_v61 = vmul.f32 %v8328_v48, %v12446_v18  ;;  %v8330_v30 = vpop.eup %8329  ;;  %5677 = vmatpush.bf16.msra.mxu2 %v7733_v7 }
 0x8a5   :  { %v3621_v8 = vmul.f32 %v8330_v30, %v12461_v1  ;;  %v8332_v48 = vpop.eup %8331  ;;  %v3958_v30 = vmul.f32 1.442695, %v3928_v31 }
 0x8a6   :  { %8333 = vpow2.f32 %v3605_v41  ;;  %v4700_v10 = vpack.c.bf16 %v4684_v61, %v4684_v61  ;;  %v4686_v56 = vmul.f32 %v8332_v48, %v12461_v1  ;;  %5627 = vmatpush.bf16.msrb.mxu1 %v7726_v21 }
 0x8a7   :  { %8335 = vpow2.f32 %v4670_v4  ;;  %v3637_v60 = vpack.c.bf16 %v3621_v8, %v3621_v8  ;;  %5727 = vmatpush.bf16.msrb.mxu0 %v7740_v53 }
 0x8a8   :  { %v4909_v11 = vunpack.c.l.b16 %v4700_v10  ;;  %8337 = vpow2.f32 %v4315_v42  ;;  %v3817_v42 = vmul.f32 0.2, %v3801_v43  ;;  %v11471_v10 = vpop.f32.mrf.mxu2  ;;  %5678 = vmatpush.bf16.msra.mxu2 %v7732_v6  ;;  %v4702_v63 = vpack.c.bf16 %v4686_v56, %v4686_v56 }
 0x8a9   :  { %v4767_v7 = vunpack.c.l.b16 %v3637_v60  ;;  %v5145_v48 = vpop.f32.mrf.mxu3 }
 0x8aa   :  { %v4262_v27 = vpop.permute.xlu1 %4261  ;;  %v11454_v16 = vpack.c.b16 %v4910_v25, %v4909_v11  ;;  %v3833_v8 = vmax.f32 %v3801_v43, %v3817_v42  ;;  %5628 = vmatpush.bf16.msrb.mxu1 %v7725_v51  ;;  %v4911_v42 = vunpack.c.l.b16 %v4702_v63 }
 0x8ab   :  { %v4283_v4 = vsub.f32 %v4187_v57, %v4262_v27 }
 0x8ac   :  { %v8334_v23 = vpop.eup %8333  ;;  %5306 = vmatmul.bf16.gmra.mxu0 %v11454_v16 }
 0x8ad   :  { %v8336_v41 = vpop.eup %8335  ;;  %v4313_v61 = vmul.f32 1.442695, %v4283_v4  ;;  %v3622_v5 = vmul.f32 %v8334_v23, %v12463_v35 }
 0x8ae   :  { %v8338_v54 = vpop.eup %8337  ;;  %v4687_v25 = vmul.f32 %v8336_v41, %v12463_v35  ;;  %v7724_v41 = vld [vmem:[%s12085_s12 + $0x40] sm:$0xff] }
 0x8af   :  { %8339 = vpow2.f32 %v4313_v61  ;;  %v3638_v11 = vpack.c.bf16 %v3622_v5, %v3622_v5  ;;  %v4332_v31 = vmul.f32 %v8338_v54, %v12463_v35  ;;  %v11484_v61 = vpop.f32.mrf.mxu0  ;;  %5629 = vmatpush.bf16.msrb.mxu1 %v7724_v41 }
 0x8b0   :  { %8341 = vpow2.f32 %v3958_v30  ;;  %v4703_v21 = vpack.c.bf16 %v4687_v25, %v4687_v25 }
 0x8b1   :  { %v4768_v57 = vunpack.c.l.b16 %v3638_v11  ;;  %v5243_v43 = vpop.f32.mrf.mxu2  ;;  %v4348_v56 = vpack.c.bf16 %v4332_v31, %v4332_v31 }
 0x8b2   :  { %v4912_v11 = vunpack.c.l.b16 %v4703_v21 }
 0x8b3   :  { %v3912_v27 = vpop.permute.xlu1 %3911  ;;  %v11479_v53 = vpack.c.b16 %v4768_v57, %v4767_v7 }
 0x8b4   :  { %v3929_v4 = vsub.f32 %v3833_v8, %v3912_v27  ;;  %v5194_v23 = vpop.f32.mrf.mxu1  ;;  %v11488_v7 = vpack.c.b16 %v4912_v11, %v4911_v42  ;;  %v4864_v8 = vunpack.c.l.b16 %v4348_v56 }
 0x8b5   :  { %v8340_v6 = vpop.eup %8339  ;;  %v5195_v5 = vadd.f32 %v5194_v23, %v5145_v48  ;;  %5164 = vmatmul.bf16.gmra.mxu3 %v11479_v53 }
 0x8b6   :  { %v3960_v60 = vmul.f32 1.442695, %v3929_v4  ;;  %v4331_v30 = vmul.f32 %v8340_v6, %v12461_v1  ;;  %v8342_v54 = vpop.eup %8341 }
 0x8b7   :  { %v5244_v51 = vadd.f32 %v5243_v43, %v5195_v5  ;;  %v3976_v27 = vmul.f32 %v8342_v54, %v12461_v1 }
 0x8b8   :  { %8343 = vpow2.f32 %v3960_v60  ;;  %v4347_v25 = vpack.c.bf16 %v4331_v30, %v4331_v30  ;;  %v11504_v60 = vpop.f32.mrf.mxu3 }
 0x8b9   :  { %v3992_v21 = vpack.c.bf16 %v3976_v27, %v3976_v27  ;;  %v11508_v30 = vpop.f32.mrf.mxu2 }
 0x8ba   :  { %v4863_v57 = vunpack.c.l.b16 %v4347_v25 }
 0x8bb   :  { %v4815_v6 = vunpack.c.l.b16 %v3992_v21 }
 0x8bc   :  { %5311 = vmatmul.bf16.gmra.mxu0 %v11488_v7  ;;  %v11492_v48 = vpack.c.b16 %v4864_v8, %v4863_v57  ;;  %v11506_v42 = vpop.f32.mrf.mxu1 }
 0x8bd   :  { %v5292_v63 = vpop.f32.mrf.mxu0 }
 0x8be   :  { %v8344_v4 = vpop.eup %8343  ;;  %v11494_v23 = vadd.f32 %v5292_v63, %v5244_v51  ;;  %5262 = vmatmul.bf16.gmra.mxu2 %v11492_v48 }
 0x8bf   :  { %v3977_v31 = vmul.f32 %v8344_v4, %v12463_v35 }
 0x8c1   :  { %v3993_v41 = vpack.c.bf16 %v3977_v31, %v3977_v31 }
 0x8c3   :  { %v4816_v5 = vunpack.c.l.b16 %v3993_v41 }
 0x8c5   :  { %5581 = vmatmul.bf16.vlgmr.msra.gmra.mxu3 %v11037_v14  ;;  %v11499_v43 = vpack.c.b16 %v4816_v5, %v4815_v6  ;;  %v11512_v51 = vpop.f32.mrf.mxu0 }
 0x8c7   :  { %5213 = vmatmul.bf16.gmra.mxu1 %v11499_v43 }
 0x8cc   :  { %5728 = vmatmul.bf16.vlgmr.msrb.gmra.mxu0 %v11079_v3  ;;  %v5150_v56 = vpop.f32.mrf.mxu3 }
 0x8ce   :  { %5679 = vmatmul.bf16.vlgmr.msra.gmra.mxu2 %v11050_v33 }
 0x8d5   :  { %5586 = vmatmul.bf16.gmra.mxu3 %v11095_v39  ;;  %v5248_v11 = vpop.f32.mrf.mxu2 }
 0x8d7   :  { %5630 = vmatmul.bf16.vlgmr.msrb.gmra.mxu1 %v11067_v13  ;;  %v11522_v13 = vpop.f32.mrf.mxu3 }
 0x8d8   :  { %v5199_v14 = vpop.f32.mrf.mxu1 }
 0x8d9   :  { %v5200_v54 = vadd.f32 %v5199_v14, %v5150_v56 }
 0x8db   :  { %v5249_v25 = vadd.f32 %v5248_v11, %v5200_v54 }
 0x8dc   :  { %5733 = vmatmul.bf16.gmra.mxu0 %v11129_v28 }
 0x8dd   :  { %v11527_v28 = vpop.f32.mrf.mxu2 }
 0x8de   :  { %5684 = vmatmul.bf16.gmra.mxu2 %v11105_v38 }
 0x8e0   :  { %v11524_v39 = vpop.f32.mrf.mxu1 }
 0x8e1   :  { %v5297_v33 = vpop.f32.mrf.mxu0 }
 0x8e2   :  { %v11516_v3 = vadd.f32 %v5297_v33, %v5249_v25 }
 0x8e5   :  { %5591 = vmatmul.bf16.gmra.mxu3 %v11144_v50 }
 0x8e7   :  { %5635 = vmatmul.bf16.gmra.mxu1 %v11122_v45 }
 0x8e9   :  { %v11531_v50 = vpop.f32.mrf.mxu0 }
 0x8ec   :  { %5738 = vmatmul.bf16.gmra.mxu0 %v11179_v52 }
 0x8ee   :  { %5689 = vmatmul.bf16.gmra.mxu2 %v11153_v36 }
 0x8f0   :  { %v5155_v38 = vpop.f32.mrf.mxu3 }
 0x8f5   :  { %5596 = vmatmul.bf16.gmra.mxu3 %v11194_v12 }
 0x8f7   :  { %5640 = vmatmul.bf16.gmra.mxu1 %v11168_v24  ;;  %v8538_v24 = vld [vmem:[%s12083_s11] sm:$0x3] }
 0x8f8   :  { %v5834_v12 = vsel %vm2884_vm3, %v8538_v24, 0 }
 0x8f9   :  { %v5253_v52 = vpop.f32.mrf.mxu2  ;;  %5843 = vmatpush.bf16.msra.mxu1 %v5834_v12  ;;  %7765 = vmatpush.bf16.msrb.mxu3 %v5834_v12 }
 0x8fc   :  { %v5204_v57 = vpop.f32.mrf.mxu1  ;;  %5743 = vmatmul.bf16.gmra.mxu0 %v11230_v29 }
 0x8fd   :  { %v5205_v45 = vadd.f32 %v5204_v57, %v5155_v38 }
 0x8fe   :  { %5694 = vmatmul.bf16.gmra.mxu2 %v11206_v58  ;;  %v11546_v58 = vpop.f32.mrf.mxu3 }
 0x8ff   :  { %v5254_v36 = vadd.f32 %v5253_v52, %v5205_v45 }
 0x904   :  { %v11548_v29 = vpop.f32.mrf.mxu1 }
 0x905   :  { %v5302_v8 = vpop.f32.mrf.mxu0  ;;  %5601 = vmatmul.bf16.gmra.mxu3 %v11240_v26 }
 0x906   :  { %v11535_v27 = vadd.f32 %v5302_v8, %v5254_v36 }
 0x907   :  { %5645 = vmatmul.bf16.gmra.mxu1 %v11218_v9  ;;  %v11550_v9 = vpop.f32.mrf.mxu2 }
 0x90c   :  { %5748 = vmatmul.bf16.gmra.mxu0 %v11274_v34 }
 0x90e   :  { %5699 = vmatmul.bf16.gmra.mxu2 %v11252_v17  ;;  %v11554_v17 = vpop.f32.mrf.mxu0 }
 0x915   :  { %5606 = vmatmul.bf16.gmra.mxu3 %v11287_v62  ;;  %v5160_v62 = vpop.f32.mrf.mxu3 }
 0x917   :  { %5650 = vmatmul.bf16.gmra.mxu1 %v11261_v37 }
 0x91c   :  { %5753 = vmatmul.bf16.gmra.mxu0 %v11330_v40 }
 0x91d   :  { %v5258_v63 = vpop.f32.mrf.mxu2  ;;  %v11562_v40 = vpop.f32.mrf.mxu3 }
 0x91e   :  { %5704 = vmatmul.bf16.gmra.mxu2 %v11298_v59 }
 0x920   :  { %v5209_v26 = vpop.f32.mrf.mxu1 }
 0x921   :  { %v5210_v34 = vadd.f32 %v5209_v26, %v5160_v62 }
 0x923   :  { %v5259_v4 = vadd.f32 %v5258_v63, %v5210_v34 }
 0x925   :  { %5611 = vmatmul.bf16.gmra.mxu3 %v11354_v46  ;;  %v11568_v41 = vpop.f32.mrf.mxu2 }
 0x927   :  { %5655 = vmatmul.bf16.gmra.mxu1 %v11316_v22 }
 0x928   :  { %v11572_v22 = vpop.f32.mrf.mxu1 }
 0x929   :  { %v5307_v37 = vpop.f32.mrf.mxu0 }
 0x92a   :  { %v11558_v31 = vadd.f32 %v5307_v37, %v5259_v4 }
 0x92c   :  { %5758 = vmatmul.bf16.gmra.mxu0 %v11454_v16 }
 0x92e   :  { %5709 = vmatmul.bf16.gmra.mxu2 %v11383_v55 }
 0x931   :  { %v11564_v59 = vpop.f32.mrf.mxu0 }
 0x935   :  { %5616 = vmatmul.bf16.gmra.mxu3 %v11479_v53 }
 0x937   :  { %5660 = vmatmul.bf16.gmra.mxu1 %v11428_v19 }
 0x938   :  { %v5165_v21 = vpop.f32.mrf.mxu3 }
 0x939   :  { %v11570_v46 = vpop.f32.mrf.mxu0 }
 0x93c   :  { %5763 = vmatmul.bf16.gmra.mxu0 %v11488_v7 }
 0x93e   :  { %5714 = vmatmul.bf16.gmra.mxu2 %v11492_v48 }
 0x940   :  { %v11576_v55 = vpop.f32.mrf.mxu3 }
 0x941   :  { %v5263_v16 = vpop.f32.mrf.mxu2  ;;  %v11578_v6 = vpop.f32.mrf.mxu0 }
 0x944   :  { %v5214_v5 = vpop.f32.mrf.mxu1 }
 0x945   :  { %v5215_v53 = vadd.f32 %v5214_v5, %v5165_v21 }
 0x947   :  { %v11580_v56 = vadd.f32 %v5263_v16, %v5215_v53  ;;  %5665 = vmatmul.bf16.gmra.mxu1 %v11499_v43 }
 0x948   :  { %v5582_v19 = vpop.f32.mrf.mxu3 }
 0x949   :  { %v11583_v14 = vpop.f32.mrf.mxu2  ;;  %v5729_v54 = vpop.f32.mrf.mxu0 }
 0x94c   :  { %v11585_v11 = vpop.f32.mrf.mxu1 }
 0x950   :  { %v5584_v7 = vpop.f32.mrf.mxu3 }
 0x951   :  { %v5680_v25 = vpop.f32.mrf.mxu2  ;;  %v5731_v48 = vpop.f32.mrf.mxu0 }
 0x954   :  { %v5631_v33 = vpop.f32.mrf.mxu1 }
 0x955   :  { %v5632_v38 = vadd.f32 %v5631_v33, %v5582_v19 }
 0x957   :  { %v5681_v57 = vadd.f32 %v5680_v25, %v5632_v38 }
 0x958   :  { %v5587_v45 = vpop.f32.mrf.mxu3 }
 0x959   :  { %v5682_v52 = vpop.f32.mrf.mxu2  ;;  %v5734_v36 = vpop.f32.mrf.mxu0  ;;  %v5730_v8 = vadd.f32 %v5729_v54, %v5681_v57 }
 0x95b   :  { %v5769_v43 = vmax.f32 %v5730_v8, 1e-30 }
 0x95c   :  { %v5633_v24 = vpop.f32.mrf.mxu1 }
 0x95d   :  { %v5634_v12 = vadd.f32 %v5633_v24, %v5584_v7  ;;  %8345 = vrcp.f32 %v5769_v43 }
 0x95f   :  { %v5683_v62 = vadd.f32 %v5682_v52, %v5634_v12 }
 0x960   :  { %v5589_v26 = vpop.f32.mrf.mxu3 }
 0x961   :  { %v5732_v34 = vadd.f32 %v5731_v48, %v5683_v62  ;;  %v5685_v63 = vpop.f32.mrf.mxu2  ;;  %v5736_v4 = vpop.f32.mrf.mxu0 }
 0x963   :  { %v5770_v37 = vmax.f32 %v5732_v34, 1e-30  ;;  %v8346_v33 = vpop.eup %8345 }
 0x964   :  { %v5636_v21 = vpop.f32.mrf.mxu1 }
 0x965   :  { %8347 = vrcp.f32 %v5770_v37  ;;  %v5637_v16 = vadd.f32 %v5636_v21, %v5587_v45 }
 0x967   :  { %v5686_v5 = vadd.f32 %v5685_v63, %v5637_v16 }
 0x968   :  { %v5592_v53 = vpop.f32.mrf.mxu3 }
 0x969   :  { %v5687_v19 = vpop.f32.mrf.mxu2  ;;  %v5739_v25 = vpop.f32.mrf.mxu0  ;;  %v5735_v57 = vadd.f32 %v5734_v36, %v5686_v5 }
 0x96b   :  { %v8348_v38 = vpop.eup %8347  ;;  %v5771_v8 = vmax.f32 %v5735_v57, 1e-30 }
 0x96c   :  { %v5801_v54 = vpack.c.bf16 %v8348_v38, %v8346_v33  ;;  %v5638_v7 = vpop.f32.mrf.mxu1 }
 0x96d   :  { %v5639_v52 = vadd.f32 %v5638_v7, %v5589_v26  ;;  %8349 = vrcp.f32 %v5771_v8 }
 0x96e   :  { %7562 = vmatmul.msk.bf16.vlgmr.msra.gmra.mxu1 %vm2859_vm4, %v5801_v54 }
 0x96f   :  { %v5688_v48 = vadd.f32 %v5687_v19, %v5639_v52 }
 0x970   :  { %v5594_v24 = vpop.f32.mrf.mxu3 }
 0x971   :  { %v5737_v12 = vadd.f32 %v5736_v4, %v5688_v48  ;;  %v5690_v62 = vpop.f32.mrf.mxu2  ;;  %v5741_v43 = vpop.f32.mrf.mxu0 }
 0x973   :  { %v5772_v34 = vmax.f32 %v5737_v12, 1e-30  ;;  %v8350_v36 = vpop.eup %8349 }
 0x974   :  { %v5641_v45 = vpop.f32.mrf.mxu1 }
 0x975   :  { %8351 = vrcp.f32 %v5772_v34  ;;  %v5642_v63 = vadd.f32 %v5641_v45, %v5592_v53 }
 0x977   :  { %v5691_v37 = vadd.f32 %v5690_v62, %v5642_v63 }
 0x978   :  { %v5597_v21 = vpop.f32.mrf.mxu3 }
 0x979   :  { %v5692_v16 = vpop.f32.mrf.mxu2  ;;  %v5744_v33 = vpop.f32.mrf.mxu0  ;;  %v5740_v38 = vadd.f32 %v5739_v25, %v5691_v37 }
 0x97b   :  { %v8352_v5 = vpop.eup %8351  ;;  %v5773_v57 = vmax.f32 %v5740_v38, 1e-30 }
 0x97c   :  { %v5802_v26 = vpack.c.bf16 %v8352_v5, %v8350_v36  ;;  %v5643_v54 = vpop.f32.mrf.mxu1 }
 0x97d   :  { %v5644_v19 = vadd.f32 %v5643_v54, %v5594_v24  ;;  %8353 = vrcp.f32 %v5773_v57 }
 0x97e   :  { %7563 = vmatmul.msk.bf16.vlgmr.msrb.gmra.mxu3 %vm2859_vm4, %v5802_v26 }
 0x97f   :  { %v5693_v4 = vadd.f32 %v5692_v16, %v5644_v19 }
 0x980   :  { %v5599_v7 = vpop.f32.mrf.mxu3 }
 0x981   :  { %v5742_v52 = vadd.f32 %v5741_v43, %v5693_v4  ;;  %v5695_v48 = vpop.f32.mrf.mxu2  ;;  %v5746_v8 = vpop.f32.mrf.mxu0 }
 0x983   :  { %v5774_v12 = vmax.f32 %v5742_v52, 1e-30  ;;  %v8354_v36 = vpop.eup %8353 }
 0x984   :  { %v5646_v53 = vpop.f32.mrf.mxu1 }
 0x985   :  { %8355 = vrcp.f32 %v5774_v12  ;;  %v5647_v62 = vadd.f32 %v5646_v53, %v5597_v21 }
 0x987   :  { %v5696_v34 = vadd.f32 %v5695_v48, %v5647_v62 }
 0x988   :  { %v5602_v45 = vpop.f32.mrf.mxu3 }
 0x989   :  { %v5697_v63 = vpop.f32.mrf.mxu2  ;;  %v5749_v25 = vpop.f32.mrf.mxu0  ;;  %v5745_v24 = vadd.f32 %v5744_v33, %v5696_v34 }
 0x98b   :  { %v8356_v37 = vpop.eup %8355  ;;  %v5775_v38 = vmax.f32 %v5745_v24, 1e-30 }
 0x98c   :  { %v5648_v5 = vpop.f32.mrf.mxu1  ;;  %v5803_v26 = vpack.c.bf16 %v8356_v37, %v8354_v36 }
 0x98d   :  { %v5649_v16 = vadd.f32 %v5648_v5, %v5599_v7  ;;  %8357 = vrcp.f32 %v5775_v38 }
 0x98e   :  { %7564 = vmatmul.msk.bf16.gmra.mxu3 %vm2859_vm4, %v5803_v26 }
 0x98f   :  { %v5698_v43 = vadd.f32 %v5697_v63, %v5649_v16 }
 0x990   :  { %v5604_v54 = vpop.f32.mrf.mxu3 }
 0x991   :  { %v5747_v19 = vadd.f32 %v5746_v8, %v5698_v43  ;;  %v5700_v4 = vpop.f32.mrf.mxu2  ;;  %v5751_v21 = vpop.f32.mrf.mxu0 }
 0x993   :  { %v5776_v57 = vmax.f32 %v5747_v19, 1e-30  ;;  %v8358_v62 = vpop.eup %8357 }
 0x994   :  { %v5651_v52 = vpop.f32.mrf.mxu1 }
 0x995   :  { %8359 = vrcp.f32 %v5776_v57  ;;  %v5652_v48 = vadd.f32 %v5651_v52, %v5602_v45 }
 0x997   :  { %v5701_v12 = vadd.f32 %v5700_v4, %v5652_v48 }
 0x998   :  { %v5607_v33 = vpop.f32.mrf.mxu3 }
 0x999   :  { %v5702_v53 = vpop.f32.mrf.mxu2  ;;  %v5750_v36 = vadd.f32 %v5749_v25, %v5701_v12  ;;  %v5754_v63 = vpop.f32.mrf.mxu0 }
 0x99b   :  { %v8360_v34 = vpop.eup %8359  ;;  %v5777_v24 = vmax.f32 %v5750_v36, 1e-30 }
 0x99c   :  { %v5653_v7 = vpop.f32.mrf.mxu1  ;;  %v5804_v37 = vpack.c.bf16 %v8360_v34, %v8358_v62 }
 0x99d   :  { %v5654_v5 = vadd.f32 %v5653_v7, %v5604_v54  ;;  %8361 = vrcp.f32 %v5777_v24 }
 0x99e   :  { %7565 = vmatmul.msk.bf16.gmra.mxu3 %vm2859_vm4, %v5804_v37 }
 0x99f   :  { %v5703_v8 = vadd.f32 %v5702_v53, %v5654_v5 }
 0x9a0   :  { %v5609_v38 = vpop.f32.mrf.mxu3 }
 0x9a1   :  { %v5752_v26 = vadd.f32 %v5751_v21, %v5703_v8  ;;  %v5705_v16 = vpop.f32.mrf.mxu2  ;;  %v5756_v4 = vpop.f32.mrf.mxu0 }
 0x9a3   :  { %v5778_v43 = vmax.f32 %v5752_v26, 1e-30  ;;  %v8362_v25 = vpop.eup %8361 }
 0x9a4   :  { %v5656_v45 = vpop.f32.mrf.mxu1 }
 0x9a5   :  { %8363 = vrcp.f32 %v5778_v43  ;;  %v5657_v19 = vadd.f32 %v5656_v45, %v5607_v33 }
 0x9a7   :  { %v5706_v57 = vadd.f32 %v5705_v16, %v5657_v19 }
 0x9a8   :  { %v5612_v7 = vpop.f32.mrf.mxu3 }
 0x9a9   :  { %v5707_v52 = vpop.f32.mrf.mxu2  ;;  %v5755_v12 = vadd.f32 %v5754_v63, %v5706_v57  ;;  %v5759_v5 = vpop.f32.mrf.mxu0 }
 0x9ab   :  { %v8364_v48 = vpop.eup %8363  ;;  %v5779_v53 = vmax.f32 %v5755_v12, 1e-30 }
 0x9ac   :  { %v5658_v54 = vpop.f32.mrf.mxu1  ;;  %v5805_v62 = vpack.c.bf16 %v8364_v48, %v8362_v25 }
 0x9ad   :  { %v5659_v34 = vadd.f32 %v5658_v54, %v5609_v38  ;;  %8365 = vrcp.f32 %v5779_v53 }
 0x9ae   :  { %7566 = vmatmul.msk.bf16.gmra.mxu3 %vm2859_vm4, %v5805_v62 }
 0x9af   :  { %v5708_v21 = vadd.f32 %v5707_v52, %v5659_v34 }
 0x9b0   :  { %v5614_v26 = vpop.f32.mrf.mxu3 }
 0x9b1   :  { %v5757_v36 = vadd.f32 %v5756_v4, %v5708_v21  ;;  %v5710_v37 = vpop.f32.mrf.mxu2  ;;  %v5761_v19 = vpop.f32.mrf.mxu0 }
 0x9b3   :  { %v5780_v8 = vmax.f32 %v5757_v36, 1e-30  ;;  %v8366_v43 = vpop.eup %8365 }
 0x9b4   :  { %v5661_v33 = vpop.f32.mrf.mxu1 }
 0x9b5   :  { %8367 = vrcp.f32 %v5780_v8  ;;  %v5662_v24 = vadd.f32 %v5661_v33, %v5612_v7 }
 0x9b7   :  { %v5711_v16 = vadd.f32 %v5710_v37, %v5662_v24 }
 0x9b8   :  { %v5617_v54 = vpop.f32.mrf.mxu3 }
 0x9b9   :  { %v5712_v63 = vpop.f32.mrf.mxu2  ;;  %v5760_v38 = vadd.f32 %v5759_v5, %v5711_v16  ;;  %v5764_v53 = vpop.f32.mrf.mxu0 }
 0x9bb   :  { %v8368_v45 = vpop.eup %8367  ;;  %v5781_v52 = vmax.f32 %v5760_v38, 1e-30 }
 0x9bc   :  { %v5663_v57 = vpop.f32.mrf.mxu1  ;;  %v5806_v25 = vpack.c.bf16 %v8368_v45, %v8366_v43 }
 0x9bd   :  { %v5664_v48 = vadd.f32 %v5663_v57, %v5614_v26  ;;  %8369 = vrcp.f32 %v5781_v52  ;;  %v7751_v52 = vld [vmem:[%s12087_s14 + $0x18] sm:$0xff] }
 0x9be   :  { %7567 = vmatmul.msk.bf16.gmra.mxu3 %vm2859_vm4, %v5806_v25  ;;  %6069 = vmatpush.bf16.msrb.mxu1 %v7751_v52 }
 0x9bf   :  { %v5713_v4 = vadd.f32 %v5712_v63, %v5664_v48 }
 0x9c0   :  { %v5619_v5 = vpop.f32.mrf.mxu3 }
 0x9c1   :  { %v5762_v12 = vadd.f32 %v5761_v19, %v5713_v4  ;;  %v5715_v34 = vpop.f32.mrf.mxu2  ;;  %v5766_v45 = vpop.f32.mrf.mxu0 }
 0x9c3   :  { %v5782_v62 = vmax.f32 %v5762_v12, 1e-30  ;;  %v8370_v37 = vpop.eup %8369  ;;  %v7750_v12 = vld [vmem:[%s12087_s14 + $0x10] sm:$0xff] }
 0x9c4   :  { %v5666_v7 = vpop.f32.mrf.mxu1  ;;  %6070 = vmatpush.bf16.msrb.mxu1 %v7750_v12 }
 0x9c5   :  { %8371 = vrcp.f32 %v5782_v62  ;;  %v5667_v21 = vadd.f32 %v5666_v7, %v5617_v54  ;;  %v11604_v54 = vld [vmem:[%s12086_s13] ss:$0 sm:$0xff]  ;;  %v7749_v62 = vld [vmem:[%s12087_s14 + $0x8] sm:$0xff]  ;;  %v5182_v7 = vadd.f32 %v11269_v47, %v11267_v32 }
 0x9c7   :  { %v5716_v36 = vadd.f32 %v5715_v34, %v5667_v21 }
 0x9c8   :  { %6071 = vmatpush.bf16.msrb.mxu1 %v7749_v62  ;;  %v12468_v62 = vld [vmem:[#allocation15_spill] sm:$0xff] }
 0x9c9   :  { %v5765_v33 = vadd.f32 %v5764_v53, %v5716_v36  ;;  %v5717_v43 = vpop.f32.mrf.mxu2  ;;  %v5231_v36 = vadd.f32 %v11276_v44, %v5182_v7  ;;  %v12469_v7 = vld [vmem:[#allocation42_spill] sm:$0xff] }
 0x9cb   :  { %v8372_v8 = vpop.eup %8371  ;;  %v5783_v19 = vmax.f32 %v5765_v33, 1e-30 }
 0x9cc   :  { %v5668_v24 = vpop.f32.mrf.mxu1  ;;  %v5807_v26 = vpack.c.bf16 %v8372_v8, %v8370_v37  ;;  %v7748_v37 = vld [vmem:[%s12087_s14] sm:$0xff]  ;;  %v12464_v8 = vld [vmem:[#allocation33_spill] sm:$0xff] }
 0x9cd   :  { %v5669_v16 = vadd.f32 %v5668_v24, %v5619_v5  ;;  %8373 = vrcp.f32 %v5783_v19  ;;  %v5280_v5 = vadd.f32 %v12464_v8, %v5231_v36  ;;  %6072 = vmatpush.bf16.msrb.mxu1 %v7748_v37  ;;  %v12466_v19 = vld [vmem:[#allocation31_spill] sm:$0xff] }
 0x9ce   :  { %7568 = vmatmul.msk.bf16.gmra.mxu3 %vm2859_vm4, %v5807_v26 }
 0x9cf   :  { %v5718_v63 = vadd.f32 %v5717_v43, %v5669_v16 }
 0x9d1   :  { %v5767_v38 = vadd.f32 %v5766_v45, %v5718_v63  ;;  %v12465_v45 = vld [vmem:[#allocation24_spill] sm:$0xff] }
 0x9d3   :  { %v5784_v57 = vmax.f32 %v5767_v38, 1e-30  ;;  %v8374_v25 = vpop.eup %8373  ;;  %v5187_v38 = vadd.f32 %v12466_v19, %v12465_v45 }
 0x9d5   :  { %8375 = vrcp.f32 %v5784_v57  ;;  %v12467_v57 = vld [vmem:[#allocation28_spill] sm:$0xff] }
 0x9db   :  { %v8376_v48 = vpop.eup %8375 }
 0x9dc   :  { %v5808_v4 = vpack.c.bf16 %v8376_v48, %v8374_v25 }
 0x9de   :  { %7569 = vmatmul.msk.bf16.gmra.mxu3 %vm2859_vm4, %v5808_v4 }
 0x9eb   :  { %v5845_v34 = vpop.f32.mrf.mxu1 }
 0x9ec   :  { %v5885_v21 = vmul.f32 %v5845_v34, %v11245_v2  ;;  %v5236_v34 = vadd.f32 %v12468_v62, %v5187_v38 }
 0x9ee   :  { %v5905_v53 = vadd.f32 %v11604_v54, %v5885_v21  ;;  %v5285_v21 = vadd.f32 %v12469_v7, %v5236_v34 }
 0x9f0   :  { %v5937_v33 = vmul.f32 1.442695, %v5905_v53  ;;  %vm5921_vm2 = vcmp.gt.f32.partialorder %v5905_v53, 0.0 }
 0x9f2   :  { %8377 = vpow2.f32 %v5937_v33 }
 0x9f3   :  { %v5847_v24 = vpop.f32.mrf.mxu1 }
 0x9f4   :  { %v5886_v26 = vmul.f32 %v5847_v24, %v5280_v5 }
 0x9f6   :  { %v5906_v32 = vadd.f32 %v11604_v54, %v5886_v26  ;;  %v5192_v26 = vadd.f32 %v11461_v0, %v11459_v49 }
 0x9f8   :  { %v5939_v47 = vmul.f32 1.442695, %v5906_v32  ;;  %v8378_v2 = vpop.eup %8377  ;;  %vm5922_vm3 = vcmp.gt.f32.partialorder %v5906_v32, 0.0 }
 0x9f9   :  { %v7570_v16 = vadd.f32 -1.0, %v8378_v2 }
 0x9fa   :  { %8379 = vpow2.f32 %v5939_v47 }
 0x9fb   :  { %v5985_v48 = vsel %vm5921_vm2, %v5905_v53, %v7570_v16 }
 0xa00   :  { %v8380_v43 = vpop.eup %8379 }
 0xa01   :  { %v7571_v63 = vadd.f32 -1.0, %v8380_v43  ;;  %v5850_v44 = vpop.f32.mrf.mxu3  ;;  %v5241_v43 = vadd.f32 %v11471_v10, %v5192_v26 }
 0xa02   :  { %v5887_v25 = vmul.f32 %v5850_v44, %v12467_v57 }
 0xa03   :  { %v5986_v4 = vsel %vm5922_vm3, %v5906_v32, %v7571_v63  ;;  %v5290_v44 = vadd.f32 %v11484_v61, %v5241_v43  ;;  %v5197_v61 = vadd.f32 %v11506_v42, %v11504_v60 }
 0xa04   :  { %v6001_v52 = vpack.c.bf16 %v5986_v4, %v5985_v48  ;;  %v5907_v12 = vadd.f32 %v11604_v54, %v5887_v25 }
 0xa05   :  { %v5246_v34 = vadd.f32 %v11508_v30, %v5197_v61 }
 0xa06   :  { %7602 = vmatmul.msk.bf16.vlgmr.msrb.gmra.mxu1 %vm254_vm1, %v6001_v52  ;;  %v5941_v36 = vmul.f32 1.442695, %v5907_v12  ;;  %vm5923_vm4 = vcmp.gt.f32.partialorder %v5907_v12, 0.0 }
 0xa08   :  { %8381 = vpow2.f32 %v5941_v36 }
 0xa09   :  { %v5852_v37 = vpop.f32.mrf.mxu3 }
 0xa0a   :  { %v5888_v8 = vmul.f32 %v5852_v37, %v5285_v21  ;;  %v5295_v21 = vadd.f32 %v11512_v51, %v5246_v34  ;;  %v5202_v51 = vadd.f32 %v11524_v39, %v11522_v13 }
 0xa0c   :  { %v5908_v5 = vadd.f32 %v11604_v54, %v5888_v8 }
 0xa0e   :  { %v5943_v33 = vmul.f32 1.442695, %v5908_v5  ;;  %v8382_v53 = vpop.eup %8381  ;;  %vm5924_vm10 = vcmp.gt.f32.partialorder %v5908_v5, 0.0 }
 0xa0f   :  { %v7572_v2 = vadd.f32 -1.0, %v8382_v53 }
 0xa10   :  { %8383 = vpow2.f32 %v5943_v33 }
 0xa11   :  { %v5855_v24 = vpop.f32.mrf.mxu3  ;;  %v5987_v19 = vsel %vm5923_vm4, %v5907_v12, %v7572_v2  ;;  %v5251_v2 = vadd.f32 %v11527_v28, %v5202_v51  ;;  %vm6983_vm4 = vcmask 64512  }
 0xa12   :  { %v5889_v32 = vmul.f32 %v5855_v24, %v11394_v20 }
 0xa13   :  { %v5300_v43 = vadd.f32 %v11531_v50, %v5251_v2  ;;  %v5207_v50 = vadd.f32 %v11548_v29, %v11546_v58 }
 0xa14   :  { %v5909_v47 = vadd.f32 %v11604_v54, %v5889_v32 }
 0xa16   :  { %v8384_v16 = vpop.eup %8383  ;;  %v5945_v45 = vmul.f32 1.442695, %v5909_v47  ;;  %vm5925_vm11 = vcmp.gt.f32.partialorder %v5909_v47, 0.0 }
 0xa17   :  { %v7573_v63 = vadd.f32 -1.0, %v8384_v16 }
 0xa18   :  { %8385 = vpow2.f32 %v5945_v45 }
 0xa19   :  { %v5988_v38 = vsel %vm5924_vm10, %v5908_v5, %v7573_v63  ;;  %v5857_v57 = vpop.f32.mrf.mxu3 }
 0xa1a   :  { %v5890_v25 = vmul.f32 %v5857_v57, %v5290_v44  ;;  %v6002_v48 = vpack.c.bf16 %v5988_v38, %v5987_v19 }
 0xa1c   :  { %v5910_v20 = vadd.f32 %v11604_v54, %v5890_v25  ;;  %7603 = vmatmul.msk.bf16.gmra.mxu1 %vm254_vm1, %v6002_v48 }
 0xa1e   :  { %v5947_v49 = vmul.f32 1.442695, %v5910_v20  ;;  %v8386_v10 = vpop.eup %8385  ;;  %vm5926_vm12 = vcmp.gt.f32.partialorder %v5910_v20, 0.0 }
 0xa1f   :  { %v7574_v12 = vadd.f32 -1.0, %v8386_v10 }
 0xa20   :  { %8387 = vpow2.f32 %v5947_v49 }
 0xa21   :  { %v5860_v0 = vpop.f32.mrf.mxu3  ;;  %v5989_v37 = vsel %vm5925_vm11, %v5909_v47, %v7574_v12 }
 0xa22   :  { %v5891_v4 = vmul.f32 %v5860_v0, %v11494_v23  ;;  %v5256_v0 = vadd.f32 %v11550_v9, %v5207_v50 }
 0xa24   :  { %v5911_v52 = vadd.f32 %v11604_v54, %v5891_v4  ;;  %v5305_v61 = vadd.f32 %v11554_v17, %v5256_v0  ;;  %v5212_v17 = vadd.f32 %v11572_v22, %v11562_v40 }
 0xa26   :  { %v8388_v62 = vpop.eup %8387  ;;  %v5949_v36 = vmul.f32 1.442695, %v5911_v52  ;;  %vm5927_vm13 = vcmp.gt.f32.partialorder %v5911_v52, 0.0 }
 0xa27   :  { %v7575_v7 = vadd.f32 -1.0, %v8388_v62 }
 0xa28   :  { %8389 = vpow2.f32 %v5949_v36 }
 0xa29   :  { %v5990_v8 = vsel %vm5926_vm12, %v5910_v20, %v7575_v7  ;;  %v5862_v5 = vpop.f32.mrf.mxu3 }
 0xa2a   :  { %v5892_v33 = vmul.f32 %v5862_v5, %v5295_v21  ;;  %v6003_v24 = vpack.c.bf16 %v5990_v8, %v5989_v37  ;;  %v5261_v5 = vadd.f32 %v11568_v41, %v5212_v17  ;;  %v5217_v41 = vadd.f32 %v11585_v11, %v11576_v55 }
 0xa2c   :  { %v5912_v23 = vadd.f32 %v11604_v54, %v5892_v33  ;;  %7604 = vmatmul.msk.bf16.gmra.mxu1 %vm254_vm1, %v6003_v24  ;;  %v5310_v24 = vadd.f32 %v11564_v59, %v5261_v5  ;;  %v5313_v59 = vadd.f32 %v11570_v46, %v11580_v56 }
 0xa2e   :  { %v5951_v60 = vmul.f32 1.442695, %v5912_v23  ;;  %v8390_v30 = vpop.eup %8389  ;;  %vm5928_vm14 = vcmp.gt.f32.partialorder %v5912_v23, 0.0 }
 0xa2f   :  { %v7576_v32 = vadd.f32 -1.0, %v8390_v30 }
 0xa30   :  { %8391 = vpow2.f32 %v5951_v60 }
 0xa31   :  { %v5865_v42 = vpop.f32.mrf.mxu3  ;;  %v5991_v44 = vsel %vm5927_vm13, %v5911_v52, %v7576_v32 }
 0xa32   :  { %v5893_v53 = vmul.f32 %v5865_v42, %v11516_v3 }
 0xa34   :  { %v5913_v26 = vadd.f32 %v11604_v54, %v5893_v53 }
 0xa36   :  { %v8392_v47 = vpop.eup %8391  ;;  %v5953_v63 = vmul.f32 1.442695, %v5913_v26  ;;  %vm5929_vm15 = vcmp.gt.f32.partialorder %v5913_v26, 0.0 }
 0xa37   :  { %v7577_v16 = vadd.f32 -1.0, %v8392_v47  ;;  %v5266_v47 = vadd.f32 %v11583_v14, %v5217_v41  ;;  %v7752_v14 = vld [vmem:[%s12088_s15] sm:$0xff] }
 0xa38   :  { %8393 = vpow2.f32 %v5953_v63  ;;  %6161 = vmatpush.bf16.msrb.mxu2 %v7752_v14 }
 0xa39   :  { %v5992_v45 = vsel %vm5928_vm14, %v5912_v23, %v7577_v16  ;;  %v5867_v19 = vpop.f32.mrf.mxu3 }
 0xa3a   :  { %v5894_v38 = vmul.f32 %v5867_v19, %v5300_v43  ;;  %v6004_v57 = vpack.c.bf16 %v5992_v45, %v5991_v44  ;;  %v5315_v45 = vadd.f32 %v11578_v6, %v5266_v47 }
 0xa3c   :  { %v5914_v3 = vadd.f32 %v11604_v54, %v5894_v38  ;;  %7605 = vmatmul.msk.bf16.gmra.mxu1 %vm254_vm1, %v6004_v57 }
 0xa3e   :  { %v5955_v13 = vmul.f32 1.442695, %v5914_v3  ;;  %v8394_v28 = vpop.eup %8393  ;;  %vm5930_vm5 = vcmp.gt.f32.partialorder %v5914_v3, 0.0 }
 0xa3f   :  { %v7578_v20 = vadd.f32 -1.0, %v8394_v28 }
 0xa40   :  { %8395 = vpow2.f32 %v5955_v13 }
 0xa41   :  { %v5870_v39 = vpop.f32.mrf.mxu3  ;;  %v5993_v52 = vsel %vm5929_vm15, %v5913_v26, %v7578_v20 }
 0xa42   :  { %v5895_v25 = vmul.f32 %v5870_v39, %v11535_v27 }
 0xa44   :  { %v5915_v48 = vadd.f32 %v11604_v54, %v5895_v25 }
 0xa46   :  { %v8396_v49 = vpop.eup %8395  ;;  %v5957_v4 = vmul.f32 1.442695, %v5915_v48  ;;  %vm5931_vm6 = vcmp.gt.f32.partialorder %v5915_v48, 0.0 }
 0xa47   :  { %v7579_v10 = vadd.f32 -1.0, %v8396_v49 }
 0xa48   :  { %8397 = vpow2.f32 %v5957_v4 }
 0xa49   :  { %v5994_v12 = vsel %vm5930_vm5, %v5914_v3, %v7579_v10  ;;  %v5872_v62 = vpop.f32.mrf.mxu3 }
 0xa4a   :  { %v5896_v34 = vmul.f32 %v5872_v62, %v5305_v61  ;;  %v6005_v7 = vpack.c.bf16 %v5994_v12, %v5993_v52 }
 0xa4c   :  { %v5916_v27 = vadd.f32 %v11604_v54, %v5896_v34  ;;  %7606 = vmatmul.msk.bf16.gmra.mxu1 %vm254_vm1, %v6005_v7 }
 0xa4e   :  { %v5959_v58 = vmul.f32 1.442695, %v5916_v27  ;;  %v8398_v9 = vpop.eup %8397  ;;  %vm5932_vm7 = vcmp.gt.f32.partialorder %v5916_v27, 0.0 }
 0xa4f   :  { %v7580_v37 = vadd.f32 -1.0, %v8398_v9 }
 0xa50   :  { %8399 = vpow2.f32 %v5959_v58 }
 0xa51   :  { %v5875_v29 = vpop.f32.mrf.mxu3  ;;  %v5995_v60 = vsel %vm5931_vm6, %v5915_v48, %v7580_v37 }
 0xa52   :  { %v5897_v21 = vmul.f32 %v5875_v29, %v11558_v31 }
 0xa54   :  { %v5917_v36 = vadd.f32 %v11604_v54, %v5897_v21 }
 0xa56   :  { %v8400_v8 = vpop.eup %8399  ;;  %v5961_v23 = vmul.f32 1.442695, %v5917_v36  ;;  %vm5933_vm8 = vcmp.gt.f32.partialorder %v5917_v36, 0.0 }
 0xa57   :  { %v7581_v33 = vadd.f32 -1.0, %v8400_v8 }
 0xa58   :  { %8401 = vpow2.f32 %v5961_v23 }
 0xa59   :  { %v5996_v42 = vsel %vm5932_vm7, %v5916_v27, %v7581_v33  ;;  %v5877_v30 = vpop.f32.mrf.mxu3 }
 0xa5a   :  { %v5898_v51 = vmul.f32 %v5877_v30, %v5310_v24  ;;  %v6006_v53 = vpack.c.bf16 %v5996_v42, %v5995_v60 }
 0xa5c   :  { %v5918_v31 = vadd.f32 %v11604_v54, %v5898_v51  ;;  %7607 = vmatmul.msk.bf16.gmra.mxu1 %vm254_vm1, %v6006_v53 }
 0xa5e   :  { %v5963_v40 = vmul.f32 1.442695, %v5918_v31  ;;  %v8402_v26 = vpop.eup %8401  ;;  %vm5934_vm9 = vcmp.gt.f32.partialorder %v5918_v31, 0.0 }
 0xa5f   :  { %v7582_v16 = vadd.f32 -1.0, %v8402_v26 }
 0xa60   :  { %8403 = vpow2.f32 %v5963_v40 }
 0xa61   :  { %v5880_v22 = vpop.f32.mrf.mxu3  ;;  %v5997_v55 = vsel %vm5933_vm8, %v5917_v36, %v7582_v16 }
 0xa62   :  { %v5899_v32 = vmul.f32 %v5880_v22, %v5313_v59  ;;  %v6203_v59 = vld [vmem:[%s12470_s0] sm:$0x1] }
 0xa64   :  { %v5919_v2 = vadd.f32 %v11604_v54, %v5899_v32 }
 0xa66   :  { %v8404_v43 = vpop.eup %8403  ;;  %v5965_v44 = vmul.f32 1.442695, %v5919_v2  ;;  %vm5935_vm2 = vcmp.gt.f32.partialorder %v5919_v2, 0.0 }
 0xa67   :  { %v7583_v63 = vadd.f32 -1.0, %v8404_v43 }
 0xa68   :  { %8405 = vpow2.f32 %v5965_v44 }
 0xa69   :  { %v5998_v11 = vsel %vm5934_vm9, %v5918_v31, %v7583_v63  ;;  %v5882_v19 = vpop.f32.mrf.mxu3 }
 0xa6a   :  { %v5900_v38 = vmul.f32 %v5882_v19, %v5315_v45  ;;  %v6007_v46 = vpack.c.bf16 %v5998_v11, %v5997_v55 }
 0xa6c   :  { %v5920_v56 = vadd.f32 %v11604_v54, %v5900_v38  ;;  %7608 = vmatmul.msk.bf16.gmra.mxu1 %vm254_vm1, %v6007_v46 }
 0xa6e   :  { %v5967_v57 = vmul.f32 1.442695, %v5920_v56  ;;  %v8406_v3 = vpop.eup %8405  ;;  %vm5936_vm3 = vcmp.gt.f32.partialorder %v5920_v56, 0.0 }
 0xa6f   :  { %v7584_v13 = vadd.f32 -1.0, %v8406_v3 }
 0xa70   :  { %8407 = vpow2.f32 %v5967_v57 }
 0xa71   :  { %v5999_v28 = vsel %vm5935_vm2, %v5919_v2, %v7584_v13 }
 0xa76   :  { %v8408_v6 = vpop.eup %8407 }
 0xa77   :  { %v7585_v39 = vadd.f32 -1.0, %v8408_v6 }
 0xa79   :  { %v6000_v50 = vsel %vm5936_vm3, %v5920_v56, %v7585_v39 }
 0xa7a   :  { %v6008_v25 = vpack.c.bf16 %v6000_v50, %v5999_v28 }
 0xa7c   :  { %7609 = vmatmul.msk.bf16.gmra.mxu1 %vm254_vm1, %v6008_v25  ;;  %vm6220_vm1 = vcmask 1040384  }
 0xa83   :  { %v6074_v54 = vpop.f32.mrf.mxu1 }
 0xa8b   :  { %v6076_v48 = vpop.f32.mrf.mxu1 }
 0xa8c   :  { %v6114_v20 = vpack.c.bf16 %v6076_v48, %v6074_v54 }
 0xa8e   :  { %7614 = vmatmul.msk.bf16.vlgmr.msrb.gmra.mxu2 %vm140_vm0, %v6114_v20  ;;  %v6131_v41 = vsel %vm140_vm0, %v6114_v20, 0 }
 0xa99   :  { %v6079_v49 = vpop.f32.mrf.mxu1 }
 0xaa1   :  { %v6081_v0 = vpop.f32.mrf.mxu1 }
 0xaa2   :  { %v6115_v10 = vpack.c.bf16 %v6081_v0, %v6079_v49 }
 0xaa4   :  { %7615 = vmatmul.msk.bf16.gmra.mxu2 %vm140_vm0, %v6115_v10  ;;  %v6134_v40 = vsel %vm140_vm0, %v6115_v10, 0 }
 0xaa9   :  { %v6084_v61 = vpop.f32.mrf.mxu1 }
 0xab1   :  { %v6086_v4 = vpop.f32.mrf.mxu1 }
 0xab2   :  { %v6116_v52 = vpack.c.bf16 %v6086_v4, %v6084_v61 }
 0xab4   :  { %7616 = vmatmul.msk.bf16.gmra.mxu2 %vm140_vm0, %v6116_v52  ;;  %v6137_v31 = vsel %vm140_vm0, %v6116_v52, 0 }
 0xab9   :  { %v6089_v12 = vpop.f32.mrf.mxu1 }
 0xac1   :  { %v6091_v62 = vpop.f32.mrf.mxu1 }
 0xac2   :  { %v6117_v34 = vpack.c.bf16 %v6091_v62, %v6089_v12 }
 0xac4   :  { %7617 = vmatmul.msk.bf16.gmra.mxu2 %vm140_vm0, %v6117_v34  ;;  %v6140_v53 = vsel %vm140_vm0, %v6117_v34, 0 }
 0xac9   :  { %v6094_v7 = vpop.f32.mrf.mxu1 }
 0xad1   :  { %v6096_v27 = vpop.f32.mrf.mxu1 }
 0xad2   :  { %v6118_v58 = vpack.c.bf16 %v6096_v27, %v6094_v7 }
 0xad4   :  { %7618 = vmatmul.msk.bf16.gmra.mxu2 %vm140_vm0, %v6118_v58  ;;  %v6143_v51 = vsel %vm140_vm0, %v6118_v58, 0 }
 0xad9   :  { %v6099_v29 = vpop.f32.mrf.mxu1 }
 0xae1   :  { %v6101_v9 = vpop.f32.mrf.mxu1 }
 0xae2   :  { %v6119_v17 = vpack.c.bf16 %v6101_v9, %v6099_v29 }
 0xae4   :  { %7619 = vmatmul.msk.bf16.gmra.mxu2 %vm140_vm0, %v6119_v17  ;;  %v6146_v42 = vsel %vm140_vm0, %v6119_v17, 0 }
 0xae9   :  { %v6104_v21 = vpop.f32.mrf.mxu1 }
 0xaf1   :  { %v6106_v36 = vpop.f32.mrf.mxu1 }
 0xaf2   :  { %v6120_v37 = vpack.c.bf16 %v6106_v36, %v6104_v21  ;;  %v7760_v21 = vld [vmem:[%s12090_s18 + $0x38] sm:$0xff] }
 0xaf3   :  { %6667 = vmatpush.bf16.msra.mxu0 %v7760_v21 }
 0xaf4   :  { %7620 = vmatmul.msk.bf16.gmra.mxu2 %vm140_vm0, %v6120_v37  ;;  %v6149_v23 = vsel %vm140_vm0, %v6120_v37, 0 }
 0xaf9   :  { %v6109_v8 = vpop.f32.mrf.mxu1 }
 0xb01   :  { %v6111_v5 = vpop.f32.mrf.mxu1 }
 0xb02   :  { %v6121_v33 = vpack.c.bf16 %v6111_v5, %v6109_v8 }
 0xb04   :  { %7621 = vmatmul.msk.bf16.gmra.mxu2 %vm140_vm0, %v6121_v33  ;;  %6554 = vmatpush.bf16.msra.mxu3 %v6121_v33  ;;  %v6152_v24 = vsel %vm140_vm0, %v6121_v33, 0 }
 0xb05   :  { %6207 = vmatpush.bf16.xpose.msra.mxu1 %v6152_v24 }
 0xb08   :  { %6555 = vmatpush.bf16.msra.mxu3 %v6120_v37 }
 0xb0c   :  { %6556 = vmatpush.bf16.msra.mxu3 %v6119_v17 }
 0xb0d   :  { %6208 = vmatpush.bf16.xpose.msra.mxu1 %v6149_v23 }
 0xb10   :  { %6557 = vmatpush.bf16.msra.mxu3 %v6118_v58 }
 0xb11   :  { %v6163_v60 = vpop.f32.mrf.mxu2 }
 0xb12   :  { %6275 = vperm.xlu2 %8018, %v6163_v60  }
 0xb14   :  { %6558 = vmatpush.bf16.msra.mxu3 %v6117_v34 }
 0xb15   :  { %6209 = vmatpush.bf16.xpose.msra.mxu1 %v6146_v42  ;;  %v7759_v42 = vld [vmem:[%s12090_s18 + $0x30] sm:$0xff] }
 0xb16   :  { %6668 = vmatpush.bf16.msra.mxu0 %v7759_v42 }
 0xb18   :  { %6559 = vmatpush.bf16.msra.mxu3 %v6116_v52 }
 0xb19   :  { %v6165_v30 = vpop.f32.mrf.mxu2 }
 0xb1a   :  { %6280 = vperm.xlu2 %8018, %v6165_v30  }
 0xb1c   :  { %6560 = vmatpush.bf16.msra.mxu3 %v6115_v10 }
 0xb1d   :  { %6210 = vmatpush.bf16.xpose.msra.mxu1 %v6143_v51 }
 0xb20   :  { %6561 = vmatpush.bf16.msra.mxu3 %v6114_v20 }
 0xb25   :  { %6211 = vmatpush.bf16.xpose.msra.mxu1 %v6140_v53 }
 0xb27   :  { %v6168_v47 = vpop.f32.mrf.mxu2 }
 0xb2d   :  { %6212 = vmatpush.bf16.xpose.msra.mxu1 %v6137_v31 }
 0xb2f   :  { %v6170_v2 = vpop.f32.mrf.mxu2 }
 0xb35   :  { %6213 = vmatpush.bf16.xpose.msra.mxu1 %v6134_v40 }
 0xb37   :  { %v6173_v16 = vpop.f32.mrf.mxu2 }
 0xb3d   :  { %6214 = vmatpush.bf16.xpose.msra.mxu1 %v6131_v41 }
 0xb3f   :  { %v6175_v43 = vpop.f32.mrf.mxu2 }
 0xb44   :  { %7622 = vmatmul.msk.bf16.vlgmr.msra.gmra.mxu1 %vm140_vm0, %v6203_v59 }
 0xb47   :  { %v6178_v63 = vpop.f32.mrf.mxu2 }
 0xb4f   :  { %v6180_v44 = vpop.f32.mrf.mxu2 }
 0xb57   :  { %v11703_v45 = vpop.f32.mrf.mxu2 }
 0xb5f   :  { %v6185_v55 = vpop.f32.mrf.mxu2 }
 0xb67   :  { %v11705_v11 = vpop.f32.mrf.mxu2 }
 0xb6f   :  { %v6190_v50 = vpop.f32.mrf.mxu2 }
 0xb77   :  { %v6193_v48 = vpop.f32.mrf.mxu2 }
 0xb7f   :  { %v6195_v52 = vpop.f32.mrf.mxu2 }
 0xb87   :  { %v6198_v58 = vpop.f32.mrf.mxu2 }
 0xb8f   :  { %v6200_v8 = vpop.f32.mrf.mxu2 }
 0xbc1   :  { %v11700_v22 = vpop.f32.mrf.mxu1 }
 0xbc2   :  { %v6221_v26 = vsel %vm6220_vm1, %v11700_v22, -inf }
 0xbc3   :  { %6222 = vmax.xlane.f32.xlu1 %v6221_v26 }
 0xbc9   :  { %v6218_v32 = vpop.f32.mrf.mxu1 }
 0xbca   :  { %v7758_v32 = vld [vmem:[%s12090_s18 + $0x28] sm:$0xff] }
 0xbcb   :  { %6669 = vmatpush.bf16.msra.mxu0 %v7758_v32 }
 0xc36   :  { %v6223_v19 = vpop.xlane.xlu1 %6222 }
 0xc37   :  { %v11707_v38 = vperm.slane %v6223_v19, 0 }
 0xc39   :  { %v6229_v46 = vadd.f32 %v11707_v38, %v6173_v16  ;;  %v6226_v56 = vadd.f32 %v11707_v38, %v6165_v30  ;;  %v6225_v14 = vadd.f32 %v11707_v38, %v6163_v60  ;;  %v6227_v25 = vadd.f32 %v11707_v38, %v6168_v47 }
 0xc3a   :  { %v6228_v54 = vadd.f32 %v11707_v38, %v6170_v2  ;;  %v6236_v10 = vadd.f32 %v11707_v38, %v6190_v50  ;;  %v6237_v62 = vadd.f32 %v11707_v38, %v6193_v48  ;;  %v6230_v34 = vadd.f32 %v11707_v38, %v6175_v43 }
 0xc3b   :  { %v6245_v57 = vmul.f32 0.2, %v6229_v46  ;;  %v6242_v3 = vmul.f32 0.2, %v6226_v56  ;;  %v6241_v13 = vmul.f32 0.2, %v6225_v14  ;;  %v6231_v17 = vadd.f32 %v11707_v38, %v6178_v63 }
 0xc3c   :  { %v6243_v20 = vmul.f32 0.2, %v6227_v25  ;;  %v6244_v49 = vmul.f32 0.2, %v6228_v54  ;;  %v6252_v4 = vmul.f32 0.2, %v6236_v10  ;;  %v6232_v37 = vadd.f32 %v11707_v38, %v6180_v44 }
 0xc3d   :  { %v6261_v6 = vmax.f32 %v6229_v46, %v6245_v57  ;;  %v6258_v39 = vmax.f32 %v6226_v56, %v6242_v3  ;;  %v6257_v28 = vmax.f32 %v6225_v14, %v6241_v13  ;;  %v6253_v7 = vmul.f32 0.2, %v6237_v62  ;;  %v7755_v57 = vld [vmem:[%s12090_s18 + $0x10] sm:$0xff]  ;;  %v7754_v13 = vld [vmem:[%s12090_s18 + $0x8] sm:$0xff] }
 0xc3e   :  { %v6259_v0 = vmax.f32 %v6227_v25, %v6243_v20  ;;  %v6260_v61 = vmax.f32 %v6228_v54, %v6244_v49  ;;  %v6268_v12 = vmax.f32 %v6236_v10, %v6252_v4  ;;  %v6246_v27 = vmul.f32 0.2, %v6230_v34 }
 0xc3f   :  { %6424 = vperm.xlu1 %8020, %v6261_v6   ;;  %6409 = vperm.xlu2 %8018, %v6258_v39   ;;  %v6269_v29 = vmax.f32 %v6237_v62, %v6253_v7  ;;  %v6247_v36 = vmul.f32 0.2, %v6231_v17  ;;  %v6248_v33 = vmul.f32 0.2, %v6232_v37  ;;  %v6233_v23 = vadd.f32 %v11707_v38, %v11703_v45 }
 0xc40   :  { %6404 = vperm.xlu0 %8019, %v6257_v28   ;;  %v6262_v9 = vmax.f32 %v6230_v34, %v6246_v27  ;;  %v6234_v60 = vadd.f32 %v11707_v38, %v6185_v55  ;;  %v6235_v40 = vadd.f32 %v11707_v38, %v11705_v11  ;;  %v6238_v26 = vadd.f32 %v11707_v38, %v6195_v52  ;;  %v7753_v28 = vld [vmem:[%s12090_s18] sm:$0xff] }
 0xc41   :  { %v6263_v5 = vmax.f32 %v6231_v17, %v6247_v36  ;;  %v6264_v24 = vmax.f32 %v6232_v37, %v6248_v33  ;;  %v6249_v30 = vmul.f32 0.2, %v6233_v23  ;;  %v11742_v14 = vperm.slane %v11700_v22, 0  ;;  %v12471_v17 = vld [vmem:[#allocation47_spill] sm:$0xff]  ;;  %v12472_v36 = vld [vmem:[#allocation46_spill] sm:$0xff] }
 0xc42   :  { %v6250_v51 = vmul.f32 0.2, %v6234_v60  ;;  %v6251_v41 = vmul.f32 0.2, %v6235_v40 }
 0xc43   :  { %v6265_v53 = vmax.f32 %v6233_v23, %v6249_v30 }
 0xc44   :  { %v6266_v31 = vmax.f32 %v6234_v60, %v6250_v51  ;;  %v6267_v59 = vmax.f32 %v6235_v40, %v6251_v41 }
 0xc47   :  { %6320 = vperm.xlu1 %8020, %v6185_v55   ;;  %6285 = vperm.xlu2 %8018, %v6168_v47   ;;  %v6254_v47 = vmul.f32 0.2, %v6238_v26 }
 0xc48   :  { %6290 = vperm.xlu0 %8019, %v6170_v2   ;;  %v6276_v2 = vpop.permute.xlu2 %6275 }
 0xc49   :  { %v6354_v22 = vadd.f32 %v11742_v14, %v6276_v2  ;;  %v12473_v2 = vld [vmem:[#allocation49_spill] sm:$0xff] }
 0xc4b   :  { %v6370_v54 = vmul.f32 0.2, %v6354_v22 }
 0xc4d   :  { %v6386_v20 = vmax.f32 %v6354_v22, %v6370_v54 }
 0xc4f   :  { %6325 = vperm.xlu1 %8020, %v11705_v11   ;;  %6414 = vperm.xlu2 %8018, %v6259_v0  }
 0xc50   :  { %6419 = vperm.xlu0 %8019, %v6260_v61   ;;  %v6281_v19 = vpop.permute.xlu2 %6280 }
 0xc51   :  { %v6355_v3 = vadd.f32 %v11742_v14, %v6281_v19 }
 0xc53   :  { %v6371_v6 = vmul.f32 0.2, %v6355_v3 }
 0xc57   :  { %6459 = vperm.xlu1 %8020, %v6268_v12   ;;  %6295 = vperm.xlu2 %8018, %v6173_v16   ;;  %v6270_v16 = vmax.f32 %v6238_v26, %v6254_v47 }
 0xc58   :  { %6300 = vperm.xlu0 %8019, %v6175_v43   ;;  %v6239_v43 = vadd.f32 %v11707_v38, %v6198_v58 }
 0xc5f   :  { %6464 = vperm.xlu1 %8020, %v6269_v29   ;;  %6429 = vperm.xlu2 %8018, %v6262_v9  }
 0xc60   :  { %6305 = vperm.xlu0 %8019, %v6178_v63   ;;  %v6240_v63 = vadd.f32 %v11707_v38, %v6200_v8  ;;  %v7756_v38 = vld [vmem:[%s12090_s18 + $0x18] sm:$0xff] }
 0xc62   :  { %v6256_v55 = vmul.f32 0.2, %v6240_v63 }
 0xc64   :  { %v6272_v46 = vmax.f32 %v6240_v63, %v6256_v55 }
 0xc67   :  { %6350 = vperm.xlu1 %8020, %v6200_v8   ;;  %6310 = vperm.xlu2 %8018, %v6180_v44   ;;  %v7757_v44 = vld [vmem:[%s12090_s18 + $0x20] sm:$0xff] }
 0xc68   :  { %6434 = vperm.xlu0 %8019, %v6263_v5   ;;  %6670 = vmatpush.bf16.msra.mxu0 %v7757_v44 }
 0xc6c   :  { %6671 = vmatpush.bf16.msra.mxu0 %v7756_v38 }
 0xc6f   :  { %6439 = vperm.xlu2 %8018, %v6264_v24  }
 0xc70   :  { %6315 = vperm.xlu0 %8019, %v11703_v45   ;;  %v6255_v45 = vmul.f32 0.2, %v6239_v43  ;;  %6672 = vmatpush.bf16.msra.mxu0 %v7755_v57 }
 0xc72   :  { %v6271_v11 = vmax.f32 %v6239_v43, %v6255_v45  ;;  %v12474_v43 = vld [vmem:[#allocation48_spill] sm:$0xff] }
 0xc74   :  { %6673 = vmatpush.bf16.msra.mxu0 %v7754_v13 }
 0xc77   :  { %6444 = vperm.xlu2 %8018, %v6265_v53  }
 0xc78   :  { %6449 = vperm.xlu0 %8019, %v6266_v31   ;;  %6674 = vmatpush.bf16.msra.mxu0 %v7753_v28 }
 0xc7f   :  { %6330 = vperm.xlu2 %8018, %v6190_v50   ;;  %v6387_v50 = vmax.f32 %v6355_v3, %v6371_v6 }
 0xc80   :  { %6454 = vperm.xlu0 %8019, %v6267_v59  }
 0xc87   :  { %6335 = vperm.xlu2 %8018, %v6193_v48  }
 0xc88   :  { %6340 = vperm.xlu0 %8019, %v6195_v52  }
 0xc8f   :  { %6469 = vperm.xlu2 %8018, %v6270_v16  }
 0xc90   :  { %6345 = vperm.xlu0 %8019, %v6198_v58  }
 0xc97   :  { %6474 = vperm.xlu2 %8018, %v6271_v11  }
 0xc98   :  { %6479 = vperm.xlu0 %8019, %v6272_v46  }
 0xc99   :  { %v6410_v56 = vpop.permute.xlu2 %6409 }
 0xc9a   :  { %v6483_v25 = vsub.f32 %v6387_v50, %v6410_v56 }
 0xc9c   :  { %v6500_v48 = vmul.f32 1.442695, %v6483_v25 }
 0xc9e   :  { %8409 = vpow2.f32 %v6500_v48  ;;  %v12475_v48 = vld [vmem:[#allocation11_spill] sm:$0xff] }
 0xca1   :  { %v6286_v39 = vpop.permute.xlu2 %6285 }
 0xca2   :  { %v6356_v10 = vadd.f32 %v11742_v14, %v6286_v39 }
 0xca4   :  { %v6372_v52 = vmul.f32 0.2, %v6356_v10  ;;  %v8410_v62 = vpop.eup %8409 }
 0xca5   :  { %v6531_v21 = vmul.f32 %v8410_v62, %v12471_v17 }
 0xca6   :  { %v6388_v34 = vmax.f32 %v6356_v10, %v6372_v52  ;;  %v12476_v10 = vld [vmem:[#allocation18_spill] sm:$0xff] }
 0xca9   :  { %v6415_v49 = vpop.permute.xlu2 %6414 }
 0xcaa   :  { %v6484_v29 = vsub.f32 %v6388_v34, %v6415_v49 }
 0xcac   :  { %v6502_v33 = vmul.f32 1.442695, %v6484_v29 }
 0xcb1   :  { %v6296_v27 = vpop.permute.xlu2 %6295  ;;  %v6425_v41 = vpop.permute.xlu1 %6424 }
 0xcb2   :  { %v6405_v0 = vpop.permute.xlu0 %6404  ;;  %v6358_v8 = vadd.f32 %v11742_v14, %v6296_v27 }
 0xcb3   :  { %v6482_v61 = vsub.f32 %v6386_v20, %v6405_v0 }
 0xcb4   :  { %v6374_v42 = vmul.f32 0.2, %v6358_v8 }
 0xcb5   :  { %v6498_v4 = vmul.f32 1.442695, %v6482_v61 }
 0xcb6   :  { %v6390_v53 = vmax.f32 %v6358_v8, %v6374_v42  ;;  %v12478_v42 = vld [vmem:[#allocation4_spill] sm:$0xff] }
 0xcb7   :  { %8411 = vpow2.f32 %v6498_v4 }
 0xcb8   :  { %8413 = vpow2.f32 %v6502_v33  ;;  %v6486_v26 = vsub.f32 %v6390_v53, %v6425_v41 }
 0xcb9   :  { %v6430_v51 = vpop.permute.xlu2 %6429  ;;  %v6321_v0 = vpop.permute.xlu1 %6320 }
 0xcba   :  { %v6291_v12 = vpop.permute.xlu0 %6290  ;;  %v6506_v45 = vmul.f32 1.442695, %v6486_v26 }
 0xcbb   :  { %v6357_v7 = vadd.f32 %v11742_v14, %v6291_v12  ;;  %v6363_v12 = vadd.f32 %v11742_v14, %v6321_v0 }
 0xcbd   :  { %v8412_v58 = vpop.eup %8411  ;;  %v6373_v9 = vmul.f32 0.2, %v6357_v7 }
 0xcbe   :  { %v6530_v37 = vmul.f32 %v8412_v58, %v12472_v36  ;;  %v8414_v40 = vpop.eup %8413  ;;  %v6379_v58 = vmul.f32 0.2, %v6363_v12 }
 0xcbf   :  { %v6389_v24 = vmax.f32 %v6357_v7, %v6373_v9  ;;  %v6532_v16 = vmul.f32 %v8414_v40, %v12473_v2 }
 0xcc0   :  { %v6546_v5 = vpack.c.bf16 %v6531_v21, %v6530_v37  ;;  %v6395_v21 = vmax.f32 %v6363_v12, %v6379_v58 }
 0xcc1   :  { %v6311_v55 = vpop.permute.xlu2 %6310 }
 0xcc2   :  { %6562 = vmatmul.bf16.vlgmr.msra.gmra.mxu3 %v6546_v5  ;;  %6675 = vmatmul.bf16.vlgmr.msra.gmra.mxu0 %v6546_v5  ;;  %v6420_v23 = vpop.permute.xlu0 %6419  ;;  %v6361_v56 = vadd.f32 %v11742_v14, %v6311_v55  ;;  %v12477_v5 = vld [vmem:[#allocation14_spill] sm:$0xff]  ;;  %v12479_v55 = vld [vmem:[#allocation16_spill] sm:$0xff] }
 0xcc3   :  { %v6485_v60 = vsub.f32 %v6389_v24, %v6420_v23  ;;  %v6326_v23 = vpop.permute.xlu1 %6325 }
 0xcc4   :  { %v6377_v13 = vmul.f32 0.2, %v6361_v56 }
 0xcc5   :  { %v6504_v30 = vmul.f32 1.442695, %v6485_v60 }
 0xcc6   :  { %v6393_v25 = vmax.f32 %v6361_v56, %v6377_v13  ;;  %v12480_v56 = vld [vmem:[#allocation19_spill] sm:$0xff] }
 0xcc7   :  { %8415 = vpow2.f32 %v6504_v30 }
 0xcc8   :  { %8417 = vpow2.f32 %v6506_v45 }
 0xcc9   :  { %v6440_v22 = vpop.permute.xlu2 %6439 }
 0xcca   :  { %v6301_v31 = vpop.permute.xlu0 %6300  ;;  %v6489_v49 = vsub.f32 %v6393_v25, %v6440_v22 }
 0xccb   :  { %v6359_v59 = vadd.f32 %v11742_v14, %v6301_v31  ;;  %v6364_v31 = vadd.f32 %v11742_v14, %v6326_v23 }
 0xccc   :  { %v6512_v62 = vmul.f32 1.442695, %v6489_v49 }
 0xccd   :  { %v8416_v32 = vpop.eup %8415  ;;  %v6375_v47 = vmul.f32 0.2, %v6359_v59  ;;  %v6380_v26 = vmul.f32 0.2, %v6364_v31 }
 0xcce   :  { %v6533_v63 = vmul.f32 %v8416_v32, %v12474_v43  ;;  %v8418_v39 = vpop.eup %8417  ;;  %v6460_v43 = vpop.permute.xlu1 %6459 }
 0xccf   :  { %v6391_v44 = vmax.f32 %v6359_v59, %v6375_v47  ;;  %v6534_v61 = vmul.f32 %v8418_v39, %v12476_v10  ;;  %v12481_v10 = vld [vmem:[#allocation2_spill] sm:$0xff] }
 0xcd0   :  { %v6547_v11 = vpack.c.bf16 %v6533_v63, %v6532_v16  ;;  %v6396_v16 = vmax.f32 %v6364_v31, %v6380_v26 }
 0xcd1   :  { %v6487_v19 = vsub.f32 %v6391_v44, %v6430_v51  ;;  %v6445_v27 = vpop.permute.xlu2 %6444 }
 0xcd2   :  { %6567 = vmatmul.bf16.gmra.mxu3 %v6547_v11  ;;  %6680 = vmatmul.bf16.gmra.mxu0 %v6547_v11  ;;  %v6306_v46 = vpop.permute.xlu0 %6305 }
 0xcd3   :  { %v6508_v38 = vmul.f32 1.442695, %v6487_v19  ;;  %v6360_v57 = vadd.f32 %v11742_v14, %v6306_v46 }
 0xcd5   :  { %8419 = vpow2.f32 %v6508_v38  ;;  %v6376_v3 = vmul.f32 0.2, %v6360_v57 }
 0xcd7   :  { %v6392_v6 = vmax.f32 %v6360_v57, %v6376_v3 }
 0xcd9   :  { %v6331_v60 = vpop.permute.xlu2 %6330 }
 0xcda   :  { %v6435_v28 = vpop.permute.xlu0 %6434  ;;  %v6365_v40 = vadd.f32 %v11742_v14, %v6331_v60 }
 0xcdb   :  { %v8420_v50 = vpop.eup %8419  ;;  %v6488_v54 = vsub.f32 %v6392_v6, %v6435_v28  ;;  %v6465_v28 = vpop.permute.xlu1 %6464 }
 0xcdc   :  { %v6535_v20 = vmul.f32 %v8420_v50, %v12475_v48  ;;  %v6381_v32 = vmul.f32 0.2, %v6365_v40 }
 0xcdd   :  { %v6510_v4 = vmul.f32 1.442695, %v6488_v54 }
 0xcde   :  { %v6548_v52 = vpack.c.bf16 %v6535_v20, %v6534_v61  ;;  %v6397_v2 = vmax.f32 %v6365_v40, %v6381_v32 }
 0xcdf   :  { %8421 = vpow2.f32 %v6510_v4 }
 0xce0   :  { %8423 = vpow2.f32 %v6512_v62  ;;  %v6493_v19 = vsub.f32 %v6397_v2, %v6460_v43  ;;  %v12482_v62 = vld [vmem:[#allocation6_spill] sm:$0xff] }
 0xce1   :  { %v6336_v46 = vpop.permute.xlu2 %6335 }
 0xce2   :  { %6572 = vmatmul.bf16.gmra.mxu3 %v6548_v52  ;;  %6685 = vmatmul.bf16.gmra.mxu0 %v6548_v52  ;;  %v6316_v34 = vpop.permute.xlu0 %6315  ;;  %v6520_v6 = vmul.f32 1.442695, %v6493_v19  ;;  %v6366_v39 = vadd.f32 %v11742_v14, %v6336_v46 }
 0xce3   :  { %v6362_v7 = vadd.f32 %v11742_v14, %v6316_v34  ;;  %v6351_v52 = vpop.permute.xlu1 %6350 }
 0xce4   :  { %v6382_v50 = vmul.f32 0.2, %v6366_v39  ;;  %v6369_v58 = vadd.f32 %v11742_v14, %v6351_v52 }
 0xce5   :  { %v6378_v29 = vmul.f32 0.2, %v6362_v7  ;;  %v8422_v9 = vpop.eup %8421 }
 0xce6   :  { %v8424_v37 = vpop.eup %8423  ;;  %v6536_v33 = vmul.f32 %v8422_v9, %v12477_v5  ;;  %v6398_v48 = vmax.f32 %v6366_v39, %v6382_v50 }
 0xce7   :  { %v6394_v17 = vmax.f32 %v6362_v7, %v6378_v29  ;;  %v6537_v30 = vmul.f32 %v8424_v37, %v12478_v42 }
 0xce8   :  { %v6494_v4 = vsub.f32 %v6398_v48, %v6465_v28 }
 0xce9   :  { %v6490_v24 = vsub.f32 %v6394_v17, %v6445_v27  ;;  %v6549_v53 = vpack.c.bf16 %v6537_v30, %v6536_v33  ;;  %v6470_v20 = vpop.permute.xlu2 %6469  ;;  %v6385_v17 = vmul.f32 0.2, %v6369_v58 }
 0xcea   :  { %v6450_v36 = vpop.permute.xlu0 %6449  ;;  %v6522_v29 = vmul.f32 1.442695, %v6494_v4 }
 0xceb   :  { %v6491_v8 = vsub.f32 %v6395_v21, %v6450_v36  ;;  %v6514_v41 = vmul.f32 1.442695, %v6490_v24  ;;  %v6401_v5 = vmax.f32 %v6369_v58, %v6385_v17 }
 0xced   :  { %v6516_v51 = vmul.f32 1.442695, %v6491_v8 }
 0xcef   :  { %8425 = vpow2.f32 %v6516_v51 }
 0xcf0   :  { %8427 = vpow2.f32 %v6514_v41 }
 0xcf1   :  { %v6475_v23 = vpop.permute.xlu2 %6474 }
 0xcf2   :  { %6577 = vmatmul.bf16.gmra.mxu3 %v6549_v53  ;;  %6690 = vmatmul.bf16.gmra.mxu0 %v6549_v53  ;;  %v6455_v59 = vpop.permute.xlu0 %6454 }
 0xcf3   :  { %v6492_v44 = vsub.f32 %v6396_v16, %v6455_v59 }
 0xcf5   :  { %v8426_v47 = vpop.eup %8425  ;;  %v6518_v57 = vmul.f32 1.442695, %v6492_v44 }
 0xcf6   :  { %v8428_v63 = vpop.eup %8427  ;;  %v6539_v11 = vmul.f32 %v8426_v47, %v12479_v55 }
 0xcf7   :  { %v6538_v38 = vmul.f32 %v8428_v63, %v12480_v56  ;;  %8429 = vpow2.f32 %v6518_v57 }
 0xcf8   :  { %8431 = vpow2.f32 %v6520_v6 }
 0xcf9   :  { %v6550_v13 = vpack.c.bf16 %v6539_v11, %v6538_v38 }
 0xcfa   :  { %v6341_v45 = vpop.permute.xlu0 %6340 }
 0xcfb   :  { %v6367_v3 = vadd.f32 %v11742_v14, %v6341_v45 }
 0xcfd   :  { %v6383_v22 = vmul.f32 0.2, %v6367_v3  ;;  %v8430_v54 = vpop.eup %8429 }
 0xcfe   :  { %v8432_v49 = vpop.eup %8431  ;;  %v6540_v61 = vmul.f32 %v8430_v54, %v12481_v10 }
 0xcff   :  { %v6399_v25 = vmax.f32 %v6367_v3, %v6383_v22  ;;  %v6541_v34 = vmul.f32 %v8432_v49, %v12482_v62  ;;  %v6864_v62 = vld [vmem:[%s12092_s20] sm:$0xff] }
 0xd01   :  { %v6495_v0 = vsub.f32 %v6399_v25, %v6470_v20  ;;  %v6551_v27 = vpack.c.bf16 %v6541_v34, %v6540_v61 }
 0xd02   :  { %6582 = vmatmul.bf16.gmra.mxu3 %v6550_v13  ;;  %6695 = vmatmul.bf16.gmra.mxu0 %v6550_v13  ;;  %v6346_v12 = vpop.permute.xlu0 %6345 }
 0xd03   :  { %v6524_v7 = vmul.f32 1.442695, %v6495_v0  ;;  %v6368_v9 = vadd.f32 %v11742_v14, %v6346_v12  ;;  %v6865_v12 = vld [vmem:[%s12092_s20 + $0x8] sm:$0xff] }
 0xd04   :  { %6932 = vmatpush.msrb.mxu1 %v6865_v12 }
 0xd05   :  { %8433 = vpow2.f32 %v6524_v7  ;;  %v6384_v21 = vmul.f32 0.2, %v6368_v9 }
 0xd06   :  { %8435 = vpow2.f32 %v6522_v29  ;;  %6933 = vmatpush.msrb.mxu1 %v6864_v62 }
 0xd07   :  { %v6400_v8 = vmax.f32 %v6368_v9, %v6384_v21 }
 0xd09   :  { %v6496_v42 = vsub.f32 %v6400_v8, %v6475_v23 }
 0xd0a   :  { %v6480_v36 = vpop.permute.xlu0 %6479 }
 0xd0b   :  { %v8434_v37 = vpop.eup %8433  ;;  %v6497_v24 = vsub.f32 %v6401_v5, %v6480_v36  ;;  %v6526_v53 = vmul.f32 1.442695, %v6496_v42  ;;  %v11797_v42 = vld [vmem:[%s12091_s19] ss:$0 sm:$0xff] }
 0xd0c   :  { %v8436_v33 = vpop.eup %8435  ;;  %v6543_v60 = vmul.f32 %v8434_v37, %v12451_v15 }
 0xd0d   :  { %v6542_v30 = vmul.f32 %v8436_v33, %v12446_v18  ;;  %v6528_v51 = vmul.f32 1.442695, %v6497_v24 }
 0xd0f   :  { %v6552_v14 = vpack.c.bf16 %v6543_v60, %v6542_v30  ;;  %8437 = vpow2.f32 %v6528_v51 }
 0xd10   :  { %8439 = vpow2.f32 %v6526_v53 }
 0xd12   :  { %6587 = vmatmul.bf16.gmra.mxu3 %v6551_v27  ;;  %6700 = vmatmul.bf16.gmra.mxu0 %v6551_v27 }
 0xd15   :  { %v8438_v31 = vpop.eup %8437 }
 0xd16   :  { %v8440_v40 = vpop.eup %8439  ;;  %v6545_v41 = vmul.f32 %v8438_v31, %v12463_v35 }
 0xd17   :  { %v6544_v59 = vmul.f32 %v8440_v40, %v12461_v1 }
 0xd19   :  { %v6553_v26 = vpack.c.bf16 %v6545_v41, %v6544_v59 }
 0xd22   :  { %6592 = vmatmul.bf16.gmra.mxu3 %v6552_v14  ;;  %6705 = vmatmul.bf16.gmra.mxu0 %v6552_v14 }
 0xd32   :  { %6597 = vmatmul.bf16.gmra.mxu3 %v6553_v26  ;;  %6710 = vmatmul.bf16.gmra.mxu0 %v6553_v26 }
 0xd3f   :  { %v6676_v15 = vpop.f32.mrf.mxu0 }
 0xd40   :  { %v6716_v32 = vmax.f32 %v6676_v15, 1e-30 }
 0xd42   :  { %8441 = vrcp.f32 %v6716_v32 }
 0xd45   :  { %v6563_v52 = vpop.f32.mrf.mxu3 }
 0xd47   :  { %v6678_v18 = vpop.f32.mrf.mxu0 }
 0xd48   :  { %v8442_v47 = vpop.eup %8441  ;;  %v6717_v2 = vmax.f32 %v6678_v18, 1e-30 }
 0xd49   :  { %6750 = vperm.xlu1 %8020, %v8442_v47  }
 0xd4a   :  { %8443 = vrcp.f32 %v6717_v2 }
 0xd4d   :  { %v6565_v58 = vpop.f32.mrf.mxu3 }
 0xd4f   :  { %v6681_v16 = vpop.f32.mrf.mxu0 }
 0xd50   :  { %v8444_v43 = vpop.eup %8443  ;;  %v6718_v63 = vmax.f32 %v6681_v16, 1e-30 }
 0xd51   :  { %6755 = vperm.xlu2 %8018, %v8444_v43  }
 0xd52   :  { %8445 = vrcp.f32 %v6718_v63 }
 0xd55   :  { %v6568_v8 = vpop.f32.mrf.mxu3 }
 0xd57   :  { %v6683_v44 = vpop.f32.mrf.mxu0 }
 0xd58   :  { %v8446_v35 = vpop.eup %8445  ;;  %v6719_v45 = vmax.f32 %v6683_v44, 1e-30 }
 0xd59   :  { %6760 = vperm.xlu0 %8019, %v8446_v35  }
 0xd5a   :  { %8447 = vrcp.f32 %v6719_v45 }
 0xd5d   :  { %v6570_v23 = vpop.f32.mrf.mxu3 }
 0xd5f   :  { %v6686_v1 = vpop.f32.mrf.mxu0 }
 0xd60   :  { %v8448_v55 = vpop.eup %8447  ;;  %v6720_v11 = vmax.f32 %v6686_v1, 1e-30 }
 0xd61   :  { %6765 = vperm.xlu1 %8020, %v8448_v55  }
 0xd62   :  { %8449 = vrcp.f32 %v6720_v11 }
 0xd65   :  { %v6573_v40 = vpop.f32.mrf.mxu3 }
 0xd67   :  { %v6688_v19 = vpop.f32.mrf.mxu0 }
 0xd68   :  { %v8450_v46 = vpop.eup %8449  ;;  %v6721_v56 = vmax.f32 %v6688_v19, 1e-30 }
 0xd69   :  { %6770 = vperm.xlu2 %8018, %v8450_v46  }
 0xd6a   :  { %8451 = vrcp.f32 %v6721_v56 }
 0xd6d   :  { %v6575_v32 = vpop.f32.mrf.mxu3 }
 0xd6f   :  { %v6691_v38 = vpop.f32.mrf.mxu0 }
 0xd70   :  { %v8452_v57 = vpop.eup %8451  ;;  %v6722_v3 = vmax.f32 %v6691_v38, 1e-30 }
 0xd71   :  { %6775 = vperm.xlu0 %8019, %v8452_v57  }
 0xd72   :  { %8453 = vrcp.f32 %v6722_v3 }
 0xd75   :  { %v6578_v43 = vpop.f32.mrf.mxu3 }
 0xd77   :  { %v6693_v13 = vpop.f32.mrf.mxu0 }
 0xd78   :  { %v8454_v6 = vpop.eup %8453  ;;  %v6723_v39 = vmax.f32 %v6693_v13, 1e-30 }
 0xd79   :  { %6780 = vperm.xlu1 %8020, %v8454_v6  }
 0xd7a   :  { %8455 = vrcp.f32 %v6723_v39 }
 0xd7d   :  { %v6580_v35 = vpop.f32.mrf.mxu3 }
 0xd7f   :  { %v6696_v22 = vpop.f32.mrf.mxu0 }
 0xd80   :  { %v8456_v28 = vpop.eup %8455  ;;  %v6724_v50 = vmax.f32 %v6696_v22, 1e-30 }
 0xd81   :  { %6785 = vperm.xlu2 %8018, %v8456_v28  }
 0xd82   :  { %8457 = vrcp.f32 %v6724_v50 }
 0xd85   :  { %v6583_v46 = vpop.f32.mrf.mxu3 }
 0xd87   :  { %v6698_v25 = vpop.f32.mrf.mxu0 }
 0xd88   :  { %v8458_v54 = vpop.eup %8457  ;;  %v6725_v48 = vmax.f32 %v6698_v25, 1e-30 }
 0xd89   :  { %6790 = vperm.xlu0 %8019, %v8458_v54  }
 0xd8a   :  { %8459 = vrcp.f32 %v6725_v48 }
 0xd8d   :  { %v6585_v13 = vpop.f32.mrf.mxu3 }
 0xd8f   :  { %v6701_v20 = vpop.f32.mrf.mxu0 }
 0xd90   :  { %v8460_v49 = vpop.eup %8459  ;;  %v6726_v0 = vmax.f32 %v6701_v20, 1e-30 }
 0xd91   :  { %6795 = vperm.xlu1 %8020, %v8460_v49  }
 0xd92   :  { %8461 = vrcp.f32 %v6726_v0 }
 0xd95   :  { %v6588_v28 = vpop.f32.mrf.mxu3 }
 0xd97   :  { %v6703_v10 = vpop.f32.mrf.mxu0 }
 0xd98   :  { %v8462_v61 = vpop.eup %8461  ;;  %v6727_v4 = vmax.f32 %v6703_v10, 1e-30 }
 0xd99   :  { %6800 = vperm.xlu2 %8018, %v8462_v61  }
 0xd9a   :  { %8463 = vrcp.f32 %v6727_v4 }
 0xd9d   :  { %v6590_v49 = vpop.f32.mrf.mxu3 }
 0xd9f   :  { %v6706_v34 = vpop.f32.mrf.mxu0 }
 0xda0   :  { %v8464_v7 = vpop.eup %8463  ;;  %v6728_v27 = vmax.f32 %v6706_v34, 1e-30 }
 0xda1   :  { %6805 = vperm.xlu0 %8019, %v8464_v7  }
 0xda2   :  { %8465 = vrcp.f32 %v6728_v27 }
 0xda5   :  { %v6593_v4 = vpop.f32.mrf.mxu3 }
 0xda7   :  { %v6708_v29 = vpop.f32.mrf.mxu0 }
 0xda8   :  { %v8466_v9 = vpop.eup %8465  ;;  %v6729_v17 = vmax.f32 %v6708_v29, 1e-30 }
 0xda9   :  { %6810 = vperm.xlu1 %8020, %v8466_v9  }
 0xdaa   :  { %8467 = vrcp.f32 %v6729_v17 }
 0xdab   :  { %v6756_v14 = vpop.permute.xlu2 %6755 }
 0xdac   :  { %v6829_v31 = vmul.f32 %v6756_v14, %v6565_v58 }
 0xdad   :  { %v6595_v7 = vpop.f32.mrf.mxu3 }
 0xdae   :  { %v6849_v41 = vadd.f32 %v11797_v42, %v6829_v31 }
 0xdaf   :  { %v6711_v21 = vpop.f32.mrf.mxu0 }
 0xdb0   :  { %v8468_v36 = vpop.eup %8467  ;;  %v6730_v37 = vmax.f32 %v6711_v21, 1e-30 }
 0xdb1   :  { %6815 = vperm.xlu2 %8018, %v8468_v36  }
 0xdb2   :  { %8469 = vrcp.f32 %v6730_v37 }
 0xdb5   :  { %v6598_v9 = vpop.f32.mrf.mxu3 }
 0xdb7   :  { %v6713_v5 = vpop.f32.mrf.mxu0 }
 0xdb8   :  { %v8470_v33 = vpop.eup %8469  ;;  %v6731_v24 = vmax.f32 %v6713_v5, 1e-30 }
 0xdb9   :  { %6820 = vperm.xlu0 %8019, %v8470_v33  }
 0xdba   :  { %8471 = vrcp.f32 %v6731_v24  ;;  %v11834_v24 = vld [vmem:[%s12093_s21] ss:$0 sm:$0xff] }
 0xdbb   :  { %v6751_v60 = vpop.permute.xlu1 %6750 }
 0xdbc   :  { %v6828_v30 = vmul.f32 %v6751_v60, %v6563_v52 }
 0xdbd   :  { %v6600_v37 = vpop.f32.mrf.mxu3 }
 0xdbe   :  { %v6848_v51 = vadd.f32 %v11797_v42, %v6828_v30 }
 0xdc0   :  { %v8472_v53 = vpop.eup %8471  ;;  %7655 = vmatmul.msk.f32.vlgmr.msrb.gmra.mxu1 %vm140_vm0, %v6848_v51 }
 0xdc1   :  { %6825 = vperm.xlu1 %8020, %v8472_v53  }
 0xdc3   :  { %v6771_v16 = vpop.permute.xlu2 %6770 }
 0xdc4   :  { %v6832_v63 = vmul.f32 %v6771_v16, %v6573_v40 }
 0xdc6   :  { %v6852_v44 = vadd.f32 %v11797_v42, %v6832_v63 }
 0xdc8   :  { %7656 = vmatmul.msk.f32.gmra.mxu1 %vm140_vm0, %v6849_v41 }
 0xdcb   :  { %v6761_v59 = vpop.permute.xlu0 %6760 }
 0xdcc   :  { %v6830_v26 = vmul.f32 %v6761_v59, %v6568_v8 }
 0xdce   :  { %v6850_v15 = vadd.f32 %v11797_v42, %v6830_v26 }
 0xdd0   :  { %7657 = vmatmul.msk.f32.gmra.mxu1 %vm140_vm0, %v6850_v15 }
 0xdd3   :  { %v6766_v18 = vpop.permute.xlu1 %6765 }
 0xdd4   :  { %v6831_v47 = vmul.f32 %v6766_v18, %v6570_v23 }
 0xdd6   :  { %v6851_v2 = vadd.f32 %v11797_v42, %v6831_v47 }
 0xdd8   :  { %7658 = vmatmul.msk.f32.gmra.mxu1 %vm140_vm0, %v6851_v2 }
 0xddb   :  { %v6786_v38 = vpop.permute.xlu2 %6785 }
 0xddc   :  { %v6835_v57 = vmul.f32 %v6786_v38, %v6580_v35 }
 0xdde   :  { %v6855_v3 = vadd.f32 %v11797_v42, %v6835_v57 }
 0xde0   :  { %7659 = vmatmul.msk.f32.gmra.mxu1 %vm140_vm0, %v6852_v44 }
 0xde3   :  { %v6776_v45 = vpop.permute.xlu0 %6775 }
 0xde4   :  { %v6833_v1 = vmul.f32 %v6776_v45, %v6575_v32 }
 0xde6   :  { %v6853_v55 = vadd.f32 %v11797_v42, %v6833_v1 }
 0xde8   :  { %7660 = vmatmul.msk.f32.gmra.mxu1 %vm140_vm0, %v6853_v55 }
 0xdeb   :  { %v6781_v11 = vpop.permute.xlu1 %6780 }
 0xdec   :  { %v6834_v19 = vmul.f32 %v6781_v11, %v6578_v43 }
 0xdee   :  { %v6854_v56 = vadd.f32 %v11797_v42, %v6834_v19 }
 0xdf0   :  { %7661 = vmatmul.msk.f32.gmra.mxu1 %vm140_vm0, %v6854_v56 }
 0xdf3   :  { %v6801_v48 = vpop.permute.xlu2 %6800 }
 0xdf4   :  { %v6838_v20 = vmul.f32 %v6801_v48, %v6588_v28 }
 0xdf6   :  { %v6858_v0 = vadd.f32 %v11797_v42, %v6838_v20 }
 0xdf8   :  { %7662 = vmatmul.msk.f32.gmra.mxu1 %vm140_vm0, %v6855_v3 }
 0xdfb   :  { %v6791_v6 = vpop.permute.xlu0 %6790 }
 0xdfc   :  { %v6836_v39 = vmul.f32 %v6791_v6, %v6583_v46 }
 0xdfe   :  { %v6856_v22 = vadd.f32 %v11797_v42, %v6836_v39 }
 0xe00   :  { %7663 = vmatmul.msk.f32.gmra.mxu1 %vm140_vm0, %v6856_v22 }
 0xe03   :  { %v6796_v50 = vpop.permute.xlu1 %6795 }
 0xe04   :  { %v6837_v25 = vmul.f32 %v6796_v50, %v6585_v13 }
 0xe06   :  { %v6857_v54 = vadd.f32 %v11797_v42, %v6837_v25 }
 0xe08   :  { %7664 = vmatmul.msk.f32.gmra.mxu1 %vm140_vm0, %v6857_v54 }
 0xe0b   :  { %v6816_v27 = vpop.permute.xlu2 %6815 }
 0xe0c   :  { %v6841_v58 = vmul.f32 %v6816_v27, %v6595_v7 }
 0xe0e   :  { %v6861_v29 = vadd.f32 %v11797_v42, %v6841_v58 }
 0xe10   :  { %7665 = vmatmul.msk.f32.gmra.mxu1 %vm140_vm0, %v6858_v0 }
 0xe13   :  { %v6806_v10 = vpop.permute.xlu0 %6805 }
 0xe14   :  { %v6839_v61 = vmul.f32 %v6806_v10, %v6590_v49 }
 0xe16   :  { %v6859_v52 = vadd.f32 %v11797_v42, %v6839_v61 }
 0xe18   :  { %7666 = vmatmul.msk.f32.gmra.mxu1 %vm140_vm0, %v6859_v52 }
 0xe1b   :  { %v6811_v12 = vpop.permute.xlu1 %6810 }
 0xe1c   :  { %v6840_v62 = vmul.f32 %v6811_v12, %v6593_v4 }
 0xe1e   :  { %v6860_v34 = vadd.f32 %v11797_v42, %v6840_v62 }
 0xe20   :  { %7667 = vmatmul.msk.f32.gmra.mxu1 %vm140_vm0, %v6860_v34 }
 0xe28   :  { %7668 = vmatmul.msk.f32.gmra.mxu1 %vm140_vm0, %v6861_v29 }
 0xe2b   :  { %v6821_v17 = vpop.permute.xlu0 %6820 }
 0xe2c   :  { %v6842_v21 = vmul.f32 %v6821_v17, %v6598_v9 }
 0xe2e   :  { %v6862_v36 = vadd.f32 %v11797_v42, %v6842_v21 }
 0xe30   :  { %7669 = vmatmul.msk.f32.gmra.mxu1 %vm140_vm0, %v6862_v36 }
 0xe33   :  { %v6826_v8 = vpop.permute.xlu1 %6825 }
 0xe34   :  { %v6843_v5 = vmul.f32 %v6826_v8, %v6600_v37 }
 0xe36   :  { %v6863_v33 = vadd.f32 %v11797_v42, %v6843_v5 }
 0xe38   :  { %7670 = vmatmul.msk.f32.gmra.mxu1 %vm140_vm0, %v6863_v33 }
 0xe3d   :  { %v6935_v23 = vpop.f32.mrf.mxu1 }
 0xe3e   :  { %v6936_v60 = vadd.f32 %v11834_v24, %v6935_v23 }
 0xe40   :  { %v6984_v30 = vsel %vm6983_vm4, %v6936_v60, -inf }
 0xe41   :  { %6985 = vmax.xlane.f32.xlu2 %v6984_v30 }
 0xe45   :  { %v6938_v51 = vpop.f32.mrf.mxu1 }
 0xe46   :  { %v11839_v14 = vadd.f32 %v11834_v24, %v6938_v51 }
 0xe48   :  { %v6987_v42 = vsel %vm6983_vm4, %v11839_v14, -inf }
 0xe49   :  { %6988 = vmax.xlane.f32.xlu0 %v6987_v42 }
 0xe4d   :  { %v6941_v53 = vpop.f32.mrf.mxu1 }
 0xe4e   :  { %v11844_v31 = vadd.f32 %v11834_v24, %v6941_v53 }
 0xe50   :  { %v6990_v40 = vsel %vm6983_vm4, %v11844_v31, -inf }
 0xe51   :  { %6991 = vmax.xlane.f32.xlu1 %v6990_v40 }
 0xe55   :  { %v6944_v41 = vpop.f32.mrf.mxu1 }
 0xe56   :  { %v11849_v59 = vadd.f32 %v11834_v24, %v6944_v41 }
 0xe58   :  { %v6993_v26 = vsel %vm6983_vm4, %v11849_v59, -inf }
 0xe59   :  { %6994 = vmax.xlane.f32.xlu2 %v6993_v26 }
 0xe5d   :  { %v6947_v15 = vpop.f32.mrf.mxu1 }
 0xe5e   :  { %v11854_v32 = vadd.f32 %v11834_v24, %v6947_v15 }
 0xe60   :  { %v6996_v18 = vsel %vm6983_vm4, %v11854_v32, -inf }
 0xe61   :  { %6997 = vmax.xlane.f32.xlu0 %v6996_v18 }
 0xe65   :  { %v6950_v47 = vpop.f32.mrf.mxu1 }
 0xe66   :  { %v11859_v2 = vadd.f32 %v11834_v24, %v6950_v47 }
 0xe68   :  { %v6999_v16 = vsel %vm6983_vm4, %v11859_v2, -inf }
 0xe69   :  { %7000 = vmax.xlane.f32.xlu1 %v6999_v16 }
 0xe6d   :  { %v6953_v43 = vpop.f32.mrf.mxu1 }
 0xe6e   :  { %v11864_v63 = vadd.f32 %v11834_v24, %v6953_v43 }
 0xe70   :  { %v7002_v44 = vsel %vm6983_vm4, %v11864_v63, -inf }
 0xe71   :  { %7003 = vmax.xlane.f32.xlu2 %v7002_v44 }
 0xe75   :  { %v6956_v35 = vpop.f32.mrf.mxu1 }
 0xe76   :  { %v11869_v45 = vadd.f32 %v11834_v24, %v6956_v35 }
 0xe78   :  { %v7005_v1 = vsel %vm6983_vm4, %v11869_v45, -inf }
 0xe79   :  { %7006 = vmax.xlane.f32.xlu0 %v7005_v1 }
 0xe7d   :  { %v6959_v55 = vpop.f32.mrf.mxu1 }
 0xe7e   :  { %v11874_v11 = vadd.f32 %v11834_v24, %v6959_v55 }
 0xe80   :  { %v7008_v19 = vsel %vm6983_vm4, %v11874_v11, -inf }
 0xe81   :  { %7009 = vmax.xlane.f32.xlu1 %v7008_v19 }
 0xe85   :  { %v6962_v46 = vpop.f32.mrf.mxu1 }
 0xe86   :  { %v11879_v56 = vadd.f32 %v11834_v24, %v6962_v46 }
 0xe88   :  { %v7011_v38 = vsel %vm6983_vm4, %v11879_v56, -inf }
 0xe89   :  { %7012 = vmax.xlane.f32.xlu2 %v7011_v38 }
 0xe8d   :  { %v6965_v57 = vpop.f32.mrf.mxu1 }
 0xe8e   :  { %v11884_v3 = vadd.f32 %v11834_v24, %v6965_v57 }
 0xe90   :  { %v7014_v13 = vsel %vm6983_vm4, %v11884_v3, -inf }
 0xe91   :  { %7015 = vmax.xlane.f32.xlu0 %v7014_v13 }
 0xe95   :  { %v6968_v6 = vpop.f32.mrf.mxu1 }
 0xe96   :  { %v11889_v39 = vadd.f32 %v11834_v24, %v6968_v6 }
 0xe98   :  { %v7017_v22 = vsel %vm6983_vm4, %v11889_v39, -inf }
 0xe99   :  { %7018 = vmax.xlane.f32.xlu1 %v7017_v22 }
 0xe9d   :  { %v6971_v28 = vpop.f32.mrf.mxu1 }
 0xe9e   :  { %v11894_v50 = vadd.f32 %v11834_v24, %v6971_v28 }
 0xea0   :  { %v7020_v25 = vsel %vm6983_vm4, %v11894_v50, -inf }
 0xea1   :  { %7021 = vmax.xlane.f32.xlu2 %v7020_v25 }
 0xea5   :  { %v6974_v54 = vpop.f32.mrf.mxu1 }
 0xea6   :  { %v11899_v48 = vadd.f32 %v11834_v24, %v6974_v54 }
 0xea8   :  { %v7023_v20 = vsel %vm6983_vm4, %v11899_v48, -inf }
 0xea9   :  { %7024 = vmax.xlane.f32.xlu0 %v7023_v20 }
 0xead   :  { %v6977_v49 = vpop.f32.mrf.mxu1 }
 0xeae   :  { %v11904_v0 = vadd.f32 %v11834_v24, %v6977_v49 }
 0xeb0   :  { %v7026_v10 = vsel %vm6983_vm4, %v11904_v0, -inf }
 0xeb1   :  { %7027 = vmax.xlane.f32.xlu1 %v7026_v10 }
 0xeb4   :  { %v6986_v61 = vpop.xlane.xlu2 %6985 }
 0xeb5   :  { %v11908_v4 = vsub.f32 %v6936_v60, %v6986_v61  ;;  %v6980_v52 = vpop.f32.mrf.mxu1 }
 0xeb6   :  { %v11911_v12 = vadd.f32 %v11834_v24, %v6980_v52 }
 0xeb7   :  { %v7048_v62 = vmul.f32 1.442695, %v11908_v4 }
 0xeb8   :  { %v7029_v34 = vsel %vm6983_vm4, %v11911_v12, -inf }
 0xeb9   :  { %8473 = vpow2.f32 %v7048_v62  ;;  %7030 = vmax.xlane.f32.xlu2 %v7029_v34 }
 0xebc   :  { %v6989_v7 = vpop.xlane.xlu0 %6988 }
 0xebd   :  { %v11917_v27 = vsub.f32 %v11839_v14, %v6989_v7 }
 0xebf   :  { %v8474_v58 = vpop.eup %8473  ;;  %v7050_v29 = vmul.f32 1.442695, %v11917_v27 }
 0xec0   :  { %v7080_v9 = vsel %vm6983_vm4, %v8474_v58, 0.0 }
 0xec1   :  { %8475 = vpow2.f32 %v7050_v29  ;;  %7081 = vadd.xlane.f32.xlu0 %v7080_v9 }
 0xec4   :  { %v6992_v17 = vpop.xlane.xlu1 %6991 }
 0xec5   :  { %v11922_v21 = vsub.f32 %v11844_v31, %v6992_v17 }
 0xec7   :  { %v8476_v36 = vpop.eup %8475  ;;  %v7052_v37 = vmul.f32 1.442695, %v11922_v21 }
 0xec8   :  { %v7083_v8 = vsel %vm6983_vm4, %v8476_v36, 0.0 }
 0xec9   :  { %8477 = vpow2.f32 %v7052_v37  ;;  %7084 = vadd.xlane.f32.xlu1 %v7083_v8 }
 0xecc   :  { %v6995_v5 = vpop.xlane.xlu2 %6994 }
 0xecd   :  { %v11927_v33 = vsub.f32 %v11849_v59, %v6995_v5 }
 0xecf   :  { %v8478_v24 = vpop.eup %8477  ;;  %v7054_v23 = vmul.f32 1.442695, %v11927_v33 }
 0xed0   :  { %v7086_v60 = vsel %vm6983_vm4, %v8478_v24, 0.0 }
 0xed1   :  { %8479 = vpow2.f32 %v7054_v23  ;;  %7087 = vadd.xlane.f32.xlu2 %v7086_v60 }
 0xed4   :  { %v6998_v30 = vpop.xlane.xlu0 %6997 }
 0xed5   :  { %v11932_v51 = vsub.f32 %v11854_v32, %v6998_v30 }
 0xed7   :  { %v8480_v14 = vpop.eup %8479  ;;  %v7056_v42 = vmul.f32 1.442695, %v11932_v51 }
 0xed8   :  { %v7089_v53 = vsel %vm6983_vm4, %v8480_v14, 0.0 }
 0xed9   :  { %8481 = vpow2.f32 %v7056_v42  ;;  %7090 = vadd.xlane.f32.xlu0 %v7089_v53 }
 0xedc   :  { %v7001_v31 = vpop.xlane.xlu1 %7000 }
 0xedd   :  { %v11937_v40 = vsub.f32 %v11859_v2, %v7001_v31 }
 0xedf   :  { %v8482_v41 = vpop.eup %8481  ;;  %v7058_v59 = vmul.f32 1.442695, %v11937_v40 }
 0xee0   :  { %v7092_v26 = vsel %vm6983_vm4, %v8482_v41, 0.0 }
 0xee1   :  { %8483 = vpow2.f32 %v7058_v59  ;;  %7093 = vadd.xlane.f32.xlu1 %v7092_v26 }
 0xee4   :  { %v7004_v15 = vpop.xlane.xlu2 %7003 }
 0xee5   :  { %v11942_v32 = vsub.f32 %v11864_v63, %v7004_v15 }
 0xee7   :  { %v8484_v18 = vpop.eup %8483  ;;  %v7060_v47 = vmul.f32 1.442695, %v11942_v32 }
 0xee8   :  { %v7095_v16 = vsel %vm6983_vm4, %v8484_v18, 0.0 }
 0xee9   :  { %8485 = vpow2.f32 %v7060_v47  ;;  %7096 = vadd.xlane.f32.xlu2 %v7095_v16 }
 0xeec   :  { %v7007_v2 = vpop.xlane.xlu0 %7006 }
 0xeed   :  { %v11947_v43 = vsub.f32 %v11869_v45, %v7007_v2 }
 0xeef   :  { %v8486_v44 = vpop.eup %8485  ;;  %v7062_v35 = vmul.f32 1.442695, %v11947_v43 }
 0xef0   :  { %v7098_v1 = vsel %vm6983_vm4, %v8486_v44, 0.0 }
 0xef1   :  { %8487 = vpow2.f32 %v7062_v35  ;;  %7099 = vadd.xlane.f32.xlu0 %v7098_v1 }
 0xef4   :  { %v7010_v63 = vpop.xlane.xlu1 %7009 }
 0xef5   :  { %v11952_v55 = vsub.f32 %v11874_v11, %v7010_v63 }
 0xef7   :  { %v8488_v19 = vpop.eup %8487  ;;  %v7064_v46 = vmul.f32 1.442695, %v11952_v55 }
 0xef8   :  { %v7101_v38 = vsel %vm6983_vm4, %v8488_v19, 0.0 }
 0xef9   :  { %8489 = vpow2.f32 %v7064_v46  ;;  %7102 = vadd.xlane.f32.xlu1 %v7101_v38 }
 0xefc   :  { %v7013_v45 = vpop.xlane.xlu2 %7012 }
 0xefd   :  { %v11957_v57 = vsub.f32 %v11879_v56, %v7013_v45 }
 0xeff   :  { %v8490_v13 = vpop.eup %8489  ;;  %v7066_v6 = vmul.f32 1.442695, %v11957_v57 }
 0xf00   :  { %v7104_v22 = vsel %vm6983_vm4, %v8490_v13, 0.0 }
 0xf01   :  { %8491 = vpow2.f32 %v7066_v6  ;;  %7105 = vadd.xlane.f32.xlu2 %v7104_v22 }
 0xf04   :  { %v7016_v11 = vpop.xlane.xlu0 %7015 }
 0xf05   :  { %v11962_v28 = vsub.f32 %v11884_v3, %v7016_v11 }
 0xf07   :  { %v8492_v25 = vpop.eup %8491  ;;  %v7068_v54 = vmul.f32 1.442695, %v11962_v28 }
 0xf08   :  { %v7107_v20 = vsel %vm6983_vm4, %v8492_v25, 0.0 }
 0xf09   :  { %8493 = vpow2.f32 %v7068_v54  ;;  %7108 = vadd.xlane.f32.xlu0 %v7107_v20 }
 0xf0c   :  { %v7019_v56 = vpop.xlane.xlu1 %7018 }
 0xf0d   :  { %v11967_v49 = vsub.f32 %v11889_v39, %v7019_v56 }
 0xf0f   :  { %v8494_v10 = vpop.eup %8493  ;;  %v7070_v61 = vmul.f32 1.442695, %v11967_v49 }
 0xf10   :  { %v7110_v52 = vsel %vm6983_vm4, %v8494_v10, 0.0 }
 0xf11   :  { %8495 = vpow2.f32 %v7070_v61  ;;  %7111 = vadd.xlane.f32.xlu1 %v7110_v52 }
 0xf14   :  { %v7022_v3 = vpop.xlane.xlu2 %7021 }
 0xf15   :  { %v11972_v62 = vsub.f32 %v11894_v50, %v7022_v3 }
 0xf17   :  { %v8496_v34 = vpop.eup %8495  ;;  %v7072_v7 = vmul.f32 1.442695, %v11972_v62 }
 0xf18   :  { %v7113_v58 = vsel %vm6983_vm4, %v8496_v34, 0.0 }
 0xf19   :  { %8497 = vpow2.f32 %v7072_v7  ;;  %7114 = vadd.xlane.f32.xlu2 %v7113_v58 }
 0xf1c   :  { %v7025_v39 = vpop.xlane.xlu0 %7024 }
 0xf1d   :  { %v11977_v29 = vsub.f32 %v11899_v48, %v7025_v39 }
 0xf1f   :  { %v8498_v9 = vpop.eup %8497  ;;  %v7074_v17 = vmul.f32 1.442695, %v11977_v29 }
 0xf20   :  { %v7116_v36 = vsel %vm6983_vm4, %v8498_v9, 0.0 }
 0xf21   :  { %8499 = vpow2.f32 %v7074_v17  ;;  %7117 = vadd.xlane.f32.xlu0 %v7116_v36 }
 0xf24   :  { %v7028_v50 = vpop.xlane.xlu1 %7027 }
 0xf25   :  { %v11982_v37 = vsub.f32 %v11904_v0, %v7028_v50 }
 0xf27   :  { %v8500_v8 = vpop.eup %8499  ;;  %v7076_v5 = vmul.f32 1.442695, %v11982_v37 }
 0xf28   :  { %v7119_v24 = vsel %vm6983_vm4, %v8500_v8, 0.0 }
 0xf29   :  { %8501 = vpow2.f32 %v7076_v5  ;;  %7120 = vadd.xlane.f32.xlu1 %v7119_v24 }
 0xf2c   :  { %v7031_v48 = vpop.xlane.xlu2 %7030 }
 0xf2d   :  { %v11987_v23 = vsub.f32 %v11911_v12, %v7031_v48 }
 0xf2f   :  { %v8502_v60 = vpop.eup %8501  ;;  %v7078_v30 = vmul.f32 1.442695, %v11987_v23 }
 0xf30   :  { %v7122_v14 = vsel %vm6983_vm4, %v8502_v60, 0.0 }
 0xf31   :  { %8503 = vpow2.f32 %v7078_v30  ;;  %7123 = vadd.xlane.f32.xlu2 %v7122_v14 }
 0xf34   :  { %v7082_v0 = vpop.xlane.xlu0 %7081 }
 0xf35   :  { %8505 = vlog2.f32 %v7082_v0 }
 0xf37   :  { %v8504_v42 = vpop.eup %8503 }
 0xf38   :  { %v7125_v53 = vsel %vm6983_vm4, %v8504_v42, 0.0 }
 0xf39   :  { %7126 = vadd.xlane.f32.xlu0 %v7125_v53 }
 0xf3b   :  { %v8506_v31 = vpop.eup %8505 }
 0xf3c   :  { %v7129_v41 = vmul.f32 0.6931472, %v8506_v31  ;;  %v7085_v59 = vpop.xlane.xlu1 %7084 }
 0xf3d   :  { %8507 = vlog2.f32 %v7085_v59 }
 0xf3e   :  { %v7160_v12 = vsub.f32 %v11908_v4, %v7129_v41 }
 0xf40   :  { %7176 = vst.msk [vmem:[%s12094_s22] sm:$0xff] %vm6983_vm4, %v7160_v12 }
 0xf43   :  { %v8508_v26 = vpop.eup %8507 }
 0xf44   :  { %v7131_v15 = vmul.f32 0.6931472, %v8508_v26  ;;  %v7088_v18 = vpop.xlane.xlu2 %7087 }
 0xf45   :  { %8509 = vlog2.f32 %v7088_v18 }
 0xf46   :  { %v7161_v47 = vsub.f32 %v11917_v27, %v7131_v15 }
 0xf48   :  { %7177 = vst.msk [vmem:[%s12094_s22 + $0x8] sm:$0xff] %vm6983_vm4, %v7161_v47 }
 0xf4b   :  { %v8510_v16 = vpop.eup %8509 }
 0xf4c   :  { %v7133_v2 = vmul.f32 0.6931472, %v8510_v16  ;;  %v7091_v44 = vpop.xlane.xlu0 %7090 }
 0xf4d   :  { %8511 = vlog2.f32 %v7091_v44 }
 0xf4e   :  { %v7162_v4 = vsub.f32 %v11922_v21, %v7133_v2 }
 0xf50   :  { %7178 = vst.msk [vmem:[%s12094_s22 + $0x10] sm:$0xff] %vm6983_vm4, %v7162_v4 }
 0xf53   :  { %v8512_v35 = vpop.eup %8511 }
 0xf54   :  { %v7135_v1 = vmul.f32 0.6931472, %v8512_v35  ;;  %v7094_v63 = vpop.xlane.xlu1 %7093 }
 0xf55   :  { %8513 = vlog2.f32 %v7094_v63 }
 0xf56   :  { %v7163_v27 = vsub.f32 %v11927_v33, %v7135_v1 }
 0xf58   :  { %7179 = vst.msk [vmem:[%s12094_s22 + $0x18] sm:$0xff] %vm6983_vm4, %v7163_v27 }
 0xf5b   :  { %v8514_v19 = vpop.eup %8513 }
 0xf5c   :  { %v7137_v46 = vmul.f32 0.6931472, %v8514_v19  ;;  %v7097_v38 = vpop.xlane.xlu2 %7096 }
 0xf5d   :  { %8515 = vlog2.f32 %v7097_v38 }
 0xf5e   :  { %v7164_v21 = vsub.f32 %v11932_v51, %v7137_v46 }
 0xf60   :  { %7180 = vst.msk [vmem:[%s12094_s22 + $0x20] sm:$0xff] %vm6983_vm4, %v7164_v21 }
 0xf63   :  { %v8516_v45 = vpop.eup %8515 }
 0xf64   :  { %v7139_v13 = vmul.f32 0.6931472, %v8516_v45  ;;  %v7100_v6 = vpop.xlane.xlu0 %7099 }
 0xf65   :  { %8517 = vlog2.f32 %v7100_v6 }
 0xf66   :  { %v7165_v33 = vsub.f32 %v11937_v40, %v7139_v13 }
 0xf68   :  { %7181 = vst.msk [vmem:[%s12094_s22 + $0x28] sm:$0xff] %vm6983_vm4, %v7165_v33 }
 0xf6b   :  { %v8518_v22 = vpop.eup %8517 }
 0xf6c   :  { %v7141_v11 = vmul.f32 0.6931472, %v8518_v22  ;;  %v7103_v25 = vpop.xlane.xlu1 %7102 }
 0xf6d   :  { %8519 = vlog2.f32 %v7103_v25 }
 0xf6e   :  { %v7166_v51 = vsub.f32 %v11942_v32, %v7141_v11 }
 0xf70   :  { %7182 = vst.msk [vmem:[%s12094_s22 + $0x30] sm:$0xff] %vm6983_vm4, %v7166_v51 }
 0xf73   :  { %v8520_v54 = vpop.eup %8519 }
 0xf74   :  { %v7143_v20 = vmul.f32 0.6931472, %v8520_v54  ;;  %v7106_v56 = vpop.xlane.xlu2 %7105 }
 0xf75   :  { %8521 = vlog2.f32 %v7106_v56 }
 0xf76   :  { %v7167_v40 = vsub.f32 %v11947_v43, %v7143_v20 }
 0xf78   :  { %7183 = vst.msk [vmem:[%s12094_s22 + $0x38] sm:$0xff] %vm6983_vm4, %v7167_v40 }
 0xf7b   :  { %v8522_v10 = vpop.eup %8521 }
 0xf7c   :  { %v7145_v61 = vmul.f32 0.6931472, %v8522_v10  ;;  %v7109_v52 = vpop.xlane.xlu0 %7108 }
 0xf7d   :  { %8523 = vlog2.f32 %v7109_v52 }
 0xf7e   :  { %v7168_v32 = vsub.f32 %v11952_v55, %v7145_v61 }
 0xf80   :  { %7184 = vst.msk [vmem:[%s12094_s22 + $0x40] sm:$0xff] %vm6983_vm4, %v7168_v32 }
 0xf83   :  { %v8524_v3 = vpop.eup %8523 }
 0xf84   :  { %v7147_v34 = vmul.f32 0.6931472, %v8524_v3  ;;  %v7112_v7 = vpop.xlane.xlu1 %7111 }
 0xf85   :  { %8525 = vlog2.f32 %v7112_v7 }
 0xf86   :  { %v7169_v43 = vsub.f32 %v11957_v57, %v7147_v34 }
 0xf88   :  { %7185 = vst.msk [vmem:[%s12094_s22 + $0x48] sm:$0xff] %vm6983_vm4, %v7169_v43 }
 0xf8b   :  { %v8526_v58 = vpop.eup %8525 }
 0xf8c   :  { %v7149_v39 = vmul.f32 0.6931472, %v8526_v58  ;;  %v7115_v9 = vpop.xlane.xlu2 %7114 }
 0xf8d   :  { %8527 = vlog2.f32 %v7115_v9 }
 0xf8e   :  { %v7170_v55 = vsub.f32 %v11962_v28, %v7149_v39 }
 0xf90   :  { %7186 = vst.msk [vmem:[%s12094_s22 + $0x50] sm:$0xff] %vm6983_vm4, %v7170_v55 }
 0xf93   :  { %v8528_v17 = vpop.eup %8527 }
 0xf94   :  { %v7151_v36 = vmul.f32 0.6931472, %v8528_v17  ;;  %v7118_v50 = vpop.xlane.xlu0 %7117 }
 0xf95   :  { %8529 = vlog2.f32 %v7118_v50 }
 0xf96   :  { %v7171_v57 = vsub.f32 %v11967_v49, %v7151_v36 }
 0xf98   :  { %7187 = vst.msk [vmem:[%s12094_s22 + $0x58] sm:$0xff] %vm6983_vm4, %v7171_v57 }
 0xf9b   :  { %v8530_v8 = vpop.eup %8529 }
 0xf9c   :  { %v7153_v5 = vmul.f32 0.6931472, %v8530_v8  ;;  %v7121_v24 = vpop.xlane.xlu1 %7120 }
 0xf9d   :  { %8531 = vlog2.f32 %v7121_v24 }
 0xf9e   :  { %v7172_v28 = vsub.f32 %v11972_v62, %v7153_v5 }
 0xfa0   :  { %7188 = vst.msk [vmem:[%s12094_s22 + $0x60] sm:$0xff] %vm6983_vm4, %v7172_v28 }
 0xfa3   :  { %v8532_v48 = vpop.eup %8531 }
 0xfa4   :  { %v7155_v60 = vmul.f32 0.6931472, %v8532_v48  ;;  %v7124_v30 = vpop.xlane.xlu2 %7123 }
 0xfa5   :  { %8533 = vlog2.f32 %v7124_v30 }
 0xfa6   :  { %v7173_v49 = vsub.f32 %v11977_v29, %v7155_v60 }
 0xfa8   :  { %7189 = vst.msk [vmem:[%s12094_s22 + $0x68] sm:$0xff] %vm6983_vm4, %v7173_v49 }
 0xfab   :  { %v8534_v14 = vpop.eup %8533 }
 0xfac   :  { %v7157_v0 = vmul.f32 0.6931472, %v8534_v14  ;;  %v7127_v42 = vpop.xlane.xlu0 %7126 }
 0xfad   :  { %8535 = vlog2.f32 %v7127_v42 }
 0xfae   :  { %v7174_v62 = vsub.f32 %v11982_v37, %v7157_v0 }
 0xfb0   :  { %7190 = vst.msk [vmem:[%s12094_s22 + $0x70] sm:$0xff] %vm6983_vm4, %v7174_v62 }
 0xfb3   :  { %v8536_v53 = vpop.eup %8535 }
 0xfb4   :  { %v7159_v31 = vmul.f32 0.6931472, %v8536_v53 }
 0xfb6   :  { %v7175_v29 = vsub.f32 %v11987_v23, %v7159_v31 }
 0xfb8   :  { %7191 = vst.msk [vmem:[%s12094_s22 + $0x78] sm:$0xff] %vm6983_vm4, %v7175_v29 }

</bundles_post_ra>
